<compile_context>
chip_gen: v7x
topology: tpu7x:2x2x1
jax: 0.10.0
libtpu: 0.0.40
codegen_flags: <defaults>
</compile_context>

<pallas_src>
import jax
import jax.numpy as jnp
from jax.experimental import pallas as pl
from jax.experimental.pallas import tpu as pltpu

N_CLASSES = 5
CONV_K = 3
FC_IN = 8269                              # nn.Linear(8269, 5)
SEQ_LEN = 2 * FC_IN + (CONV_K - 1)        # 16540
LANE_PAD = pl.cdiv(SEQ_LEN, 128) * 128    # 16640 lanes (lane-dense, 128-multiple)


def _net_kernel(cw_ref, x_ref, wfc_ref, bfc_ref, logit_ref):
    # Conv parameters [w0, w1, w2, bias] from SMEM: scalar reads broadcast into
    # the VPU multiplies directly (no lane-extract from a padded VMEM tile).
    w0 = cw_ref[0]
    w1 = cw_ref[1]
    w2 = cw_ref[2]
    bc = cw_ref[3]

    x = x_ref[...]                                     # (bn, 16640); lanes >= 16540 are 0
    # Shifted taps via XLU lane rotation:  pltpu.roll(x, LANE_PAD - k)[j] == x[j + k]
    # (wrapped lanes only ever meet zero rows of wfc).
    x1 = pltpu.roll(x, shift=LANE_PAD - 1, axis=1)     # x[j + 1]
    x2 = pltpu.roll(x, shift=LANE_PAD - 2, axis=1)     # x[j + 2]

    # Conv1d(1, 1, 3) (cross-correlation, as PyTorch) at every position j, bias
    # deferred until after the pooling max.
    conv = w0 * x + w1 * x1 + w2 * x2                  # conv(x)[j] - bias
    conv_next = pltpu.roll(conv, shift=LANE_PAD - 1, axis=1)   # conv(x)[j+1] - bias

    # relu + max_pool1d(2):  max(relu(c[j]+b), relu(c[j+1]+b)) == max(max(c[j], c[j+1]) + b, 0)
    pooled = jnp.maximum(jnp.maximum(conv, conv_next) + bc, 0.0)

    # fc1.  Only rows 2*i (i < 8269) of wfc are non-zero, so the odd / tail /
    # wrapped lanes of `pooled` (finite by construction) contribute nothing.
    logits = jnp.dot(pooled, wfc_ref[...], preferred_element_type=jnp.float32)
    logit_ref[...] = logits + bfc_ref[...]


def _pick_block_n():
    """Per-generation default batch tile (rows per grid step)."""
    try:
        vmem = getattr(pltpu.get_tpu_info(), "vmem_capacity_bytes", 0)
    except Exception:
        vmem = 0
    # 128-MiB-VMEM chips (v5e/v6e): 256-row tiles amortize the ~0.35 us/step
    # overhead.  64-MiB chips (v7x) / unknown: 128 keeps the footprint safe and
    # the 1-D parallel grid >= 2 steps at large N for dual-TensorCore sharding.
    return 256 if vmem >= 100 * 1024 * 1024 else 128


def make_net_forward(conv_w, conv_b, fc_w, fc_b, *, block_n=None):
    """Build a jitted forward(x).  All parameter-layout prep happens once, here."""
    if block_n is None:
        block_n = _pick_block_n()
    assert block_n % 8 == 0

    # --- hoisted one-time parameter prep (becomes jit-time constants) ---
    # 4 conv scalars [w0, w1, w2, bias] -> SMEM operand.
    cw = jnp.concatenate(
        [conv_w.reshape(-1), conv_b.reshape(-1)]).astype(jnp.float32)          # (4,)
    # fc weight as (16640, 5): row 2*i holds fc_w[:, i]; every other row is zero,
    # so the kernel's full-resolution pooled vector multiplies straight in with no
    # even/odd deinterleave anywhere.
    wfc = jnp.zeros((LANE_PAD, N_CLASSES), jnp.float32)
    wfc = wfc.at[0:2 * FC_IN:2, :].set(fc_w.T.astype(jnp.float32))             # (16640, 5)
    bfc = fc_b.reshape(1, N_CLASSES).astype(jnp.float32)                       # (1, 5)

    @jax.jit
    def forward(x):
        n, c, l = x.shape
        if c != 1 or l != SEQ_LEN:
            raise ValueError(f"expected input (N, 1, {SEQ_LEN}), got {x.shape}")

        bn = min(block_n, ((n + 7) // 8) * 8)
        n_pad = ((n + bn - 1) // bn) * bn
        # Single fused layout op: squeeze the channel and zero-pad rows to the
        # batch tile / lanes 16540 -> 16640.  The zero (finite) tail is required:
        # the rolled / tail lanes feed only zero rows of wfc, and 0*finite == 0
        # while 0*NaN/Inf == NaN would poison the matmul.
        xp = jnp.pad(x[:, 0, :].astype(jnp.float32),
                     ((0, n_pad - n), (0, LANE_PAD - SEQ_LEN)))
        grid = (n_pad // bn,)

        # 2 input buffers + ~2 block-sized compiler temporaries + lane-padded
        # (16640,128) fc-weight double buffer + margin.
        vmem_limit = min(100 * 1024 * 1024,
                         (4 * bn * LANE_PAD + 2 * LANE_PAD * 128) * 4 + (8 << 20))

        logits = pl.pallas_call(
            _net_kernel,
            out_shape=jax.ShapeDtypeStruct((n_pad, N_CLASSES), jnp.float32),
            grid_spec=pltpu.PrefetchScalarGridSpec(
                num_scalar_prefetch=0,
                grid=grid,
                in_specs=[
                    # conv scalars: SMEM, no VMEM tile, no per-step DMA stream.
                    pl.BlockSpec(memory_space=pltpu.MemorySpace.SMEM),
                    # raw (lane-padded) input rows — the only large DMA stream.
                    pl.BlockSpec((bn, LANE_PAD), lambda i: (i, 0)),
                    # grid-invariant parameter blocks (constant index_map, fetched
                    # once by the pipeline).
                    pl.BlockSpec((LANE_PAD, N_CLASSES), lambda i: (0, 0)),   # fc weight
                    pl.BlockSpec((1, N_CLASSES), lambda i: (0, 0)),          # fc bias
                ],
                out_specs=pl.BlockSpec((bn, N_CLASSES), lambda i: (i, 0)),
            ),
            compiler_params=pltpu.CompilerParams(
                dimension_semantics=("parallel",),
                vmem_limit_bytes=vmem_limit,
            ),
        )(cw, xp, wfc, bfc)

        logits = logits[:n]
        # F.softmax(..., dim=1) over the size-1 channel axis: identically 1.0 for
        # finite logits (NaN-preserving), synthesized here instead of in-kernel.
        probs = jnp.exp(logits - logits).reshape(n, 1, N_CLASSES)
        return probs, logits

    return forward


if __name__ == "__main__":
    key = jax.random.PRNGKey(0)
    kx, kcw, kcb, kfw, kfb = jax.random.split(key, 5)

    batch = 2
    x = jax.random.normal(kx, (batch, 1, SEQ_LEN), dtype=jnp.float32)

    # Deterministic torch-style U(-1/sqrt(fan_in), 1/sqrt(fan_in)) parameter init.
    cbound = 1.0 / (1 * CONV_K) ** 0.5
    conv_w = jax.random.uniform(kcw, (1, 1, CONV_K), jnp.float32, -cbound, cbound)
    conv_b = jax.random.uniform(kcb, (1,), jnp.float32, -cbound, cbound)
    fbound = 1.0 / FC_IN ** 0.5
    fc_w = jax.random.uniform(kfw, (N_CLASSES, FC_IN), jnp.float32, -fbound, fbound)
    fc_b = jax.random.uniform(kfb, (N_CLASSES,), jnp.float32, -fbound, fbound)

    forward = make_net_forward(conv_w, conv_b, fc_w, fc_b)
    probs, logits = jax.block_until_ready(forward(x))

    # Pure-JAX reference (the logits make the check meaningful, since the dim=1
    # softmax output of the module is identically 1.0 for any input).
    def ref(xin):
        xs = xin[:, 0, :]
        conv = (conv_w[0, 0, 0] * xs[:, :-2]
                + conv_w[0, 0, 1] * xs[:, 1:-1]
                + conv_w[0, 0, 2] * xs[:, 2:]
                + conv_b[0])
        r = jnp.maximum(conv, 0.0)
        pooled = jnp.maximum(r[:, 0::2][:, :FC_IN], r[:, 1::2][:, :FC_IN])
        lg = pooled @ fc_w.T + fc_b
        return jax.nn.softmax(lg[:, None, :], axis=1), lg

    ref_probs, ref_logits = ref(x)
    assert probs.shape == (batch, 1, N_CLASSES)
    assert logits.shape == (batch, N_CLASSES)
    assert bool(jnp.allclose(logits, ref_logits, atol=1e-4, rtol=1e-4))
    assert bool(jnp.allclose(probs, ref_probs, atol=1e-6))
    print("KERNEL_OK")
</pallas_src>

<mosaic_0001>
module attributes {stable_mosaic.version = 11 : i64} {
  func.func @_net_kernel(%arg0: i32, %arg1: memref<4xf32, #tpu.memory_space<smem>>, %arg2: memref<8x16640xf32, #tpu.memory_space<vmem>>, %arg3: memref<16640x5xf32, #tpu.memory_space<vmem>>, %arg4: memref<1x5xf32, #tpu.memory_space<vmem>>, %arg5: memref<8x5xf32, #tpu.memory_space<vmem>>) attributes {dimension_semantics = [#tpu.dimension_semantics<parallel>], iteration_bounds = array<i64: 1>, scalar_prefetch = 0 : i64, scratch_operands = 0 : i64, tpu.core_type = #tpu.core_type<tc>, window_params = [{transform_indices = @transform_0, window_bounds = array<i64: 4>}, {transform_indices = @transform_1, window_bounds = array<i64: 8, 16640>}, {pipeline_mode = #tpu.pipeline_mode<synchronous>, transform_indices = @transform_2, window_bounds = array<i64: 16640, 5>}, {pipeline_mode = #tpu.pipeline_mode<synchronous>, transform_indices = @transform_3, window_bounds = array<i64: 1, 5>}, {transform_indices = @transform_4, window_bounds = array<i64: 8, 5>}]} {
    %c0 = arith.constant 0 : index
    %0 = memref.load %arg1[%c0] : memref<4xf32, #tpu.memory_space<smem>>
    %c1 = arith.constant 1 : index
    %1 = memref.load %arg1[%c1] : memref<4xf32, #tpu.memory_space<smem>>
    %c2 = arith.constant 2 : index
    %2 = memref.load %arg1[%c2] : memref<4xf32, #tpu.memory_space<smem>>
    %c3 = arith.constant 3 : index
    %3 = memref.load %arg1[%c3] : memref<4xf32, #tpu.memory_space<smem>>
    %c0_0 = arith.constant 0 : index
    %c0_1 = arith.constant 0 : index
    %4 = vector.load %arg2[%c0_0, %c0_1] : memref<8x16640xf32, #tpu.memory_space<vmem>>, vector<8x16640xf32>
    %c16639_i32 = arith.constant 16639 : i32
    %5 = tpu.dynamic_rotate %4 by %c16639_i32 dim 1 : vector<8x16640xf32>, i32 -> vector<8x16640xf32>
    %c16638_i32 = arith.constant 16638 : i32
    %6 = tpu.dynamic_rotate %4 by %c16638_i32 dim 1 : vector<8x16640xf32>, i32 -> vector<8x16640xf32>
    %7 = vector.broadcast %0 : f32 to vector<8x16640xf32>
    %8 = arith.mulf %7, %4 : vector<8x16640xf32>
    %9 = vector.broadcast %1 : f32 to vector<8x16640xf32>
    %10 = arith.mulf %9, %5 : vector<8x16640xf32>
    %11 = arith.addf %8, %10 : vector<8x16640xf32>
    %12 = vector.broadcast %2 : f32 to vector<8x16640xf32>
    %13 = arith.mulf %12, %6 : vector<8x16640xf32>
    %14 = arith.addf %11, %13 : vector<8x16640xf32>
    %c16639_i32_2 = arith.constant 16639 : i32
    %15 = tpu.dynamic_rotate %14 by %c16639_i32_2 dim 1 : vector<8x16640xf32>, i32 -> vector<8x16640xf32>
    %16 = arith.maximumf %14, %15 : vector<8x16640xf32>
    %17 = vector.broadcast %3 : f32 to vector<8x16640xf32>
    %18 = arith.addf %16, %17 : vector<8x16640xf32>
    %cst = arith.constant 0.000000e+00 : f32
    %19 = vector.broadcast %cst : f32 to vector<8x16640xf32>
    %20 = arith.maximumf %18, %19 : vector<8x16640xf32>
    %c0_3 = arith.constant 0 : index
    %c0_4 = arith.constant 0 : index
    %21 = vector.load %arg3[%c0_3, %c0_4] : memref<16640x5xf32, #tpu.memory_space<vmem>>, vector<16640x5xf32>
    %cst_5 = arith.constant dense<0.000000e+00> : vector<8x5xf32>
    %22 = tpu.matmul %20, %21, %cst_5 {dimension_numbers = #tpu.dot_dimension_numbers<[1], [0], [0], [1], [0, 0, 1, 1], [], []>} : vector<8x16640xf32>, vector<16640x5xf32>, vector<8x5xf32> -> vector<8x5xf32>
    %c0_6 = arith.constant 0 : index
    %c0_7 = arith.constant 0 : index
    %23 = vector.load %arg4[%c0_6, %c0_7] : memref<1x5xf32, #tpu.memory_space<vmem>>, vector<1x5xf32>
    %24 = vector.broadcast %23 : vector<1x5xf32> to vector<8x5xf32>
    %25 = arith.addf %22, %24 : vector<8x5xf32>
    %c0_8 = arith.constant 0 : index
    %c0_9 = arith.constant 0 : index
    %26 = vector.load %arg5[%c0_8, %c0_9] : memref<8x5xf32, #tpu.memory_space<vmem>>, vector<8x5xf32>
    tpu.vector_store %arg5[%c0_8, %c0_9], %25 {strides = array<i32>} : memref<8x5xf32, #tpu.memory_space<vmem>>, vector<8x5xf32>,
    return
  }
  func.func @transform_0(%arg0: i32) -> i32 {
    %c0_i32 = arith.constant 0 : i32
    %c0_i32_0 = arith.constant 0 : i32
    return %c0_i32 : i32
  }
  func.func @transform_1(%arg0: i32) -> (i32, i32) {
    %c0_i32 = arith.constant 0 : i32
    %c0_i32_0 = arith.constant 0 : i32
    return %arg0, %c0_i32 : i32, i32
  }
  func.func @transform_2(%arg0: i32) -> (i32, i32) {
    %c0_i32 = arith.constant 0 : i32
    %c0_i32_0 = arith.constant 0 : i32
    %c0_i32_1 = arith.constant 0 : i32
    return %c0_i32, %c0_i32_0 : i32, i32
  }
  func.func @transform_3(%arg0: i32) -> (i32, i32) {
    %c0_i32 = arith.constant 0 : i32
    %c0_i32_0 = arith.constant 0 : i32
    %c0_i32_1 = arith.constant 0 : i32
    return %c0_i32, %c0_i32_0 : i32, i32
  }
  func.func @transform_4(%arg0: i32) -> (i32, i32) {
    %c0_i32 = arith.constant 0 : i32
    %c0_i32_0 = arith.constant 0 : i32
    return %arg0, %c0_i32 : i32, i32
  }
}

</mosaic_0001>

<bundles_post_ra>
// kernel: forward.1
= control target key start
LH: loop header
LB: loop body
LE: loop exit
PB: predicated region body
PF: predicated region fallthrough
CT: control target
= control target key end

     0   :  { %9 = vsyncpa [#allocation4], 0  ;;  %s17815_s0 = inlined_call_operand.hbm [shape: f32[4], index: 0, kind: input, shape index: {}]   ;;  %s17816_s1 = inlined_call_operand.vmem [shape: f32[8,16640], index: 1, kind: input, shape index: {}]   ;;  %s17817_s2 = inlined_call_operand.hbm [shape: f32[16640,5], index: 2, kind: input, shape index: {}]   ;;  %s17818_s3 = inlined_call_operand.hbm [shape: f32[1,5], index: 3, kind: input, shape index: {}]   ;;  %s17819_s4 = inlined_call_operand.vmem [shape: f32[8,5], index: 4, kind: output, shape index: {}]  }
   0x1   :  { %10 = vsyncpa [#allocation3], 0 }
   0x2   :  { %11 = vsyncpa [#allocation7], 0  ;;  %s13475_s17 = scalar_lea.hbm %s17815_s0, 16 }
   0x3   :  { %p13476_p0 = scmp.ne.s32.totalorder %s17815_s0, %s13475_s17  ;;  %p13479_p1 = scmp.lt.u32.totalorder %s13475_s17, %s17815_s0 }
   0x5   :  { %p13481_p2 = pnand %p13479_p1, %p13476_p0 }
   0x7   :  { %13484 = shalt.err (!%p13481_p2)
}
   0x8   :  { %s13535_s22 = smov [#allocation2]   ;;  %s13536_s25 = smov [#allocation5]  }
   0x9   :  { %19 = dma.hbm_to_smem %s17815_s0, 16, %s13535_s22, [#allocation4]  }
   0xa   :  { %s27_s26 = sshll.u32 %s13536_s25, 4  ;;  %s13485_s29 = scalar_lea.hbm %s17817_s2, 266240  ;;  %s28_s26 = int_to_ptr.vmem [resolvable:$true] %s27_s26 }
   0xb   :  { %p13486_p3 = scmp.ne.s32.totalorder %s17817_s2, %s13485_s29  ;;  %p13489_p4 = scmp.lt.u32.totalorder %s13485_s29, %s17817_s2 }
   0xd   :  { %p13491_p5 = pnand %p13489_p4, %p13486_p3 }
   0xf   :  { %13494 = shalt.err (!%p13491_p5)
}
  0x10   :  { %s13495_s8 = scalar_lea.vmem %s28_s26, 266240  ;;  %p13500_p7 = scmp.lt.s32.totalorder %s28_s26, %s28_s26 }
  0x11   :  { %p13496_p6 = scmp.ne.s32.totalorder %s28_s26, %s13495_s8  ;;  %p13501_p8 = scmp.lt.s32.totalorder %s13495_s8, %s13495_s8 }
  0x13   :  { %p13502_p9 = por %p13501_p8, %p13500_p7 }
  0x15   :  { %p13503_p10 = pnand %p13502_p9, %p13496_p6 }
  0x17   :  { %13506 = shalt.err (!%p13503_p10)
}
  0x18   :  { %s13537_s0 = smov 128   ;;  %s13538_s9 = smov 8  }
  0x19   :  { %33 = dma.hbm_to_vmem [thread:$0]  %s17817_s2, 266240, %s28_s26, [#allocation3], %s13537_s0, %s13537_s0, %s13538_s9  }
  0x1a   :  { %s13539_s12 = smov [#allocation6]   ;;  %s13507_s16 = scalar_lea.hbm %s17818_s3, 16 }
  0x1b   :  { %s40_s13 = sshll.u32 %s13539_s12, 4  ;;  %p13508_p11 = scmp.ne.s32.totalorder %s17818_s3, %s13507_s16  ;;  %s41_s13 = int_to_ptr.vmem [resolvable:$true] %s40_s13 }
  0x1c   :  { %p13511_p12 = scmp.lt.u32.totalorder %s13507_s16, %s17818_s3 }
  0x1e   :  { %p13513_p13 = pnand %p13511_p12, %p13508_p11 }
  0x20   :  { %13516 = shalt.err (!%p13513_p13)
}
  0x21   :  { %s13517_s21 = scalar_lea.vmem %s41_s13, 16  ;;  %s13521_s2 = scalar_lea.vmem %s41_s13, 32 }
  0x22   :  { %p13518_p0 = scmp.ne.s32.totalorder %s41_s13, %s13517_s21  ;;  %p13522_p1 = scmp.lt.s32.totalorder %s41_s13, %s41_s13 }
  0x23   :  { %p13523_p2 = scmp.lt.s32.totalorder %s13521_s2, %s13517_s21 }
  0x25   :  { %p13524_p3 = por %p13523_p2, %p13522_p1 }
  0x27   :  { %p13525_p4 = pnand %p13524_p3, %p13518_p0 }
  0x29   :  { %13528 = shalt.err (!%p13525_p4)
}
  0x2a   :  { %43 = dma.hbm_to_vmem [thread:$0]  %s17818_s3, 16, %s41_s13, [#allocation7]  }
  0x2b   :  { %13529 = dma.done.wait [#allocation4], 16  }
  0x2c   :  { %13530 = vsyncadd [#allocation4], 4294967280 }
  0x2d   :  { %13531 = dma.done.wait [#allocation3], 266240  }
  0x2e   :  { %13532 = vsyncadd [#allocation3], 4294701056 }
  0x2f   :  { %13533 = dma.done.wait [#allocation7], 16  }
  0x30   :  { %13534 = vsyncadd [#allocation7], 4294967280 }
  0x31   :  { %53 = sfence }
  0x32   :  { %v13606_v0 = vld [vmem:[%s17816_s1 + $0x18] sm:$0xff]  ;;  %v13611_v1 = vld [vmem:[%s17816_s1 + $0x8] sm:$0xff]  ;;  %s13540_s28 = smov 127   ;;  %v13620_v2 = vld [vmem:[%s17816_s1 + $0x10] sm:$0xff]  ;;  %s13541_s6 = smov 126   ;;  %v448_v48 = vlaneseq  ;;  %vm9043_vm2 = vcmask 39936  }
  0x33   :  { %194 = vrot.lane.b32.xlu1 %v13606_v0, %s13540_s28  ;;  %190 = vrot.lane.b32.xlu0 %v13611_v1, %s13540_s28  ;;  %v13625_v3 = vld [vmem:[%s17816_s1] sm:$0xff]  ;;  %v13647_v5 = vld [vmem:[%s17816_s1 + $0x28] sm:$0xff]  ;;  %v2424_v17 = vld [vmem:[#allocation5 + $0x90] sm:$0xff]  ;;  %s54_s2 = sld [smem:[#allocation2]]  ;;  %s9052_s22 = sld [smem:[#allocation2 + $0x1]] }
  0x34   :  { %v13642_v4 = vld [vmem:[%s17816_s1 + $0x20] sm:$0xff]  ;;  %v13656_v6 = vld [vmem:[%s17816_s1 + $0x30] sm:$0xff]  ;;  %v13661_v7 = vld [vmem:[%s17816_s1 + $0x38] sm:$0xff]  ;;  %v13709_v49 = vand.u32 127, %v448_v48  ;;  %s13711_s23 = sld [smem:[#allocation2 + $0x2]]  ;;  %s9054_s18 = sld [smem:[#allocation2 + $0x3]] }
  0x35   :  { %v13678_v8 = vld [vmem:[%s17816_s1 + $0x40] sm:$0xff]  ;;  %v13683_v9 = vld [vmem:[%s17816_s1 + $0x48] sm:$0xff]  ;;  %v13692_v10 = vld [vmem:[%s17816_s1 + $0x50] sm:$0xff] }
  0x36   :  { %v13697_v11 = vld [vmem:[%s17816_s1 + $0x58] sm:$0xff]  ;;  %v2422_v12 = vld [vmem:[#allocation5 + $0x80] sm:$0xff]  ;;  %v2423_v13 = vld [vmem:[#allocation5 + $0x88] sm:$0xff]  ;;  %vm450_vm0 = vcmp.lt.s32.totalorder %v13709_v49, 127  ;;  %vm841_vm1 = vcmp.lt.s32.totalorder %v13709_v49, 126 }
  0x37   :  { %192 = vrot.lane.b32.xlu0 %v13620_v2, %s13540_s28  ;;  %188 = vrot.lane.b32.xlu1 %v13625_v3, %s13540_s28  ;;  %v2406_v14 = vld [vmem:[#allocation5] sm:$0xff]  ;;  %v11331_v15 = vpack.c.bf16 %v2423_v13, %v2422_v12  ;;  %v2407_v16 = vld [vmem:[#allocation5 + $0x8] sm:$0xff]  ;;  %v2425_v18 = vld [vmem:[#allocation5 + $0x98] sm:$0xff] }
  0x38   :  { %v11333_v19 = vpack.c.bf16 %v2407_v16, %v2406_v14  ;;  %v11335_v20 = vpack.c.bf16 %v2425_v18, %v2424_v17  ;;  %v2408_v21 = vld [vmem:[#allocation5 + $0x10] sm:$0xff]  ;;  %v2409_v22 = vld [vmem:[#allocation5 + $0x18] sm:$0xff]  ;;  %v2426_v23 = vld [vmem:[#allocation5 + $0xa0] sm:$0xff] }
  0x39   :  { %11332 = vmatprep.subr.bf16.mxu0 %v11331_v15  ;;  %v2427_v24 = vld [vmem:[#allocation5 + $0xa8] sm:$0xff]  ;;  %v11337_v25 = vpack.c.bf16 %v2409_v22, %v2408_v21  ;;  %v2410_v27 = vld [vmem:[#allocation5 + $0x20] sm:$0xff]  ;;  %v2428_v29 = vld [vmem:[#allocation5 + $0xb0] sm:$0xff]  ;;  %v13716_v15 = vstv %s54_s2  ;;  %v13718_v16 = vstv %s9052_s22 }
  0x3a   :  { %11334 = vmatpush3.bf16.msra.mxu0 %v11333_v19  ;;  %v11339_v26 = vpack.c.bf16 %v2427_v24, %v2426_v23  ;;  %v2411_v28 = vld [vmem:[#allocation5 + $0x28] sm:$0xff]  ;;  %v2429_v30 = vld [vmem:[#allocation5 + $0xb8] sm:$0xff]  ;;  %v2454_v31 = vld [vmem:[#allocation5 + $0x180] sm:$0xff] }
  0x3b   :  { %583 = vrot.lane.b32.xlu0 %v13611_v1, %s13541_s6  ;;  %585 = vrot.lane.b32.xlu1 %v13620_v2, %s13541_s6  ;;  %v11341_v32 = vpack.c.bf16 %v2411_v28, %v2410_v27  ;;  %v2455_v33 = vld [vmem:[#allocation5 + $0x188] sm:$0xff]  ;;  %v11343_v34 = vpack.c.bf16 %v2429_v30, %v2428_v29  ;;  %v2412_v35 = vld [vmem:[#allocation5 + $0x30] sm:$0xff]  ;;  %v2413_v36 = vld [vmem:[#allocation5 + $0x38] sm:$0xff] }
  0x3c   :  { %11336 = vmatprep.subr.bf16.mxu0 %v11335_v20  ;;  %v11363_v37 = vpack.c.bf16 %v2455_v33, %v2454_v31  ;;  %v2430_v38 = vld [vmem:[#allocation5 + $0xc0] sm:$0xff]  ;;  %v2431_v39 = vld [vmem:[#allocation5 + $0xc8] sm:$0xff]  ;;  %v11345_v40 = vpack.c.bf16 %v2413_v36, %v2412_v35  ;;  %v2432_v44 = vld [vmem:[#allocation5 + $0xd0] sm:$0xff] }
  0x3d   :  { %v11347_v41 = vpack.c.bf16 %v2431_v39, %v2430_v38  ;;  %v2414_v42 = vld [vmem:[#allocation5 + $0x40] sm:$0xff]  ;;  %v2415_v43 = vld [vmem:[#allocation5 + $0x48] sm:$0xff]  ;;  %v2433_v45 = vld [vmem:[#allocation5 + $0xd8] sm:$0xff]  ;;  %v975_v38 = vmul.f32 %v13716_v15, %v13620_v2 }
  0x3e   :  { %11338 = vmatpush3.bf16.msra.mxu0 %v11337_v25  ;;  %11364 = vmatprep.subr.bf16.mxu1 %v11363_v37  ;;  %v11349_v46 = vpack.c.bf16 %v2415_v43, %v2414_v42  ;;  %v11351_v47 = vpack.c.bf16 %v2433_v45, %v2432_v44  ;;  %v2416_v50 = vld [vmem:[#allocation5 + $0x50] sm:$0xff]  ;;  %v2417_v51 = vld [vmem:[#allocation5 + $0x58] sm:$0xff]  ;;  %v2438_v52 = vld [vmem:[#allocation5 + $0x100] sm:$0xff]  ;;  %v973_v42 = vmul.f32 %v13716_v15, %v13625_v3 }
  0x3f   :  { %587 = vrot.lane.b32.xlu0 %v13606_v0, %s13541_s6  ;;  %581 = vrot.lane.b32.xlu1 %v13625_v3, %s13541_s6  ;;  %v11353_v53 = vpack.c.bf16 %v2417_v51, %v2416_v50  ;;  %v2439_v54 = vld [vmem:[#allocation5 + $0x108] sm:$0xff]  ;;  %v2434_v58 = vld [vmem:[#allocation5 + $0xe0] sm:$0xff]  ;;  %v2456_v60 = vld [vmem:[#allocation5 + $0x190] sm:$0xff] }
  0x40   :  { %11340 = vmatprep.subr.bf16.mxu0 %v11339_v26  ;;  %v11365_v57 = vpack.c.bf16 %v2439_v54, %v2438_v52  ;;  %v2435_v59 = vld [vmem:[#allocation5 + $0xe8] sm:$0xff]  ;;  %v2457_v62 = vld [vmem:[#allocation5 + $0x198] sm:$0xff]  ;;  %v2418_v12 = vld [vmem:[#allocation5 + $0x60] sm:$0xff]  ;;  %v974_v26 = vmul.f32 %v13716_v15, %v13611_v1 }
  0x41   :  { %v11355_v61 = vpack.c.bf16 %v2435_v59, %v2434_v58  ;;  %v11367_v63 = vpack.c.bf16 %v2457_v62, %v2456_v60  ;;  %v2419_v13 = vld [vmem:[#allocation5 + $0x68] sm:$0xff]  ;;  %v2440_v14 = vld [vmem:[#allocation5 + $0x110] sm:$0xff]  ;;  %v2441_v18 = vld [vmem:[#allocation5 + $0x118] sm:$0xff] }
  0x42   :  { %11342 = vmatpush3.bf16.msra.mxu0 %v11341_v32  ;;  %11366 = vmatpush3.bf16.msra.mxu1 %v11365_v57  ;;  %v11357_v17 = vpack.c.bf16 %v2419_v13, %v2418_v12  ;;  %v11369_v21 = vpack.c.bf16 %v2441_v18, %v2440_v14  ;;  %v2436_v23 = vld [vmem:[#allocation5 + $0xf0] sm:$0xff]  ;;  %v2437_v24 = vld [vmem:[#allocation5 + $0xf8] sm:$0xff]  ;;  %v2458_v25 = vld [vmem:[#allocation5 + $0x1a0] sm:$0xff] }
  0x43   :  { %196 = vrot.lane.b32.xlu0 %v13642_v4, %s13540_s28  ;;  %198 = vrot.lane.b32.xlu1 %v13647_v5, %s13540_s28  ;;  %v11359_v29 = vpack.c.bf16 %v2437_v24, %v2436_v23  ;;  %v2459_v30 = vld [vmem:[#allocation5 + $0x1a8] sm:$0xff]  ;;  %v2420_v31 = vld [vmem:[#allocation5 + $0x70] sm:$0xff]  ;;  %v2421_v32 = vld [vmem:[#allocation5 + $0x78] sm:$0xff] }
  0x44   :  { %11344 = vmatprep.subr.bf16.mxu0 %v11343_v34  ;;  %11368 = vmatprep.subr.bf16.mxu1 %v11367_v63  ;;  %v13735_v34 = vstv %s13711_s23  ;;  %v11371_v35 = vpack.c.bf16 %v2459_v30, %v2458_v25  ;;  %v11361_v36 = vpack.c.bf16 %v2421_v32, %v2420_v31  ;;  %v2442_v1 = vld [vmem:[#allocation5 + $0x120] sm:$0xff]  ;;  %v2443_v37 = vld [vmem:[#allocation5 + $0x128] sm:$0xff]  ;;  %v2460_v45 = vld [vmem:[#allocation5 + $0x1b0] sm:$0xff] }
  0x45   :  { %v2487_v52 = vld [vmem:[#allocation5 + $0x288] sm:$0xff]  ;;  %v2445_v3 = vld [vmem:[#allocation5 + $0x138] sm:$0xff]  ;;  %v2462_v14 = vld [vmem:[#allocation5 + $0x1c0] sm:$0xff] }
  0x46   :  { %11346 = vmatpush3.bf16.msra.mxu0 %v11345_v40  ;;  %11370 = vmatpush3.bf16.msra.mxu1 %v11369_v21  ;;  %v2447_v25 = vld [vmem:[#allocation5 + $0x148] sm:$0xff]  ;;  %v2448_v32 = vld [vmem:[#allocation5 + $0x150] sm:$0xff] }
  0x47   :  { %200 = vrot.lane.b32.xlu0 %v13656_v6, %s13540_s28  ;;  %202 = vrot.lane.b32.xlu1 %v13661_v7, %s13540_s28  ;;  %v13775_v30 = vld [vmem:[%s17816_s1 + $0x68] sm:$0xff] }
  0x48   :  { %11348 = vmatprep.subr.bf16.mxu0 %v11347_v41  ;;  %v11373_v41 = vpack.c.bf16 %v2443_v37, %v2442_v1  ;;  %11372 = vmatprep.subr.bf16.mxu1 %v11371_v35  ;;  %v977_v37 = vmul.f32 %v13716_v15, %v13642_v4 }
  0x4a   :  { %11350 = vmatpush3.bf16.msra.mxu0 %v11349_v46  ;;  %v2461_v46 = vld [vmem:[#allocation5 + $0x1b8] sm:$0xff]  ;;  %11374 = vmatpush3.bf16.msra.mxu1 %v11373_v41  ;;  %v13789_v41 = vld [vmem:[%s17816_s1 + $0x60] sm:$0xff] }
  0x4b   :  { %589 = vrot.lane.b32.xlu0 %v13642_v4, %s13541_s6  ;;  %591 = vrot.lane.b32.xlu1 %v13647_v5, %s13541_s6  ;;  %v11375_v51 = vpack.c.bf16 %v2461_v46, %v2460_v45  ;;  %v979_v45 = vmul.f32 %v13716_v15, %v13656_v6 }
  0x4c   :  { %11352 = vmatprep.subr.bf16.mxu0 %v11351_v47  ;;  %v2486_v47 = vld [vmem:[#allocation5 + $0x280] sm:$0xff] }
  0x4d   :  { %v11395_v54 = vpack.c.bf16 %v2487_v52, %v2486_v47  ;;  %11376 = vmatprep.subr.bf16.mxu1 %v11375_v51 }
  0x4e   :  { %11354 = vmatpush3.bf16.msra.mxu0 %v11353_v53  ;;  %v2444_v53 = vld [vmem:[#allocation5 + $0x130] sm:$0xff] }
  0x4f   :  { %593 = vrot.lane.b32.xlu0 %v13656_v6, %s13541_s6  ;;  %595 = vrot.lane.b32.xlu1 %v13661_v7, %s13541_s6 }
  0x50   :  { %11356 = vmatprep.subr.bf16.mxu0 %v11355_v61 }
  0x52   :  { %11358 = vmatpush3.bf16.msra.mxu0 %v11357_v17  ;;  %v2463_v17 = vld [vmem:[#allocation5 + $0x1c8] sm:$0xff] }
  0x53   :  { %204 = vrot.lane.b32.xlu0 %v13678_v8, %s13540_s28  ;;  %206 = vrot.lane.b32.xlu1 %v13683_v9, %s13540_s28  ;;  %v11379_v18 = vpack.c.bf16 %v2463_v17, %v2462_v14  ;;  %v2453_v17 = vld [vmem:[#allocation5 + $0x178] sm:$0xff] }
  0x54   :  { %11360 = vmatprep.subr.bf16.mxu0 %v11359_v29  ;;  %v2465_v29 = vld [vmem:[#allocation5 + $0x1d8] sm:$0xff] }
  0x56   :  { %11362 = vmatpush3.bf16.msra.mxu0 %v11361_v36 }
  0x57   :  { %208 = vrot.lane.b32.xlu0 %v13692_v10, %s13540_s28  ;;  %210 = vrot.lane.b32.xlu1 %v13697_v11, %s13540_s28 }
  0x58   :  { %11396 = vmatprep.subr.bf16.mxu0 %v11395_v54  ;;  %v2469_v54 = vld [vmem:[#allocation5 + $0x1f8] sm:$0xff] }
  0x5b   :  { %597 = vrot.lane.b32.xlu0 %v13678_v8, %s13541_s6  ;;  %599 = vrot.lane.b32.xlu1 %v13683_v9, %s13541_s6 }
  0x5f   :  { %601 = vrot.lane.b32.xlu0 %v13692_v10, %s13541_s6 }
  0xa5   :  { %v13713_v55 = vpop.permute.xlu1 %194  ;;  %v191_v56 = vpop.permute.xlu0 %190 }
  0xa9   :  { %v193_v19 = vpop.permute.xlu0 %192  ;;  %v13720_v20 = vpop.permute.xlu1 %188 }
  0xaa   :  { %v578_v22 = vsel %vm450_vm0, %v191_v56, %v193_v19  ;;  %v577_v27 = vsel %vm450_vm0, %v193_v19, %v13713_v55  ;;  %v579_v33 = vsel %vm450_vm0, %v13720_v20, %v191_v56  ;;  %v11377_v56 = vpack.c.bf16 %v2445_v3, %v2444_v53  ;;  %v2446_v19 = vld [vmem:[#allocation5 + $0x140] sm:$0xff] }
  0xab   :  { %v1105_v28 = vmul.f32 %v13718_v16, %v578_v22  ;;  %v1106_v43 = vmul.f32 %v13718_v16, %v577_v27  ;;  %v1104_v48 = vmul.f32 %v13718_v16, %v579_v33  ;;  %v2449_v33 = vld [vmem:[#allocation5 + $0x158] sm:$0xff] }
  0xac   :  { %11378 = vmatpush3.bf16.msra.mxu1 %v11377_v56  ;;  %v11385_v1 = vpack.c.bf16 %v2449_v33, %v2448_v32  ;;  %v13817_v56 = vld [vmem:[%s17816_s1 + $0x70] sm:$0xff] }
  0xad   :  { %v584_v39 = vpop.permute.xlu0 %583  ;;  %v586_v40 = vpop.permute.xlu1 %585  ;;  %v1235_v50 = vadd.f32 %v1105_v28, %v974_v26  ;;  %v1236_v62 = vadd.f32 %v1106_v43, %v975_v38  ;;  %v1234_v13 = vadd.f32 %v1104_v48, %v973_v42  ;;  %11380 = vmatprep.subr.bf16.mxu1 %v11379_v18  ;;  %v11381_v26 = vpack.c.bf16 %v2447_v25, %v2446_v19  ;;  %v2464_v28 = vld [vmem:[#allocation5 + $0x1d0] sm:$0xff]  ;;  %v13797_v42 = vld [vmem:[%s17816_s1 + $0x78] sm:$0xff]  ;;  %v2451_v48 = vld [vmem:[#allocation5 + $0x168] sm:$0xff] }
  0xae   :  { %v969_v44 = vsel %vm841_vm1, %v584_v39, %v586_v40  ;;  %v11383_v31 = vpack.c.bf16 %v2465_v29, %v2464_v28 }
  0xaf   :  { %v1366_v2 = vmul.f32 %v13735_v34, %v969_v44  ;;  %v2450_v44 = vld [vmem:[#allocation5 + $0x160] sm:$0xff] }
  0xb0   :  { %11382 = vmatpush3.bf16.msra.mxu1 %v11381_v26  ;;  %v11389_v52 = vpack.c.bf16 %v2451_v48, %v2450_v44  ;;  %v2518_v26 = vld [vmem:[#allocation5 + $0x380] sm:$0xff]  ;;  %v13866_v44 = vld [vmem:[%s17816_s1 + $0x88] sm:$0xff] }
  0xb1   :  { %v13746_v57 = vpop.permute.xlu0 %587  ;;  %v13748_v58 = vpop.permute.xlu1 %581  ;;  %v13750_v59 = vadd.f32 %v1366_v2, %v1235_v50  ;;  %11384 = vmatprep.subr.bf16.mxu1 %v11383_v31 }
  0xb2   :  { %v968_v60 = vsel %vm841_vm1, %v586_v40, %v13746_v57  ;;  %v970_v61 = vsel %vm841_vm1, %v13748_v58, %v584_v39  ;;  %v2466_v39 = vld [vmem:[#allocation5 + $0x1e0] sm:$0xff]  ;;  %v2467_v40 = vld [vmem:[#allocation5 + $0x1e8] sm:$0xff] }
  0xb3   :  { %v1367_v63 = vmul.f32 %v13735_v34, %v968_v60  ;;  %v1365_v12 = vmul.f32 %v13735_v34, %v970_v61  ;;  %1627 = vrot.lane.b32.xlu0 %v13750_v59, %s13540_s28  ;;  %v11387_v43 = vpack.c.bf16 %v2467_v40, %v2466_v39  ;;  %v2452_v61 = vld [vmem:[#allocation5 + $0x170] sm:$0xff] }
  0xb4   :  { %11386 = vmatpush3.bf16.msra.mxu1 %v11385_v1 }
  0xb5   :  { %v197_v21 = vpop.permute.xlu0 %196  ;;  %v13762_v22 = vadd.f32 %v1367_v63, %v1236_v62  ;;  %v13764_v23 = vadd.f32 %v1365_v12, %v1234_v13  ;;  %v199_v24 = vpop.permute.xlu1 %198  ;;  %11388 = vmatprep.subr.bf16.mxu1 %v11387_v43  ;;  %v976_v62 = vmul.f32 %v13716_v15, %v13606_v0  ;;  %v978_v63 = vmul.f32 %v13716_v15, %v13647_v5 }
  0xb6   :  { %v575_v27 = vsel %vm450_vm0, %v197_v21, %v199_v24  ;;  %v576_v2 = vsel %vm450_vm0, %v13713_v55, %v197_v21  ;;  %v2468_v55 = vld [vmem:[#allocation5 + $0x1f0] sm:$0xff] }
  0xb7   :  { %1629 = vrot.lane.b32.xlu1 %v13762_v22, %s13540_s28  ;;  %1625 = vrot.lane.b32.xlu0 %v13764_v23, %s13540_s28  ;;  %v1108_v38 = vmul.f32 %v13718_v16, %v575_v27  ;;  %v11391_v60 = vpack.c.bf16 %v2469_v54, %v2468_v55  ;;  %v1107_v12 = vmul.f32 %v13718_v16, %v576_v2  ;;  %v13903_v55 = vld [vmem:[%s17816_s1 + $0x90] sm:$0xff] }
  0xb8   :  { %11390 = vmatpush3.bf16.msra.mxu1 %v11389_v52 }
  0xb9   :  { %v201_v35 = vpop.permute.xlu0 %200  ;;  %v13777_v36 = vpop.permute.xlu1 %202  ;;  %v1238_v51 = vadd.f32 %v1108_v38, %v977_v37  ;;  %11392 = vmatprep.subr.bf16.mxu1 %v11391_v60  ;;  %v1237_v33 = vadd.f32 %v1107_v12, %v976_v62  ;;  %v982_v60 = vmul.f32 %v13716_v15, %v13683_v9 }
  0xba   :  { %v573_v4 = vsel %vm450_vm0, %v201_v35, %v13777_v36  ;;  %v574_v53 = vsel %vm450_vm0, %v199_v24, %v201_v35  ;;  %v11393_v24 = vpack.c.bf16 %v2453_v17, %v2452_v61 }
  0xbb   :  { %603 = vrot.lane.b32.xlu1 %v13697_v11, %s13541_s6  ;;  %214 = vrot.lane.b32.xlu0 %v13775_v30, %s13540_s28  ;;  %v1110_v6 = vmul.f32 %v13718_v16, %v573_v4  ;;  %v1109_v19 = vmul.f32 %v13718_v16, %v574_v53 }
  0xbc   :  { %11394 = vmatpush3.bf16.msra.mxu1 %v11393_v24 }
  0xbd   :  { %v590_v46 = vpop.permute.xlu0 %589  ;;  %v592_v47 = vpop.permute.xlu1 %591  ;;  %v1240_v25 = vadd.f32 %v1110_v6, %v979_v45  ;;  %v1239_v1 = vadd.f32 %v1109_v19, %v978_v63  ;;  %v13937_v19 = vld [vmem:[%s17816_s1 + $0xa0] sm:$0xff] }
  0xbe   :  { %v966_v50 = vsel %vm841_vm1, %v590_v46, %v592_v47  ;;  %v967_v18 = vsel %vm841_vm1, %v13746_v57, %v590_v46  ;;  %v2519_v57 = vld [vmem:[#allocation5 + $0x388] sm:$0xff] }
  0xbf   :  { %212 = vrot.lane.b32.xlu1 %v13789_v41, %s13540_s28  ;;  %218 = vrot.lane.b32.xlu0 %v13797_v42, %s13540_s28  ;;  %v1369_v3 = vmul.f32 %v13735_v34, %v966_v50  ;;  %v11427_v28 = vpack.c.bf16 %v2519_v57, %v2518_v26  ;;  %v1368_v29 = vmul.f32 %v13735_v34, %v967_v18  ;;  %v13881_v50 = vld [vmem:[%s17816_s1 + $0x80] sm:$0xff] }
  0xc1   :  { %v594_v13 = vpop.permute.xlu0 %593  ;;  %v596_v14 = vpop.permute.xlu1 %595  ;;  %v13835_v5 = vadd.f32 %v1369_v3, %v1238_v51  ;;  %11428 = vmatprep.subr.bf16.mxu1 %v11427_v28  ;;  %v13847_v38 = vadd.f32 %v1368_v29, %v1237_v33  ;;  %v13963_v28 = vstv %s9054_s18  ;;  %v983_v29 = vmul.f32 %v13716_v15, %v13692_v10 }
  0xc2   :  { %v964_v21 = vsel %vm841_vm1, %v594_v13, %v596_v14  ;;  %v965_v27 = vsel %vm841_vm1, %v592_v47, %v594_v13  ;;  %v981_v47 = vmul.f32 %v13716_v15, %v13678_v8  ;;  %v13886_v8 = vld [vmem:[%s17816_s1 + $0x98] sm:$0xff] }
  0xc3   :  { %216 = vrot.lane.b32.xlu1 %v13817_v56, %s13540_s28  ;;  %607 = vrot.lane.b32.xlu0 %v13775_v30, %s13541_s6  ;;  %v1371_v0 = vmul.f32 %v13735_v34, %v964_v21  ;;  %v1370_v35 = vmul.f32 %v13735_v34, %v965_v27  ;;  %v13944_v21 = vld [vmem:[%s17816_s1 + $0xb0] sm:$0xff] }
  0xc5   :  { %v205_v31 = vpop.permute.xlu0 %204  ;;  %v207_v32 = vpop.permute.xlu1 %206  ;;  %v13845_v37 = vadd.f32 %v1371_v0, %v1240_v25  ;;  %v13851_v39 = vadd.f32 %v1370_v35, %v1239_v1  ;;  %v2470_v35 = vld [vmem:[#allocation5 + $0x200] sm:$0xff]  ;;  %v2471_v1 = vld [vmem:[#allocation5 + $0x208] sm:$0xff] }
  0xc6   :  { %v571_v43 = vsel %vm450_vm0, %v205_v31, %v207_v32  ;;  %v572_v48 = vsel %vm450_vm0, %v13777_v36, %v205_v31  ;;  %v980_v36 = vmul.f32 %v13716_v15, %v13661_v7 }
  0xc7   :  { %605 = vrot.lane.b32.xlu1 %v13789_v41, %s13541_s6  ;;  %1633 = vrot.lane.b32.xlu0 %v13835_v5, %s13540_s28  ;;  %v1112_v2 = vmul.f32 %v13718_v16, %v571_v43  ;;  %v1111_v52 = vmul.f32 %v13718_v16, %v572_v48  ;;  %v2489_v48 = vld [vmem:[#allocation5 + $0x298] sm:$0xff] }
  0xc9   :  { %v209_v40 = vpop.permute.xlu0 %208  ;;  %v13855_v4 = vpop.permute.xlu1 %210  ;;  %v1242_v6 = vadd.f32 %v1112_v2, %v981_v47  ;;  %v1241_v61 = vadd.f32 %v1111_v52, %v980_v36  ;;  %v2488_v47 = vld [vmem:[#allocation5 + $0x290] sm:$0xff]  ;;  %v11397_v2 = vpack.c.bf16 %v2471_v1, %v2470_v35  ;;  %v2477_v1 = vld [vmem:[#allocation5 + $0x238] sm:$0xff] }
  0xca   :  { %v570_v3 = vsel %vm450_vm0, %v207_v32, %v209_v40  ;;  %v569_v0 = vsel %vm450_vm0, %v209_v40, %v13855_v4  ;;  %v11399_v52 = vpack.c.bf16 %v2489_v48, %v2488_v47  ;;  %v2476_v35 = vld [vmem:[#allocation5 + $0x230] sm:$0xff]  ;;  %v2494_v47 = vld [vmem:[#allocation5 + $0x2c0] sm:$0xff]  ;;  %v2495_v48 = vld [vmem:[#allocation5 + $0x2c8] sm:$0xff] }
  0xcb   :  { %1631 = vrot.lane.b32.xlu1 %v13847_v38, %s13540_s28  ;;  %1637 = vrot.lane.b32.xlu0 %v13845_v37, %s13540_s28  ;;  %v1113_v62 = vmul.f32 %v13718_v16, %v570_v3  ;;  %v1114_v31 = vmul.f32 %v13718_v16, %v569_v0 }
  0xcd   :  { %v598_v45 = vpop.permute.xlu0 %597  ;;  %v600_v46 = vpop.permute.xlu1 %599  ;;  %v1243_v17 = vadd.f32 %v1113_v62, %v982_v60  ;;  %v2491_v62 = vld [vmem:[#allocation5 + $0x2a8] sm:$0xff] }
  0xce   :  { %v962_v51 = vsel %vm841_vm1, %v598_v45, %v600_v46  ;;  %v963_v7 = vsel %vm841_vm1, %v596_v14, %v598_v45 }
  0xcf   :  { %1635 = vrot.lane.b32.xlu1 %v13851_v39, %s13540_s28  ;;  %611 = vrot.lane.b32.xlu0 %v13797_v42, %s13541_s6  ;;  %v1373_v53 = vmul.f32 %v13735_v34, %v962_v51  ;;  %v1372_v63 = vmul.f32 %v13735_v34, %v963_v7 }
  0xd1   :  { %v602_v54 = vpop.permute.xlu0 %601  ;;  %v13915_v12 = vadd.f32 %v1373_v53, %v1242_v6  ;;  %v13922_v14 = vadd.f32 %v1372_v63, %v1241_v61  ;;  %v2472_v53 = vld [vmem:[#allocation5 + $0x210] sm:$0xff]  ;;  %v2473_v6 = vld [vmem:[#allocation5 + $0x218] sm:$0xff]  ;;  %v2490_v61 = vld [vmem:[#allocation5 + $0x2a0] sm:$0xff] }
  0xd2   :  { %v961_v13 = vsel %vm841_vm1, %v600_v46, %v602_v54 }
  0xd3   :  { %609 = vrot.lane.b32.xlu1 %v13817_v56, %s13541_s6  ;;  %222 = vrot.lane.b32.xlu0 %v13866_v44, %s13540_s28  ;;  %v1374_v9 = vmul.f32 %v13735_v34, %v961_v13  ;;  %v11403_v13 = vpack.c.bf16 %v2491_v62, %v2490_v61 }
  0xd5   :  { %v13928_v18 = vadd.f32 %v1374_v9, %v1243_v17  ;;  %v2474_v9 = vld [vmem:[#allocation5 + $0x220] sm:$0xff]  ;;  %v2475_v17 = vld [vmem:[#allocation5 + $0x228] sm:$0xff] }
  0xd7   :  { %220 = vrot.lane.b32.xlu1 %v13881_v50, %s13540_s28  ;;  %226 = vrot.lane.b32.xlu0 %v13886_v8, %s13540_s28 }
  0xdb   :  { %224 = vrot.lane.b32.xlu1 %v13903_v55, %s13540_s28  ;;  %615 = vrot.lane.b32.xlu0 %v13866_v44, %s13541_s6 }
  0xdf   :  { %613 = vrot.lane.b32.xlu1 %v13881_v50, %s13541_s6  ;;  %1641 = vrot.lane.b32.xlu0 %v13915_v12, %s13540_s28 }
  0xe3   :  { %1639 = vrot.lane.b32.xlu1 %v13922_v14, %s13540_s28 }
  0xe7   :  { %1643 = vrot.lane.b32.xlu1 %v13928_v18, %s13540_s28 }
  0xeb   :  { %617 = vrot.lane.b32.xlu1 %v13903_v55, %s13541_s6 }
  0xef   :  { %228 = vrot.lane.b32.xlu1 %v13937_v19, %s13540_s28 }
  0xf3   :  { %232 = vrot.lane.b32.xlu1 %v13944_v21, %s13540_s28 }
  0xf7   :  { %621 = vrot.lane.b32.xlu1 %v13937_v19, %s13541_s6 }
 0x125   :  { %v1628_v24 = vpop.permute.xlu0 %1627 }
 0x129   :  { %v13953_v25 = vpop.permute.xlu1 %1629  ;;  %v13955_v26 = vpop.permute.xlu0 %1625 }
 0x12a   :  { %v2013_v57 = vsel %vm450_vm0, %v13955_v26, %v1628_v24  ;;  %v2012_v27 = vsel %vm450_vm0, %v1628_v24, %v13953_v25 }
 0x12b   :  { %v2015_v32 = vmax.f32 %v13764_v23, %v2013_v57  ;;  %v2016_v33 = vmax.f32 %v13750_v59, %v2012_v27  ;;  %v1244_v59 = vadd.f32 %v1114_v31, %v983_v29  ;;  %v2492_v57 = vld [vmem:[#allocation5 + $0x2b0] sm:$0xff]  ;;  %v2493_v27 = vld [vmem:[#allocation5 + $0x2b8] sm:$0xff]  ;;  %v984_v29 = vmul.f32 %v13716_v15, %v13697_v11 }
 0x12d   :  { %v604_v40 = vpop.permute.xlu1 %603  ;;  %v2147_v43 = vadd.f32 %v13963_v28, %v2016_v33  ;;  %v13971_v45 = vpop.permute.xlu0 %214  ;;  %v2146_v46 = vadd.f32 %v13963_v28, %v2015_v32  ;;  %v11405_v32 = vpack.c.bf16 %v2475_v17, %v2474_v9  ;;  %v11407_v33 = vpack.c.bf16 %v2493_v27, %v2492_v57  ;;  %v2497_v9 = vld [vmem:[#allocation5 + $0x2d8] sm:$0xff] }
 0x12e   :  { %v960_v10 = vsel %vm841_vm1, %v602_v54, %v604_v40  ;;  %v11401_v54 = vpack.c.bf16 %v2473_v6, %v2472_v53  ;;  %v2478_v53 = vld [vmem:[#allocation5 + $0x240] sm:$0xff]  ;;  %v2479_v6 = vld [vmem:[#allocation5 + $0x248] sm:$0xff] }
 0x12f   :  { %v1375_v51 = vmul.f32 %v13735_v34, %v960_v10  ;;  %v2277_v23 = vmax.f32 %v2147_v43, 0.0  ;;  %v2276_v36 = vmax.f32 %v2146_v46, 0.0 }
 0x131   :  { %v213_v3 = vpop.permute.xlu1 %212  ;;  %4557 = vmatprep.mubr.f32.mxu0 %v2277_v23  ;;  %v13977_v7 = vadd.f32 %v1375_v51, %v1244_v59  ;;  %v13979_v60 = vpop.permute.xlu0 %218  ;;  %v11409_v51 = vpack.c.bf16 %v2477_v1, %v2476_v35  ;;  %v2503_v35 = vld [vmem:[#allocation5 + $0x308] sm:$0xff] }
 0x132   :  { %4558 = vmatmul.mubr.f32.vlgmr.msra.gmra.mrb[0].mxu0 %v2276_v36  ;;  %v568_v63 = vsel %vm450_vm0, %v13855_v4, %v213_v3  ;;  %v13996_v4 = vld [vmem:[%s17816_s1 + $0xa8] sm:$0xff]  ;;  %v567_v11 = vsel %vm450_vm0, %v213_v3, %v13971_v45  ;;  %v985_v36 = vmul.f32 %v13716_v15, %v13789_v41  ;;  %v987_v3 = vmul.f32 %v13716_v15, %v13817_v56  ;;  %v14023_v41 = vld [vmem:[%s17816_s1 + $0xb8] sm:$0xff] }
 0x133   :  { %11398 = vmatpush3.bf16.msra.mxu0 %v11397_v2  ;;  %1645 = vrot.lane.b32.xlu0 %v13977_v7, %s13540_s28  ;;  %v1115_v31 = vmul.f32 %v13718_v16, %v568_v63  ;;  %v1116_v59 = vmul.f32 %v13718_v16, %v567_v11 }
 0x134   :  { %11400 = vmatprep.subr.bf16.mxu0 %v11399_v52  ;;  %v11411_v52 = vpack.c.bf16 %v2495_v48, %v2494_v47 }
 0x135   :  { %v217_v24 = vpop.permute.xlu1 %216  ;;  %v13986_v0 = vpop.permute.xlu0 %607  ;;  %v1245_v23 = vadd.f32 %v1115_v31, %v984_v29  ;;  %v11413_v29 = vpack.c.bf16 %v2479_v6, %v2478_v53  ;;  %v2480_v31 = vld [vmem:[#allocation5 + $0x250] sm:$0xff]  ;;  %v1246_v1 = vadd.f32 %v1116_v59, %v985_v36 }
 0x136   :  { %v565_v56 = vsel %vm450_vm0, %v217_v24, %v13979_v60 }
 0x137   :  { %11402 = vmatpush3.bf16.msra.mxu0 %v11401_v54  ;;  %619 = vrot.lane.b32.xlu0 %v13886_v8, %s13541_s6 }
 0x138   :  { %11404 = vmatprep.subr.bf16.mxu0 %v11403_v13  ;;  %v2496_v13 = vld [vmem:[#allocation5 + $0x2d0] sm:$0xff] }
 0x139   :  { %v606_v43 = vpop.permute.xlu1 %605  ;;  %v14001_v46 = vpop.permute.xlu0 %1633 }
 0x13a   :  { %v959_v10 = vsel %vm841_vm1, %v604_v40, %v606_v43  ;;  %v986_v40 = vmul.f32 %v13716_v15, %v13775_v30  ;;  %v958_v61 = vsel %vm841_vm1, %v606_v43, %v13986_v0  ;;  %v566_v30 = vsel %vm450_vm0, %v13971_v45, %v217_v24 }
 0x13b   :  { %v1376_v2 = vmul.f32 %v13735_v34, %v959_v10  ;;  %11406 = vmatpush3.bf16.msra.mxu0 %v11405_v32  ;;  %230 = vrot.lane.b32.xlu0 %v13996_v4, %s13540_s28  ;;  %v2481_v32 = vld [vmem:[#allocation5 + $0x258] sm:$0xff]  ;;  %v1377_v24 = vmul.f32 %v13735_v34, %v958_v61  ;;  %v1117_v11 = vmul.f32 %v13718_v16, %v566_v30 }
 0x13c   :  { %11408 = vmatprep.subr.bf16.mxu0 %v11407_v33  ;;  %v2502_v33 = vld [vmem:[#allocation5 + $0x300] sm:$0xff]  ;;  %v1118_v43 = vmul.f32 %v13718_v16, %v565_v56  ;;  %v11417_v36 = vpack.c.bf16 %v2481_v32, %v2480_v31 }
 0x13d   :  { %v1632_v62 = vpop.permute.xlu1 %1631  ;;  %v14018_v54 = vadd.f32 %v1376_v2, %v1245_v23  ;;  %v14025_v63 = vpop.permute.xlu0 %1637  ;;  %v2499_v2 = vld [vmem:[#allocation5 + $0x2e8] sm:$0xff]  ;;  %v2521_v23 = vld [vmem:[#allocation5 + $0x398] sm:$0xff]  ;;  %v11429_v61 = vpack.c.bf16 %v2503_v35, %v2502_v33  ;;  %v1247_v31 = vadd.f32 %v1117_v11, %v986_v40  ;;  %v2500_v33 = vld [vmem:[#allocation5 + $0x2f0] sm:$0xff] }
 0x13e   :  { %v2011_v17 = vsel %vm450_vm0, %v13953_v25, %v1632_v62  ;;  %v2010_v57 = vsel %vm450_vm0, %v1632_v62, %v14001_v46  ;;  %v11415_v25 = vpack.c.bf16 %v2497_v9, %v2496_v13  ;;  %v2482_v62 = vld [vmem:[#allocation5 + $0x260] sm:$0xff]  ;;  %v2483_v13 = vld [vmem:[#allocation5 + $0x268] sm:$0xff]  ;;  %v14058_v9 = vadd.f32 %v1377_v24, %v1246_v1  ;;  %v2484_v11 = vld [vmem:[#allocation5 + $0x270] sm:$0xff] }
 0x13f   :  { %v2017_v27 = vmax.f32 %v13762_v22, %v2011_v17  ;;  %11410 = vmatpush3.bf16.msra.mxu0 %v11409_v51  ;;  %1647 = vrot.lane.b32.xlu1 %v14018_v54, %s13540_s28  ;;  %v2018_v45 = vmax.f32 %v13847_v38, %v2010_v57  ;;  %v2498_v22 = vld [vmem:[#allocation5 + $0x2e0] sm:$0xff]  ;;  %v2520_v51 = vld [vmem:[#allocation5 + $0x390] sm:$0xff]  ;;  %v2505_v57 = vld [vmem:[#allocation5 + $0x318] sm:$0xff]  ;;  %v1248_v32 = vadd.f32 %v1118_v43, %v987_v3 }
 0x140   :  { %234 = vrot.lane.b32.xlu0 %v14023_v41, %s13540_s28  ;;  %11412 = vmatprep.subr.bf16.mxu0 %v11411_v52  ;;  %v11419_v30 = vpack.c.bf16 %v2499_v2, %v2498_v22  ;;  %v11431_v56 = vpack.c.bf16 %v2521_v23, %v2520_v51  ;;  %v2504_v17 = vld [vmem:[#allocation5 + $0x310] sm:$0xff]  ;;  %v2522_v1 = vld [vmem:[#allocation5 + $0x3a0] sm:$0xff]  ;;  %v2523_v22 = vld [vmem:[#allocation5 + $0x3a8] sm:$0xff] }
 0x141   :  { %v1636_v47 = vpop.permute.xlu1 %1635  ;;  %v2149_v38 = vadd.f32 %v13963_v28, %v2018_v45  ;;  %v14049_v48 = vpop.permute.xlu0 %611  ;;  %v2148_v10 = vadd.f32 %v13963_v28, %v2017_v27  ;;  %v11433_v3 = vpack.c.bf16 %v2505_v57, %v2504_v17  ;;  %v2506_v2 = vld [vmem:[#allocation5 + $0x320] sm:$0xff]  ;;  %v2507_v51 = vld [vmem:[#allocation5 + $0x328] sm:$0xff] }
 0x142   :  { %v2008_v52 = vsel %vm450_vm0, %v1636_v47, %v14025_v63  ;;  %v11437_v57 = vpack.c.bf16 %v2507_v51, %v2506_v2  ;;  %v2536_v2 = vld [vmem:[#allocation5 + $0x410] sm:$0xff]  ;;  %v2537_v51 = vld [vmem:[#allocation5 + $0x418] sm:$0xff] }
 0x143   :  { %v2020_v59 = vmax.f32 %v13851_v39, %v2008_v52  ;;  %11414 = vmatpush3.bf16.msra.mxu0 %v11413_v29  ;;  %v2279_v53 = vmax.f32 %v2149_v38, 0.0  ;;  %v2278_v6 = vmax.f32 %v2148_v10, 0.0  ;;  %v2009_v39 = vsel %vm450_vm0, %v14001_v46, %v1636_v47  ;;  %v2485_v10 = vld [vmem:[#allocation5 + $0x278] sm:$0xff] }
 0x144   :  { %623 = vrot.lane.b32.xlu0 %v13996_v4, %s13541_s6  ;;  %11416 = vmatprep.subr.bf16.mxu0 %v11415_v25  ;;  %v2501_v25 = vld [vmem:[#allocation5 + $0x2f8] sm:$0xff]  ;;  %v11421_v46 = vpack.c.bf16 %v2483_v13, %v2482_v62  ;;  %v2019_v43 = vmax.f32 %v13835_v5, %v2009_v39  ;;  %v2550_v13 = vld [vmem:[#allocation5 + $0x480] sm:$0xff]  ;;  %v11425_v17 = vpack.c.bf16 %v2485_v10, %v2484_v11  ;;  %v2508_v39 = vld [vmem:[#allocation5 + $0x330] sm:$0xff] }
 0x145   :  { %v610_v27 = vpop.permute.xlu1 %609  ;;  %4627 = vmatprep.mubr.f32.mxu1 %v2279_v53  ;;  %v2151_v29 = vadd.f32 %v13963_v28, %v2020_v59  ;;  %v14064_v45 = vpop.permute.xlu0 %222  ;;  %v11435_v59 = vpack.c.bf16 %v2523_v22, %v2522_v1  ;;  %v2525_v5 = vld [vmem:[#allocation5 + $0x3b8] sm:$0xff]  ;;  %v2552_v22 = vld [vmem:[#allocation5 + $0x490] sm:$0xff] }
 0x146   :  { %v957_v24 = vsel %vm841_vm1, %v13986_v0, %v610_v27  ;;  %v956_v35 = vsel %vm841_vm1, %v610_v27, %v14049_v48  ;;  %4628 = vmatmul.mubr.f32.vlgmr.msra.gmra.mrb[0].mxu1 %v2278_v6  ;;  %v11423_v0 = vpack.c.bf16 %v2501_v25, %v2500_v33  ;;  %v2524_v6 = vld [vmem:[#allocation5 + $0x3b0] sm:$0xff]  ;;  %v989_v27 = vmul.f32 %v13716_v15, %v13881_v50 }
 0x147   :  { %v1378_v47 = vmul.f32 %v13735_v34, %v957_v24  ;;  %v1379_v38 = vmul.f32 %v13735_v34, %v956_v35  ;;  %11418 = vmatpush3.bf16.msra.mxu0 %v11417_v36  ;;  %11430 = vmatpush3.bf16.msra.mxu1 %v11429_v61  ;;  %v2281_v40 = vmax.f32 %v2151_v29, 0.0  ;;  %v2150_v29 = vadd.f32 %v13963_v28, %v2019_v43  ;;  %v2526_v35 = vld [vmem:[#allocation5 + $0x3c0] sm:$0xff] }
 0x148   :  { %1649 = vrot.lane.b32.xlu0 %v14058_v9, %s13540_s28  ;;  %11420 = vmatprep.subr.bf16.mxu0 %v11419_v30  ;;  %v2551_v30 = vld [vmem:[#allocation5 + $0x488] sm:$0xff] }
 0x149   :  { %v221_v23 = vpop.permute.xlu1 %220  ;;  %4697 = vmatprep.mubr.f32.mxu0 %v2281_v40  ;;  %11432 = vmatprep.subr.bf16.mxu1 %v11431_v56  ;;  %v14077_v52 = vadd.f32 %v1378_v47, %v1247_v31  ;;  %v14079_v36 = vadd.f32 %v1379_v38, %v1248_v32  ;;  %v14081_v53 = vpop.permute.xlu0 %226  ;;  %v988_v56 = vmul.f32 %v13716_v15, %v13797_v42  ;;  %v2509_v31 = vld [vmem:[#allocation5 + $0x338] sm:$0xff]  ;;  %v2534_v32 = vld [vmem:[#allocation5 + $0x400] sm:$0xff]  ;;  %v2535_v42 = vld [vmem:[#allocation5 + $0x408] sm:$0xff]  ;;  %v2280_v43 = vmax.f32 %v2150_v29, 0.0 }
 0x14a   :  { %v564_v61 = vsel %vm450_vm0, %v13979_v60, %v221_v23  ;;  %v563_v62 = vsel %vm450_vm0, %v221_v23, %v14064_v45  ;;  %v11439_v60 = vpack.c.bf16 %v2525_v5, %v2524_v6  ;;  %v11459_v1 = vpack.c.bf16 %v2551_v30, %v2550_v13  ;;  %v2553_v47 = vld [vmem:[#allocation5 + $0x498] sm:$0xff]  ;;  %v2510_v40 = vld [vmem:[#allocation5 + $0x340] sm:$0xff]  ;;  %v2528_v5 = vld [vmem:[#allocation5 + $0x3d0] sm:$0xff] }
 0x14b   :  { %11422 = vmatpush3.bf16.msra.mxu0 %v11421_v46  ;;  %11434 = vmatpush3.bf16.msra.mxu1 %v11433_v3  ;;  %v1119_v33 = vmul.f32 %v13718_v16, %v564_v61  ;;  %v1120_v25 = vmul.f32 %v13718_v16, %v563_v62  ;;  %v2527_v46 = vld [vmem:[#allocation5 + $0x3c8] sm:$0xff]  ;;  %v11441_v38 = vpack.c.bf16 %v2509_v31, %v2508_v39  ;;  %v2529_v61 = vld [vmem:[#allocation5 + $0x3d8] sm:$0xff]  ;;  %v2512_v29 = vld [vmem:[#allocation5 + $0x350] sm:$0xff] }
 0x14c   :  { %1651 = vrot.lane.b32.xlu1 %v14077_v52, %s13540_s28  ;;  %1653 = vrot.lane.b32.xlu0 %v14079_v36, %s13540_s28  ;;  %v2511_v3 = vld [vmem:[#allocation5 + $0x348] sm:$0xff]  ;;  %v11461_v11 = vpack.c.bf16 %v2535_v42, %v2534_v32  ;;  %v11443_v10 = vpack.c.bf16 %v2527_v46, %v2526_v35  ;;  %v2513_v31 = vld [vmem:[#allocation5 + $0x358] sm:$0xff]  ;;  %v2538_v32 = vld [vmem:[#allocation5 + $0x420] sm:$0xff] }
 0x14d   :  { %v14100_v24 = vpop.permute.xlu1 %224  ;;  %11424 = vmatprep.subr.bf16.mxu0 %v11423_v0  ;;  %11436 = vmatprep.subr.bf16.mxu1 %v11435_v59  ;;  %v14102_v50 = vpop.permute.xlu0 %615  ;;  %v14111_v0 = vld [vmem:[%s17816_s1 + $0xc0] sm:$0xff]  ;;  %v14116_v59 = vld [vmem:[%s17816_s1 + $0xc8] sm:$0xff]  ;;  %v1249_v6 = vadd.f32 %v1119_v33, %v988_v56  ;;  %v11445_v30 = vpack.c.bf16 %v2511_v3, %v2510_v40  ;;  %v11449_v3 = vpack.c.bf16 %v2513_v31, %v2512_v29  ;;  %v2516_v29 = vld [vmem:[#allocation5 + $0x370] sm:$0xff] }
 0x14e   :  { %v2539_v42 = vld [vmem:[#allocation5 + $0x428] sm:$0xff]  ;;  %v2530_v46 = vld [vmem:[#allocation5 + $0x3e0] sm:$0xff]  ;;  %v2517_v31 = vld [vmem:[#allocation5 + $0x378] sm:$0xff] }
 0x14f   :  { %11426 = vmatpush3.bf16.msra.mxu0 %v11425_v17  ;;  %11438 = vmatpush3.bf16.msra.mxu1 %v11437_v57  ;;  %v2554_v17 = vld [vmem:[#allocation5 + $0x4a0] sm:$0xff]  ;;  %v2555_v57 = vld [vmem:[#allocation5 + $0x4a8] sm:$0xff] }
 0x150   :  { %625 = vrot.lane.b32.xlu1 %v13944_v21, %s13541_s6  ;;  %627 = vrot.lane.b32.xlu0 %v14023_v41, %s13541_s6  ;;  %v1250_v21 = vadd.f32 %v1120_v25, %v989_v27  ;;  %v11463_v41 = vpack.c.bf16 %v2553_v47, %v2552_v22  ;;  %v11467_v22 = vpack.c.bf16 %v2555_v57, %v2554_v17  ;;  %v2559_v57 = vld [vmem:[#allocation5 + $0x4c8] sm:$0xff] }
 0x151   :  { %v614_v23 = vpop.permute.xlu1 %613  ;;  %11440 = vmatprep.subr.bf16.mxu1 %v11439_v60  ;;  %11460 = vmatprep.subr.bf16.mxu0 %v11459_v1  ;;  %v14126_v27 = vpop.permute.xlu0 %1641  ;;  %v11465_v60 = vpack.c.bf16 %v2537_v51, %v2536_v2  ;;  %v2531_v1 = vld [vmem:[#allocation5 + $0x3e8] sm:$0xff]  ;;  %v562_v47 = vsel %vm450_vm0, %v14064_v45, %v14100_v24  ;;  %v2557_v2 = vld [vmem:[#allocation5 + $0x4b8] sm:$0xff]  ;;  %v990_v51 = vmul.f32 %v13716_v15, %v13866_v44  ;;  %v14159_v44 = vld [vmem:[%s17816_s1 + $0xd0] sm:$0xff] }
 0x152   :  { %v955_v62 = vsel %vm841_vm1, %v14049_v48, %v614_v23  ;;  %4698 = vmatmul.mubr.f32.vlgmr.msra.gmra.mrb[2].mxu0 %v2280_v43  ;;  %v954_v13 = vsel %vm841_vm1, %v614_v23, %v14102_v50  ;;  %v11447_v48 = vpack.c.bf16 %v2529_v61, %v2528_v5  ;;  %v11469_v43 = vpack.c.bf16 %v2539_v42, %v2538_v32  ;;  %v2515_v23 = vld [vmem:[#allocation5 + $0x368] sm:$0xff]  ;;  %v2542_v32 = vld [vmem:[#allocation5 + $0x440] sm:$0xff] }
 0x153   :  { %v1380_v39 = vmul.f32 %v13735_v34, %v955_v62  ;;  %v1381_v56 = vmul.f32 %v13735_v34, %v954_v13  ;;  %11442 = vmatpush3.bf16.msra.mxu1 %v11441_v38  ;;  %11462 = vmatpush3.bf16.msra.mxu0 %v11461_v11  ;;  %v2514_v11 = vld [vmem:[#allocation5 + $0x360] sm:$0xff]  ;;  %v11451_v45 = vpack.c.bf16 %v2531_v1, %v2530_v46  ;;  %v2532_v13 = vld [vmem:[#allocation5 + $0x3f0] sm:$0xff]  ;;  %v2543_v42 = vld [vmem:[#allocation5 + $0x448] sm:$0xff] }
 0x154   :  { %236 = vrot.lane.b32.xlu1 %v14111_v0, %s13540_s28  ;;  %238 = vrot.lane.b32.xlu0 %v14116_v59, %s13540_s28 }
 0x155   :  { %v1640_v33 = vpop.permute.xlu1 %1639  ;;  %11444 = vmatprep.subr.bf16.mxu1 %v11443_v10  ;;  %v14132_v25 = vadd.f32 %v1380_v39, %v1249_v6  ;;  %v14134_v35 = vadd.f32 %v1381_v56, %v1250_v21  ;;  %11464 = vmatprep.subr.bf16.mxu0 %v11463_v41  ;;  %v2556_v10 = vld [vmem:[#allocation5 + $0x4b0] sm:$0xff]  ;;  %v1121_v21 = vmul.f32 %v13718_v16, %v562_v47  ;;  %v14164_v41 = vld [vmem:[%s17816_s1 + $0xd8] sm:$0xff] }
 0x156   :  { %v2006_v38 = vsel %vm450_vm0, %v1640_v33, %v14126_v27  ;;  %v2540_v6 = vld [vmem:[#allocation5 + $0x430] sm:$0xff]  ;;  %v2007_v5 = vsel %vm450_vm0, %v14025_v63, %v1640_v33  ;;  %v11471_v17 = vpack.c.bf16 %v2557_v2, %v2556_v10  ;;  %v2558_v63 = vld [vmem:[#allocation5 + $0x4c0] sm:$0xff]  ;;  %v11453_v56 = vpack.c.bf16 %v2515_v23, %v2514_v11 }
 0x157   :  { %v2022_v40 = vmax.f32 %v13922_v14, %v2006_v38  ;;  %11446 = vmatpush3.bf16.msra.mxu1 %v11445_v30  ;;  %11466 = vmatpush3.bf16.msra.mxu0 %v11465_v60  ;;  %v2541_v14 = vld [vmem:[#allocation5 + $0x438] sm:$0xff]  ;;  %v1251_v1 = vadd.f32 %v1121_v21, %v990_v51  ;;  %v2560_v47 = vld [vmem:[#allocation5 + $0x4d0] sm:$0xff]  ;;  %v11477_v10 = vpack.c.bf16 %v2543_v42, %v2542_v32  ;;  %v2566_v23 = vld [vmem:[#allocation5 + $0x500] sm:$0xff] }
 0x158   :  { %1655 = vrot.lane.b32.xlu1 %v14132_v25, %s13540_s28  ;;  %1657 = vrot.lane.b32.xlu0 %v14134_v35, %s13540_s28  ;;  %v2533_v30 = vld [vmem:[#allocation5 + $0x3f8] sm:$0xff]  ;;  %v11473_v60 = vpack.c.bf16 %v2541_v14, %v2540_v6  ;;  %v2544_v2 = vld [vmem:[#allocation5 + $0x450] sm:$0xff]  ;;  %v2567_v6 = vld [vmem:[#allocation5 + $0x508] sm:$0xff] }
 0x159   :  { %v14154_v61 = vpop.permute.xlu1 %1643  ;;  %11448 = vmatprep.subr.bf16.mxu1 %v11447_v48  ;;  %v2153_v62 = vadd.f32 %v13963_v28, %v2022_v40  ;;  %11468 = vmatprep.subr.bf16.mxu0 %v11467_v22  ;;  %v2021_v48 = vmax.f32 %v13845_v37, %v2007_v5  ;;  %v11455_v46 = vpack.c.bf16 %v2533_v30, %v2532_v13  ;;  %v2561_v38 = vld [vmem:[#allocation5 + $0x4d8] sm:$0xff]  ;;  %v2582_v40 = vld [vmem:[#allocation5 + $0x580] sm:$0xff]  ;;  %v2584_v13 = vld [vmem:[#allocation5 + $0x590] sm:$0xff] }
 0x15a   :  { %v11475_v22 = vpack.c.bf16 %v2559_v57, %v2558_v63  ;;  %v2562_v5 = vld [vmem:[#allocation5 + $0x4e0] sm:$0xff]  ;;  %v2585_v30 = vld [vmem:[#allocation5 + $0x598] sm:$0xff]  ;;  %v11493_v63 = vpack.c.bf16 %v2567_v6, %v2566_v23  ;;  %v2564_v32 = vld [vmem:[#allocation5 + $0x4f0] sm:$0xff] }
 0x15b   :  { %11450 = vmatpush3.bf16.msra.mxu1 %v11449_v3  ;;  %v2283_v39 = vmax.f32 %v2153_v62, 0.0  ;;  %11470 = vmatpush3.bf16.msra.mxu0 %v11469_v43  ;;  %v2583_v3 = vld [vmem:[#allocation5 + $0x588] sm:$0xff]  ;;  %v11457_v43 = vpack.c.bf16 %v2517_v31, %v2516_v29  ;;  %v2152_v51 = vadd.f32 %v13963_v28, %v2021_v48  ;;  %v2546_v57 = vld [vmem:[#allocation5 + $0x460] sm:$0xff]  ;;  %v2569_v48 = vld [vmem:[#allocation5 + $0x518] sm:$0xff]  ;;  %v11495_v31 = vpack.c.bf16 %v2585_v30, %v2584_v13 }
 0x15c   :  { %240 = vrot.lane.b32.xlu1 %v14159_v44, %s13540_s28  ;;  %242 = vrot.lane.b32.xlu0 %v14164_v41, %s13540_s28  ;;  %v11491_v21 = vpack.c.bf16 %v2583_v3, %v2582_v40  ;;  %v2563_v62 = vld [vmem:[#allocation5 + $0x4e8] sm:$0xff]  ;;  %v2565_v42 = vld [vmem:[#allocation5 + $0x4f8] sm:$0xff]  ;;  %v2590_v13 = vld [vmem:[#allocation5 + $0x5c0] sm:$0xff] }
 0x15d   :  { %v14172_v33 = vpop.permute.xlu1 %617  ;;  %11452 = vmatprep.subr.bf16.mxu1 %v11451_v45  ;;  %4767 = vmatprep.mubr.f32.mxu1 %v2283_v39  ;;  %v11479_v45 = vpack.c.bf16 %v2561_v38, %v2560_v47  ;;  %v2282_v39 = vmax.f32 %v2152_v51, 0.0  ;;  %v2547_v29 = vld [vmem:[#allocation5 + $0x468] sm:$0xff]  ;;  %v2549_v40 = vld [vmem:[#allocation5 + $0x478] sm:$0xff]  ;;  %v11487_v3 = vpack.c.bf16 %v2565_v42, %v2564_v32  ;;  %v2594_v42 = vld [vmem:[#allocation5 + $0x5e0] sm:$0xff] }
 0x15e   :  { %v953_v37 = vsel %vm841_vm1, %v14102_v50, %v14172_v33  ;;  %11472 = vmatprep.subr.bf16.mxu0 %v11471_v17  ;;  %v2545_v50 = vld [vmem:[#allocation5 + $0x458] sm:$0xff]  ;;  %v11485_v47 = vpack.c.bf16 %v2547_v29, %v2546_v57  ;;  %v2591_v30 = vld [vmem:[#allocation5 + $0x5c8] sm:$0xff]  ;;  %v2574_v57 = vld [vmem:[#allocation5 + $0x540] sm:$0xff] }
 0x15f   :  { %v1382_v11 = vmul.f32 %v13735_v34, %v953_v37  ;;  %11454 = vmatpush3.bf16.msra.mxu1 %v11453_v56  ;;  %11474 = vmatpush3.bf16.msra.mxu0 %v11473_v60  ;;  %v11481_v17 = vpack.c.bf16 %v2545_v50, %v2544_v2  ;;  %v11483_v56 = vpack.c.bf16 %v2563_v62, %v2562_v5  ;;  %v2568_v60 = vld [vmem:[#allocation5 + $0x510] sm:$0xff]  ;;  %v2589_v51 = vld [vmem:[#allocation5 + $0x5b8] sm:$0xff]  ;;  %v2615_v50 = vld [vmem:[#allocation5 + $0x688] sm:$0xff] }
 0x160   :  { %629 = vrot.lane.b32.xlu1 %v14111_v0, %s13541_s6  ;;  %631 = vrot.lane.b32.xlu0 %v14116_v59, %s13541_s6  ;;  %v11497_v38 = vpack.c.bf16 %v2569_v48, %v2568_v60  ;;  %v2548_v37 = vld [vmem:[#allocation5 + $0x470] sm:$0xff]  ;;  %v2573_v62 = vld [vmem:[#allocation5 + $0x538] sm:$0xff] }
 0x161   :  { %11456 = vmatprep.subr.bf16.mxu1 %v11455_v46  ;;  %v14184_v14 = vadd.f32 %v1382_v11, %v1251_v1  ;;  %11476 = vmatprep.subr.bf16.mxu0 %v11475_v22  ;;  %v2586_v46 = vld [vmem:[#allocation5 + $0x5a0] sm:$0xff]  ;;  %v2587_v1 = vld [vmem:[#allocation5 + $0x5a8] sm:$0xff]  ;;  %v11489_v23 = vpack.c.bf16 %v2549_v40, %v2548_v37  ;;  %v2572_v5 = vld [vmem:[#allocation5 + $0x530] sm:$0xff] }
 0x162   :  { %v14191_v22 = vld [vmem:[%s17816_s1 + $0xe0] sm:$0xff]  ;;  %v11499_v2 = vpack.c.bf16 %v2587_v1, %v2586_v46  ;;  %v2593_v29 = vld [vmem:[#allocation5 + $0x5d8] sm:$0xff]  ;;  %v2595_v46 = vld [vmem:[#allocation5 + $0x5e8] sm:$0xff] }
 0x163   :  { %11458 = vmatpush3.bf16.msra.mxu1 %v11457_v43  ;;  %11478 = vmatpush3.bf16.msra.mxu0 %v11477_v10  ;;  %v2570_v11 = vld [vmem:[#allocation5 + $0x520] sm:$0xff]  ;;  %v2571_v43 = vld [vmem:[#allocation5 + $0x528] sm:$0xff]  ;;  %v2588_v10 = vld [vmem:[#allocation5 + $0x5b0] sm:$0xff] }
 0x164   :  { %1659 = vrot.lane.b32.xlu1 %v14184_v14, %s13540_s28  ;;  %11480 = vmatprep.subr.bf16.mxu0 %v11479_v45  ;;  %v2614_v45 = vld [vmem:[#allocation5 + $0x680] sm:$0xff]  ;;  %v11501_v6 = vpack.c.bf16 %v2571_v43, %v2570_v11  ;;  %v2577_v32 = vld [vmem:[#allocation5 + $0x558] sm:$0xff]  ;;  %v2579_v37 = vld [vmem:[#allocation5 + $0x568] sm:$0xff] }
 0x165   :  { %11492 = vmatprep.subr.bf16.mxu1 %v11491_v21  ;;  %v11503_v21 = vpack.c.bf16 %v2589_v51, %v2588_v10  ;;  %v2596_v40 = vld [vmem:[#allocation5 + $0x5f0] sm:$0xff]  ;;  %v2646_v51 = vld [vmem:[#allocation5 + $0x780] sm:$0xff] }
 0x166   :  { %4768 = vmatmul.mubr.f32.vlgmr.msra.gmra.mrb[2].mxu1 %v2282_v39  ;;  %v2575_v39 = vld [vmem:[#allocation5 + $0x548] sm:$0xff]  ;;  %v2580_v10 = vld [vmem:[#allocation5 + $0x570] sm:$0xff] }
 0x167   :  { %11482 = vmatpush3.bf16.msra.mxu0 %v11481_v17  ;;  %11494 = vmatpush3.bf16.msra.mxu1 %v11493_v63  ;;  %v11505_v17 = vpack.c.bf16 %v2573_v62, %v2572_v5  ;;  %v11507_v63 = vpack.c.bf16 %v2591_v30, %v2590_v13  ;;  %v11509_v60 = vpack.c.bf16 %v2575_v39, %v2574_v57 }
 0x168   :  { %633 = vrot.lane.b32.xlu1 %v14159_v44, %s13541_s6  ;;  %11484 = vmatprep.subr.bf16.mxu0 %v11483_v56  ;;  %v11523_v44 = vpack.c.bf16 %v2615_v50, %v2614_v45  ;;  %v2592_v56 = vld [vmem:[#allocation5 + $0x5d0] sm:$0xff]  ;;  %v2647_v45 = vld [vmem:[#allocation5 + $0x788] sm:$0xff]  ;;  %v561_v5 = vsel %vm450_vm0, %v14100_v24, %v14081_v53  ;;  %v992_v57 = vmul.f32 %v13716_v15, %v13886_v8 }
 0x169   :  { %11496 = vmatprep.subr.bf16.mxu1 %v11495_v31  ;;  %v11511_v48 = vpack.c.bf16 %v2593_v29, %v2592_v56  ;;  %v2576_v31 = vld [vmem:[#allocation5 + $0x550] sm:$0xff]  ;;  %v2598_v56 = vld [vmem:[#allocation5 + $0x600] sm:$0xff] }
 0x16a   :  { %v11513_v1 = vpack.c.bf16 %v2577_v32, %v2576_v31  ;;  %v2617_v31 = vld [vmem:[#allocation5 + $0x698] sm:$0xff] }
 0x16b   :  { %11486 = vmatpush3.bf16.msra.mxu0 %v11485_v47  ;;  %11498 = vmatpush3.bf16.msra.mxu1 %v11497_v38  ;;  %v11515_v47 = vpack.c.bf16 %v2595_v46, %v2594_v42  ;;  %v2578_v38 = vld [vmem:[#allocation5 + $0x560] sm:$0xff] }
 0x16c   :  { %244 = vrot.lane.b32.xlu1 %v14191_v22, %s13540_s28  ;;  %11488 = vmatprep.subr.bf16.mxu0 %v11487_v3  ;;  %v2597_v3 = vld [vmem:[#allocation5 + $0x5f8] sm:$0xff]  ;;  %v11517_v11 = vpack.c.bf16 %v2579_v37, %v2578_v38 }
 0x16d   :  { %11500 = vmatprep.subr.bf16.mxu1 %v11499_v2  ;;  %v11519_v43 = vpack.c.bf16 %v2597_v3, %v2596_v40  ;;  %v2581_v2 = vld [vmem:[#allocation5 + $0x578] sm:$0xff]  ;;  %v2600_v40 = vld [vmem:[#allocation5 + $0x610] sm:$0xff] }
 0x16e   :  { %v11521_v50 = vpack.c.bf16 %v2581_v2, %v2580_v10  ;;  %v2601_v3 = vld [vmem:[#allocation5 + $0x618] sm:$0xff]  ;;  %v2618_v2 = vld [vmem:[#allocation5 + $0x6a0] sm:$0xff] }
 0x16f   :  { %11490 = vmatpush3.bf16.msra.mxu0 %v11489_v23  ;;  %11502 = vmatpush3.bf16.msra.mxu1 %v11501_v6  ;;  %v11555_v23 = vpack.c.bf16 %v2647_v45, %v2646_v51  ;;  %v229_v6 = vpop.permute.xlu1 %228  ;;  %v11529_v51 = vpack.c.bf16 %v2601_v3, %v2600_v40 }
 0x170   :  { %11504 = vmatprep.subr.bf16.mxu1 %v11503_v21  ;;  %11524 = vmatprep.subr.bf16.mxu0 %v11523_v44  ;;  %v2005_v21 = vsel %vm450_vm0, %v14126_v27, %v14154_v61  ;;  %v560_v13 = vsel %vm450_vm0, %v14081_v53, %v229_v6  ;;  %v2599_v53 = vld [vmem:[#allocation5 + $0x608] sm:$0xff] }
 0x171   :  { %v2023_v62 = vmax.f32 %v13915_v12, %v2005_v21  ;;  %v1123_v24 = vmul.f32 %v13718_v16, %v560_v13  ;;  %v11525_v32 = vpack.c.bf16 %v2599_v53, %v2598_v56  ;;  %v2621_v13 = vld [vmem:[#allocation5 + $0x6b8] sm:$0xff]  ;;  %v2604_v56 = vld [vmem:[#allocation5 + $0x630] sm:$0xff] }
 0x172   :  { %v2605_v53 = vld [vmem:[#allocation5 + $0x638] sm:$0xff] }
 0x173   :  { %11506 = vmatpush3.bf16.msra.mxu1 %v11505_v17  ;;  %v14201_v44 = vpop.permute.xlu1 %232  ;;  %v991_v17 = vmul.f32 %v13716_v15, %v13903_v55  ;;  %v2154_v29 = vadd.f32 %v13963_v28, %v2023_v62  ;;  %v2620_v62 = vld [vmem:[#allocation5 + $0x6b0] sm:$0xff] }
 0x174   :  { %11508 = vmatprep.subr.bf16.mxu1 %v11507_v63  ;;  %v1122_v63 = vmul.f32 %v13718_v16, %v561_v5  ;;  %v14243_v5 = vld [vmem:[%s17816_s1 + $0xf0] sm:$0xff] }
 0x175   :  { %v2284_v38 = vmax.f32 %v2154_v29, 0.0  ;;  %v2622_v29 = vld [vmem:[#allocation5 + $0x6c0] sm:$0xff] }
 0x176   :  { %v1252_v42 = vadd.f32 %v1122_v63, %v991_v17 }
 0x177   :  { %11510 = vmatpush3.bf16.msra.mxu1 %v11509_v60  ;;  %v622_v39 = vpop.permute.xlu1 %621 }
 0x178   :  { %11512 = vmatprep.subr.bf16.mxu1 %v11511_v48  ;;  %v2616_v48 = vld [vmem:[#allocation5 + $0x690] sm:$0xff] }
 0x179   :  { %v11527_v37 = vpack.c.bf16 %v2617_v31, %v2616_v48  ;;  %v11537_v48 = vpack.c.bf16 %v2605_v53, %v2604_v56 }
 0x17b   :  { %11514 = vmatpush3.bf16.msra.mxu1 %v11513_v1 }
 0x17c   :  { %11516 = vmatprep.subr.bf16.mxu1 %v11515_v47  ;;  %v1253_v47 = vadd.f32 %v1123_v24, %v992_v57  ;;  %v993_v57 = vmul.f32 %v13716_v15, %v13937_v19  ;;  %v14257_v24 = vld [vmem:[%s17816_s1 + $0xe8] sm:$0xff] }
 0x17f   :  { %11518 = vmatpush3.bf16.msra.mxu1 %v11517_v11 }
 0x180   :  { %11520 = vmatprep.subr.bf16.mxu1 %v11519_v43 }
 0x183   :  { %11522 = vmatpush3.bf16.msra.mxu1 %v11521_v50  ;;  %v2602_v50 = vld [vmem:[#allocation5 + $0x620] sm:$0xff] }
 0x184   :  { %11556 = vmatprep.subr.bf16.mxu1 %v11555_v23  ;;  %v2603_v23 = vld [vmem:[#allocation5 + $0x628] sm:$0xff] }
 0x1a5   :  { %v1646_v30 = vpop.permute.xlu0 %1645 }
 0x1a6   :  { %v2004_v27 = vsel %vm450_vm0, %v14154_v61, %v1646_v30 }
 0x1a7   :  { %v2024_v12 = vmax.f32 %v13928_v18, %v2004_v27  ;;  %v11533_v27 = vpack.c.bf16 %v2603_v23, %v2602_v50  ;;  %v2626_v50 = vld [vmem:[#allocation5 + $0x6e0] sm:$0xff]  ;;  %v2627_v23 = vld [vmem:[#allocation5 + $0x6e8] sm:$0xff] }
 0x1a9   :  { %v620_v60 = vpop.permute.xlu0 %619  ;;  %v2155_v55 = vadd.f32 %v13963_v28, %v2024_v12  ;;  %v11535_v12 = vpack.c.bf16 %v2621_v13, %v2620_v62 }
 0x1aa   :  { %v951_v61 = vsel %vm841_vm1, %v620_v60, %v622_v39  ;;  %v952_v8 = vsel %vm841_vm1, %v14172_v33, %v620_v60  ;;  %v2619_v33 = vld [vmem:[#allocation5 + $0x6a8] sm:$0xff] }
 0x1ab   :  { %v1383_v18 = vmul.f32 %v13735_v34, %v952_v8  ;;  %v1384_v46 = vmul.f32 %v13735_v34, %v951_v61  ;;  %v2285_v1 = vmax.f32 %v2155_v55, 0.0  ;;  %v11531_v45 = vpack.c.bf16 %v2619_v33, %v2618_v2  ;;  %v2609_v2 = vld [vmem:[#allocation5 + $0x658] sm:$0xff]  ;;  %v2630_v33 = vld [vmem:[#allocation5 + $0x700] sm:$0xff] }
 0x1ad   :  { %4837 = vmatprep.mubr.f32.mxu0 %v2285_v1  ;;  %v231_v11 = vpop.permute.xlu0 %230  ;;  %v14230_v43 = vadd.f32 %v1383_v18, %v1252_v42  ;;  %v14232_v10 = vadd.f32 %v1384_v46, %v1253_v47  ;;  %v2624_v18 = vld [vmem:[#allocation5 + $0x6d0] sm:$0xff]  ;;  %v2625_v46 = vld [vmem:[#allocation5 + $0x6d8] sm:$0xff] }
 0x1ae   :  { %4838 = vmatmul.mubr.f32.vlgmr.msra.gmra.mrb[4].mxu0 %v2284_v38  ;;  %v559_v21 = vsel %vm450_vm0, %v229_v6, %v231_v11  ;;  %v558_v47 = vsel %vm450_vm0, %v231_v11, %v14201_v44  ;;  %v11543_v3 = vpack.c.bf16 %v2625_v46, %v2624_v18  ;;  %v2608_v11 = vld [vmem:[#allocation5 + $0x650] sm:$0xff] }
 0x1af   :  { %11526 = vmatpush3.bf16.msra.mxu0 %v11525_v32  ;;  %1661 = vrot.lane.b32.xlu0 %v14230_v43, %s13540_s28  ;;  %v1124_v6 = vmul.f32 %v13718_v16, %v559_v21  ;;  %v2607_v32 = vld [vmem:[#allocation5 + $0x648] sm:$0xff]  ;;  %v994_v21 = vmul.f32 %v13716_v15, %v13996_v4  ;;  %v11545_v53 = vpack.c.bf16 %v2609_v2, %v2608_v11  ;;  %v2650_v11 = vld [vmem:[#allocation5 + $0x7a0] sm:$0xff] }
 0x1b0   :  { %1663 = vrot.lane.b32.xlu1 %v14232_v10, %s13540_s28  ;;  %11528 = vmatprep.subr.bf16.mxu0 %v11527_v37  ;;  %v14282_v37 = vld [vmem:[%s17816_s1 + $0xf8] sm:$0xff]  ;;  %v2651_v2 = vld [vmem:[#allocation5 + $0x7a8] sm:$0xff] }
 0x1b1   :  { %v1648_v63 = vpop.permute.xlu1 %1647  ;;  %v1254_v61 = vadd.f32 %v1124_v6, %v993_v57  ;;  %v2610_v57 = vld [vmem:[#allocation5 + $0x660] sm:$0xff]  ;;  %v13418_v6 = vld [vmem:[%s17816_s1 + $0xb0] sm:$0xff] }
 0x1b2   :  { %v14245_v17 = vpop.permute.xlu0 %234  ;;  %v2003_v60 = vsel %vm450_vm0, %v1646_v30, %v1648_v63  ;;  %v2606_v30 = vld [vmem:[#allocation5 + $0x640] sm:$0xff] }
 0x1b3   :  { %11530 = vmatpush3.bf16.msra.mxu0 %v11529_v51  ;;  %635 = vrot.lane.b32.xlu0 %v14164_v41, %s13541_s6  ;;  %v2623_v41 = vld [vmem:[#allocation5 + $0x6c8] sm:$0xff]  ;;  %v2025_v42 = vmax.f32 %v13977_v7, %v2003_v60  ;;  %v557_v7 = vsel %vm450_vm0, %v14201_v44, %v14245_v17  ;;  %v1125_v44 = vmul.f32 %v13718_v16, %v558_v47  ;;  %v2633_v60 = vld [vmem:[#allocation5 + $0x718] sm:$0xff] }
 0x1b4   :  { %248 = vrot.lane.b32.xlu1 %v14243_v5, %s13540_s28  ;;  %11532 = vmatprep.subr.bf16.mxu0 %v11531_v45  ;;  %v11539_v8 = vpack.c.bf16 %v2623_v41, %v2622_v29  ;;  %v2631_v45 = vld [vmem:[#allocation5 + $0x708] sm:$0xff]  ;;  %v1126_v56 = vmul.f32 %v13718_v16, %v557_v7  ;;  %v2632_v41 = vld [vmem:[#allocation5 + $0x710] sm:$0xff]  ;;  %v2629_v7 = vld [vmem:[#allocation5 + $0x6f8] sm:$0xff] }
 0x1b5   :  { %v2156_v51 = vadd.f32 %v13963_v28, %v2025_v42  ;;  %v2611_v29 = vld [vmem:[#allocation5 + $0x668] sm:$0xff] }
 0x1b6   :  { %v14261_v19 = vpop.permute.xlu0 %623  ;;  %v11549_v47 = vpack.c.bf16 %v2611_v29, %v2610_v57  ;;  %v11563_v57 = vpack.c.bf16 %v2651_v2, %v2650_v11  ;;  %v2638_v2 = vld [vmem:[#allocation5 + $0x740] sm:$0xff] }
 0x1b7   :  { %v950_v55 = vsel %vm841_vm1, %v622_v39, %v14261_v19  ;;  %11534 = vmatpush3.bf16.msra.mxu0 %v11533_v27  ;;  %246 = vrot.lane.b32.xlu0 %v14257_v24, %s13540_s28  ;;  %v2649_v27 = vld [vmem:[#allocation5 + $0x798] sm:$0xff] }
 0x1b8   :  { %v1385_v31 = vmul.f32 %v13735_v34, %v950_v55  ;;  %637 = vrot.lane.b32.xlu1 %v14191_v22, %s13541_s6  ;;  %11536 = vmatprep.subr.bf16.mxu0 %v11535_v12  ;;  %v11541_v22 = vpack.c.bf16 %v2607_v32, %v2606_v30  ;;  %v995_v12 = vmul.f32 %v13418_v6, %v13716_v15  ;;  %v2652_v6 = vld [vmem:[#allocation5 + $0x7b0] sm:$0xff] }
 0x1b9   :  { %v11547_v30 = vpack.c.bf16 %v2627_v23, %v2626_v50  ;;  %v2612_v50 = vld [vmem:[#allocation5 + $0x670] sm:$0xff]  ;;  %v2613_v23 = vld [vmem:[#allocation5 + $0x678] sm:$0xff] }
 0x1ba   :  { %v1650_v39 = vpop.permute.xlu0 %1649  ;;  %v14272_v1 = vadd.f32 %v1385_v31, %v1254_v61  ;;  %v11557_v31 = vpack.c.bf16 %v2631_v45, %v2630_v33  ;;  %v2286_v61 = vmax.f32 %v2156_v51, 0.0 }
 0x1bb   :  { %v2002_v38 = vsel %vm450_vm0, %v1648_v63, %v1650_v39  ;;  %11538 = vmatpush3.bf16.msra.mxu0 %v11537_v48  ;;  %v2648_v63 = vld [vmem:[#allocation5 + $0x790] sm:$0xff] }
 0x1bc   :  { %v2026_v40 = vmax.f32 %v14018_v54, %v2002_v38  ;;  %1665 = vrot.lane.b32.xlu0 %v14272_v1, %s13540_s28  ;;  %11540 = vmatprep.subr.bf16.mxu0 %v11539_v8  ;;  %v11559_v32 = vpack.c.bf16 %v2649_v27, %v2648_v63  ;;  %v1255_v38 = vadd.f32 %v1125_v44, %v994_v21  ;;  %v2634_v44 = vld [vmem:[#allocation5 + $0x720] sm:$0xff] }
 0x1be   :  { %v1652_v62 = vpop.permute.xlu1 %1651  ;;  %v14295_v54 = vpop.permute.xlu0 %1653  ;;  %v2157_v13 = vadd.f32 %v13963_v28, %v2026_v40 }
 0x1bf   :  { %v2000_v4 = vsel %vm450_vm0, %v1652_v62, %v14295_v54  ;;  %11542 = vmatpush3.bf16.msra.mxu0 %v11541_v22  ;;  %v2001_v8 = vsel %vm450_vm0, %v1650_v39, %v1652_v62  ;;  %v2628_v22 = vld [vmem:[#allocation5 + $0x6f0] sm:$0xff]  ;;  %v2635_v62 = vld [vmem:[#allocation5 + $0x728] sm:$0xff] }
 0x1c0   :  { %v2028_v55 = vmax.f32 %v14077_v52, %v2000_v4  ;;  %250 = vrot.lane.b32.xlu0 %v14282_v37, %s13540_s28  ;;  %v2287_v48 = vmax.f32 %v2157_v13, 0.0  ;;  %11544 = vmatprep.subr.bf16.mxu0 %v11543_v3  ;;  %v11561_v52 = vpack.c.bf16 %v2633_v60, %v2632_v41  ;;  %v1256_v3 = vadd.f32 %v1126_v56, %v995_v12  ;;  %v2653_v12 = vld [vmem:[#allocation5 + $0x7b8] sm:$0xff]  ;;  %v2678_v4 = vld [vmem:[#allocation5 + $0x880] sm:$0xff] }
 0x1c1   :  { %v2027_v33 = vmax.f32 %v14058_v9, %v2001_v8  ;;  %v11551_v21 = vpack.c.bf16 %v2629_v7, %v2628_v22  ;;  %v11553_v56 = vpack.c.bf16 %v2613_v23, %v2612_v50  ;;  %v11565_v41 = vpack.c.bf16 %v2635_v62, %v2634_v44  ;;  %v2662_v60 = vld [vmem:[#allocation5 + $0x800] sm:$0xff]  ;;  %v2680_v7 = vld [vmem:[#allocation5 + $0x890] sm:$0xff]  ;;  %v2639_v50 = vld [vmem:[#allocation5 + $0x748] sm:$0xff] }
 0x1c2   :  { %v626_v42 = vpop.permute.xlu1 %625  ;;  %4907 = vmatprep.mubr.f32.mxu1 %v2287_v48  ;;  %v14311_v18 = vpop.permute.xlu0 %627  ;;  %v2159_v46 = vadd.f32 %v13963_v28, %v2028_v55  ;;  %v2663_v55 = vld [vmem:[#allocation5 + $0x808] sm:$0xff]  ;;  %v11567_v48 = vpack.c.bf16 %v2653_v12, %v2652_v6  ;;  %v2682_v23 = vld [vmem:[#allocation5 + $0x8a0] sm:$0xff]  ;;  %v13419_v6 = vld [vmem:[%s17816_s1 + $0xb8] sm:$0xff] }
 0x1c3   :  { %v949_v40 = vsel %vm841_vm1, %v14261_v19, %v626_v42  ;;  %v948_v39 = vsel %vm841_vm1, %v626_v42, %v14311_v18  ;;  %4908 = vmatmul.mubr.f32.vlgmr.msra.gmra.mrb[4].mxu1 %v2286_v61  ;;  %11546 = vmatpush3.bf16.msra.mxu0 %v11545_v53  ;;  %v2679_v53 = vld [vmem:[#allocation5 + $0x888] sm:$0xff]  ;;  %v2158_v29 = vadd.f32 %v13963_v28, %v2027_v33  ;;  %v2637_v61 = vld [vmem:[#allocation5 + $0x738] sm:$0xff]  ;;  %v2664_v33 = vld [vmem:[#allocation5 + $0x810] sm:$0xff] }
 0x1c4   :  { %v1386_v51 = vmul.f32 %v13735_v34, %v949_v40  ;;  %v1387_v45 = vmul.f32 %v13735_v34, %v948_v39  ;;  %11558 = vmatpush3.bf16.msra.mxu1 %v11557_v31  ;;  %639 = vrot.lane.b32.xlu0 %v14257_v24, %s13541_s6  ;;  %v2289_v19 = vmax.f32 %v2159_v46, 0.0  ;;  %v2636_v31 = vld [vmem:[#allocation5 + $0x730] sm:$0xff]  ;;  %v2655_v42 = vld [vmem:[#allocation5 + $0x7c8] sm:$0xff]  ;;  %v11587_v46 = vpack.c.bf16 %v2679_v53, %v2678_v4  ;;  %v2681_v40 = vld [vmem:[#allocation5 + $0x898] sm:$0xff] }
 0x1c5   :  { %11548 = vmatprep.subr.bf16.mxu0 %v11547_v30  ;;  %11560 = vmatprep.subr.bf16.mxu1 %v11559_v32  ;;  %v2654_v32 = vld [vmem:[#allocation5 + $0x7c0] sm:$0xff]  ;;  %v11589_v22 = vpack.c.bf16 %v2663_v55, %v2662_v60  ;;  %v2288_v39 = vmax.f32 %v2158_v29, 0.0  ;;  %v11569_v11 = vpack.c.bf16 %v2637_v61, %v2636_v31  ;;  %v996_v12 = vmul.f32 %v13419_v6, %v13716_v15  ;;  %v2641_v60 = vld [vmem:[#allocation5 + $0x758] sm:$0xff]  ;;  %v2667_v31 = vld [vmem:[#allocation5 + $0x828] sm:$0xff] }
 0x1c6   :  { %v237_v13 = vpop.permute.xlu1 %236  ;;  %4977 = vmatprep.mubr.f32.mxu0 %v2289_v19  ;;  %v14325_v63 = vpop.permute.xlu0 %238  ;;  %v14327_v9 = vadd.f32 %v1386_v51, %v1255_v38  ;;  %v14329_v27 = vadd.f32 %v1387_v45, %v1256_v3  ;;  %v14350_v38 = vld [vmem:[%s17816_s1 + $0x100] sm:$0xff]  ;;  %v2665_v51 = vld [vmem:[#allocation5 + $0x818] sm:$0xff]  ;;  %v997_v45 = vmul.f32 %v13716_v15, %v14111_v0 }
 0x1c7   :  { %11550 = vmatpush3.bf16.msra.mxu0 %v11549_v47  ;;  %v555_v47 = vsel %vm450_vm0, %v237_v13, %v14325_v63  ;;  %v556_v19 = vsel %vm450_vm0, %v14245_v17, %v237_v13  ;;  %v14371_v17 = vld [vmem:[%s17816_s1 + $0x108] sm:$0xff]  ;;  %v2657_v13 = vld [vmem:[#allocation5 + $0x7d8] sm:$0xff]  ;;  %v11593_v4 = vpack.c.bf16 %v2665_v51, %v2664_v33 }
 0x1c8   :  { %11562 = vmatpush3.bf16.msra.mxu1 %v11561_v52  ;;  %1667 = vrot.lane.b32.xlu1 %v14327_v9, %s13540_s28  ;;  %v1127_v53 = vmul.f32 %v13718_v16, %v556_v19  ;;  %v2669_v19 = vld [vmem:[#allocation5 + $0x838] sm:$0xff] }
 0x1c9   :  { %1669 = vrot.lane.b32.xlu0 %v14329_v27, %s13540_s28  ;;  %11552 = vmatprep.subr.bf16.mxu0 %v11551_v21  ;;  %v2683_v21 = vld [vmem:[#allocation5 + $0x8a8] sm:$0xff] }
 0x1ca   :  { %v14336_v8 = vpop.permute.xlu1 %1655  ;;  %11564 = vmatprep.subr.bf16.mxu1 %v11563_v57  ;;  %v14338_v30 = vpop.permute.xlu0 %1657  ;;  %v11591_v57 = vpack.c.bf16 %v2681_v40, %v2680_v7  ;;  %v11595_v55 = vpack.c.bf16 %v2683_v21, %v2682_v23  ;;  %v1257_v51 = vadd.f32 %v1127_v53, %v996_v12  ;;  %v2643_v23 = vld [vmem:[#allocation5 + $0x768] sm:$0xff]  ;;  %v2686_v12 = vld [vmem:[#allocation5 + $0x8c0] sm:$0xff] }
 0x1cb   :  { %v1998_v52 = vsel %vm450_vm0, %v14336_v8, %v14338_v30  ;;  %11554 = vmatpush3.bf16.msra.mxu0 %v11553_v56  ;;  %v2640_v56 = vld [vmem:[#allocation5 + $0x750] sm:$0xff]  ;;  %v1999_v21 = vsel %vm450_vm0, %v14295_v54, %v14336_v8  ;;  %v2670_v8 = vld [vmem:[#allocation5 + $0x840] sm:$0xff] }
 0x1cc   :  { %v2030_v3 = vmax.f32 %v14132_v25, %v1998_v52  ;;  %11566 = vmatpush3.bf16.msra.mxu1 %v11565_v41  ;;  %641 = vrot.lane.b32.xlu1 %v14243_v5, %s13541_s6  ;;  %v11571_v25 = vpack.c.bf16 %v2655_v42, %v2654_v32  ;;  %v1128_v5 = vmul.f32 %v13718_v16, %v555_v47  ;;  %v2658_v47 = vld [vmem:[#allocation5 + $0x7e0] sm:$0xff]  ;;  %v2659_v52 = vld [vmem:[#allocation5 + $0x7e8] sm:$0xff] }
 0x1cd   :  { %643 = vrot.lane.b32.xlu0 %v14282_v37, %s13541_s6  ;;  %11568 = vmatprep.subr.bf16.mxu1 %v11567_v48  ;;  %v2656_v37 = vld [vmem:[#allocation5 + $0x7d0] sm:$0xff]  ;;  %v11573_v41 = vpack.c.bf16 %v2639_v50, %v2638_v2  ;;  %v2666_v48 = vld [vmem:[#allocation5 + $0x820] sm:$0xff]  ;;  %v11577_v40 = vpack.c.bf16 %v2641_v60, %v2640_v56  ;;  %v2687_v56 = vld [vmem:[#allocation5 + $0x8c8] sm:$0xff] }
 0x1ce   :  { %v14363_v44 = vpop.permute.xlu1 %240  ;;  %4978 = vmatmul.mubr.f32.vlgmr.msra.gmra.mrb[6].mxu0 %v2288_v39  ;;  %v14365_v62 = vpop.permute.xlu0 %242  ;;  %v2161_v0 = vadd.f32 %v13963_v28, %v2030_v3  ;;  %11588 = vmatprep.subr.bf16.mxu0 %v11587_v46  ;;  %v11575_v61 = vpack.c.bf16 %v2657_v13, %v2656_v37  ;;  %v1258_v46 = vadd.f32 %v1128_v5, %v997_v45  ;;  %v2684_v3 = vld [vmem:[#allocation5 + $0x8b0] sm:$0xff]  ;;  %v2642_v50 = vld [vmem:[#allocation5 + $0x760] sm:$0xff] }
 0x1cf   :  { %11590 = vmatpush3.bf16.msra.mxu0 %v11589_v22  ;;  %v11597_v39 = vpack.c.bf16 %v2667_v31, %v2666_v48  ;;  %v2668_v45 = vld [vmem:[#allocation5 + $0x830] sm:$0xff]  ;;  %v11581_v54 = vpack.c.bf16 %v2643_v23, %v2642_v50  ;;  %v2645_v48 = vld [vmem:[#allocation5 + $0x778] sm:$0xff]  ;;  %v2690_v50 = vld [vmem:[#allocation5 + $0x8e0] sm:$0xff] }
 0x1d0   :  { %11570 = vmatpush3.bf16.msra.mxu1 %v11569_v11  ;;  %252 = vrot.lane.b32.xlu1 %v14350_v38, %s13540_s28  ;;  %v2291_v29 = vmax.f32 %v2161_v0, 0.0  ;;  %v2685_v11 = vld [vmem:[#allocation5 + $0x8b8] sm:$0xff]  ;;  %v2660_v13 = vld [vmem:[#allocation5 + $0x7f0] sm:$0xff]  ;;  %v2691_v23 = vld [vmem:[#allocation5 + $0x8e8] sm:$0xff] }
 0x1d1   :  { %11572 = vmatprep.subr.bf16.mxu1 %v11571_v25  ;;  %254 = vrot.lane.b32.xlu0 %v14371_v17, %s13540_s28  ;;  %v11579_v25 = vpack.c.bf16 %v2659_v52, %v2658_v47  ;;  %v11599_v6 = vpack.c.bf16 %v2685_v11, %v2684_v3  ;;  %v14414_v60 = vld [vmem:[%s17816_s1 + $0x110] sm:$0xff]  ;;  %v14419_v31 = vld [vmem:[%s17816_s1 + $0x118] sm:$0xff] }
 0x1d2   :  { %v630_v32 = vpop.permute.xlu1 %629  ;;  %5047 = vmatprep.mubr.f32.mxu1 %v2291_v29  ;;  %v632_v42 = vpop.permute.xlu0 %631  ;;  %11592 = vmatprep.subr.bf16.mxu0 %v11591_v57  ;;  %v2661_v57 = vld [vmem:[#allocation5 + $0x7f8] sm:$0xff]  ;;  %v2671_v29 = vld [vmem:[#allocation5 + $0x848] sm:$0xff]  ;;  %v2672_v11 = vld [vmem:[#allocation5 + $0x850] sm:$0xff] }
 0x1d3   :  { %v947_v22 = vsel %vm841_vm1, %v14311_v18, %v630_v32  ;;  %v946_v7 = vsel %vm841_vm1, %v630_v32, %v632_v42  ;;  %11594 = vmatpush3.bf16.msra.mxu0 %v11593_v4  ;;  %v554_v18 = vsel %vm450_vm0, %v14325_v63, %v14363_v44  ;;  %v11601_v63 = vpack.c.bf16 %v2669_v19, %v2668_v45  ;;  %v2711_v32 = vld [vmem:[#allocation5 + $0x988] sm:$0xff]  ;;  %v2712_v19 = vld [vmem:[#allocation5 + $0x990] sm:$0xff] }
 0x1d4   :  { %v1388_v2 = vmul.f32 %v13735_v34, %v947_v22  ;;  %v1389_v33 = vmul.f32 %v13735_v34, %v946_v7  ;;  %11574 = vmatpush3.bf16.msra.mxu1 %v11573_v41  ;;  %11596 = vmatprep.subr.bf16.mxu0 %v11595_v55  ;;  %v998_v4 = vmul.f32 %v13716_v15, %v14116_v59  ;;  %v2644_v55 = vld [vmem:[#allocation5 + $0x770] sm:$0xff]  ;;  %v2689_v7 = vld [vmem:[#allocation5 + $0x8d8] sm:$0xff]  ;;  %v2695_v45 = vld [vmem:[#allocation5 + $0x908] sm:$0xff] }
 0x1d5   :  { %11576 = vmatprep.subr.bf16.mxu1 %v11575_v61  ;;  %v1129_v53 = vmul.f32 %v13718_v16, %v554_v18  ;;  %v2029_v41 = vmax.f32 %v14079_v36, %v1999_v21  ;;  %v11583_v59 = vpack.c.bf16 %v2661_v57, %v2660_v13  ;;  %v2710_v36 = vld [vmem:[#allocation5 + $0x980] sm:$0xff]  ;;  %v11605_v52 = vpack.c.bf16 %v2671_v29, %v2670_v8  ;;  %v2688_v22 = vld [vmem:[#allocation5 + $0x8d0] sm:$0xff]  ;;  %v2713_v18 = vld [vmem:[#allocation5 + $0x998] sm:$0xff] }
 0x1d6   :  { %v14397_v5 = vpop.permute.xlu1 %1659  ;;  %v14399_v0 = vadd.f32 %v1388_v2, %v1257_v51  ;;  %v14401_v37 = vadd.f32 %v1389_v33, %v1258_v46  ;;  %v11603_v46 = vpack.c.bf16 %v2687_v56, %v2686_v12  ;;  %v2673_v2 = vld [vmem:[#allocation5 + $0x858] sm:$0xff]  ;;  %v2694_v51 = vld [vmem:[#allocation5 + $0x900] sm:$0xff]  ;;  %v11623_v56 = vpack.c.bf16 %v2713_v18, %v2712_v19  ;;  %v2715_v29 = vld [vmem:[#allocation5 + $0x9a8] sm:$0xff] }
 0x1d7   :  { %11598 = vmatpush3.bf16.msra.mxu0 %v11597_v39  ;;  %v11585_v39 = vpack.c.bf16 %v2645_v48, %v2644_v55  ;;  %v1259_v3 = vadd.f32 %v1129_v53, %v998_v4  ;;  %v2160_v33 = vadd.f32 %v13963_v28, %v2029_v41  ;;  %v11609_v21 = vpack.c.bf16 %v2673_v2, %v2672_v11  ;;  %v2696_v4 = vld [vmem:[#allocation5 + $0x910] sm:$0xff]  ;;  %v2697_v53 = vld [vmem:[#allocation5 + $0x918] sm:$0xff]  ;;  %v14445_v2 = vld [vmem:[%s17816_s1 + $0x120] sm:$0xff] }
 0x1d8   :  { %11578 = vmatpush3.bf16.msra.mxu1 %v11577_v40  ;;  %1671 = vrot.lane.b32.xlu1 %v14399_v0, %s13540_s28  ;;  %v11621_v57 = vpack.c.bf16 %v2695_v45, %v2694_v51  ;;  %v11611_v8 = vpack.c.bf16 %v2691_v23, %v2690_v50  ;;  %v2692_v41 = vld [vmem:[#allocation5 + $0x8f0] sm:$0xff]  ;;  %v11625_v48 = vpack.c.bf16 %v2697_v53, %v2696_v4  ;;  %v2701_v51 = vld [vmem:[#allocation5 + $0x938] sm:$0xff]  ;;  %v2718_v19 = vld [vmem:[#allocation5 + $0x9c0] sm:$0xff] }
 0x1d9   :  { %1673 = vrot.lane.b32.xlu0 %v14401_v37, %s13540_s28  ;;  %11580 = vmatprep.subr.bf16.mxu1 %v11579_v25  ;;  %v11607_v25 = vpack.c.bf16 %v2689_v7, %v2688_v22  ;;  %v2290_v12 = vmax.f32 %v2160_v33, 0.0  ;;  %v2717_v7 = vld [vmem:[#allocation5 + $0x9b8] sm:$0xff]  ;;  %v2719_v18 = vld [vmem:[#allocation5 + $0x9c8] sm:$0xff]  ;;  %v2702_v50 = vld [vmem:[#allocation5 + $0x940] sm:$0xff] }
 0x1da   :  { %v14421_v61 = vpop.permute.xlu1 %633  ;;  %11600 = vmatprep.subr.bf16.mxu0 %v11599_v6  ;;  %v2674_v6 = vld [vmem:[#allocation5 + $0x860] sm:$0xff]  ;;  %v2703_v23 = vld [vmem:[#allocation5 + $0x948] sm:$0xff] }
 0x1db   :  { %v945_v47 = vsel %vm841_vm1, %v632_v42, %v14421_v61  ;;  %11602 = vmatpush3.bf16.msra.mxu0 %v11601_v63  ;;  %v11619_v42 = vpack.c.bf16 %v2711_v32, %v2710_v36  ;;  %v2675_v63 = vld [vmem:[#allocation5 + $0x868] sm:$0xff]  ;;  %v2676_v36 = vld [vmem:[#allocation5 + $0x870] sm:$0xff]  ;;  %v2722_v4 = vld [vmem:[#allocation5 + $0x9e0] sm:$0xff] }
 0x1dc   :  { %11582 = vmatpush3.bf16.msra.mxu1 %v11581_v54  ;;  %256 = vrot.lane.b32.xlu1 %v14414_v60, %s13540_s28  ;;  %v1390_v40 = vmul.f32 %v13735_v34, %v945_v47  ;;  %v2714_v54 = vld [vmem:[#allocation5 + $0x9a0] sm:$0xff]  ;;  %v11613_v55 = vpack.c.bf16 %v2675_v63, %v2674_v6  ;;  %v2699_v47 = vld [vmem:[#allocation5 + $0x928] sm:$0xff]  ;;  %v11637_v6 = vpack.c.bf16 %v2703_v23, %v2702_v50 }
 0x1dd   :  { %258 = vrot.lane.b32.xlu0 %v14419_v31, %s13540_s28  ;;  %11584 = vmatprep.subr.bf16.mxu1 %v11583_v59  ;;  %v2693_v59 = vld [vmem:[#allocation5 + $0x8f8] sm:$0xff]  ;;  %v11627_v32 = vpack.c.bf16 %v2715_v29, %v2714_v54  ;;  %v2723_v53 = vld [vmem:[#allocation5 + $0x9e8] sm:$0xff]  ;;  %v2706_v29 = vld [vmem:[#allocation5 + $0x960] sm:$0xff] }
 0x1de   :  { %11604 = vmatprep.subr.bf16.mxu0 %v11603_v46  ;;  %v14434_v13 = vadd.f32 %v1390_v40, %v1259_v3  ;;  %v2698_v46 = vld [vmem:[#allocation5 + $0x920] sm:$0xff]  ;;  %v11615_v22 = vpack.c.bf16 %v2693_v59, %v2692_v41  ;;  %v2707_v41 = vld [vmem:[#allocation5 + $0x968] sm:$0xff]  ;;  %v2724_v59 = vld [vmem:[#allocation5 + $0x9f0] sm:$0xff] }
 0x1df   :  { %11606 = vmatpush3.bf16.msra.mxu0 %v11605_v52  ;;  %v2716_v52 = vld [vmem:[#allocation5 + $0x9b0] sm:$0xff]  ;;  %v2742_v40 = vld [vmem:[#allocation5 + $0xa80] sm:$0xff]  ;;  %v11629_v11 = vpack.c.bf16 %v2699_v47, %v2698_v46  ;;  %v2775_v47 = vld [vmem:[#allocation5 + $0xb88] sm:$0xff] }
 0x1e0   :  { %11586 = vmatpush3.bf16.msra.mxu1 %v11585_v39  ;;  %645 = vrot.lane.b32.xlu1 %v14350_v38, %s13541_s6  ;;  %v2743_v39 = vld [vmem:[#allocation5 + $0xa88] sm:$0xff]  ;;  %v11631_v33 = vpack.c.bf16 %v2717_v7, %v2716_v52  ;;  %v2774_v46 = vld [vmem:[#allocation5 + $0xb80] sm:$0xff] }
 0x1e1   :  { %647 = vrot.lane.b32.xlu0 %v14371_v17, %s13541_s6  ;;  %11620 = vmatprep.subr.bf16.mxu1 %v11619_v42  ;;  %v2677_v17 = vld [vmem:[#allocation5 + $0x878] sm:$0xff]  ;;  %v2700_v42 = vld [vmem:[#allocation5 + $0x930] sm:$0xff]  ;;  %v11651_v45 = vpack.c.bf16 %v2743_v39, %v2742_v40 }
 0x1e2   :  { %11608 = vmatprep.subr.bf16.mxu0 %v11607_v25  ;;  %v11617_v3 = vpack.c.bf16 %v2677_v17, %v2676_v36  ;;  %v11635_v25 = vpack.c.bf16 %v2719_v18, %v2718_v19  ;;  %v2708_v17 = vld [vmem:[#allocation5 + $0x970] sm:$0xff]  ;;  %v14453_v18 = vpop.permute.xlu1 %244 }
 0x1e3   :  { %5048 = vmatmul.mubr.f32.vlgmr.msra.gmra.mrb[6].mxu1 %v2290_v12  ;;  %11610 = vmatpush3.bf16.msra.mxu0 %v11609_v21  ;;  %v2720_v21 = vld [vmem:[#allocation5 + $0x9d0] sm:$0xff] }
 0x1e4   :  { %1675 = vrot.lane.b32.xlu1 %v14434_v13, %s13540_s28  ;;  %11622 = vmatpush3.bf16.msra.mxu1 %v11621_v57  ;;  %v2721_v57 = vld [vmem:[#allocation5 + $0x9d8] sm:$0xff]  ;;  %v2704_v12 = vld [vmem:[#allocation5 + $0x950] sm:$0xff] }
 0x1e5   :  { %11624 = vmatprep.subr.bf16.mxu1 %v11623_v56  ;;  %11612 = vmatprep.subr.bf16.mxu0 %v11611_v8  ;;  %v11639_v63 = vpack.c.bf16 %v2721_v57, %v2720_v21  ;;  %v2705_v56 = vld [vmem:[#allocation5 + $0x958] sm:$0xff]  ;;  %v11643_v8 = vpack.c.bf16 %v2723_v53, %v2722_v4 }
 0x1e6   :  { %v11641_v54 = vpack.c.bf16 %v2705_v56, %v2704_v12  ;;  %v2726_v12 = vld [vmem:[#allocation5 + $0xa00] sm:$0xff]  ;;  %v552_v56 = vsel %vm450_vm0, %v14365_v62, %v14453_v18 }
 0x1e7   :  { %11614 = vmatpush3.bf16.msra.mxu0 %v11613_v55  ;;  %v2725_v55 = vld [vmem:[#allocation5 + $0x9f8] sm:$0xff] }
 0x1e8   :  { %649 = vrot.lane.b32.xlu1 %v14414_v60, %s13541_s6  ;;  %11626 = vmatpush3.bf16.msra.mxu1 %v11625_v48  ;;  %v11633_v60 = vpack.c.bf16 %v2701_v51, %v2700_v42  ;;  %v11645_v48 = vpack.c.bf16 %v2707_v41, %v2706_v29  ;;  %v11647_v36 = vpack.c.bf16 %v2725_v55, %v2724_v59 }
 0x1e9   :  { %11628 = vmatprep.subr.bf16.mxu1 %v11627_v32  ;;  %11616 = vmatprep.subr.bf16.mxu0 %v11615_v22  ;;  %v2709_v32 = vld [vmem:[#allocation5 + $0x978] sm:$0xff]  ;;  %v11683_v22 = vpack.c.bf16 %v2775_v47, %v2774_v46  ;;  %v1131_v47 = vmul.f32 %v13718_v16, %v552_v56  ;;  %v14515_v56 = vld [vmem:[%s17816_s1 + $0x130] sm:$0xff] }
 0x1ea   :  { %v11649_v52 = vpack.c.bf16 %v2709_v32, %v2708_v17 }
 0x1eb   :  { %11618 = vmatpush3.bf16.msra.mxu0 %v11617_v3  ;;  %v9055_v3 = vld [vmem:[#allocation6] ss:$0 sm:$0xff] }
 0x1ec   :  { %11630 = vmatpush3.bf16.msra.mxu1 %v11629_v11  ;;  %260 = vrot.lane.b32.xlu1 %v14445_v2, %s13540_s28 }
 0x1ed   :  { %11632 = vmatprep.subr.bf16.mxu1 %v11631_v33  ;;  %11652 = vmatprep.subr.bf16.mxu0 %v11651_v45  ;;  %v1997_v45 = vsel %vm450_vm0, %v14338_v30, %v14397_v5  ;;  %v13420_v30 = vld [vmem:[%s17816_s1 + $0xd0] sm:$0xff] }
 0x1ee   :  { %v999_v57 = vmul.f32 %v13420_v30, %v13716_v15  ;;  %v2731_v30 = vld [vmem:[#allocation5 + $0xa28] sm:$0xff] }
 0x1f0   :  { %11634 = vmatpush3.bf16.msra.mxu1 %v11633_v60  ;;  %v553_v60 = vsel %vm450_vm0, %v14363_v44, %v14365_v62  ;;  %v2727_v44 = vld [vmem:[#allocation5 + $0xa08] sm:$0xff]  ;;  %v13421_v62 = vld [vmem:[%s17816_s1 + $0xd8] sm:$0xff] }
 0x1f1   :  { %11636 = vmatprep.subr.bf16.mxu1 %v11635_v25  ;;  %v2031_v25 = vmax.f32 %v14134_v35, %v1997_v45  ;;  %v11653_v59 = vpack.c.bf16 %v2727_v44, %v2726_v12  ;;  %v1000_v32 = vmul.f32 %v13421_v62, %v13716_v15  ;;  %v2734_v62 = vld [vmem:[#allocation5 + $0xa40] sm:$0xff] }
 0x1f3   :  { %v2162_v35 = vadd.f32 %v13963_v28, %v2031_v25 }
 0x1f4   :  { %11638 = vmatpush3.bf16.msra.mxu1 %v11637_v6  ;;  %v1130_v6 = vmul.f32 %v13718_v16, %v553_v60 }
 0x1f5   :  { %11640 = vmatprep.subr.bf16.mxu1 %v11639_v63  ;;  %v2292_v46 = vmax.f32 %v2162_v35, 0.0 }
 0x1f6   :  { %v1260_v17 = vadd.f32 %v1130_v6, %v999_v57  ;;  %v2748_v57 = vld [vmem:[#allocation5 + $0xab0] sm:$0xff]  ;;  %v2749_v6 = vld [vmem:[#allocation5 + $0xab8] sm:$0xff] }
 0x1f8   :  { %11642 = vmatpush3.bf16.msra.mxu1 %v11641_v54  ;;  %v2744_v54 = vld [vmem:[#allocation5 + $0xa90] sm:$0xff] }
 0x1f9   :  { %11644 = vmatprep.subr.bf16.mxu1 %v11643_v8  ;;  %v2745_v8 = vld [vmem:[#allocation5 + $0xa98] sm:$0xff] }
 0x1fc   :  { %11646 = vmatpush3.bf16.msra.mxu1 %v11645_v48 }
 0x1fd   :  { %11648 = vmatprep.subr.bf16.mxu1 %v11647_v36 }
 0x200   :  { %11650 = vmatpush3.bf16.msra.mxu1 %v11649_v52  ;;  %v11655_v52 = vpack.c.bf16 %v2745_v8, %v2744_v54  ;;  %v2759_v8 = vld [vmem:[#allocation5 + $0xb08] sm:$0xff] }
 0x201   :  { %11684 = vmatprep.subr.bf16.mxu1 %v11683_v22  ;;  %v2728_v22 = vld [vmem:[#allocation5 + $0xa10] sm:$0xff] }
 0x205   :  { %v9088_v7 = vpop.f32.mrb[0].mxu0 }
 0x206   :  { %v9089_v40 = vpop.f32.mrb[1].mxu0 }
 0x207   :  { %v9090_v39 = vadd.f32 %v9089_v40, %v9088_v7  ;;  %v2729_v7 = vld [vmem:[#allocation5 + $0xa18] sm:$0xff] }
 0x208   :  { %v11657_v45 = vpack.c.bf16 %v2729_v7, %v2728_v22  ;;  %v2735_v22 = vld [vmem:[#allocation5 + $0xa48] sm:$0xff]  ;;  %v2760_v7 = vld [vmem:[#allocation5 + $0xb10] sm:$0xff] }
 0x209   :  { %v4560_v42 = vadd.f32 %v9090_v39, %v9055_v3  ;;  %v2746_v3 = vld [vmem:[#allocation5 + $0xaa0] sm:$0xff] }
 0x219   :  { %v9123_v11 = vpop.f32.mrb[0].mxu1 }
 0x21a   :  { %v9124_v33 = vpop.f32.mrb[1].mxu1 }
 0x21b   :  { %v9125_v51 = vadd.f32 %v9124_v33, %v9123_v11  ;;  %v2747_v11 = vld [vmem:[#allocation5 + $0xaa8] sm:$0xff] }
 0x21c   :  { %v11659_v25 = vpack.c.bf16 %v2747_v11, %v2746_v3  ;;  %v2761_v3 = vld [vmem:[#allocation5 + $0xb18] sm:$0xff] }
 0x21d   :  { %v4630_v19 = vadd.f32 %v9125_v51, %v4560_v42 }
 0x221   :  { %v1662_v50 = vpop.permute.xlu0 %1661 }
 0x222   :  { %v1664_v23 = vpop.permute.xlu1 %1663  ;;  %v1996_v21 = vsel %vm450_vm0, %v14397_v5, %v1662_v50 }
 0x223   :  { %v2032_v63 = vmax.f32 %v14184_v14, %v1996_v21  ;;  %v1995_v33 = vsel %vm450_vm0, %v1662_v50, %v1664_v23  ;;  %v2730_v21 = vld [vmem:[#allocation5 + $0xa20] sm:$0xff] }
 0x224   :  { %v2033_v50 = vmax.f32 %v14230_v43, %v1995_v33  ;;  %v11661_v35 = vpack.c.bf16 %v2731_v30, %v2730_v21  ;;  %v2779_v21 = vld [vmem:[#allocation5 + $0xba8] sm:$0xff] }
 0x225   :  { %v9158_v5 = vpop.f32.mrb[2].mxu0  ;;  %v636_v4 = vpop.permute.xlu0 %635  ;;  %v2163_v53 = vadd.f32 %v13963_v28, %v2032_v63 }
 0x226   :  { %v9159_v29 = vpop.f32.mrb[3].mxu0  ;;  %v14475_v41 = vpop.permute.xlu1 %248  ;;  %v944_v14 = vsel %vm841_vm1, %v14421_v61, %v636_v4 }
 0x227   :  { %v9160_v55 = vadd.f32 %v9159_v29, %v9158_v5  ;;  %v1391_v48 = vmul.f32 %v13735_v34, %v944_v14  ;;  %v2293_v36 = vmax.f32 %v2163_v53, 0.0  ;;  %v11663_v5 = vpack.c.bf16 %v2749_v6, %v2748_v57  ;;  %v2733_v53 = vld [vmem:[#allocation5 + $0xa38] sm:$0xff]  ;;  %v2750_v29 = vld [vmem:[#allocation5 + $0xac0] sm:$0xff]  ;;  %v2736_v6 = vld [vmem:[#allocation5 + $0xa50] sm:$0xff] }
 0x228   :  { %v11689_v57 = vpack.c.bf16 %v2761_v3, %v2760_v7  ;;  %v2765_v7 = vld [vmem:[#allocation5 + $0xb38] sm:$0xff] }
 0x229   :  { %v14486_v40 = vadd.f32 %v9160_v55, %v4630_v19  ;;  %5117 = vmatprep.mubr.f32.mxu0 %v2293_v36  ;;  %v14488_v61 = vpop.permute.xlu0 %246  ;;  %v14490_v39 = vadd.f32 %v1391_v48, %v1260_v17  ;;  %v1261_v19 = vadd.f32 %v1131_v47, %v1000_v32  ;;  %v2751_v55 = vld [vmem:[#allocation5 + $0xac8] sm:$0xff]  ;;  %v2776_v48 = vld [vmem:[#allocation5 + $0xb90] sm:$0xff]  ;;  %v2777_v36 = vld [vmem:[#allocation5 + $0xb98] sm:$0xff] }
 0x22a   :  { %v14494_v42 = vpop.permute.xlu1 %637  ;;  %5118 = vmatmul.mubr.f32.vlgmr.msra.gmra.mrb[8].mxu0 %v2292_v46  ;;  %v551_v54 = vsel %vm450_vm0, %v14453_v18, %v14488_v61  ;;  %v13422_v18 = vld [vmem:[%s17816_s1 + $0xe0] sm:$0xff]  ;;  %v11667_v33 = vpack.c.bf16 %v2751_v55, %v2750_v29  ;;  %v2780_v29 = vld [vmem:[#allocation5 + $0xbb0] sm:$0xff] }
 0x22b   :  { %v943_v51 = vsel %vm841_vm1, %v636_v4, %v14494_v42  ;;  %11654 = vmatpush3.bf16.msra.mxu0 %v11653_v59  ;;  %1677 = vrot.lane.b32.xlu0 %v14490_v39, %s13540_s28  ;;  %v2732_v4 = vld [vmem:[#allocation5 + $0xa30] sm:$0xff]  ;;  %v1001_v32 = vmul.f32 %v13422_v18, %v13716_v15  ;;  %v1132_v46 = vmul.f32 %v13718_v16, %v551_v54 }
 0x22c   :  { %v1392_v60 = vmul.f32 %v13735_v34, %v943_v51  ;;  %11656 = vmatprep.subr.bf16.mxu0 %v11655_v52  ;;  %v11665_v17 = vpack.c.bf16 %v2733_v53, %v2732_v4  ;;  %v11687_v51 = vpack.c.bf16 %v2777_v36, %v2776_v48  ;;  %v2754_v53 = vld [vmem:[#allocation5 + $0xae0] sm:$0xff] }
 0x22e   :  { %v14503_v63 = vadd.f32 %v1392_v60, %v1261_v19  ;;  %v14505_v12 = vpop.permute.xlu0 %1665  ;;  %v2753_v60 = vld [vmem:[#allocation5 + $0xad8] sm:$0xff] }
 0x22f   :  { %v1994_v44 = vsel %vm450_vm0, %v1664_v23, %v14505_v12  ;;  %11658 = vmatpush3.bf16.msra.mxu0 %v11657_v45  ;;  %651 = vrot.lane.b32.xlu0 %v14419_v31, %s13541_s6  ;;  %v14523_v23 = vld [vmem:[%s17816_s1 + $0x128] sm:$0xff]  ;;  %v2164_v31 = vadd.f32 %v13963_v28, %v2033_v50  ;;  %v2752_v45 = vld [vmem:[#allocation5 + $0xad0] sm:$0xff]  ;;  %v11669_v50 = vpack.c.bf16 %v2735_v22, %v2734_v62  ;;  %v2738_v62 = vld [vmem:[#allocation5 + $0xa60] sm:$0xff] }
 0x230   :  { %v2034_v43 = vmax.f32 %v14232_v10, %v1994_v44  ;;  %1679 = vrot.lane.b32.xlu1 %v14503_v63, %s13540_s28  ;;  %11660 = vmatprep.subr.bf16.mxu0 %v11659_v25  ;;  %v2758_v10 = vld [vmem:[#allocation5 + $0xb00] sm:$0xff]  ;;  %v2737_v44 = vld [vmem:[#allocation5 + $0xa58] sm:$0xff]  ;;  %v2764_v22 = vld [vmem:[#allocation5 + $0xb30] sm:$0xff] }
 0x231   :  { %v11685_v52 = vpack.c.bf16 %v2759_v8, %v2758_v10  ;;  %v2294_v11 = vmax.f32 %v2164_v31, 0.0  ;;  %v2778_v25 = vld [vmem:[#allocation5 + $0xba0] sm:$0xff]  ;;  %v2755_v31 = vld [vmem:[#allocation5 + $0xae8] sm:$0xff]  ;;  %v11671_v10 = vpack.c.bf16 %v2753_v60, %v2752_v45  ;;  %v13423_v60 = vld [vmem:[%s17816_s1 + $0xf0] sm:$0xff] }
 0x232   :  { %v14530_v14 = vpop.permute.xlu0 %250  ;;  %v2165_v59 = vadd.f32 %v13963_v28, %v2034_v43  ;;  %v550_v43 = vsel %vm450_vm0, %v14488_v61, %v14475_v41  ;;  %v11691_v8 = vpack.c.bf16 %v2779_v21, %v2778_v25  ;;  %v1002_v61 = vmul.f32 %v13716_v15, %v14257_v24 }
 0x233   :  { %11662 = vmatpush3.bf16.msra.mxu0 %v11661_v35  ;;  %262 = vrot.lane.b32.xlu0 %v14523_v23, %s13540_s28  ;;  %v2762_v35 = vld [vmem:[#allocation5 + $0xb20] sm:$0xff]  ;;  %v549_v24 = vsel %vm450_vm0, %v14475_v41, %v14530_v14  ;;  %v14581_v41 = vld [vmem:[%s17816_s1 + $0x138] sm:$0xff] }
 0x234   :  { %264 = vrot.lane.b32.xlu1 %v14515_v56, %s13540_s28  ;;  %v2295_v47 = vmax.f32 %v2165_v59, 0.0  ;;  %11664 = vmatprep.subr.bf16.mxu0 %v11663_v5  ;;  %v1262_v5 = vadd.f32 %v1132_v46, %v1001_v32  ;;  %v2781_v59 = vld [vmem:[#allocation5 + $0xbb8] sm:$0xff] }
 0x236   :  { %5187 = vmatprep.mubr.f32.mxu1 %v2295_v47  ;;  %v14542_v19 = vpop.permute.xlu0 %639  ;;  %v11675_v47 = vpack.c.bf16 %v2755_v31, %v2754_v53  ;;  %v2741_v31 = vld [vmem:[#allocation5 + $0xa78] sm:$0xff] }
 0x237   :  { %v942_v30 = vsel %vm841_vm1, %v14494_v42, %v14542_v19  ;;  %5188 = vmatmul.mubr.f32.vlgmr.msra.gmra.mrb[8].mxu1 %v2294_v11  ;;  %11666 = vmatpush3.bf16.msra.mxu0 %v11665_v17  ;;  %v2763_v42 = vld [vmem:[#allocation5 + $0xb28] sm:$0xff]  ;;  %v11673_v17 = vpack.c.bf16 %v2737_v44, %v2736_v6  ;;  %v11695_v11 = vpack.c.bf16 %v2781_v59, %v2780_v29 }
 0x238   :  { %v1393_v4 = vmul.f32 %v13735_v34, %v942_v30  ;;  %11686 = vmatpush3.bf16.msra.mxu1 %v11685_v52  ;;  %653 = vrot.lane.b32.xlu1 %v14445_v2, %s13541_s6  ;;  %v1133_v2 = vmul.f32 %v13718_v16, %v550_v43  ;;  %v11693_v46 = vpack.c.bf16 %v2763_v42, %v2762_v35  ;;  %v2739_v52 = vld [vmem:[#allocation5 + $0xa68] sm:$0xff]  ;;  %v2782_v43 = vld [vmem:[#allocation5 + $0xbc0] sm:$0xff] }
 0x239   :  { %v9193_v54 = vpop.f32.mrb[2].mxu1  ;;  %11668 = vmatprep.subr.bf16.mxu0 %v11667_v33  ;;  %11688 = vmatprep.subr.bf16.mxu1 %v11687_v51  ;;  %v11677_v21 = vpack.c.bf16 %v2739_v52, %v2738_v62  ;;  %v11697_v30 = vpack.c.bf16 %v2765_v7, %v2764_v22  ;;  %v2767_v29 = vld [vmem:[#allocation5 + $0xb48] sm:$0xff]  ;;  %v2806_v62 = vld [vmem:[#allocation5 + $0xc80] sm:$0xff] }
 0x23a   :  { %v14557_v55 = vadd.f32 %v1393_v4, %v1262_v5  ;;  %v9194_v48 = vpop.f32.mrb[3].mxu1  ;;  %v1668_v36 = vpop.permute.xlu1 %1667  ;;  %v2783_v5 = vld [vmem:[#allocation5 + $0xbc8] sm:$0xff]  ;;  %v2790_v52 = vld [vmem:[#allocation5 + $0xc00] sm:$0xff] }
 0x23b   :  { %v9195_v18 = vadd.f32 %v9194_v48, %v9193_v54  ;;  %v14560_v32 = vpop.permute.xlu0 %1669  ;;  %11670 = vmatpush3.bf16.msra.mxu0 %v11669_v50  ;;  %v1993_v51 = vsel %vm450_vm0, %v14505_v12, %v1668_v36  ;;  %v2756_v50 = vld [vmem:[#allocation5 + $0xaf0] sm:$0xff]  ;;  %v2757_v12 = vld [vmem:[#allocation5 + $0xaf8] sm:$0xff]  ;;  %v2791_v22 = vld [vmem:[#allocation5 + $0xc08] sm:$0xff] }
 0x23c   :  { %v1992_v3 = vsel %vm450_vm0, %v1668_v36, %v14560_v32  ;;  %11690 = vmatpush3.bf16.msra.mxu1 %v11689_v57  ;;  %1681 = vrot.lane.b32.xlu0 %v14557_v55, %s13540_s28  ;;  %v1263_v57 = vadd.f32 %v1133_v2, %v1002_v61  ;;  %v2035_v4 = vmax.f32 %v14272_v1, %v1993_v51  ;;  %v2784_v48 = vld [vmem:[#allocation5 + $0xbd0] sm:$0xff]  ;;  %v2785_v36 = vld [vmem:[#allocation5 + $0xbd8] sm:$0xff]  ;;  %v2807_v2 = vld [vmem:[#allocation5 + $0xc88] sm:$0xff] }
 0x23d   :  { %v14572_v33 = vadd.f32 %v9195_v18, %v14486_v40  ;;  %v2036_v45 = vmax.f32 %v14327_v9, %v1992_v3  ;;  %11672 = vmatprep.subr.bf16.mxu0 %v11671_v10  ;;  %11692 = vmatprep.subr.bf16.mxu1 %v11691_v8  ;;  %v1003_v40 = vmul.f32 %v13423_v60, %v13716_v15  ;;  %v2766_v8 = vld [vmem:[#allocation5 + $0xb40] sm:$0xff]  ;;  %v2768_v3 = vld [vmem:[#allocation5 + $0xb50] sm:$0xff] }
 0x23e   :  { %v642_v25 = vpop.permute.xlu1 %641  ;;  %v1134_v9 = vmul.f32 %v13718_v16, %v549_v24  ;;  %v11679_v10 = vpack.c.bf16 %v2757_v12, %v2756_v50  ;;  %v11699_v61 = vpack.c.bf16 %v2783_v5, %v2782_v43  ;;  %v11703_v24 = vpack.c.bf16 %v2785_v36, %v2784_v48  ;;  %v2786_v51 = vld [vmem:[#allocation5 + $0xbe0] sm:$0xff]  ;;  %v14615_v50 = vld [vmem:[#allocation5 + $0xbf0] sm:$0xff]  ;;  %v2789_v43 = vld [vmem:[#allocation5 + $0xbf8] sm:$0xff] }
 0x23f   :  { %v941_v6 = vsel %vm841_vm1, %v14542_v19, %v642_v25  ;;  %v14591_v44 = vpop.permute.xlu0 %643  ;;  %11674 = vmatpush3.bf16.msra.mxu0 %v11673_v17  ;;  %v2167_v35 = vadd.f32 %v13963_v28, %v2036_v45  ;;  %v2740_v19 = vld [vmem:[#allocation5 + $0xa70] sm:$0xff]  ;;  %v11717_v12 = vpack.c.bf16 %v2791_v22, %v2790_v52 }
 0x240   :  { %v1394_v42 = vmul.f32 %v13735_v34, %v941_v6  ;;  %v940_v53 = vsel %vm841_vm1, %v642_v25, %v14591_v44  ;;  %11694 = vmatpush3.bf16.msra.mxu1 %v11693_v46  ;;  %266 = vrot.lane.b32.xlu0 %v14581_v41, %s13540_s28  ;;  %v11681_v17 = vpack.c.bf16 %v2741_v31, %v2740_v19  ;;  %v14613_v25 = vld [vmem:[#allocation5 + $0xb60] sm:$0xff]  ;;  %v2792_v5 = vld [vmem:[#allocation5 + $0xc10] sm:$0xff]  ;;  %v2811_v19 = vld [vmem:[#allocation5 + $0xca8] sm:$0xff] }
 0x241   :  { %11676 = vmatprep.subr.bf16.mxu0 %v11675_v47  ;;  %v2297_v54 = vmax.f32 %v2167_v35, 0.0  ;;  %11696 = vmatprep.subr.bf16.mxu1 %v11695_v11  ;;  %v1395_v1 = vmul.f32 %v13735_v34, %v940_v53  ;;  %v1264_v18 = vadd.f32 %v1134_v9, %v1003_v40  ;;  %v2166_v46 = vadd.f32 %v13963_v28, %v2035_v4  ;;  %v2769_v11 = vld [vmem:[#allocation5 + $0xb58] sm:$0xff]  ;;  %v2787_v40 = vld [vmem:[#allocation5 + $0xbe8] sm:$0xff]  ;;  %v2810_v53 = vld [vmem:[#allocation5 + $0xca0] sm:$0xff] }
 0x242   :  { %v14601_v59 = vadd.f32 %v1394_v42, %v1263_v57  ;;  %v11701_v47 = vpack.c.bf16 %v2767_v29, %v2766_v8  ;;  %v253_v60 = vpop.permute.xlu1 %252  ;;  %v2808_v57 = vld [vmem:[#allocation5 + $0xc90] sm:$0xff]  ;;  %v2809_v9 = vld [vmem:[#allocation5 + $0xc98] sm:$0xff]  ;;  %v11705_v35 = vpack.c.bf16 %v2769_v11, %v2768_v3  ;;  %v11707_v42 = vpack.c.bf16 %v2787_v40, %v2786_v51  ;;  %v2839_v11 = vld [vmem:[#allocation5 + $0xd88] sm:$0xff] }
 0x243   :  { %5257 = vmatprep.mubr.f32.mxu0 %v2297_v54  ;;  %11678 = vmatpush3.bf16.msra.mxu0 %v11677_v21  ;;  %v14609_v7 = vpop.permute.xlu0 %254  ;;  %v14611_v45 = vadd.f32 %v1395_v1, %v1264_v18  ;;  %v2771_v21 = vld [vmem:[#allocation5 + $0xb68] sm:$0xff]  ;;  %v2296_v6 = vmax.f32 %v2166_v46, 0.0  ;;  %v2793_v4 = vld [vmem:[#allocation5 + $0xc18] sm:$0xff]  ;;  %v14624_v54 = vld [vmem:[%s17816_s1 + $0x140] sm:$0xff]  ;;  %v11711_v1 = vpack.c.bf16 %v2789_v43, %v14615_v50  ;;  %v548_v46 = vsel %vm450_vm0, %v14530_v14, %v253_v60 }
 0x244   :  { %11698 = vmatpush3.bf16.msra.mxu1 %v11697_v30  ;;  %655 = vrot.lane.b32.xlu0 %v14523_v23, %s13541_s6  ;;  %v11715_v30 = vpack.c.bf16 %v2807_v2, %v2806_v62  ;;  %v11721_v48 = vpack.c.bf16 %v2793_v4, %v2792_v5  ;;  %v547_v36 = vsel %vm450_vm0, %v253_v60, %v14609_v7  ;;  %v2794_v2 = vld [vmem:[#allocation5 + $0xc20] sm:$0xff]  ;;  %v2795_v18 = vld [vmem:[#allocation5 + $0xc28] sm:$0xff]  ;;  %v2812_v22 = vld [vmem:[#allocation5 + $0xcb0] sm:$0xff] }
 0x245   :  { %1683 = vrot.lane.b32.xlu1 %v14601_v59, %s13540_s28  ;;  %11680 = vmatprep.subr.bf16.mxu0 %v11679_v10  ;;  %v11719_v10 = vpack.c.bf16 %v2809_v9, %v2808_v57  ;;  %v11723_v62 = vpack.c.bf16 %v2811_v19, %v2810_v53  ;;  %v13424_v3 = vld [vmem:[%s17816_s1 + $0xf8] sm:$0xff]  ;;  %v1005_v51 = vmul.f32 %v13716_v15, %v14350_v38  ;;  %v2815_v38 = vld [vmem:[#allocation5 + $0xcc8] sm:$0xff]  ;;  %v2822_v53 = vld [vmem:[#allocation5 + $0xd00] sm:$0xff] }
 0x246   :  { %11700 = vmatprep.subr.bf16.mxu1 %v11699_v61  ;;  %v2772_v61 = vld [vmem:[#allocation5 + $0xb70] sm:$0xff]  ;;  %v1004_v14 = vmul.f32 %v13424_v3, %v13716_v15  ;;  %v1136_v60 = vmul.f32 %v13718_v16, %v547_v36  ;;  %v2797_v50 = vld [vmem:[#allocation5 + $0xc38] sm:$0xff]  ;;  %v2823_v19 = vld [vmem:[#allocation5 + $0xd08] sm:$0xff] }
 0x247   :  { %11682 = vmatpush3.bf16.msra.mxu0 %v11681_v17 }
 0x248   :  { %11702 = vmatpush3.bf16.msra.mxu1 %v11701_v47  ;;  %1685 = vrot.lane.b32.xlu0 %v14611_v45, %s13540_s28 }
 0x249   :  { %657 = vrot.lane.b32.xlu1 %v14515_v56, %s13541_s6  ;;  %11704 = vmatprep.subr.bf16.mxu1 %v11703_v24  ;;  %v11709_v56 = vpack.c.bf16 %v2771_v21, %v14613_v25  ;;  %v2813_v24 = vld [vmem:[#allocation5 + $0xcb8] sm:$0xff]  ;;  %v11725_v21 = vpack.c.bf16 %v2795_v18, %v2794_v2 }
 0x24a   :  { %v1672_v31 = vpop.permute.xlu1 %1671  ;;  %5258 = vmatmul.mubr.f32.vlgmr.msra.gmra.mrb[10].mxu0 %v2296_v6  ;;  %11716 = vmatprep.subr.bf16.mxu0 %v11715_v30  ;;  %v2796_v30 = vld [vmem:[#allocation5 + $0xc30] sm:$0xff]  ;;  %v11727_v9 = vpack.c.bf16 %v2813_v24, %v2812_v22  ;;  %v2814_v6 = vld [vmem:[#allocation5 + $0xcc0] sm:$0xff] }
 0x24b   :  { %v1991_v8 = vsel %vm450_vm0, %v14560_v32, %v1672_v31  ;;  %v14629_v29 = vpop.permute.xlu0 %1673  ;;  %11718 = vmatpush3.bf16.msra.mxu0 %v11717_v12  ;;  %v2773_v32 = vld [vmem:[#allocation5 + $0xb78] sm:$0xff]  ;;  %v1135_v12 = vmul.f32 %v13718_v16, %v548_v46  ;;  %v11749_v46 = vpack.c.bf16 %v2823_v19, %v2822_v53  ;;  %v2827_v53 = vld [vmem:[#allocation5 + $0xd28] sm:$0xff] }
 0x24c   :  { %v1990_v17 = vsel %vm450_vm0, %v1672_v31, %v14629_v29  ;;  %11706 = vmatpush3.bf16.msra.mxu1 %v11705_v35  ;;  %659 = vrot.lane.b32.xlu0 %v14581_v41, %s13541_s6  ;;  %v2037_v47 = vmax.f32 %v14329_v27, %v1991_v8  ;;  %v14651_v41 = vld [vmem:[%s17816_s1 + $0x148] sm:$0xff]  ;;  %v11713_v57 = vpack.c.bf16 %v2773_v32, %v2772_v61  ;;  %v2840_v61 = vld [vmem:[#allocation5 + $0xd90] sm:$0xff]  ;;  %v2798_v32 = vld [vmem:[#allocation5 + $0xc40] sm:$0xff] }
 0x24d   :  { %v2038_v52 = vmax.f32 %v14399_v0, %v1990_v17  ;;  %268 = vrot.lane.b32.xlu1 %v14624_v54, %s13540_s28  ;;  %11708 = vmatprep.subr.bf16.mxu1 %v11707_v42  ;;  %v2838_v0 = vld [vmem:[#allocation5 + $0xd80] sm:$0xff]  ;;  %v11729_v42 = vpack.c.bf16 %v2797_v50, %v2796_v30  ;;  %v1266_v31 = vadd.f32 %v1136_v60, %v1005_v51 }
 0x24e   :  { %v14657_v27 = vpop.permute.xlu1 %256  ;;  %11720 = vmatprep.subr.bf16.mxu0 %v11719_v10  ;;  %v2168_v35 = vadd.f32 %v13963_v28, %v2037_v47  ;;  %v11747_v5 = vpack.c.bf16 %v2839_v11, %v2838_v0  ;;  %v1265_v36 = vadd.f32 %v1135_v12, %v1004_v14  ;;  %v2816_v47 = vld [vmem:[#allocation5 + $0xcd0] sm:$0xff]  ;;  %v2825_v0 = vld [vmem:[#allocation5 + $0xd18] sm:$0xff]  ;;  %v2842_v60 = vld [vmem:[#allocation5 + $0xda0] sm:$0xff] }
 0x24f   :  { %v14662_v40 = vpop.permute.xlu0 %258  ;;  %v2169_v25 = vadd.f32 %v13963_v28, %v2038_v52  ;;  %11722 = vmatpush3.bf16.msra.mxu0 %v11721_v48  ;;  %v2841_v48 = vld [vmem:[#allocation5 + $0xd98] sm:$0xff]  ;;  %v2824_v14 = vld [vmem:[#allocation5 + $0xd10] sm:$0xff] }
 0x250   :  { %11710 = vmatpush3.bf16.msra.mxu1 %v11709_v56  ;;  %270 = vrot.lane.b32.xlu0 %v14651_v41, %s13540_s28  ;;  %v11731_v56 = vpack.c.bf16 %v2815_v38, %v2814_v6  ;;  %v2298_v2 = vmax.f32 %v2168_v35, 0.0  ;;  %v2817_v52 = vld [vmem:[#allocation5 + $0xcd8] sm:$0xff]  ;;  %v11751_v3 = vpack.c.bf16 %v2841_v48, %v2840_v61  ;;  %v2800_v12 = vld [vmem:[#allocation5 + $0xc50] sm:$0xff]  ;;  %v11753_v6 = vpack.c.bf16 %v2825_v0, %v2824_v14  ;;  %v2818_v38 = vld [vmem:[#allocation5 + $0xce0] sm:$0xff] }
 0x251   :  { %11712 = vmatprep.subr.bf16.mxu1 %v11711_v1  ;;  %v2299_v43 = vmax.f32 %v2169_v25, 0.0  ;;  %11724 = vmatprep.subr.bf16.mxu0 %v11723_v62  ;;  %v2799_v62 = vld [vmem:[#allocation5 + $0xc48] sm:$0xff]  ;;  %v11735_v50 = vpack.c.bf16 %v2817_v52, %v2816_v47  ;;  %v2846_v47 = vld [vmem:[#allocation5 + $0xdc0] sm:$0xff]  ;;  %v2804_v0 = vld [vmem:[#allocation5 + $0xc70] sm:$0xff] }
 0x252   :  { %v646_v4 = vpop.permute.xlu1 %645  ;;  %v11733_v51 = vpack.c.bf16 %v2799_v62, %v2798_v32  ;;  %v13425_v25 = vld [vmem:[%s17816_s1 + $0x108] sm:$0xff]  ;;  %v2821_v62 = vld [vmem:[#allocation5 + $0xcf8] sm:$0xff] }
 0x253   :  { %v939_v10 = vsel %vm841_vm1, %v14591_v44, %v646_v4  ;;  %5327 = vmatprep.mubr.f32.mxu1 %v2299_v43  ;;  %v648_v8 = vpop.permute.xlu0 %647  ;;  %11726 = vmatpush3.bf16.msra.mxu0 %v11725_v21  ;;  %v546_v44 = vsel %vm450_vm0, %v14609_v7, %v14657_v27  ;;  %v2843_v7 = vld [vmem:[#allocation5 + $0xda8] sm:$0xff]  ;;  %v1006_v21 = vmul.f32 %v13425_v25, %v13716_v15  ;;  %v14703_v43 = vld [vmem:[%s17816_s1 + $0x158] sm:$0xff] }
 0x254   :  { %v1396_v1 = vmul.f32 %v13735_v34, %v939_v10  ;;  %v938_v17 = vsel %vm841_vm1, %v646_v4, %v648_v8  ;;  %11714 = vmatpush3.bf16.msra.mxu1 %v11713_v57  ;;  %11728 = vmatprep.subr.bf16.mxu0 %v11727_v9  ;;  %v1137_v30 = vmul.f32 %v13718_v16, %v546_v44  ;;  %v2801_v57 = vld [vmem:[#allocation5 + $0xc58] sm:$0xff]  ;;  %v14698_v9 = vld [vmem:[%s17816_s1 + $0x150] sm:$0xff]  ;;  %v2819_v35 = vld [vmem:[#allocation5 + $0xce8] sm:$0xff] }
 0x255   :  { %v1397_v18 = vmul.f32 %v13735_v34, %v938_v17  ;;  %11748 = vmatprep.subr.bf16.mxu1 %v11747_v5  ;;  %v11755_v4 = vpack.c.bf16 %v2843_v7, %v2842_v60  ;;  %v2844_v10 = vld [vmem:[#allocation5 + $0xdb0] sm:$0xff]  ;;  %v2803_v17 = vld [vmem:[#allocation5 + $0xc68] sm:$0xff]  ;;  %v2870_v7 = vld [vmem:[#allocation5 + $0xe80] sm:$0xff] }
 0x256   :  { %v14680_v22 = vadd.f32 %v1396_v1, %v1265_v36  ;;  %v14682_v24 = vpop.permute.xlu1 %1675  ;;  %v1267_v61 = vadd.f32 %v1137_v30, %v1006_v21  ;;  %v11739_v36 = vpack.c.bf16 %v2819_v35, %v2818_v38  ;;  %v2802_v1 = vld [vmem:[#allocation5 + $0xc60] sm:$0xff]  ;;  %v2828_v44 = vld [vmem:[#allocation5 + $0xd30] sm:$0xff]  ;;  %v2847_v52 = vld [vmem:[#allocation5 + $0xdc8] sm:$0xff] }
 0x257   :  { %v14684_v11 = vadd.f32 %v1397_v18, %v1266_v31  ;;  %5328 = vmatmul.mubr.f32.vlgmr.msra.gmra.mrb[10].mxu1 %v2298_v2  ;;  %11730 = vmatpush3.bf16.msra.mxu0 %v11729_v42  ;;  %v2826_v42 = vld [vmem:[#allocation5 + $0xd20] sm:$0xff]  ;;  %v11737_v31 = vpack.c.bf16 %v2801_v57, %v2800_v12  ;;  %v2829_v18 = vld [vmem:[#allocation5 + $0xd38] sm:$0xff]  ;;  %v2871_v25 = vld [vmem:[#allocation5 + $0xe88] sm:$0xff]  ;;  %v11763_v21 = vpack.c.bf16 %v2847_v52, %v2846_v47 }
 0x258   :  { %1687 = vrot.lane.b32.xlu1 %v14680_v22, %s13540_s28  ;;  %11732 = vmatprep.subr.bf16.mxu0 %v11731_v56  ;;  %v2845_v56 = vld [vmem:[#allocation5 + $0xdb8] sm:$0xff]  ;;  %v11757_v32 = vpack.c.bf16 %v2827_v53, %v2826_v42  ;;  %v11761_v60 = vpack.c.bf16 %v2829_v18, %v2828_v44  ;;  %v2830_v30 = vld [vmem:[#allocation5 + $0xd40] sm:$0xff]  ;;  %v2848_v57 = vld [vmem:[#allocation5 + $0xdd0] sm:$0xff]  ;;  %v11779_v38 = vpack.c.bf16 %v2871_v25, %v2870_v7 }
 0x259   :  { %1689 = vrot.lane.b32.xlu0 %v14684_v11, %s13540_s28  ;;  %11750 = vmatpush3.bf16.msra.mxu1 %v11749_v46  ;;  %v11759_v2 = vpack.c.bf16 %v2845_v56, %v2844_v10  ;;  %v11741_v46 = vpack.c.bf16 %v2803_v17, %v2802_v1  ;;  %v2832_v42 = vld [vmem:[#allocation5 + $0xd50] sm:$0xff]  ;;  %v2833_v53 = vld [vmem:[#allocation5 + $0xd58] sm:$0xff]  ;;  %v14728_v10 = vld [vmem:[%s17816_s1 + $0x160] sm:$0xff]  ;;  %v1989_v25 = vsel %vm450_vm0, %v14629_v29, %v14682_v24 }
 0x25a   :  { %v14705_v5 = vpop.permute.xlu1 %649  ;;  %11752 = vmatprep.subr.bf16.mxu1 %v11751_v3  ;;  %v11769_v56 = vpack.c.bf16 %v2833_v53, %v2832_v42  ;;  %v2852_v1 = vld [vmem:[#allocation5 + $0xdf0] sm:$0xff]  ;;  %v2853_v17 = vld [vmem:[#allocation5 + $0xdf8] sm:$0xff]  ;;  %v2903_v44 = vld [vmem:[#allocation5 + $0xf88] sm:$0xff] }
 0x25b   :  { %v937_v19 = vsel %vm841_vm1, %v648_v8, %v14705_v5  ;;  %11734 = vmatpush3.bf16.msra.mxu0 %v11733_v51  ;;  %v2820_v8 = vld [vmem:[#allocation5 + $0xcf0] sm:$0xff]  ;;  %v2805_v51 = vld [vmem:[#allocation5 + $0xc78] sm:$0xff] }
 0x25c   :  { %272 = vrot.lane.b32.xlu1 %v14698_v9, %s13540_s28  ;;  %v1398_v48 = vmul.f32 %v13735_v34, %v937_v19  ;;  %11736 = vmatprep.subr.bf16.mxu0 %v11735_v50  ;;  %v11743_v14 = vpack.c.bf16 %v2821_v62, %v2820_v8  ;;  %v2831_v50 = vld [vmem:[#allocation5 + $0xd48] sm:$0xff]  ;;  %v11745_v12 = vpack.c.bf16 %v2805_v51, %v2804_v0  ;;  %v2850_v19 = vld [vmem:[#allocation5 + $0xde0] sm:$0xff]  ;;  %v2836_v8 = vld [vmem:[#allocation5 + $0xd70] sm:$0xff] }
 0x25d   :  { %274 = vrot.lane.b32.xlu0 %v14703_v43, %s13540_s28  ;;  %11754 = vmatpush3.bf16.msra.mxu1 %v11753_v6  ;;  %v2849_v6 = vld [vmem:[#allocation5 + $0xdd8] sm:$0xff]  ;;  %v11765_v35 = vpack.c.bf16 %v2831_v50, %v2830_v30  ;;  %v545_v30 = vsel %vm450_vm0, %v14657_v27, %v14662_v40  ;;  %v2039_v50 = vmax.f32 %v14401_v37, %v1989_v25  ;;  %v2854_v27 = vld [vmem:[#allocation5 + $0xe00] sm:$0xff] }
 0x25e   :  { %11756 = vmatprep.subr.bf16.mxu1 %v11755_v4  ;;  %v14715_v3 = vadd.f32 %v1398_v48, %v1267_v61  ;;  %v11767_v4 = vpack.c.bf16 %v2849_v6, %v2848_v57  ;;  %v2834_v48 = vld [vmem:[#allocation5 + $0xd60] sm:$0xff]  ;;  %v2837_v62 = vld [vmem:[#allocation5 + $0xd78] sm:$0xff]  ;;  %v14742_v57 = vpop.permute.xlu1 %260  ;;  %v13426_v6 = vld [vmem:[%s17816_s1 + $0x110] sm:$0xff] }
 0x25f   :  { %11738 = vmatpush3.bf16.msra.mxu0 %v11737_v31  ;;  %v2851_v31 = vld [vmem:[#allocation5 + $0xde8] sm:$0xff]  ;;  %v11777_v18 = vpack.c.bf16 %v2837_v62, %v2836_v8  ;;  %v1007_v29 = vmul.f32 %v13426_v6, %v13716_v15  ;;  %v2170_v37 = vadd.f32 %v13963_v28, %v2039_v50  ;;  %v2856_v62 = vld [vmem:[#allocation5 + $0xe10] sm:$0xff]  ;;  %v2858_v25 = vld [vmem:[#allocation5 + $0xe20] sm:$0xff] }
 0x260   :  { %661 = vrot.lane.b32.xlu1 %v14624_v54, %s13541_s6  ;;  %11740 = vmatprep.subr.bf16.mxu0 %v11739_v36  ;;  %v11771_v61 = vpack.c.bf16 %v2851_v31, %v2850_v19  ;;  %v2835_v36 = vld [vmem:[#allocation5 + $0xd68] sm:$0xff]  ;;  %v2872_v31 = vld [vmem:[#allocation5 + $0xe90] sm:$0xff]  ;;  %v2877_v50 = vld [vmem:[#allocation5 + $0xeb8] sm:$0xff] }
 0x261   :  { %663 = vrot.lane.b32.xlu0 %v14651_v41, %s13541_s6  ;;  %11758 = vmatpush3.bf16.msra.mxu1 %v11757_v32  ;;  %v11773_v32 = vpack.c.bf16 %v2835_v36, %v2834_v48 }
 0x262   :  { %11760 = vmatprep.subr.bf16.mxu1 %v11759_v2  ;;  %v2902_v2 = vld [vmem:[#allocation5 + $0xf80] sm:$0xff] }
 0x263   :  { %11742 = vmatpush3.bf16.msra.mxu0 %v11741_v46  ;;  %v11811_v46 = vpack.c.bf16 %v2903_v44, %v2902_v2  ;;  %v2857_v2 = vld [vmem:[#allocation5 + $0xe18] sm:$0xff]  ;;  %v544_v44 = vsel %vm450_vm0, %v14662_v40, %v14742_v57 }
 0x264   :  { %1691 = vrot.lane.b32.xlu1 %v14715_v3, %s13540_s28  ;;  %11744 = vmatprep.subr.bf16.mxu0 %v11743_v14 }
 0x265   :  { %11762 = vmatpush3.bf16.msra.mxu1 %v11761_v60 }
 0x266   :  { %11764 = vmatprep.subr.bf16.mxu1 %v11763_v21 }
 0x267   :  { %11746 = vmatpush3.bf16.msra.mxu0 %v11745_v12 }
 0x268   :  { %665 = vrot.lane.b32.xlu1 %v14698_v9, %s13541_s6  ;;  %11780 = vmatprep.subr.bf16.mxu0 %v11779_v38  ;;  %v11775_v9 = vpack.c.bf16 %v2853_v17, %v2852_v1  ;;  %v1138_v38 = vmul.f32 %v13718_v16, %v545_v30  ;;  %v2876_v30 = vld [vmem:[#allocation5 + $0xeb0] sm:$0xff] }
 0x269   :  { %11766 = vmatpush3.bf16.msra.mxu1 %v11765_v35 }
 0x26a   :  { %11768 = vmatprep.subr.bf16.mxu1 %v11767_v4  ;;  %v2855_v4 = vld [vmem:[#allocation5 + $0xe08] sm:$0xff]  ;;  %v1268_v1 = vadd.f32 %v1138_v38, %v1007_v29 }
 0x26b   :  { %v11781_v36 = vpack.c.bf16 %v2855_v4, %v2854_v27  ;;  %v11791_v4 = vpack.c.bf16 %v2877_v50, %v2876_v30  ;;  %v2889_v50 = vld [vmem:[#allocation5 + $0xf18] sm:$0xff] }
 0x26c   :  { %276 = vrot.lane.b32.xlu1 %v14728_v10, %s13540_s28 }
 0x26d   :  { %11770 = vmatpush3.bf16.msra.mxu1 %v11769_v56 }
 0x26e   :  { %11772 = vmatprep.subr.bf16.mxu1 %v11771_v61 }
 0x271   :  { %11774 = vmatpush3.bf16.msra.mxu1 %v11773_v32 }
 0x272   :  { %11776 = vmatprep.subr.bf16.mxu1 %v11775_v9  ;;  %v2300_v9 = vmax.f32 %v2170_v37, 0.0  ;;  %v2860_v37 = vld [vmem:[#allocation5 + $0xe30] sm:$0xff] }
 0x275   :  { %11778 = vmatpush3.bf16.msra.mxu1 %v11777_v18 }
 0x276   :  { %11812 = vmatprep.subr.bf16.mxu1 %v11811_v46 }
 0x281   :  { %v9228_v47 = vpop.f32.mrb[4].mxu0 }
 0x282   :  { %v9229_v52 = vpop.f32.mrb[5].mxu0 }
 0x283   :  { %v9230_v14 = vadd.f32 %v9229_v52, %v9228_v47  ;;  %v2875_v47 = vld [vmem:[#allocation5 + $0xea8] sm:$0xff] }
 0x285   :  { %v4840_v0 = vadd.f32 %v9230_v14, %v14572_v33  ;;  %v11785_v14 = vpack.c.bf16 %v2857_v2, %v2856_v62 }
 0x296   :  { %v9263_v51 = vpop.f32.mrb[4].mxu1 }
 0x297   :  { %v9264_v60 = vpop.f32.mrb[5].mxu1 }
 0x298   :  { %v9265_v7 = vadd.f32 %v9264_v60, %v9263_v51  ;;  %v1139_v51 = vmul.f32 %v13718_v16, %v544_v44  ;;  %v2881_v44 = vld [vmem:[#allocation5 + $0xed8] sm:$0xff] }
 0x29a   :  { %v4910_v21 = vadd.f32 %v9265_v7, %v4840_v0  ;;  %v13427_v0 = vld [vmem:[%s17816_s1 + $0x118] sm:$0xff] }
 0x29b   :  { %v1008_v40 = vmul.f32 %v13427_v0, %v13716_v15  ;;  %v2864_v0 = vld [vmem:[#allocation5 + $0xe50] sm:$0xff] }
 0x29d   :  { %v1678_v12 = vpop.permute.xlu0 %1677 }
 0x29e   :  { %v1988_v33 = vsel %vm450_vm0, %v14682_v24, %v1678_v12  ;;  %v2873_v24 = vld [vmem:[#allocation5 + $0xe98] sm:$0xff] }
 0x29f   :  { %v2040_v35 = vmax.f32 %v14434_v13, %v1988_v33  ;;  %v11783_v8 = vpack.c.bf16 %v2873_v24, %v2872_v31  ;;  %v2879_v31 = vld [vmem:[#allocation5 + $0xec8] sm:$0xff] }
 0x2a1   :  { %v9298_v42 = vpop.f32.mrb[6].mxu0  ;;  %v652_v53 = vpop.permute.xlu0 %651  ;;  %v2171_v19 = vadd.f32 %v13963_v28, %v2040_v35  ;;  %v1269_v35 = vadd.f32 %v1139_v51, %v1008_v40  ;;  %v2865_v40 = vld [vmem:[#allocation5 + $0xe58] sm:$0xff]  ;;  %v2888_v51 = vld [vmem:[#allocation5 + $0xf10] sm:$0xff] }
 0x2a2   :  { %v9299_v56 = vpop.f32.mrb[7].mxu0  ;;  %v1680_v61 = vpop.permute.xlu1 %1679  ;;  %v936_v48 = vsel %vm841_vm1, %v14705_v5, %v652_v53  ;;  %v2874_v5 = vld [vmem:[#allocation5 + $0xea0] sm:$0xff] }
 0x2a3   :  { %v9300_v17 = vadd.f32 %v9299_v56, %v9298_v42  ;;  %v1399_v13 = vmul.f32 %v13735_v34, %v936_v48  ;;  %v2301_v32 = vmax.f32 %v2171_v19, 0.0  ;;  %v11787_v7 = vpack.c.bf16 %v2875_v47, %v2874_v5  ;;  %v2861_v42 = vld [vmem:[#allocation5 + $0xe38] sm:$0xff]  ;;  %v2904_v5 = vld [vmem:[#allocation5 + $0xf90] sm:$0xff] }
 0x2a4   :  { %v1987_v33 = vsel %vm450_vm0, %v1678_v12, %v1680_v61  ;;  %v14791_v12 = vld [vmem:[%s17816_s1 + $0x168] sm:$0xff]  ;;  %v11793_v48 = vpack.c.bf16 %v2861_v42, %v2860_v37  ;;  %v2905_v47 = vld [vmem:[#allocation5 + $0xf98] sm:$0xff] }
 0x2a5   :  { %v14763_v18 = vadd.f32 %v9300_v17, %v4910_v21  ;;  %v14765_v46 = vadd.f32 %v1399_v13, %v1268_v1  ;;  %5397 = vmatprep.mubr.f32.mxu0 %v2301_v32  ;;  %v14776_v60 = vpop.permute.xlu0 %262  ;;  %v2859_v21 = vld [vmem:[#allocation5 + $0xe28] sm:$0xff]  ;;  %v2041_v19 = vmax.f32 %v14490_v39, %v1987_v33  ;;  %v14809_v39 = vld [vmem:[%s17816_s1 + $0x170] sm:$0xff]  ;;  %v2862_v17 = vld [vmem:[#allocation5 + $0xe40] sm:$0xff] }
 0x2a6   :  { %v14767_v52 = vpop.permute.xlu1 %264  ;;  %5398 = vmatmul.mubr.f32.vlgmr.msra.gmra.mrb[12].mxu0 %v2300_v9  ;;  %v11789_v38 = vpack.c.bf16 %v2859_v21, %v2858_v25  ;;  %v2863_v13 = vld [vmem:[#allocation5 + $0xe48] sm:$0xff]  ;;  %v543_v32 = vsel %vm450_vm0, %v14742_v57, %v14776_v60  ;;  %v2882_v33 = vld [vmem:[#allocation5 + $0xee0] sm:$0xff] }
 0x2a7   :  { %11782 = vmatpush3.bf16.msra.mxu0 %v11781_v36  ;;  %1693 = vrot.lane.b32.xlu0 %v14765_v46, %s13540_s28  ;;  %v2887_v9 = vld [vmem:[#allocation5 + $0xf08] sm:$0xff]  ;;  %v1140_v25 = vmul.f32 %v13718_v16, %v543_v32  ;;  %v542_v37 = vsel %vm450_vm0, %v14776_v60, %v14767_v52  ;;  %v2890_v32 = vld [vmem:[#allocation5 + $0xf20] sm:$0xff] }
 0x2a8   :  { %11784 = vmatprep.subr.bf16.mxu0 %v11783_v8  ;;  %v2880_v8 = vld [vmem:[#allocation5 + $0xed0] sm:$0xff] }
 0x2aa   :  { %v14780_v6 = vpop.permute.xlu1 %653 }
 0x2ab   :  { %v935_v29 = vsel %vm841_vm1, %v652_v53, %v14780_v6  ;;  %11786 = vmatpush3.bf16.msra.mxu0 %v11785_v14  ;;  %667 = vrot.lane.b32.xlu0 %v14703_v43, %s13541_s6  ;;  %v2878_v53 = vld [vmem:[#allocation5 + $0xec0] sm:$0xff]  ;;  %v11797_v14 = vpack.c.bf16 %v2863_v13, %v2862_v17 }
 0x2ac   :  { %v1400_v27 = vmul.f32 %v13735_v34, %v935_v29  ;;  %11788 = vmatprep.subr.bf16.mxu0 %v11787_v7  ;;  %v11795_v1 = vpack.c.bf16 %v2879_v31, %v2878_v53  ;;  %v13428_v7 = vld [vmem:[%s17816_s1 + $0x120] sm:$0xff]  ;;  %v2883_v29 = vld [vmem:[#allocation5 + $0xee8] sm:$0xff]  ;;  %v11801_v53 = vpack.c.bf16 %v2865_v40, %v2864_v0 }
 0x2ad   :  { %v1009_v57 = vmul.f32 %v13428_v7, %v13716_v15  ;;  %v2906_v31 = vld [vmem:[#allocation5 + $0xfa0] sm:$0xff]  ;;  %v11803_v17 = vpack.c.bf16 %v2883_v29, %v2882_v33  ;;  %v2868_v33 = vld [vmem:[#allocation5 + $0xe70] sm:$0xff]  ;;  %v2869_v29 = vld [vmem:[#allocation5 + $0xe78] sm:$0xff] }
 0x2ae   :  { %v14794_v24 = vadd.f32 %v1400_v27, %v1269_v35  ;;  %v14796_v43 = vpop.permute.xlu0 %1681  ;;  %v11799_v35 = vpack.c.bf16 %v2881_v44, %v2880_v8  ;;  %v11815_v27 = vpack.c.bf16 %v2905_v47, %v2904_v5  ;;  %v2866_v13 = vld [vmem:[#allocation5 + $0xe60] sm:$0xff]  ;;  %v2891_v8 = vld [vmem:[#allocation5 + $0xf28] sm:$0xff]  ;;  %v2885_v44 = vld [vmem:[#allocation5 + $0xef8] sm:$0xff] }
 0x2af   :  { %v1986_v56 = vsel %vm450_vm0, %v1680_v61, %v14796_v43  ;;  %11790 = vmatpush3.bf16.msra.mxu0 %v11789_v38  ;;  %278 = vrot.lane.b32.xlu0 %v14791_v12, %s13540_s28  ;;  %v2172_v61 = vadd.f32 %v13963_v28, %v2041_v19  ;;  %v1270_v60 = vadd.f32 %v1140_v25, %v1009_v57 }
 0x2b0   :  { %v2042_v36 = vmax.f32 %v14503_v63, %v1986_v56  ;;  %1695 = vrot.lane.b32.xlu1 %v14794_v24, %s13540_s28  ;;  %11792 = vmatprep.subr.bf16.mxu0 %v11791_v4  ;;  %v2886_v63 = vld [vmem:[#allocation5 + $0xf00] sm:$0xff]  ;;  %v1010_v4 = vmul.f32 %v13716_v15, %v14523_v23  ;;  %v2907_v56 = vld [vmem:[#allocation5 + $0xfa8] sm:$0xff]  ;;  %v11817_v23 = vpack.c.bf16 %v2889_v50, %v2888_v51 }
 0x2b1   :  { %v11813_v30 = vpack.c.bf16 %v2887_v9, %v2886_v63  ;;  %v2302_v38 = vmax.f32 %v2172_v61, 0.0  ;;  %v2867_v61 = vld [vmem:[#allocation5 + $0xe68] sm:$0xff]  ;;  %v11819_v47 = vpack.c.bf16 %v2907_v56, %v2906_v31  ;;  %v11821_v57 = vpack.c.bf16 %v2891_v8, %v2890_v32 }
 0x2b2   :  { %v14816_v62 = vpop.permute.xlu0 %266  ;;  %v2173_v2 = vadd.f32 %v13963_v28, %v2042_v36  ;;  %v11805_v7 = vpack.c.bf16 %v2867_v61, %v2866_v13  ;;  %v2911_v31 = vld [vmem:[#allocation5 + $0xfc8] sm:$0xff] }
 0x2b3   :  { %11794 = vmatpush3.bf16.msra.mxu0 %v11793_v48 }
 0x2b4   :  { %280 = vrot.lane.b32.xlu1 %v14809_v39, %s13540_s28  ;;  %v2303_v21 = vmax.f32 %v2173_v2, 0.0  ;;  %11796 = vmatprep.subr.bf16.mxu0 %v11795_v1  ;;  %v2884_v2 = vld [vmem:[#allocation5 + $0xef0] sm:$0xff] }
 0x2b5   :  { %v11807_v25 = vpack.c.bf16 %v2885_v44, %v2884_v2  ;;  %v2894_v2 = vld [vmem:[#allocation5 + $0xf40] sm:$0xff]  ;;  %v2895_v44 = vld [vmem:[#allocation5 + $0xf48] sm:$0xff] }
 0x2b6   :  { %v9333_v42 = vpop.f32.mrb[6].mxu1  ;;  %5467 = vmatprep.mubr.f32.mxu1 %v2303_v21  ;;  %v656_v19 = vpop.permute.xlu0 %655  ;;  %v2909_v21 = vld [vmem:[#allocation5 + $0xfb8] sm:$0xff] }
 0x2b7   :  { %v9334_v48 = vpop.f32.mrb[7].mxu1  ;;  %v1684_v36 = vpop.permute.xlu1 %1683  ;;  %v934_v1 = vsel %vm841_vm1, %v14780_v6, %v656_v19  ;;  %5468 = vmatmul.mubr.f32.vlgmr.msra.gmra.mrb[12].mxu1 %v2302_v38  ;;  %11798 = vmatpush3.bf16.msra.mxu0 %v11797_v14  ;;  %v1141_v6 = vmul.f32 %v13718_v16, %v542_v37  ;;  %v2893_v37 = vld [vmem:[#allocation5 + $0xf38] sm:$0xff] }
 0x2b8   :  { %v9335_v63 = vadd.f32 %v9334_v48, %v9333_v42  ;;  %v1401_v9 = vmul.f32 %v13735_v34, %v934_v1  ;;  %11814 = vmatpush3.bf16.msra.mxu1 %v11813_v30  ;;  %669 = vrot.lane.b32.xlu1 %v14728_v10, %s13541_s6  ;;  %v1985_v5 = vsel %vm450_vm0, %v14796_v43, %v1684_v36  ;;  %v2908_v43 = vld [vmem:[#allocation5 + $0xfb0] sm:$0xff] }
 0x2b9   :  { %11800 = vmatprep.subr.bf16.mxu0 %v11799_v35  ;;  %11816 = vmatprep.subr.bf16.mxu1 %v11815_v27  ;;  %v2043_v30 = vmax.f32 %v14557_v55, %v1985_v5  ;;  %v1271_v38 = vadd.f32 %v1141_v6, %v1010_v4  ;;  %v541_v35 = vsel %vm450_vm0, %v14767_v52, %v14816_v62  ;;  %v14866_v55 = vld [vmem:[%s17816_s1 + $0x178] sm:$0xff]  ;;  %v13429_v52 = vld [vmem:[%s17816_s1 + $0x130] sm:$0xff] }
 0x2ba   :  { %v14843_v14 = vadd.f32 %v9335_v63, %v14763_v18  ;;  %v14845_v0 = vadd.f32 %v1401_v9, %v1270_v60  ;;  %v14847_v40 = vpop.permute.xlu0 %1685  ;;  %v1011_v56 = vmul.f32 %v13429_v52, %v13716_v15  ;;  %v11809_v1 = vpack.c.bf16 %v2869_v29, %v2868_v33  ;;  %v2918_v63 = vld [vmem:[#allocation5 + $0x1000] sm:$0xff]  ;;  %v2919_v9 = vld [vmem:[#allocation5 + $0x1008] sm:$0xff]  ;;  %v2912_v5 = vld [vmem:[#allocation5 + $0xfd0] sm:$0xff] }
 0x2bb   :  { %v658_v10 = vpop.permute.xlu1 %657  ;;  %v1984_v51 = vsel %vm450_vm0, %v1684_v36, %v14847_v40  ;;  %11802 = vmatpush3.bf16.msra.mxu0 %v11801_v53  ;;  %v2910_v53 = vld [vmem:[#allocation5 + $0xfc0] sm:$0xff]  ;;  %v1142_v13 = vmul.f32 %v13718_v16, %v541_v35  ;;  %v2174_v61 = vadd.f32 %v13963_v28, %v2043_v30  ;;  %v2897_v35 = vld [vmem:[#allocation5 + $0xf58] sm:$0xff] }
 0x2bc   :  { %v933_v18 = vsel %vm841_vm1, %v656_v19, %v658_v10  ;;  %v2044_v50 = vmax.f32 %v14601_v59, %v1984_v51  ;;  %11818 = vmatpush3.bf16.msra.mxu1 %v11817_v23  ;;  %1697 = vrot.lane.b32.xlu0 %v14845_v0, %s13540_s28  ;;  %v2892_v59 = vld [vmem:[#allocation5 + $0xf30] sm:$0xff]  ;;  %v11823_v19 = vpack.c.bf16 %v2909_v21, %v2908_v43  ;;  %v2934_v23 = vld [vmem:[#allocation5 + $0x1080] sm:$0xff] }
 0x2bd   :  { %v1402_v27 = vmul.f32 %v13735_v34, %v933_v18  ;;  %11804 = vmatprep.subr.bf16.mxu0 %v11803_v17  ;;  %11820 = vmatprep.subr.bf16.mxu1 %v11819_v47  ;;  %v2935_v17 = vld [vmem:[#allocation5 + $0x1088] sm:$0xff]  ;;  %v11825_v60 = vpack.c.bf16 %v2893_v37, %v2892_v59  ;;  %v11827_v8 = vpack.c.bf16 %v2911_v31, %v2910_v53  ;;  %v2913_v47 = vld [vmem:[#allocation5 + $0xfd8] sm:$0xff]  ;;  %v2304_v21 = vmax.f32 %v2174_v61, 0.0  ;;  %v14892_v30 = vld [vmem:[%s17816_s1 + $0x180] sm:$0xff] }
 0x2be   :  { %v14868_v42 = vpop.permute.xlu0 %659  ;;  %v2175_v4 = vadd.f32 %v13963_v28, %v2044_v50  ;;  %v11845_v51 = vpack.c.bf16 %v2919_v9, %v2918_v63  ;;  %v1272_v43 = vadd.f32 %v1142_v13, %v1011_v56  ;;  %v2920_v18 = vld [vmem:[#allocation5 + $0x1010] sm:$0xff]  ;;  %v2921_v50 = vld [vmem:[#allocation5 + $0x1018] sm:$0xff]  ;;  %v11831_v29 = vpack.c.bf16 %v2913_v47, %v2912_v5  ;;  %v2938_v53 = vld [vmem:[#allocation5 + $0x10a0] sm:$0xff] }
 0x2bf   :  { %v14875_v48 = vadd.f32 %v1402_v27, %v1271_v38  ;;  %v932_v36 = vsel %vm841_vm1, %v658_v10, %v14868_v42  ;;  %11806 = vmatpush3.bf16.msra.mxu0 %v11805_v7  ;;  %v11843_v10 = vpack.c.bf16 %v2935_v17, %v2934_v23  ;;  %v2936_v7 = vld [vmem:[#allocation5 + $0x1090] sm:$0xff]  ;;  %v2914_v27 = vld [vmem:[#allocation5 + $0xfe0] sm:$0xff]  ;;  %v269_v59 = vpop.permute.xlu1 %268  ;;  %v2939_v31 = vld [vmem:[#allocation5 + $0x10a8] sm:$0xff] }
 0x2c0   :  { %11822 = vmatpush3.bf16.msra.mxu1 %v11821_v57  ;;  %282 = vrot.lane.b32.xlu0 %v14866_v55, %s13540_s28  ;;  %v2305_v32 = vmax.f32 %v2175_v4, 0.0  ;;  %v1403_v6 = vmul.f32 %v13735_v34, %v932_v36  ;;  %v2937_v57 = vld [vmem:[#allocation5 + $0x1098] sm:$0xff]  ;;  %v2896_v38 = vld [vmem:[#allocation5 + $0xf50] sm:$0xff]  ;;  %v2915_v4 = vld [vmem:[#allocation5 + $0xfe8] sm:$0xff] }
 0x2c1   :  { %1699 = vrot.lane.b32.xlu1 %v14875_v48, %s13540_s28  ;;  %11808 = vmatprep.subr.bf16.mxu0 %v11807_v25  ;;  %v11829_v25 = vpack.c.bf16 %v2895_v44, %v2894_v2  ;;  %v2898_v52 = vld [vmem:[#allocation5 + $0xf60] sm:$0xff]  ;;  %v2899_v56 = vld [vmem:[#allocation5 + $0xf68] sm:$0xff]  ;;  %v2916_v36 = vld [vmem:[#allocation5 + $0xff0] sm:$0xff]  ;;  %v11835_v61 = vpack.c.bf16 %v2915_v4, %v2914_v27 }
 0x2c2   :  { %5537 = vmatprep.mubr.f32.mxu0 %v2305_v32  ;;  %11824 = vmatprep.subr.bf16.mxu1 %v11823_v19  ;;  %v14896_v33 = vpop.permute.xlu0 %270  ;;  %v14898_v37 = vadd.f32 %v1403_v6, %v1272_v43  ;;  %v11847_v19 = vpack.c.bf16 %v2937_v57, %v2936_v7  ;;  %v2917_v23 = vld [vmem:[#allocation5 + $0xff8] sm:$0xff]  ;;  %v2922_v17 = vld [vmem:[#allocation5 + $0x1020] sm:$0xff]  ;;  %v2923_v13 = vld [vmem:[#allocation5 + $0x1028] sm:$0xff]  ;;  %v11851_v32 = vpack.c.bf16 %v2939_v31, %v2938_v53 }
 0x2c3   :  { %11810 = vmatpush3.bf16.msra.mxu0 %v11809_v1  ;;  %v11833_v1 = vpack.c.bf16 %v2897_v35, %v2896_v38  ;;  %v2941_v63 = vld [vmem:[#allocation5 + $0x10b8] sm:$0xff]  ;;  %v11837_v44 = vpack.c.bf16 %v2899_v56, %v2898_v52  ;;  %v11839_v6 = vpack.c.bf16 %v2917_v23, %v2916_v36  ;;  %v2900_v5 = vld [vmem:[#allocation5 + $0xf70] sm:$0xff]  ;;  %v11853_v47 = vpack.c.bf16 %v2923_v13, %v2922_v17  ;;  %v2967_v27 = vld [vmem:[#allocation5 + $0x1188] sm:$0xff] }
 0x2c4   :  { %11826 = vmatpush3.bf16.msra.mxu1 %v11825_v60  ;;  %671 = vrot.lane.b32.xlu0 %v14791_v12, %s13541_s6  ;;  %v2940_v60 = vld [vmem:[#allocation5 + $0x10b0] sm:$0xff]  ;;  %v2925_v43 = vld [vmem:[#allocation5 + $0x1038] sm:$0xff]  ;;  %v2926_v31 = vld [vmem:[#allocation5 + $0x1040] sm:$0xff] }
 0x2c5   :  { %673 = vrot.lane.b32.xlu1 %v14809_v39, %s13541_s6  ;;  %11828 = vmatprep.subr.bf16.mxu1 %v11827_v8  ;;  %v11849_v39 = vpack.c.bf16 %v2921_v50, %v2920_v18  ;;  %v11855_v7 = vpack.c.bf16 %v2941_v63, %v2940_v60  ;;  %v2924_v57 = vld [vmem:[#allocation5 + $0x1030] sm:$0xff]  ;;  %v14925_v50 = vld [vmem:[%s17816_s1 + $0x188] sm:$0xff]  ;;  %v13430_v38 = vld [vmem:[%s17816_s1 + $0x138] sm:$0xff] }
 0x2c6   :  { %5538 = vmatmul.mubr.f32.vlgmr.msra.gmra.mrb[14].mxu0 %v2304_v21  ;;  %11844 = vmatprep.subr.bf16.mxu0 %v11843_v10  ;;  %v539_v10 = vsel %vm450_vm0, %v269_v59, %v14896_v33  ;;  %v540_v21 = vsel %vm450_vm0, %v14816_v62, %v269_v59  ;;  %v1012_v35 = vmul.f32 %v13430_v38, %v13716_v15  ;;  %v2927_v52 = vld [vmem:[#allocation5 + $0x1048] sm:$0xff]  ;;  %v2950_v60 = vld [vmem:[#allocation5 + $0x1100] sm:$0xff] }
 0x2c7   :  { %11846 = vmatpush3.bf16.msra.mxu0 %v11845_v51  ;;  %v1144_v59 = vmul.f32 %v13718_v16, %v539_v10  ;;  %v11857_v53 = vpack.c.bf16 %v2925_v43, %v2924_v57  ;;  %v1143_v56 = vmul.f32 %v13718_v16, %v540_v21  ;;  %v2951_v63 = vld [vmem:[#allocation5 + $0x1108] sm:$0xff]  ;;  %v2969_v10 = vld [vmem:[#allocation5 + $0x1198] sm:$0xff] }
 0x2c8   :  { %11830 = vmatpush3.bf16.msra.mxu1 %v11829_v25  ;;  %1701 = vrot.lane.b32.xlu0 %v14898_v37, %s13540_s28  ;;  %v2929_v57 = vld [vmem:[#allocation5 + $0x1058] sm:$0xff] }
 0x2c9   :  { %284 = vrot.lane.b32.xlu1 %v14892_v30, %s13540_s28  ;;  %11832 = vmatprep.subr.bf16.mxu1 %v11831_v29  ;;  %v2943_v29 = vld [vmem:[#allocation5 + $0x10c8] sm:$0xff] }
 0x2ca   :  { %v1688_v9 = vpop.permute.xlu1 %1687  ;;  %11848 = vmatprep.subr.bf16.mxu0 %v11847_v19 }
 0x2cb   :  { %v1983_v8 = vsel %vm450_vm0, %v14847_v40, %v1688_v9  ;;  %v14907_v2 = vpop.permute.xlu0 %1689  ;;  %11850 = vmatpush3.bf16.msra.mxu0 %v11849_v39  ;;  %v2901_v40 = vld [vmem:[#allocation5 + $0xf78] sm:$0xff] }
 0x2cc   :  { %v1982_v51 = vsel %vm450_vm0, %v1688_v9, %v14907_v2  ;;  %11834 = vmatpush3.bf16.msra.mxu1 %v11833_v1  ;;  %675 = vrot.lane.b32.xlu0 %v14866_v55, %s13541_s6  ;;  %v2045_v25 = vmax.f32 %v14611_v45, %v1983_v8  ;;  %v2942_v55 = vld [vmem:[#allocation5 + $0x10c0] sm:$0xff]  ;;  %v11841_v36 = vpack.c.bf16 %v2901_v40, %v2900_v5  ;;  %v2944_v1 = vld [vmem:[#allocation5 + $0x10d0] sm:$0xff] }
 0x2cd   :  { %v2046_v18 = vmax.f32 %v14680_v22, %v1982_v51  ;;  %11836 = vmatprep.subr.bf16.mxu1 %v11835_v61  ;;  %11852 = vmatprep.subr.bf16.mxu0 %v11851_v32  ;;  %v2966_v45 = vld [vmem:[#allocation5 + $0x1180] sm:$0xff]  ;;  %v1013_v22 = vmul.f32 %v13716_v15, %v14624_v54  ;;  %v11859_v39 = vpack.c.bf16 %v2943_v29, %v2942_v55  ;;  %v2945_v54 = vld [vmem:[#allocation5 + $0x10d8] sm:$0xff]  ;;  %v2947_v55 = vld [vmem:[#allocation5 + $0x10e8] sm:$0xff] }
 0x2ce   :  { %v14931_v62 = vpop.permute.xlu1 %272  ;;  %v2176_v23 = vadd.f32 %v13963_v28, %v2045_v25  ;;  %v11875_v13 = vpack.c.bf16 %v2967_v27, %v2966_v45  ;;  %v11861_v32 = vpack.c.bf16 %v2927_v52, %v2926_v31  ;;  %v11863_v5 = vpack.c.bf16 %v2945_v54, %v2944_v1  ;;  %v2952_v45 = vld [vmem:[#allocation5 + $0x1110] sm:$0xff]  ;;  %v2953_v27 = vld [vmem:[#allocation5 + $0x1118] sm:$0xff] }
 0x2cf   :  { %v14936_v4 = vpop.permute.xlu0 %274  ;;  %v2177_v19 = vadd.f32 %v13963_v28, %v2046_v18  ;;  %11854 = vmatpush3.bf16.msra.mxu0 %v11853_v47  ;;  %v1274_v9 = vadd.f32 %v1144_v59, %v1013_v22  ;;  %v2968_v47 = vld [vmem:[#allocation5 + $0x1190] sm:$0xff]  ;;  %v1273_v51 = vadd.f32 %v1143_v56, %v1012_v35  ;;  %v11877_v25 = vpack.c.bf16 %v2951_v63, %v2950_v60  ;;  %v2946_v18 = vld [vmem:[#allocation5 + $0x10e0] sm:$0xff] }
 0x2d0   :  { %11838 = vmatpush3.bf16.msra.mxu1 %v11837_v44  ;;  %286 = vrot.lane.b32.xlu0 %v14925_v50, %s13540_s28  ;;  %v2306_v43 = vmax.f32 %v2176_v23, 0.0  ;;  %v11879_v35 = vpack.c.bf16 %v2969_v10, %v2968_v47  ;;  %v11867_v52 = vpack.c.bf16 %v2947_v55, %v2946_v18  ;;  %v2930_v56 = vld [vmem:[#allocation5 + $0x1060] sm:$0xff]  ;;  %v11881_v1 = vpack.c.bf16 %v2953_v27, %v2952_v45  ;;  %v2948_v54 = vld [vmem:[#allocation5 + $0x10f0] sm:$0xff]  ;;  %v14973_v23 = vld [vmem:[%s17816_s1 + $0x198] sm:$0xff] }
 0x2d1   :  { %11840 = vmatprep.subr.bf16.mxu1 %v11839_v6  ;;  %v2307_v17 = vmax.f32 %v2177_v19, 0.0  ;;  %11856 = vmatprep.subr.bf16.mxu0 %v11855_v7  ;;  %v2928_v7 = vld [vmem:[#allocation5 + $0x1050] sm:$0xff]  ;;  %v2970_v19 = vld [vmem:[#allocation5 + $0x11a0] sm:$0xff]  ;;  %v2975_v18 = vld [vmem:[#allocation5 + $0x11c8] sm:$0xff] }
 0x2d2   :  { %v662_v61 = vpop.permute.xlu1 %661  ;;  %v11865_v59 = vpack.c.bf16 %v2929_v57, %v2928_v7  ;;  %v2998_v7 = vld [vmem:[#allocation5 + $0x1280] sm:$0xff] }
 0x2d3   :  { %v931_v8 = vsel %vm841_vm1, %v14868_v42, %v662_v61  ;;  %5607 = vmatprep.mubr.f32.mxu1 %v2307_v17  ;;  %v664_v44 = vpop.permute.xlu0 %663  ;;  %11858 = vmatpush3.bf16.msra.mxu0 %v11857_v53  ;;  %v538_v42 = vsel %vm450_vm0, %v14896_v33, %v14931_v62  ;;  %v2971_v33 = vld [vmem:[#allocation5 + $0x11a8] sm:$0xff]  ;;  %v1014_v53 = vmul.f32 %v13716_v15, %v14651_v41  ;;  %v2949_v41 = vld [vmem:[#allocation5 + $0x10f8] sm:$0xff] }
 0x2d4   :  { %v1404_v6 = vmul.f32 %v13735_v34, %v931_v8  ;;  %v930_v40 = vsel %vm841_vm1, %v662_v61, %v664_v44  ;;  %11842 = vmatpush3.bf16.msra.mxu1 %v11841_v36  ;;  %11860 = vmatprep.subr.bf16.mxu0 %v11859_v39  ;;  %v1145_v31 = vmul.f32 %v13718_v16, %v538_v42  ;;  %v2931_v36 = vld [vmem:[#allocation5 + $0x1068] sm:$0xff]  ;;  %v108_v39 = vld [vmem:[%s17816_s1 + $0x190] sm:$0xff]  ;;  %v2954_v61 = vld [vmem:[#allocation5 + $0x1120] sm:$0xff] }
 0x2d5   :  { %v1405_v21 = vmul.f32 %v13735_v34, %v930_v40  ;;  %11876 = vmatprep.subr.bf16.mxu1 %v11875_v13  ;;  %v11883_v13 = vpack.c.bf16 %v2971_v33, %v2970_v19  ;;  %v11869_v63 = vpack.c.bf16 %v2931_v36, %v2930_v56  ;;  %v2973_v8 = vld [vmem:[#allocation5 + $0x11b8] sm:$0xff]  ;;  %v11871_v10 = vpack.c.bf16 %v2949_v41, %v2948_v54  ;;  %v2959_v19 = vld [vmem:[#allocation5 + $0x1148] sm:$0xff]  ;;  %v2976_v33 = vld [vmem:[#allocation5 + $0x11d0] sm:$0xff] }
 0x2d6   :  { %v14954_v29 = vadd.f32 %v1404_v6, %v1273_v51  ;;  %v14956_v38 = vpop.permute.xlu1 %1691  ;;  %v2932_v51 = vld [vmem:[#allocation5 + $0x1070] sm:$0xff]  ;;  %v2933_v6 = vld [vmem:[#allocation5 + $0x1078] sm:$0xff]  ;;  %v2979_v54 = vld [vmem:[#allocation5 + $0x11e8] sm:$0xff] }
 0x2d7   :  { %v14958_v22 = vadd.f32 %v1405_v21, %v1274_v9  ;;  %5608 = vmatmul.mubr.f32.vlgmr.msra.gmra.mrb[14].mxu1 %v2306_v43  ;;  %11862 = vmatpush3.bf16.msra.mxu0 %v11861_v32  ;;  %v2955_v32 = vld [vmem:[#allocation5 + $0x1128] sm:$0xff]  ;;  %v2972_v9 = vld [vmem:[#allocation5 + $0x11b0] sm:$0xff]  ;;  %v2957_v42 = vld [vmem:[#allocation5 + $0x1138] sm:$0xff]  ;;  %v11873_v21 = vpack.c.bf16 %v2933_v6, %v2932_v51 }
 0x2d8   :  { %1703 = vrot.lane.b32.xlu1 %v14954_v29, %s13540_s28  ;;  %11864 = vmatprep.subr.bf16.mxu0 %v11863_v5  ;;  %v1275_v5 = vadd.f32 %v1145_v31, %v1014_v53  ;;  %v11885_v40 = vpack.c.bf16 %v2955_v32, %v2954_v61  ;;  %v11887_v57 = vpack.c.bf16 %v2973_v8, %v2972_v9  ;;  %v2956_v43 = vld [vmem:[#allocation5 + $0x1130] sm:$0xff]  ;;  %v2977_v53 = vld [vmem:[#allocation5 + $0x11d8] sm:$0xff]  ;;  %v14996_v41 = vld [vmem:[%s17816_s1 + $0x1a0] sm:$0xff] }
 0x2d9   :  { %1705 = vrot.lane.b32.xlu0 %v14958_v22, %s13540_s28  ;;  %11878 = vmatpush3.bf16.msra.mxu1 %v11877_v25  ;;  %v2974_v25 = vld [vmem:[#allocation5 + $0x11c0] sm:$0xff]  ;;  %v11889_v45 = vpack.c.bf16 %v2957_v42, %v2956_v43  ;;  %v2960_v56 = vld [vmem:[#allocation5 + $0x1150] sm:$0xff]  ;;  %v2961_v36 = vld [vmem:[#allocation5 + $0x1158] sm:$0xff] }
 0x2da   :  { %v14975_v17 = vpop.permute.xlu1 %665  ;;  %11880 = vmatprep.subr.bf16.mxu1 %v11879_v35  ;;  %v11891_v27 = vpack.c.bf16 %v2975_v18, %v2974_v25  ;;  %v2962_v32 = vld [vmem:[#allocation5 + $0x1160] sm:$0xff]  ;;  %v2981_v9 = vld [vmem:[#allocation5 + $0x11f8] sm:$0xff]  ;;  %v3031_v51 = vld [vmem:[#allocation5 + $0x1388] sm:$0xff] }
 0x2db   :  { %v929_v60 = vsel %vm841_vm1, %v664_v44, %v14975_v17  ;;  %11866 = vmatpush3.bf16.msra.mxu0 %v11865_v59  ;;  %v2999_v44 = vld [vmem:[#allocation5 + $0x1288] sm:$0xff]  ;;  %v2958_v59 = vld [vmem:[#allocation5 + $0x1140] sm:$0xff] }
 0x2dc   :  { %288 = vrot.lane.b32.xlu1 %v108_v39, %s13540_s28  ;;  %v1406_v47 = vmul.f32 %v13735_v34, %v929_v60  ;;  %11868 = vmatprep.subr.bf16.mxu0 %v11867_v52  ;;  %v11907_v35 = vpack.c.bf16 %v2999_v44, %v2998_v7  ;;  %v11893_v31 = vpack.c.bf16 %v2959_v19, %v2958_v59  ;;  %v2963_v60 = vld [vmem:[#allocation5 + $0x1168] sm:$0xff]  ;;  %v13431_v19 = vld [vmem:[%s17816_s1 + $0x150] sm:$0xff] }
 0x2dd   :  { %290 = vrot.lane.b32.xlu0 %v14973_v23, %s13540_s28  ;;  %11882 = vmatpush3.bf16.msra.mxu1 %v11881_v1  ;;  %v11895_v52 = vpack.c.bf16 %v2977_v53, %v2976_v33  ;;  %v2978_v1 = vld [vmem:[#allocation5 + $0x11e0] sm:$0xff]  ;;  %v11901_v8 = vpack.c.bf16 %v2963_v60, %v2962_v32  ;;  %v1015_v33 = vmul.f32 %v13431_v19, %v13716_v15 }
 0x2de   :  { %11884 = vmatprep.subr.bf16.mxu1 %v11883_v13  ;;  %v14984_v55 = vadd.f32 %v1406_v47, %v1275_v5  ;;  %v11897_v13 = vpack.c.bf16 %v2961_v36, %v2960_v56  ;;  %v11899_v61 = vpack.c.bf16 %v2979_v54, %v2978_v1  ;;  %v2964_v5 = vld [vmem:[#allocation5 + $0x1170] sm:$0xff]  ;;  %v2965_v47 = vld [vmem:[#allocation5 + $0x1178] sm:$0xff]  ;;  %v15021_v54 = vpop.permute.xlu1 %276 }
 0x2df   :  { %11870 = vmatpush3.bf16.msra.mxu0 %v11869_v63  ;;  %v2980_v63 = vld [vmem:[#allocation5 + $0x11f0] sm:$0xff]  ;;  %v11905_v6 = vpack.c.bf16 %v2965_v47, %v2964_v5  ;;  %v2985_v47 = vld [vmem:[#allocation5 + $0x1218] sm:$0xff] }
 0x2e0   :  { %677 = vrot.lane.b32.xlu1 %v14892_v30, %s13541_s6  ;;  %11872 = vmatprep.subr.bf16.mxu0 %v11871_v10  ;;  %v3030_v10 = vld [vmem:[#allocation5 + $0x1380] sm:$0xff]  ;;  %v3000_v1 = vld [vmem:[#allocation5 + $0x1290] sm:$0xff] }
 0x2e1   :  { %679 = vrot.lane.b32.xlu0 %v14925_v50, %s13541_s6  ;;  %11886 = vmatpush3.bf16.msra.mxu1 %v11885_v40  ;;  %v11939_v40 = vpack.c.bf16 %v3031_v51, %v3030_v10  ;;  %v2984_v5 = vld [vmem:[#allocation5 + $0x1210] sm:$0xff] }
 0x2e2   :  { %11888 = vmatprep.subr.bf16.mxu1 %v11887_v57 }
 0x2e3   :  { %11874 = vmatpush3.bf16.msra.mxu0 %v11873_v21 }
 0x2e4   :  { %1707 = vrot.lane.b32.xlu1 %v14984_v55, %s13540_s28  ;;  %11908 = vmatprep.subr.bf16.mxu0 %v11907_v35  ;;  %v1981_v35 = vsel %vm450_vm0, %v14907_v2, %v14956_v38 }
 0x2e5   :  { %11890 = vmatpush3.bf16.msra.mxu1 %v11889_v45  ;;  %v537_v45 = vsel %vm450_vm0, %v14931_v62, %v14936_v4 }
 0x2e6   :  { %11892 = vmatprep.subr.bf16.mxu1 %v11891_v27  ;;  %v2047_v27 = vmax.f32 %v14684_v11, %v1981_v35  ;;  %v1146_v2 = vmul.f32 %v13718_v16, %v537_v45  ;;  %v13432_v45 = vld [vmem:[%s17816_s1 + $0x158] sm:$0xff] }
 0x2e8   :  { %681 = vrot.lane.b32.xlu1 %v108_v39, %s13541_s6  ;;  %v11903_v39 = vpack.c.bf16 %v2981_v9, %v2980_v63  ;;  %v2178_v62 = vadd.f32 %v13963_v28, %v2047_v27  ;;  %v1276_v60 = vadd.f32 %v1146_v2, %v1015_v33  ;;  %v1016_v27 = vmul.f32 %v13432_v45, %v13716_v15  ;;  %v2988_v33 = vld [vmem:[#allocation5 + $0x1230] sm:$0xff]  ;;  %v2989_v2 = vld [vmem:[#allocation5 + $0x1238] sm:$0xff] }
 0x2e9   :  { %11894 = vmatpush3.bf16.msra.mxu1 %v11893_v31  ;;  %v2982_v31 = vld [vmem:[#allocation5 + $0x1200] sm:$0xff]  ;;  %v3033_v45 = vld [vmem:[#allocation5 + $0x1398] sm:$0xff] }
 0x2ea   :  { %11896 = vmatprep.subr.bf16.mxu1 %v11895_v52  ;;  %v2983_v52 = vld [vmem:[#allocation5 + $0x1208] sm:$0xff] }
 0x2eb   :  { %v11909_v32 = vpack.c.bf16 %v2983_v52, %v2982_v31  ;;  %v3007_v31 = vld [vmem:[#allocation5 + $0x12c8] sm:$0xff] }
 0x2ec   :  { %292 = vrot.lane.b32.xlu1 %v14996_v41, %s13540_s28 }
 0x2ed   :  { %11898 = vmatpush3.bf16.msra.mxu1 %v11897_v13 }
 0x2ee   :  { %11900 = vmatprep.subr.bf16.mxu1 %v11899_v61 }
 0x2f1   :  { %11902 = vmatpush3.bf16.msra.mxu1 %v11901_v8  ;;  %v2308_v8 = vmax.f32 %v2178_v62, 0.0 }
 0x2f2   :  { %11904 = vmatprep.subr.bf16.mxu1 %v11903_v39 }
 0x2f5   :  { %11906 = vmatpush3.bf16.msra.mxu1 %v11905_v6  ;;  %v3002_v6 = vld [vmem:[#allocation5 + $0x12a0] sm:$0xff] }
 0x2f6   :  { %11940 = vmatprep.subr.bf16.mxu1 %v11939_v40  ;;  %v3003_v40 = vld [vmem:[#allocation5 + $0x12a8] sm:$0xff] }
 0x2fd   :  { %v9368_v7 = vpop.f32.mrb[8].mxu0 }
 0x2fe   :  { %v9369_v44 = vpop.f32.mrb[9].mxu0 }
 0x2ff   :  { %v9370_v57 = vadd.f32 %v9369_v44, %v9368_v7  ;;  %v11915_v44 = vpack.c.bf16 %v3003_v40, %v3002_v6 }
 0x301   :  { %v5120_v43 = vadd.f32 %v9370_v57, %v14843_v14  ;;  %v2986_v57 = vld [vmem:[#allocation5 + $0x1220] sm:$0xff] }
 0x30a   :  { %v9403_v42 = vpop.f32.mrb[8].mxu1 }
 0x30b   :  { %v9404_v21 = vpop.f32.mrb[9].mxu1 }
 0x30c   :  { %v9405_v25 = vadd.f32 %v9404_v21, %v9403_v42  ;;  %v536_v42 = vsel %vm450_vm0, %v14936_v4, %v15021_v54  ;;  %v3004_v21 = vld [vmem:[#allocation5 + $0x12b0] sm:$0xff] }
 0x30e   :  { %v5190_v18 = vadd.f32 %v9405_v25, %v5120_v43  ;;  %v2987_v43 = vld [vmem:[#allocation5 + $0x1228] sm:$0xff]  ;;  %v3005_v25 = vld [vmem:[#allocation5 + $0x12b8] sm:$0xff] }
 0x30f   :  { %v11917_v35 = vpack.c.bf16 %v2987_v43, %v2986_v57  ;;  %v11919_v4 = vpack.c.bf16 %v3005_v25, %v3004_v21  ;;  %v3014_v43 = vld [vmem:[#allocation5 + $0x1300] sm:$0xff] }
 0x319   :  { %v1694_v59 = vpop.permute.xlu0 %1693 }
 0x31a   :  { %v1980_v14 = vsel %vm450_vm0, %v14956_v38, %v1694_v59  ;;  %v3001_v38 = vld [vmem:[#allocation5 + $0x1298] sm:$0xff] }
 0x31b   :  { %v2048_v53 = vmax.f32 %v14715_v3, %v1980_v14  ;;  %v11911_v39 = vpack.c.bf16 %v3001_v38, %v3000_v1  ;;  %v1147_v14 = vmul.f32 %v13718_v16, %v536_v42  ;;  %v11921_v38 = vpack.c.bf16 %v2989_v2, %v2988_v33  ;;  %v3032_v42 = vld [vmem:[#allocation5 + $0x1390] sm:$0xff] }
 0x31d   :  { %v9438_v11 = vpop.f32.mrb[10].mxu0  ;;  %v668_v56 = vpop.permute.xlu0 %667  ;;  %v2179_v36 = vadd.f32 %v13963_v28, %v2048_v53  ;;  %v15047_v53 = vld [vmem:[%s17816_s1 + $0x1a8] sm:$0xff] }
 0x31e   :  { %v9439_v13 = vpop.f32.mrb[11].mxu0  ;;  %v928_v61 = vsel %vm841_vm1, %v14975_v17, %v668_v56  ;;  %v11913_v17 = vpack.c.bf16 %v2985_v47, %v2984_v5 }
 0x31f   :  { %v9440_v3 = vadd.f32 %v9439_v13, %v9438_v11  ;;  %v1407_v63 = vmul.f32 %v13735_v34, %v928_v61  ;;  %v2309_v9 = vmax.f32 %v2179_v36, 0.0  ;;  %v1277_v13 = vadd.f32 %v1147_v14, %v1016_v27  ;;  %v3010_v27 = vld [vmem:[#allocation5 + $0x12e0] sm:$0xff]  ;;  %v3011_v14 = vld [vmem:[#allocation5 + $0x12e8] sm:$0xff] }
 0x321   :  { %v5260_v10 = vadd.f32 %v9440_v3, %v5190_v18  ;;  %v15027_v51 = vadd.f32 %v1407_v63, %v1276_v60  ;;  %5677 = vmatprep.mubr.f32.mxu0 %v2309_v9  ;;  %v279_v19 = vpop.permute.xlu0 %278  ;;  %v2991_v3 = vld [vmem:[#allocation5 + $0x1248] sm:$0xff]  ;;  %v3008_v9 = vld [vmem:[#allocation5 + $0x12d0] sm:$0xff] }
 0x322   :  { %v1696_v7 = vpop.permute.xlu1 %1695  ;;  %5678 = vmatmul.mubr.f32.vlgmr.msra.gmra.mrb[16].mxu0 %v2308_v8  ;;  %v3009_v8 = vld [vmem:[#allocation5 + $0x12d8] sm:$0xff] }
 0x323   :  { %11910 = vmatpush3.bf16.msra.mxu0 %v11909_v32  ;;  %1709 = vrot.lane.b32.xlu0 %v15027_v51, %s13540_s28  ;;  %v1979_v52 = vsel %vm450_vm0, %v1694_v59, %v1696_v7  ;;  %v2990_v59 = vld [vmem:[#allocation5 + $0x1240] sm:$0xff] }
 0x324   :  { %11912 = vmatprep.subr.bf16.mxu0 %v11911_v39  ;;  %v2049_v63 = vmax.f32 %v14765_v46, %v1979_v52  ;;  %v11925_v6 = vpack.c.bf16 %v2991_v3, %v2990_v59  ;;  %v15072_v46 = vld [vmem:[%s17816_s1 + $0x1b0] sm:$0xff]  ;;  %v2994_v52 = vld [vmem:[#allocation5 + $0x1260] sm:$0xff]  ;;  %v11943_v59 = vpack.c.bf16 %v3033_v45, %v3032_v42  ;;  %v11931_v3 = vpack.c.bf16 %v3011_v14, %v3010_v27 }
 0x326   :  { %v15035_v18 = vpop.permute.xlu1 %280  ;;  %v2180_v57 = vadd.f32 %v13963_v28, %v2049_v63 }
 0x327   :  { %11914 = vmatpush3.bf16.msra.mxu0 %v11913_v17  ;;  %683 = vrot.lane.b32.xlu0 %v14973_v23, %s13541_s6  ;;  %v3006_v23 = vld [vmem:[#allocation5 + $0x12c0] sm:$0xff]  ;;  %v2992_v17 = vld [vmem:[#allocation5 + $0x1250] sm:$0xff]  ;;  %v534_v21 = vsel %vm450_vm0, %v279_v19, %v15035_v18 }
 0x328   :  { %11916 = vmatprep.subr.bf16.mxu0 %v11915_v44  ;;  %v11923_v60 = vpack.c.bf16 %v3007_v31, %v3006_v23  ;;  %v2993_v44 = vld [vmem:[#allocation5 + $0x1258] sm:$0xff]  ;;  %v3016_v23 = vld [vmem:[#allocation5 + $0x1310] sm:$0xff] }
 0x329   :  { %v11929_v2 = vpack.c.bf16 %v2993_v44, %v2992_v17  ;;  %v3017_v31 = vld [vmem:[#allocation5 + $0x1318] sm:$0xff] }
 0x32a   :  { %v9473_v62 = vpop.f32.mrb[10].mxu1  ;;  %v15051_v11 = vpop.permute.xlu1 %669  ;;  %v3013_v17 = vld [vmem:[#allocation5 + $0x12f8] sm:$0xff] }
 0x32b   :  { %v9474_v36 = vpop.f32.mrb[11].mxu1  ;;  %v927_v1 = vsel %vm841_vm1, %v668_v56, %v15051_v11  ;;  %11918 = vmatpush3.bf16.msra.mxu0 %v11917_v35  ;;  %294 = vrot.lane.b32.xlu0 %v15047_v53, %s13540_s28 }
 0x32c   :  { %v9475_v61 = vadd.f32 %v9474_v36, %v9473_v62  ;;  %v1408_v32 = vmul.f32 %v13735_v34, %v927_v1  ;;  %11920 = vmatprep.subr.bf16.mxu0 %v11919_v4  ;;  %v13433_v4 = vld [vmem:[%s17816_s1 + $0x160] sm:$0xff] }
 0x32e   :  { %v15060_v39 = vadd.f32 %v9475_v61, %v5260_v10  ;;  %v15062_v56 = vadd.f32 %v1408_v32, %v1277_v13  ;;  %v1698_v5 = vpop.permute.xlu0 %1697  ;;  %v11927_v10 = vpack.c.bf16 %v3009_v8, %v3008_v9  ;;  %v3034_v13 = vld [vmem:[#allocation5 + $0x13a0] sm:$0xff]  ;;  %v3035_v61 = vld [vmem:[#allocation5 + $0x13a8] sm:$0xff]  ;;  %v2310_v32 = vmax.f32 %v2180_v57, 0.0 }
 0x32f   :  { %v1978_v47 = vsel %vm450_vm0, %v1696_v7, %v1698_v5  ;;  %11922 = vmatpush3.bf16.msra.mxu0 %v11921_v38  ;;  %v535_v7 = vsel %vm450_vm0, %v15021_v54, %v279_v19  ;;  %v1017_v54 = vmul.f32 %v13433_v4, %v13716_v15  ;;  %v1018_v19 = vmul.f32 %v13716_v15, %v14791_v12  ;;  %v2995_v38 = vld [vmem:[#allocation5 + $0x1268] sm:$0xff]  ;;  %v3036_v4 = vld [vmem:[#allocation5 + $0x13b0] sm:$0xff] }
 0x330   :  { %v2050_v40 = vmax.f32 %v14794_v24, %v1978_v47  ;;  %1711 = vrot.lane.b32.xlu1 %v15062_v56, %s13540_s28  ;;  %11924 = vmatprep.subr.bf16.mxu0 %v11923_v60  ;;  %v3015_v24 = vld [vmem:[#allocation5 + $0x1308] sm:$0xff]  ;;  %v1148_v62 = vmul.f32 %v13718_v16, %v535_v7  ;;  %v1149_v60 = vmul.f32 %v13718_v16, %v534_v21  ;;  %v2996_v7 = vld [vmem:[#allocation5 + $0x1270] sm:$0xff]  ;;  %v3018_v21 = vld [vmem:[#allocation5 + $0x1320] sm:$0xff] }
 0x331   :  { %v11941_v1 = vpack.c.bf16 %v3015_v24, %v3014_v43  ;;  %v11945_v9 = vpack.c.bf16 %v3017_v31, %v3016_v23  ;;  %v2997_v43 = vld [vmem:[#allocation5 + $0x1278] sm:$0xff]  ;;  %v3062_v23 = vld [vmem:[#allocation5 + $0x1480] sm:$0xff]  ;;  %v3063_v31 = vld [vmem:[#allocation5 + $0x1488] sm:$0xff] }
 0x332   :  { %v15081_v25 = vpop.permute.xlu0 %282  ;;  %v2181_v35 = vadd.f32 %v13963_v28, %v2050_v40  ;;  %v11947_v40 = vpack.c.bf16 %v3035_v61, %v3034_v13  ;;  %v1278_v44 = vadd.f32 %v1148_v62, %v1017_v54  ;;  %v1279_v24 = vadd.f32 %v1149_v60, %v1018_v19  ;;  %v3037_v54 = vld [vmem:[#allocation5 + $0x13b8] sm:$0xff]  ;;  %v3039_v60 = vld [vmem:[#allocation5 + $0x13c8] sm:$0xff] }
 0x333   :  { %v1700_v33 = vpop.permute.xlu1 %1699  ;;  %11926 = vmatpush3.bf16.msra.mxu0 %v11925_v6  ;;  %v11933_v6 = vpack.c.bf16 %v2995_v38, %v2994_v52  ;;  %v3021_v38 = vld [vmem:[#allocation5 + $0x1338] sm:$0xff] }
 0x334   :  { %296 = vrot.lane.b32.xlu1 %v15072_v46, %s13540_s28  ;;  %v2311_v36 = vmax.f32 %v2181_v35, 0.0  ;;  %11928 = vmatprep.subr.bf16.mxu0 %v11927_v10  ;;  %v1977_v63 = vsel %vm450_vm0, %v1698_v5, %v1700_v33  ;;  %v3012_v10 = vld [vmem:[#allocation5 + $0x12f0] sm:$0xff]  ;;  %v3019_v35 = vld [vmem:[#allocation5 + $0x1328] sm:$0xff] }
 0x335   :  { %v11935_v14 = vpack.c.bf16 %v3013_v17, %v3012_v10  ;;  %v11949_v19 = vpack.c.bf16 %v3019_v35, %v3018_v21  ;;  %v3064_v10 = vld [vmem:[#allocation5 + $0x1490] sm:$0xff]  ;;  %v3065_v17 = vld [vmem:[#allocation5 + $0x1498] sm:$0xff] }
 0x336   :  { %5747 = vmatprep.mubr.f32.mxu1 %v2311_v36  ;;  %v672_v12 = vpop.permute.xlu0 %671  ;;  %v533_v36 = vsel %vm450_vm0, %v15035_v18, %v15081_v25  ;;  %v11971_v18 = vpack.c.bf16 %v3063_v31, %v3062_v23  ;;  %v11975_v21 = vpack.c.bf16 %v3065_v17, %v3064_v10  ;;  %v3048_v35 = vld [vmem:[#allocation5 + $0x1410] sm:$0xff] }
 0x337   :  { %v674_v8 = vpop.permute.xlu1 %673  ;;  %v926_v47 = vsel %vm841_vm1, %v15051_v11, %v672_v12  ;;  %5748 = vmatmul.mubr.f32.vlgmr.msra.gmra.mrb[16].mxu1 %v2310_v32  ;;  %11930 = vmatpush3.bf16.msra.mxu0 %v11929_v2  ;;  %v2051_v11 = vmax.f32 %v14845_v0, %v1977_v63  ;;  %v11937_v0 = vpack.c.bf16 %v2997_v43, %v2996_v7  ;;  %v3038_v32 = vld [vmem:[#allocation5 + $0x13c0] sm:$0xff]  ;;  %v3047_v63 = vld [vmem:[#allocation5 + $0x1408] sm:$0xff]  ;;  %v3024_v31 = vld [vmem:[#allocation5 + $0x1350] sm:$0xff] }
 0x338   :  { %v925_v57 = vsel %vm841_vm1, %v672_v12, %v674_v8  ;;  %v1409_v5 = vmul.f32 %v13735_v34, %v926_v47  ;;  %11942 = vmatpush3.bf16.msra.mxu1 %v11941_v1  ;;  %685 = vrot.lane.b32.xlu1 %v14996_v41, %s13541_s6  ;;  %v3020_v1 = vld [vmem:[#allocation5 + $0x1330] sm:$0xff]  ;;  %v1150_v47 = vmul.f32 %v13718_v16, %v533_v36  ;;  %v15149_v43 = vld [vmem:[%s17816_s1 + $0x1c0] sm:$0xff] }
 0x339   :  { %v1410_v42 = vmul.f32 %v13735_v34, %v925_v57  ;;  %11944 = vmatprep.subr.bf16.mxu1 %v11943_v59  ;;  %11932 = vmatprep.subr.bf16.mxu0 %v11931_v3  ;;  %v2182_v62 = vadd.f32 %v13963_v28, %v2051_v11  ;;  %v3046_v3 = vld [vmem:[#allocation5 + $0x1400] sm:$0xff]  ;;  %v13434_v12 = vld [vmem:[%s17816_s1 + $0x170] sm:$0xff]  ;;  %v3041_v11 = vld [vmem:[#allocation5 + $0x13d8] sm:$0xff] }
 0x33a   :  { %v15106_v45 = vadd.f32 %v1409_v5, %v1278_v44  ;;  %v15108_v27 = vpop.permute.xlu0 %1701  ;;  %v11955_v44 = vpack.c.bf16 %v3039_v60, %v3038_v32  ;;  %v3022_v57 = vld [vmem:[#allocation5 + $0x1340] sm:$0xff]  ;;  %v3023_v5 = vld [vmem:[#allocation5 + $0x1348] sm:$0xff] }
 0x33b   :  { %v15110_v2 = vadd.f32 %v1410_v42, %v1279_v24  ;;  %v1976_v41 = vsel %vm450_vm0, %v1700_v33, %v15108_v27  ;;  %11934 = vmatpush3.bf16.msra.mxu0 %v11933_v6  ;;  %v11951_v33 = vpack.c.bf16 %v3037_v54, %v3036_v4  ;;  %v3040_v24 = vld [vmem:[#allocation5 + $0x13d0] sm:$0xff]  ;;  %v11973_v42 = vpack.c.bf16 %v3047_v63, %v3046_v3  ;;  %v3066_v54 = vld [vmem:[#allocation5 + $0x14a0] sm:$0xff]  ;;  %v3051_v32 = vld [vmem:[#allocation5 + $0x1428] sm:$0xff] }
 0x33c   :  { %v2052_v52 = vmax.f32 %v14875_v48, %v1976_v41  ;;  %11946 = vmatpush3.bf16.msra.mxu1 %v11945_v9  ;;  %1713 = vrot.lane.b32.xlu0 %v15106_v45, %s13540_s28  ;;  %v15128_v48 = vld [vmem:[%s17816_s1 + $0x1b8] sm:$0xff]  ;;  %v1019_v9 = vmul.f32 %v13434_v12, %v13716_v15  ;;  %v11957_v4 = vpack.c.bf16 %v3023_v5, %v3022_v57  ;;  %v3067_v41 = vld [vmem:[#allocation5 + $0x14a8] sm:$0xff]  ;;  %v3042_v36 = vld [vmem:[#allocation5 + $0x13e0] sm:$0xff] }
 0x33d   :  { %1715 = vrot.lane.b32.xlu1 %v15110_v2, %s13540_s28  ;;  %11948 = vmatprep.subr.bf16.mxu1 %v11947_v40  ;;  %v11953_v40 = vpack.c.bf16 %v3021_v38, %v3020_v1  ;;  %v11959_v23 = vpack.c.bf16 %v3041_v11, %v3040_v24  ;;  %v11979_v38 = vpack.c.bf16 %v3067_v41, %v3066_v54  ;;  %v3026_v63 = vld [vmem:[#allocation5 + $0x1360] sm:$0xff]  ;;  %v3027_v12 = vld [vmem:[#allocation5 + $0x1368] sm:$0xff]  ;;  %v3053_v57 = vld [vmem:[#allocation5 + $0x1438] sm:$0xff] }
 0x33e   :  { %v15130_v13 = vpop.permute.xlu0 %675  ;;  %11936 = vmatprep.subr.bf16.mxu0 %v11935_v14  ;;  %v2183_v61 = vadd.f32 %v13963_v28, %v2052_v52  ;;  %v1280_v14 = vadd.f32 %v1150_v47, %v1019_v9  ;;  %v3025_v52 = vld [vmem:[#allocation5 + $0x1358] sm:$0xff]  ;;  %v3044_v47 = vld [vmem:[#allocation5 + $0x13f0] sm:$0xff]  ;;  %v11965_v24 = vpack.c.bf16 %v3027_v12, %v3026_v63  ;;  %v3071_v11 = vld [vmem:[#allocation5 + $0x14c8] sm:$0xff] }
 0x33f   :  { %v924_v59 = vsel %vm841_vm1, %v674_v8, %v15130_v13  ;;  %11938 = vmatpush3.bf16.msra.mxu0 %v11937_v0  ;;  %v2312_v8 = vmax.f32 %v2182_v62, 0.0  ;;  %v11961_v60 = vpack.c.bf16 %v3025_v52, %v3024_v31  ;;  %v15182_v54 = vld [vmem:[%s17816_s1 + $0x1c8] sm:$0xff]  ;;  %v3078_v63 = vld [vmem:[#allocation5 + $0x1500] sm:$0xff] }
 0x340   :  { %11950 = vmatpush3.bf16.msra.mxu1 %v11949_v19  ;;  %298 = vrot.lane.b32.xlu0 %v15128_v48, %s13540_s28  ;;  %v2313_v6 = vmax.f32 %v2183_v61, 0.0  ;;  %v1411_v7 = vmul.f32 %v13735_v34, %v924_v59  ;;  %v285_v19 = vpop.permute.xlu1 %284  ;;  %v3050_v61 = vld [vmem:[#allocation5 + $0x1420] sm:$0xff]  ;;  %v3069_v59 = vld [vmem:[#allocation5 + $0x14b8] sm:$0xff]  ;;  %v3095_v31 = vld [vmem:[#allocation5 + $0x1588] sm:$0xff] }
 0x341   :  { %689 = vrot.lane.b32.xlu1 %v15072_v46, %s13541_s6  ;;  %11952 = vmatprep.subr.bf16.mxu1 %v11951_v33  ;;  %v3049_v46 = vld [vmem:[#allocation5 + $0x1418] sm:$0xff]  ;;  %v3043_v33 = vld [vmem:[#allocation5 + $0x13e8] sm:$0xff] }
 0x342   :  { %5817 = vmatprep.mubr.f32.mxu0 %v2313_v6  ;;  %11972 = vmatprep.subr.bf16.mxu0 %v11971_v18  ;;  %v15155_v0 = vpop.permute.xlu0 %286  ;;  %v15157_v62 = vadd.f32 %v1411_v7, %v1280_v14  ;;  %v11977_v1 = vpack.c.bf16 %v3049_v46, %v3048_v35  ;;  %v3068_v18 = vld [vmem:[#allocation5 + $0x14b0] sm:$0xff]  ;;  %v11963_v3 = vpack.c.bf16 %v3043_v33, %v3042_v36  ;;  %v3045_v6 = vld [vmem:[#allocation5 + $0x13f8] sm:$0xff]  ;;  %v3054_v36 = vld [vmem:[#allocation5 + $0x1440] sm:$0xff] }
 0x343   :  { %5818 = vmatmul.mubr.f32.vlgmr.msra.gmra.mrb[18].mxu0 %v2312_v8  ;;  %v11983_v8 = vpack.c.bf16 %v3069_v59, %v3068_v18  ;;  %v531_v5 = vsel %vm450_vm0, %v285_v19, %v15155_v0  ;;  %v11967_v46 = vpack.c.bf16 %v3045_v6, %v3044_v47  ;;  %v3028_v14 = vld [vmem:[#allocation5 + $0x1370] sm:$0xff]  ;;  %v3055_v33 = vld [vmem:[#allocation5 + $0x1448] sm:$0xff] }
 0x344   :  { %11954 = vmatpush3.bf16.msra.mxu1 %v11953_v40  ;;  %687 = vrot.lane.b32.xlu0 %v15047_v53, %s13541_s6  ;;  %v11981_v40 = vpack.c.bf16 %v3051_v32, %v3050_v61  ;;  %v3072_v32 = vld [vmem:[#allocation5 + $0x14d0] sm:$0xff]  ;;  %v3079_v12 = vld [vmem:[#allocation5 + $0x1508] sm:$0xff]  ;;  %v11989_v47 = vpack.c.bf16 %v3055_v33, %v3054_v36 }
 0x345   :  { %300 = vrot.lane.b32.xlu1 %v15149_v43, %s13540_s28  ;;  %11956 = vmatprep.subr.bf16.mxu1 %v11955_v44  ;;  %v3052_v44 = vld [vmem:[#allocation5 + $0x1430] sm:$0xff] }
 0x346   :  { %11974 = vmatpush3.bf16.msra.mxu0 %v11973_v42  ;;  %v532_v42 = vsel %vm450_vm0, %v15081_v25, %v285_v19  ;;  %v11985_v41 = vpack.c.bf16 %v3053_v57, %v3052_v44  ;;  %v3096_v6 = vld [vmem:[#allocation5 + $0x1590] sm:$0xff] }
 0x347   :  { %11976 = vmatprep.subr.bf16.mxu0 %v11975_v21  ;;  %v1151_v61 = vmul.f32 %v13718_v16, %v532_v42  ;;  %v3074_v42 = vld [vmem:[#allocation5 + $0x14e0] sm:$0xff] }
 0x348   :  { %11958 = vmatpush3.bf16.msra.mxu1 %v11957_v4  ;;  %1717 = vrot.lane.b32.xlu0 %v15157_v62, %s13540_s28  ;;  %v3029_v4 = vld [vmem:[#allocation5 + $0x1378] sm:$0xff] }
 0x349   :  { %11960 = vmatprep.subr.bf16.mxu1 %v11959_v23  ;;  %v3094_v23 = vld [vmem:[#allocation5 + $0x1580] sm:$0xff] }
 0x34a   :  { %v1704_v9 = vpop.permute.xlu1 %1703  ;;  %11978 = vmatpush3.bf16.msra.mxu0 %v11977_v1  ;;  %v13435_v1 = vld [vmem:[%s17816_s1 + $0x178] sm:$0xff] }
 0x34b   :  { %v1975_v10 = vsel %vm450_vm0, %v15108_v27, %v1704_v9  ;;  %v15164_v17 = vpop.permute.xlu0 %1705  ;;  %11980 = vmatprep.subr.bf16.mxu0 %v11979_v38  ;;  %v3070_v27 = vld [vmem:[#allocation5 + $0x14c0] sm:$0xff]  ;;  %v1020_v38 = vmul.f32 %v13435_v1, %v13716_v15  ;;  %v3059_v1 = vld [vmem:[#allocation5 + $0x1468] sm:$0xff] }
 0x34c   :  { %v1974_v7 = vsel %vm450_vm0, %v1704_v9, %v15164_v17  ;;  %11962 = vmatpush3.bf16.msra.mxu1 %v11961_v60  ;;  %691 = vrot.lane.b32.xlu0 %v15128_v48, %s13541_s6  ;;  %v2053_v21 = vmax.f32 %v14898_v37, %v1975_v10  ;;  %v1021_v37 = vmul.f32 %v13716_v15, %v14892_v30  ;;  %v3073_v60 = vld [vmem:[#allocation5 + $0x14d8] sm:$0xff] }
 0x34d   :  { %v2054_v35 = vmax.f32 %v14954_v29, %v1974_v7  ;;  %11964 = vmatprep.subr.bf16.mxu1 %v11963_v3  ;;  %v1152_v29 = vmul.f32 %v13718_v16, %v531_v5  ;;  %v11987_v19 = vpack.c.bf16 %v3071_v11, %v3070_v27  ;;  %v11969_v30 = vpack.c.bf16 %v3029_v4, %v3028_v14  ;;  %v3056_v5 = vld [vmem:[#allocation5 + $0x1450] sm:$0xff]  ;;  %v3057_v7 = vld [vmem:[#allocation5 + $0x1458] sm:$0xff] }
 0x34e   :  { %v15184_v48 = vpop.permute.xlu1 %288  ;;  %11982 = vmatpush3.bf16.msra.mxu0 %v11981_v40  ;;  %v2184_v18 = vadd.f32 %v13963_v28, %v2053_v21  ;;  %v12003_v3 = vpack.c.bf16 %v3095_v31, %v3094_v23  ;;  %v3097_v40 = vld [vmem:[#allocation5 + $0x1598] sm:$0xff]  ;;  %v11991_v57 = vpack.c.bf16 %v3073_v60, %v3072_v32  ;;  %v3075_v21 = vld [vmem:[#allocation5 + $0x14e8] sm:$0xff] }
 0x34f   :  { %v15189_v25 = vpop.permute.xlu0 %290  ;;  %v2185_v52 = vadd.f32 %v13963_v28, %v2054_v35  ;;  %11984 = vmatprep.subr.bf16.mxu0 %v11983_v8  ;;  %v1282_v10 = vadd.f32 %v1152_v29, %v1021_v37  ;;  %v12005_v35 = vpack.c.bf16 %v3079_v12, %v3078_v63  ;;  %v12007_v4 = vpack.c.bf16 %v3097_v40, %v3096_v6  ;;  %v3081_v23 = vld [vmem:[#allocation5 + $0x1518] sm:$0xff] }
 0x350   :  { %11966 = vmatpush3.bf16.msra.mxu1 %v11965_v24  ;;  %302 = vrot.lane.b32.xlu0 %v15182_v54, %s13540_s28  ;;  %v1281_v24 = vadd.f32 %v1151_v61, %v1020_v38  ;;  %v11993_v29 = vpack.c.bf16 %v3057_v7, %v3056_v5  ;;  %v11995_v33 = vpack.c.bf16 %v3075_v21, %v3074_v42  ;;  %v3077_v32 = vld [vmem:[#allocation5 + $0x14f8] sm:$0xff]  ;;  %v3084_v21 = vld [vmem:[#allocation5 + $0x1530] sm:$0xff] }
 0x351   :  { %11968 = vmatprep.subr.bf16.mxu1 %v11967_v46  ;;  %v2315_v59 = vmax.f32 %v2185_v52, 0.0  ;;  %v2314_v46 = vmax.f32 %v2184_v18, 0.0  ;;  %v3098_v52 = vld [vmem:[#allocation5 + $0x15a0] sm:$0xff]  ;;  %v1022_v38 = vmul.f32 %v13716_v15, %v14925_v50  ;;  %v116_v18 = vld [vmem:[%s17816_s1 + $0x1d0] sm:$0xff]  ;;  %v3083_v50 = vld [vmem:[#allocation5 + $0x1528] sm:$0xff] }
 0x352   :  { %v678_v9 = vpop.permute.xlu1 %677  ;;  %11986 = vmatpush3.bf16.msra.mxu0 %v11985_v41  ;;  %v3080_v41 = vld [vmem:[#allocation5 + $0x1510] sm:$0xff]  ;;  %v15230_v63 = vld [vmem:[%s17816_s1 + $0x1d8] sm:$0xff] }
 0x353   :  { %v923_v8 = vsel %vm841_vm1, %v15130_v13, %v678_v9  ;;  %5887 = vmatprep.mubr.f32.mxu1 %v2315_v59  ;;  %v680_v44 = vpop.permute.xlu0 %679  ;;  %11988 = vmatprep.subr.bf16.mxu0 %v11987_v19  ;;  %v530_v13 = vsel %vm450_vm0, %v15155_v0, %v15184_v48  ;;  %v3099_v19 = vld [vmem:[#allocation5 + $0x15a8] sm:$0xff]  ;;  %v3058_v0 = vld [vmem:[#allocation5 + $0x1460] sm:$0xff]  ;;  %v12009_v60 = vpack.c.bf16 %v3081_v23, %v3080_v41  ;;  %v3101_v6 = vld [vmem:[#allocation5 + $0x15b8] sm:$0xff] }
 0x354   :  { %v1412_v27 = vmul.f32 %v13735_v34, %v923_v8  ;;  %v922_v11 = vsel %vm841_vm1, %v678_v9, %v680_v44  ;;  %11970 = vmatpush3.bf16.msra.mxu1 %v11969_v30  ;;  %v1153_v61 = vmul.f32 %v13718_v16, %v530_v13  ;;  %v3076_v30 = vld [vmem:[#allocation5 + $0x14f0] sm:$0xff]  ;;  %v12011_v59 = vpack.c.bf16 %v3099_v19, %v3098_v52  ;;  %v3103_v13 = vld [vmem:[#allocation5 + $0x15c8] sm:$0xff] }
 0x355   :  { %v1413_v14 = vmul.f32 %v13735_v34, %v922_v11  ;;  %12004 = vmatprep.subr.bf16.mxu1 %v12003_v3  ;;  %v3082_v3 = vld [vmem:[#allocation5 + $0x1520] sm:$0xff]  ;;  %v11997_v9 = vpack.c.bf16 %v3059_v1, %v3058_v0  ;;  %v3060_v8 = vld [vmem:[#allocation5 + $0x1470] sm:$0xff]  ;;  %v3127_v11 = vld [vmem:[#allocation5 + $0x1688] sm:$0xff] }
 0x356   :  { %v15211_v31 = vadd.f32 %v1412_v27, %v1281_v24  ;;  %v15213_v37 = vpop.permute.xlu1 %1707  ;;  %11990 = vmatpush3.bf16.msra.mxu0 %v11989_v47  ;;  %v3100_v47 = vld [vmem:[#allocation5 + $0x15b0] sm:$0xff]  ;;  %v1283_v5 = vadd.f32 %v1153_v61, %v1022_v38  ;;  %v12013_v24 = vpack.c.bf16 %v3083_v50, %v3082_v3  ;;  %v3126_v27 = vld [vmem:[#allocation5 + $0x1680] sm:$0xff]  ;;  %v3087_v52 = vld [vmem:[#allocation5 + $0x1548] sm:$0xff] }
 0x357   :  { %v15215_v36 = vadd.f32 %v1413_v14, %v1282_v10  ;;  %5888 = vmatmul.mubr.f32.vlgmr.msra.gmra.mrb[18].mxu1 %v2314_v46  ;;  %11992 = vmatprep.subr.bf16.mxu0 %v11991_v57  ;;  %v11999_v10 = vpack.c.bf16 %v3077_v32, %v3076_v30  ;;  %v3061_v57 = vld [vmem:[#allocation5 + $0x1478] sm:$0xff]  ;;  %v12015_v42 = vpack.c.bf16 %v3101_v6, %v3100_v47  ;;  %v3102_v46 = vld [vmem:[#allocation5 + $0x15c0] sm:$0xff]  ;;  %v3104_v19 = vld [vmem:[#allocation5 + $0x15d0] sm:$0xff] }
 0x358   :  { %1719 = vrot.lane.b32.xlu1 %v15211_v31, %s13540_s28  ;;  %12006 = vmatpush3.bf16.msra.mxu1 %v12005_v35  ;;  %v12001_v35 = vpack.c.bf16 %v3061_v57, %v3060_v8  ;;  %v12035_v14 = vpack.c.bf16 %v3127_v11, %v3126_v27  ;;  %v12019_v23 = vpack.c.bf16 %v3103_v13, %v3102_v46  ;;  %v3088_v38 = vld [vmem:[#allocation5 + $0x1550] sm:$0xff]  ;;  %v3089_v61 = vld [vmem:[#allocation5 + $0x1558] sm:$0xff]  ;;  %v3106_v30 = vld [vmem:[#allocation5 + $0x15e0] sm:$0xff] }
 0x359   :  { %1721 = vrot.lane.b32.xlu0 %v15215_v36, %s13540_s28  ;;  %12008 = vmatprep.subr.bf16.mxu1 %v12007_v4  ;;  %v3107_v32 = vld [vmem:[#allocation5 + $0x15e8] sm:$0xff]  ;;  %v3090_v50 = vld [vmem:[#allocation5 + $0x1560] sm:$0xff]  ;;  %v3108_v47 = vld [vmem:[#allocation5 + $0x15f0] sm:$0xff] }
 0x35a   :  { %v15232_v12 = vpop.permute.xlu1 %681  ;;  %11994 = vmatpush3.bf16.msra.mxu0 %v11993_v29  ;;  %v3086_v29 = vld [vmem:[#allocation5 + $0x1540] sm:$0xff]  ;;  %v12027_v3 = vpack.c.bf16 %v3107_v32, %v3106_v30  ;;  %v3109_v6 = vld [vmem:[#allocation5 + $0x15f8] sm:$0xff]  ;;  %v3128_v30 = vld [vmem:[#allocation5 + $0x1690] sm:$0xff] }
 0x35b   :  { %v921_v40 = vsel %vm841_vm1, %v680_v44, %v15232_v12  ;;  %11996 = vmatprep.subr.bf16.mxu0 %v11995_v33  ;;  %v3085_v44 = vld [vmem:[#allocation5 + $0x1538] sm:$0xff]  ;;  %v12021_v0 = vpack.c.bf16 %v3087_v52, %v3086_v29  ;;  %v3158_v57 = vld [vmem:[#allocation5 + $0x1780] sm:$0xff]  ;;  %v13436_v52 = vld [vmem:[%s17816_s1 + $0x190] sm:$0xff] }
 0x35c   :  { %304 = vrot.lane.b32.xlu1 %v116_v18, %s13540_s28  ;;  %v1414_v7 = vmul.f32 %v13735_v34, %v921_v40  ;;  %12010 = vmatpush3.bf16.msra.mxu1 %v12009_v60  ;;  %v12017_v41 = vpack.c.bf16 %v3085_v44, %v3084_v21  ;;  %v3105_v33 = vld [vmem:[#allocation5 + $0x15d8] sm:$0xff]  ;;  %v12025_v60 = vpack.c.bf16 %v3089_v61, %v3088_v38 }
 0x35d   :  { %306 = vrot.lane.b32.xlu0 %v15230_v63, %s13540_s28  ;;  %12012 = vmatprep.subr.bf16.mxu1 %v12011_v59  ;;  %v12023_v1 = vpack.c.bf16 %v3105_v33, %v3104_v19  ;;  %v15253_v59 = vld [vmem:[%s17816_s1 + $0x1e0] sm:$0xff]  ;;  %v3093_v8 = vld [vmem:[#allocation5 + $0x1578] sm:$0xff] }
 0x35e   :  { %11998 = vmatpush3.bf16.msra.mxu0 %v11997_v9  ;;  %v15241_v4 = vadd.f32 %v1414_v7, %v1283_v5  ;;  %v3091_v9 = vld [vmem:[#allocation5 + $0x1568] sm:$0xff] }
 0x35f   :  { %12000 = vmatprep.subr.bf16.mxu0 %v11999_v10  ;;  %v12029_v40 = vpack.c.bf16 %v3091_v9, %v3090_v50  ;;  %v3092_v10 = vld [vmem:[#allocation5 + $0x1570] sm:$0xff]  ;;  %v3159_v5 = vld [vmem:[#allocation5 + $0x1788] sm:$0xff] }
 0x360   :  { %693 = vrot.lane.b32.xlu1 %v15149_v43, %s13541_s6  ;;  %12014 = vmatpush3.bf16.msra.mxu1 %v12013_v24  ;;  %v12033_v7 = vpack.c.bf16 %v3093_v8, %v3092_v10  ;;  %v12067_v24 = vpack.c.bf16 %v3159_v5, %v3158_v57  ;;  %v3113_v10 = vld [vmem:[#allocation5 + $0x1618] sm:$0xff]  ;;  %v3130_v5 = vld [vmem:[#allocation5 + $0x16a0] sm:$0xff] }
 0x361   :  { %695 = vrot.lane.b32.xlu0 %v15182_v54, %s13541_s6  ;;  %12016 = vmatprep.subr.bf16.mxu1 %v12015_v42 }
 0x362   :  { %12002 = vmatpush3.bf16.msra.mxu0 %v12001_v35 }
 0x363   :  { %12036 = vmatprep.subr.bf16.mxu0 %v12035_v14  ;;  %v1973_v14 = vsel %vm450_vm0, %v15164_v17, %v15213_v37  ;;  %v1023_v17 = vmul.f32 %v13436_v52, %v13716_v15  ;;  %v3134_v52 = vld [vmem:[#allocation5 + $0x16c0] sm:$0xff] }
 0x364   :  { %1723 = vrot.lane.b32.xlu1 %v15241_v4, %s13540_s28  ;;  %12018 = vmatpush3.bf16.msra.mxu1 %v12017_v41  ;;  %v529_v41 = vsel %vm450_vm0, %v15184_v48, %v15189_v25  ;;  %v3110_v48 = vld [vmem:[#allocation5 + $0x1600] sm:$0xff] }
 0x365   :  { %12020 = vmatprep.subr.bf16.mxu1 %v12019_v23  ;;  %v2055_v23 = vmax.f32 %v14958_v22, %v1973_v14  ;;  %v1154_v19 = vmul.f32 %v13718_v16, %v529_v41  ;;  %v3116_v14 = vld [vmem:[#allocation5 + $0x1630] sm:$0xff]  ;;  %v3117_v41 = vld [vmem:[#allocation5 + $0x1638] sm:$0xff] }
 0x367   :  { %v2186_v22 = vadd.f32 %v13963_v28, %v2055_v23  ;;  %v1284_v50 = vadd.f32 %v1154_v19, %v1023_v17  ;;  %v15294_v23 = vld [vmem:[%s17816_s1 + $0x1e8] sm:$0xff] }
 0x368   :  { %697 = vrot.lane.b32.xlu1 %v116_v18, %s13541_s6  ;;  %12022 = vmatpush3.bf16.msra.mxu1 %v12021_v0  ;;  %v12031_v18 = vpack.c.bf16 %v3109_v6, %v3108_v47  ;;  %v3111_v0 = vld [vmem:[#allocation5 + $0x1608] sm:$0xff] }
 0x369   :  { %12024 = vmatprep.subr.bf16.mxu1 %v12023_v1  ;;  %v2316_v6 = vmax.f32 %v2186_v22, 0.0  ;;  %v3135_v17 = vld [vmem:[#allocation5 + $0x16c8] sm:$0xff] }
 0x36c   :  { %308 = vrot.lane.b32.xlu1 %v15253_v59, %s13540_s28  ;;  %12026 = vmatpush3.bf16.msra.mxu1 %v12025_v60 }
 0x36d   :  { %12028 = vmatprep.subr.bf16.mxu1 %v12027_v3  ;;  %v12037_v3 = vpack.c.bf16 %v3111_v0, %v3110_v48 }
 0x370   :  { %12030 = vmatpush3.bf16.msra.mxu1 %v12029_v40 }
 0x371   :  { %12032 = vmatprep.subr.bf16.mxu1 %v12031_v18  ;;  %v3112_v18 = vld [vmem:[#allocation5 + $0x1610] sm:$0xff] }
 0x374   :  { %12034 = vmatpush3.bf16.msra.mxu1 %v12033_v7  ;;  %v3131_v7 = vld [vmem:[#allocation5 + $0x16a8] sm:$0xff] }
 0x375   :  { %12068 = vmatprep.subr.bf16.mxu1 %v12067_v24  ;;  %v293_v24 = vpop.permute.xlu1 %292 }
 0x379   :  { %v9508_v27 = vpop.f32.mrb[12].mxu0 }
 0x37a   :  { %v9509_v11 = vpop.f32.mrb[13].mxu0 }
 0x37b   :  { %v9510_v42 = vadd.f32 %v9509_v11, %v9508_v27  ;;  %v12043_v27 = vpack.c.bf16 %v3131_v7, %v3130_v5  ;;  %v3114_v11 = vld [vmem:[#allocation5 + $0x1620] sm:$0xff]  ;;  %v3121_v5 = vld [vmem:[#allocation5 + $0x1658] sm:$0xff] }
 0x37c   :  { %v3138_v7 = vld [vmem:[#allocation5 + $0x16e0] sm:$0xff] }
 0x37d   :  { %v5400_v21 = vadd.f32 %v9510_v42, %v15060_v39  ;;  %v3115_v42 = vld [vmem:[#allocation5 + $0x1628] sm:$0xff] }
 0x38a   :  { %v9543_v44 = vpop.f32.mrb[12].mxu1 }
 0x38b   :  { %v9544_v35 = vpop.f32.mrb[13].mxu1 }
 0x38c   :  { %v9545_v46 = vadd.f32 %v9544_v35, %v9543_v44  ;;  %v3133_v44 = vld [vmem:[#allocation5 + $0x16b8] sm:$0xff] }
 0x38e   :  { %v5470_v13 = vadd.f32 %v9545_v46, %v5400_v21  ;;  %v3132_v21 = vld [vmem:[#allocation5 + $0x16b0] sm:$0xff]  ;;  %v12045_v46 = vpack.c.bf16 %v3115_v42, %v3114_v11 }
 0x395   :  { %v15267_v29 = vpop.permute.xlu0 %1709 }
 0x396   :  { %v1972_v39 = vsel %vm450_vm0, %v15213_v37, %v15267_v29  ;;  %v3129_v37 = vld [vmem:[#allocation5 + $0x1698] sm:$0xff] }
 0x397   :  { %v2056_v33 = vmax.f32 %v14984_v55, %v1972_v39  ;;  %v12039_v40 = vpack.c.bf16 %v3129_v37, %v3128_v30  ;;  %v528_v39 = vsel %vm450_vm0, %v15189_v25, %v293_v24  ;;  %v12051_v25 = vpack.c.bf16 %v3135_v17, %v3134_v52  ;;  %v3136_v30 = vld [vmem:[#allocation5 + $0x16d0] sm:$0xff]  ;;  %v3137_v37 = vld [vmem:[#allocation5 + $0x16d8] sm:$0xff]  ;;  %v3143_v17 = vld [vmem:[#allocation5 + $0x1708] sm:$0xff] }
 0x398   :  { %v1155_v0 = vmul.f32 %v13718_v16, %v528_v39 }
 0x399   :  { %v9578_v1 = vpop.f32.mrb[14].mxu0  ;;  %v684_v38 = vpop.permute.xlu0 %683  ;;  %v2187_v61 = vadd.f32 %v13963_v28, %v2056_v33  ;;  %v13437_v33 = vld [vmem:[%s17816_s1 + $0x198] sm:$0xff] }
 0x39a   :  { %v9579_v32 = vpop.f32.mrb[15].mxu0  ;;  %v920_v60 = vsel %vm841_vm1, %v15232_v12, %v684_v38  ;;  %v12041_v12 = vpack.c.bf16 %v3113_v10, %v3112_v18  ;;  %v1024_v48 = vmul.f32 %v13437_v33, %v13716_v15  ;;  %v12055_v18 = vpack.c.bf16 %v3137_v37, %v3136_v30  ;;  %v3120_v10 = vld [vmem:[#allocation5 + $0x1650] sm:$0xff] }
 0x39b   :  { %v9580_v9 = vadd.f32 %v9579_v32, %v9578_v1  ;;  %v1415_v55 = vmul.f32 %v13735_v34, %v920_v60  ;;  %v2317_v47 = vmax.f32 %v2187_v61, 0.0  ;;  %v3118_v1 = vld [vmem:[#allocation5 + $0x1640] sm:$0xff]  ;;  %v3119_v61 = vld [vmem:[#allocation5 + $0x1648] sm:$0xff] }
 0x39d   :  { %v5540_v8 = vadd.f32 %v9580_v9, %v5470_v13  ;;  %v15285_v57 = vadd.f32 %v1415_v55, %v1284_v50  ;;  %5957 = vmatprep.mubr.f32.mxu0 %v2317_v47  ;;  %v12047_v13 = vpack.c.bf16 %v3133_v44, %v3132_v21  ;;  %v295_v22 = vpop.permute.xlu0 %294  ;;  %v12053_v55 = vpack.c.bf16 %v3119_v61, %v3118_v1  ;;  %v15327_v21 = vld [vmem:[%s17816_s1 + $0x1f0] sm:$0xff]  ;;  %v13438_v1 = vld [vmem:[%s17816_s1 + $0x1a0] sm:$0xff] }
 0x39e   :  { %5958 = vmatmul.mubr.f32.vlgmr.msra.gmra.mrb[20].mxu0 %v2316_v6  ;;  %v1285_v47 = vadd.f32 %v1155_v0, %v1024_v48  ;;  %v12057_v44 = vpack.c.bf16 %v3121_v5, %v3120_v10  ;;  %v3144_v48 = vld [vmem:[#allocation5 + $0x1710] sm:$0xff]  ;;  %v1025_v61 = vmul.f32 %v13438_v1, %v13716_v15 }
 0x39f   :  { %1725 = vrot.lane.b32.xlu0 %v15285_v57, %s13540_s28  ;;  %12038 = vmatpush3.bf16.msra.mxu0 %v12037_v3  ;;  %v3140_v0 = vld [vmem:[#allocation5 + $0x16f0] sm:$0xff] }
 0x3a0   :  { %12040 = vmatprep.subr.bf16.mxu0 %v12039_v40 }
 0x3a2   :  { %v1712_v35 = vpop.permute.xlu1 %1711 }
 0x3a3   :  { %699 = vrot.lane.b32.xlu0 %v15230_v63, %s13541_s6  ;;  %12042 = vmatpush3.bf16.msra.mxu0 %v12041_v12  ;;  %v12049_v63 = vpack.c.bf16 %v3117_v41, %v3116_v14  ;;  %v1971_v32 = vsel %vm450_vm0, %v15267_v29, %v1712_v35  ;;  %v3139_v12 = vld [vmem:[#allocation5 + $0x16e8] sm:$0xff]  ;;  %v3122_v14 = vld [vmem:[#allocation5 + $0x1660] sm:$0xff] }
 0x3a4   :  { %12044 = vmatprep.subr.bf16.mxu0 %v12043_v27  ;;  %v2057_v29 = vmax.f32 %v15027_v51, %v1971_v32  ;;  %v527_v51 = vsel %vm450_vm0, %v293_v24, %v295_v22  ;;  %v3123_v41 = vld [vmem:[#allocation5 + $0x1668] sm:$0xff]  ;;  %v3160_v24 = vld [vmem:[#allocation5 + $0x1790] sm:$0xff] }
 0x3a5   :  { %v1156_v30 = vmul.f32 %v13718_v16, %v527_v51  ;;  %v12061_v37 = vpack.c.bf16 %v3123_v41, %v3122_v14  ;;  %v3124_v32 = vld [vmem:[#allocation5 + $0x1670] sm:$0xff] }
 0x3a6   :  { %v15299_v19 = vpop.permute.xlu1 %296  ;;  %v2188_v39 = vadd.f32 %v13963_v28, %v2057_v29 }
 0x3a7   :  { %12046 = vmatpush3.bf16.msra.mxu0 %v12045_v46  ;;  %310 = vrot.lane.b32.xlu0 %v15294_v23, %s13540_s28  ;;  %v526_v52 = vsel %vm450_vm0, %v295_v22, %v15299_v19  ;;  %v3145_v22 = vld [vmem:[#allocation5 + $0x1718] sm:$0xff] }
 0x3a8   :  { %12048 = vmatprep.subr.bf16.mxu0 %v12047_v13  ;;  %v3142_v13 = vld [vmem:[#allocation5 + $0x1700] sm:$0xff] }
 0x3aa   :  { %v9613_v60 = vpop.f32.mrb[14].mxu1  ;;  %v15311_v3 = vpop.permute.xlu1 %685 }
 0x3ab   :  { %v9614_v50 = vpop.f32.mrb[15].mxu1  ;;  %v919_v9 = vsel %vm841_vm1, %v684_v38, %v15311_v3  ;;  %12050 = vmatpush3.bf16.msra.mxu0 %v12049_v63  ;;  %v3161_v63 = vld [vmem:[#allocation5 + $0x1798] sm:$0xff] }
 0x3ac   :  { %v9615_v6 = vadd.f32 %v9614_v50, %v9613_v60  ;;  %v1416_v40 = vmul.f32 %v13735_v34, %v919_v9  ;;  %12052 = vmatprep.subr.bf16.mxu0 %v12051_v25  ;;  %v3141_v25 = vld [vmem:[#allocation5 + $0x16f8] sm:$0xff]  ;;  %v1026_v50 = vmul.f32 %v13716_v15, %v15047_v53  ;;  %v1157_v9 = vmul.f32 %v13718_v16, %v526_v52  ;;  %v3162_v53 = vld [vmem:[#allocation5 + $0x17a0] sm:$0xff] }
 0x3ad   :  { %v3125_v60 = vld [vmem:[#allocation5 + $0x1678] sm:$0xff] }
 0x3ae   :  { %v15318_v27 = vadd.f32 %v9615_v6, %v5540_v8  ;;  %v15320_v11 = vadd.f32 %v1416_v40, %v1285_v47  ;;  %v1714_v42 = vpop.permute.xlu0 %1713  ;;  %v12069_v47 = vpack.c.bf16 %v3143_v17, %v3142_v13  ;;  %v2318_v6 = vmax.f32 %v2188_v39, 0.0  ;;  %v3190_v13 = vld [vmem:[#allocation5 + $0x1880] sm:$0xff] }
 0x3af   :  { %v1970_v38 = vsel %vm450_vm0, %v1712_v35, %v1714_v42  ;;  %12054 = vmatpush3.bf16.msra.mxu0 %v12053_v55  ;;  %v15331_v46 = vpop.permute.xlu1 %1715  ;;  %v12059_v35 = vpack.c.bf16 %v3139_v12, %v3138_v7  ;;  %v12071_v40 = vpack.c.bf16 %v3161_v63, %v3160_v24  ;;  %v12073_v7 = vpack.c.bf16 %v3145_v22, %v3144_v48  ;;  %v3163_v12 = vld [vmem:[#allocation5 + $0x17a8] sm:$0xff]  ;;  %v3146_v17 = vld [vmem:[#allocation5 + $0x1720] sm:$0xff]  ;;  %v3164_v48 = vld [vmem:[#allocation5 + $0x17b0] sm:$0xff] }
 0x3b0   :  { %v2058_v8 = vmax.f32 %v15062_v56, %v1970_v38  ;;  %1727 = vrot.lane.b32.xlu1 %v15320_v11, %s13540_s28  ;;  %12056 = vmatprep.subr.bf16.mxu0 %v12055_v18  ;;  %v12063_v18 = vpack.c.bf16 %v3141_v25, %v3140_v0  ;;  %v1969_v10 = vsel %vm450_vm0, %v1714_v42, %v15331_v46  ;;  %v3165_v0 = vld [vmem:[#allocation5 + $0x17b8] sm:$0xff]  ;;  %v3148_v22 = vld [vmem:[#allocation5 + $0x1730] sm:$0xff] }
 0x3b1   :  { %v12065_v38 = vpack.c.bf16 %v3125_v60, %v3124_v32  ;;  %v1287_v42 = vadd.f32 %v1157_v9, %v1026_v50  ;;  %v2059_v39 = vmax.f32 %v15106_v45, %v1969_v10  ;;  %v12075_v52 = vpack.c.bf16 %v3163_v12, %v3162_v53  ;;  %v3166_v50 = vld [vmem:[#allocation5 + $0x17c0] sm:$0xff]  ;;  %v3167_v9 = vld [vmem:[#allocation5 + $0x17c8] sm:$0xff]  ;;  %v3193_v53 = vld [vmem:[#allocation5 + $0x1898] sm:$0xff] }
 0x3b2   :  { %v15340_v33 = vpop.permute.xlu0 %298  ;;  %v2189_v56 = vadd.f32 %v13963_v28, %v2058_v8 }
 0x3b3   :  { %12058 = vmatpush3.bf16.msra.mxu0 %v12057_v44  ;;  %v690_v5 = vpop.permute.xlu1 %689  ;;  %v1286_v44 = vadd.f32 %v1156_v30, %v1025_v61  ;;  %v2190_v61 = vadd.f32 %v13963_v28, %v2059_v39  ;;  %v525_v30 = vsel %vm450_vm0, %v15299_v19, %v15340_v33  ;;  %v3177_v39 = vld [vmem:[#allocation5 + $0x1818] sm:$0xff] }
 0x3b4   :  { %312 = vrot.lane.b32.xlu1 %v15327_v21, %s13540_s28  ;;  %v2319_v55 = vmax.f32 %v2189_v56, 0.0  ;;  %12060 = vmatprep.subr.bf16.mxu0 %v12059_v35  ;;  %v3191_v35 = vld [vmem:[#allocation5 + $0x1888] sm:$0xff] }
 0x3b5   :  { %v12099_v25 = vpack.c.bf16 %v3191_v35, %v3190_v13  ;;  %v2320_v12 = vmax.f32 %v2190_v61, 0.0  ;;  %v3168_v13 = vld [vmem:[#allocation5 + $0x17d0] sm:$0xff]  ;;  %v3169_v35 = vld [vmem:[#allocation5 + $0x17d8] sm:$0xff]  ;;  %v3170_v61 = vld [vmem:[#allocation5 + $0x17e0] sm:$0xff] }
 0x3b6   :  { %6027 = vmatprep.mubr.f32.mxu1 %v2319_v55  ;;  %v688_v29 = vpop.permute.xlu0 %687  ;;  %v3174_v55 = vld [vmem:[#allocation5 + $0x1800] sm:$0xff] }
 0x3b7   :  { %v917_v51 = vsel %vm841_vm1, %v688_v29, %v690_v5  ;;  %v918_v8 = vsel %vm841_vm1, %v15311_v3, %v688_v29  ;;  %6028 = vmatmul.mubr.f32.vlgmr.msra.gmra.mrb[20].mxu1 %v2318_v6  ;;  %12062 = vmatpush3.bf16.msra.mxu0 %v12061_v37  ;;  %v3147_v3 = vld [vmem:[#allocation5 + $0x1728] sm:$0xff]  ;;  %v3149_v37 = vld [vmem:[#allocation5 + $0x1738] sm:$0xff]  ;;  %v13439_v6 = vld [vmem:[%s17816_s1 + $0x1b0] sm:$0xff] }
 0x3b8   :  { %v1417_v14 = vmul.f32 %v13735_v34, %v918_v8  ;;  %v1418_v41 = vmul.f32 %v13735_v34, %v917_v51  ;;  %12070 = vmatpush3.bf16.msra.mxu1 %v12069_v47  ;;  %701 = vrot.lane.b32.xlu1 %v15253_v59, %s13541_s6  ;;  %v12077_v1 = vpack.c.bf16 %v3147_v3, %v3146_v17  ;;  %v3175_v47 = vld [vmem:[#allocation5 + $0x1808] sm:$0xff]  ;;  %v15410_v8 = vld [vmem:[%s17816_s1 + $0x200] sm:$0xff] }
 0x3b9   :  { %12072 = vmatprep.subr.bf16.mxu1 %v12071_v40  ;;  %12064 = vmatprep.subr.bf16.mxu0 %v12063_v18  ;;  %v1027_v40 = vmul.f32 %v13439_v6, %v13716_v15  ;;  %v1158_v18 = vmul.f32 %v13718_v16, %v525_v30  ;;  %v12081_v29 = vpack.c.bf16 %v3149_v37, %v3148_v22  ;;  %v3194_v17 = vld [vmem:[#allocation5 + $0x18a0] sm:$0xff]  ;;  %v3195_v3 = vld [vmem:[#allocation5 + $0x18a8] sm:$0xff] }
 0x3ba   :  { %v15366_v24 = vadd.f32 %v1417_v14, %v1286_v44  ;;  %v15368_v63 = vadd.f32 %v1418_v41, %v1287_v42  ;;  %v15370_v56 = vpop.permute.xlu0 %1717  ;;  %v3151_v44 = vld [vmem:[#allocation5 + $0x1748] sm:$0xff]  ;;  %v12101_v42 = vpack.c.bf16 %v3175_v47, %v3174_v55  ;;  %v3176_v41 = vld [vmem:[#allocation5 + $0x1810] sm:$0xff]  ;;  %v12107_v22 = vpack.c.bf16 %v3195_v3, %v3194_v17  ;;  %v3178_v37 = vld [vmem:[#allocation5 + $0x1820] sm:$0xff] }
 0x3bb   :  { %v1968_v59 = vsel %vm450_vm0, %v15331_v46, %v15370_v56  ;;  %12066 = vmatpush3.bf16.msra.mxu0 %v12065_v38  ;;  %v12079_v46 = vpack.c.bf16 %v3165_v0, %v3164_v48  ;;  %v3150_v38 = vld [vmem:[#allocation5 + $0x1740] sm:$0xff]  ;;  %v12087_v0 = vpack.c.bf16 %v3169_v35, %v3168_v13  ;;  %v3171_v30 = vld [vmem:[#allocation5 + $0x17e8] sm:$0xff] }
 0x3bc   :  { %v2060_v45 = vmax.f32 %v15110_v2, %v1968_v59  ;;  %12074 = vmatpush3.bf16.msra.mxu1 %v12073_v7  ;;  %1729 = vrot.lane.b32.xlu0 %v15366_v24, %s13540_s28  ;;  %v15389_v2 = vld [vmem:[%s17816_s1 + $0x1f8] sm:$0xff]  ;;  %v3192_v7 = vld [vmem:[#allocation5 + $0x1890] sm:$0xff]  ;;  %v12091_v55 = vpack.c.bf16 %v3171_v30, %v3170_v61  ;;  %v3154_v47 = vld [vmem:[#allocation5 + $0x1760] sm:$0xff] }
 0x3bd   :  { %1731 = vrot.lane.b32.xlu1 %v15368_v63, %s13540_s28  ;;  %12076 = vmatprep.subr.bf16.mxu1 %v12075_v52  ;;  %v12103_v14 = vpack.c.bf16 %v3193_v53, %v3192_v7  ;;  %v12085_v52 = vpack.c.bf16 %v3151_v44, %v3150_v38  ;;  %v3153_v59 = vld [vmem:[#allocation5 + $0x1758] sm:$0xff]  ;;  %v3155_v6 = vld [vmem:[#allocation5 + $0x1768] sm:$0xff]  ;;  %v3182_v61 = vld [vmem:[#allocation5 + $0x1840] sm:$0xff] }
 0x3be   :  { %v15391_v32 = vpop.permute.xlu0 %691  ;;  %v2191_v60 = vadd.f32 %v13963_v28, %v2060_v45  ;;  %12100 = vmatprep.subr.bf16.mxu0 %v12099_v25  ;;  %v3152_v25 = vld [vmem:[#allocation5 + $0x1750] sm:$0xff]  ;;  %v301_v45 = vpop.permute.xlu1 %300  ;;  %v3181_v38 = vld [vmem:[#allocation5 + $0x1838] sm:$0xff]  ;;  %v12093_v13 = vpack.c.bf16 %v3155_v6, %v3154_v47  ;;  %v3199_v35 = vld [vmem:[#allocation5 + $0x18c8] sm:$0xff] }
 0x3bf   :  { %v916_v19 = vsel %vm841_vm1, %v690_v5, %v15391_v32  ;;  %v12083_v5 = vpack.c.bf16 %v3167_v9, %v3166_v50  ;;  %v12089_v50 = vpack.c.bf16 %v3153_v59, %v3152_v25  ;;  %v3196_v9 = vld [vmem:[#allocation5 + $0x18b0] sm:$0xff]  ;;  %v15443_v17 = vld [vmem:[%s17816_s1 + $0x208] sm:$0xff]  ;;  %v3206_v47 = vld [vmem:[#allocation5 + $0x1900] sm:$0xff] }
 0x3c0   :  { %12078 = vmatpush3.bf16.msra.mxu1 %v12077_v1  ;;  %314 = vrot.lane.b32.xlu0 %v15389_v2, %s13540_s28  ;;  %v2321_v10 = vmax.f32 %v2191_v60, 0.0  ;;  %v1419_v51 = vmul.f32 %v13735_v34, %v916_v19  ;;  %v3179_v60 = vld [vmem:[#allocation5 + $0x1828] sm:$0xff]  ;;  %v3197_v19 = vld [vmem:[#allocation5 + $0x18b8] sm:$0xff] }
 0x3c1   :  { %705 = vrot.lane.b32.xlu1 %v15327_v21, %s13541_s6  ;;  %12080 = vmatprep.subr.bf16.mxu1 %v12079_v46  ;;  %v1288_v21 = vadd.f32 %v1158_v18, %v1027_v40  ;;  %v12105_v46 = vpack.c.bf16 %v3177_v39, %v3176_v41  ;;  %v3172_v18 = vld [vmem:[#allocation5 + $0x17f0] sm:$0xff]  ;;  %v3223_v25 = vld [vmem:[#allocation5 + $0x1988] sm:$0xff] }
 0x3c2   :  { %6097 = vmatprep.mubr.f32.mxu0 %v2321_v10  ;;  %v15416_v48 = vpop.permute.xlu0 %302  ;;  %v3173_v10 = vld [vmem:[#allocation5 + $0x17f8] sm:$0xff]  ;;  %v3183_v30 = vld [vmem:[#allocation5 + $0x1848] sm:$0xff] }
 0x3c3   :  { %6098 = vmatmul.mubr.f32.vlgmr.msra.gmra.mrb[22].mxu0 %v2320_v12  ;;  %v15418_v1 = vadd.f32 %v1419_v51, %v1288_v21  ;;  %v12111_v12 = vpack.c.bf16 %v3197_v19, %v3196_v9  ;;  %v523_v44 = vsel %vm450_vm0, %v301_v45, %v15416_v48  ;;  %v12095_v39 = vpack.c.bf16 %v3173_v10, %v3172_v18  ;;  %v3156_v21 = vld [vmem:[#allocation5 + $0x1770] sm:$0xff]  ;;  %v3207_v6 = vld [vmem:[#allocation5 + $0x1908] sm:$0xff] }
 0x3c4   :  { %12082 = vmatpush3.bf16.msra.mxu1 %v12081_v29  ;;  %703 = vrot.lane.b32.xlu0 %v15294_v23, %s13541_s6  ;;  %v12109_v29 = vpack.c.bf16 %v3179_v60, %v3178_v37  ;;  %v3200_v60 = vld [vmem:[#allocation5 + $0x18d0] sm:$0xff]  ;;  %v12117_v18 = vpack.c.bf16 %v3183_v30, %v3182_v61 }
 0x3c5   :  { %316 = vrot.lane.b32.xlu1 %v15410_v8, %s13540_s28  ;;  %12084 = vmatprep.subr.bf16.mxu1 %v12083_v5  ;;  %v3180_v5 = vld [vmem:[#allocation5 + $0x1830] sm:$0xff] }
 0x3c6   :  { %12102 = vmatpush3.bf16.msra.mxu0 %v12101_v42  ;;  %v524_v42 = vsel %vm450_vm0, %v15340_v33, %v301_v45  ;;  %v12113_v3 = vpack.c.bf16 %v3181_v38, %v3180_v5  ;;  %v3224_v10 = vld [vmem:[#allocation5 + $0x1990] sm:$0xff] }
 0x3c7   :  { %12104 = vmatprep.subr.bf16.mxu0 %v12103_v14  ;;  %v1159_v37 = vmul.f32 %v13718_v16, %v524_v42  ;;  %v3202_v42 = vld [vmem:[#allocation5 + $0x18e0] sm:$0xff] }
 0x3c8   :  { %12086 = vmatpush3.bf16.msra.mxu1 %v12085_v52  ;;  %1733 = vrot.lane.b32.xlu0 %v15418_v1, %s13540_s28  ;;  %v3157_v52 = vld [vmem:[#allocation5 + $0x1778] sm:$0xff] }
 0x3c9   :  { %12088 = vmatprep.subr.bf16.mxu1 %v12087_v0  ;;  %v3222_v0 = vld [vmem:[#allocation5 + $0x1980] sm:$0xff] }
 0x3ca   :  { %v1720_v40 = vpop.permute.xlu1 %1719  ;;  %12106 = vmatpush3.bf16.msra.mxu0 %v12105_v46  ;;  %v13440_v46 = vld [vmem:[%s17816_s1 + $0x1b8] sm:$0xff] }
 0x3cb   :  { %v1967_v7 = vsel %vm450_vm0, %v15370_v56, %v1720_v40  ;;  %v15425_v53 = vpop.permute.xlu0 %1721  ;;  %12108 = vmatprep.subr.bf16.mxu0 %v12107_v22  ;;  %v3198_v56 = vld [vmem:[#allocation5 + $0x18c0] sm:$0xff]  ;;  %v1028_v22 = vmul.f32 %v13440_v46, %v13716_v15  ;;  %v3187_v46 = vld [vmem:[#allocation5 + $0x1868] sm:$0xff] }
 0x3cc   :  { %v1966_v51 = vsel %vm450_vm0, %v1720_v40, %v15425_v53  ;;  %12090 = vmatpush3.bf16.msra.mxu1 %v12089_v50  ;;  %707 = vrot.lane.b32.xlu0 %v15389_v2, %s13541_s6  ;;  %v2061_v14 = vmax.f32 %v15157_v62, %v1967_v7  ;;  %v1029_v62 = vmul.f32 %v13716_v15, %v15149_v43  ;;  %v3201_v50 = vld [vmem:[#allocation5 + $0x18d8] sm:$0xff] }
 0x3cd   :  { %v2062_v41 = vmax.f32 %v15211_v31, %v1966_v51  ;;  %12092 = vmatprep.subr.bf16.mxu1 %v12091_v55  ;;  %v1160_v31 = vmul.f32 %v13718_v16, %v523_v44  ;;  %v12115_v45 = vpack.c.bf16 %v3199_v35, %v3198_v56  ;;  %v12097_v43 = vpack.c.bf16 %v3157_v52, %v3156_v21  ;;  %v3184_v44 = vld [vmem:[#allocation5 + $0x1850] sm:$0xff]  ;;  %v3185_v51 = vld [vmem:[#allocation5 + $0x1858] sm:$0xff] }
 0x3ce   :  { %v15445_v2 = vpop.permute.xlu1 %304  ;;  %12110 = vmatpush3.bf16.msra.mxu0 %v12109_v29  ;;  %v2192_v9 = vadd.f32 %v13963_v28, %v2061_v14  ;;  %v12131_v55 = vpack.c.bf16 %v3223_v25, %v3222_v0  ;;  %v3225_v29 = vld [vmem:[#allocation5 + $0x1998] sm:$0xff]  ;;  %v12119_v38 = vpack.c.bf16 %v3201_v50, %v3200_v60  ;;  %v3203_v14 = vld [vmem:[#allocation5 + $0x18e8] sm:$0xff] }
 0x3cf   :  { %v15450_v33 = vpop.permute.xlu0 %306  ;;  %v2193_v59 = vadd.f32 %v13963_v28, %v2062_v41  ;;  %12112 = vmatprep.subr.bf16.mxu0 %v12111_v12  ;;  %v1290_v7 = vadd.f32 %v1160_v31, %v1029_v62  ;;  %v12133_v41 = vpack.c.bf16 %v3207_v6, %v3206_v47  ;;  %v12135_v52 = vpack.c.bf16 %v3225_v29, %v3224_v10  ;;  %v3209_v0 = vld [vmem:[#allocation5 + $0x1918] sm:$0xff] }
 0x3d0   :  { %12094 = vmatpush3.bf16.msra.mxu1 %v12093_v13  ;;  %318 = vrot.lane.b32.xlu0 %v15443_v17, %s13540_s28  ;;  %v1289_v13 = vadd.f32 %v1159_v37, %v1028_v22  ;;  %v12121_v31 = vpack.c.bf16 %v3185_v51, %v3184_v44  ;;  %v12123_v30 = vpack.c.bf16 %v3203_v14, %v3202_v42  ;;  %v3205_v60 = vld [vmem:[#allocation5 + $0x18f8] sm:$0xff]  ;;  %v3212_v14 = vld [vmem:[#allocation5 + $0x1930] sm:$0xff] }
 0x3d1   :  { %12096 = vmatprep.subr.bf16.mxu1 %v12095_v39  ;;  %v2323_v19 = vmax.f32 %v2193_v59, 0.0  ;;  %v2322_v39 = vmax.f32 %v2192_v9, 0.0  ;;  %v3226_v59 = vld [vmem:[#allocation5 + $0x19a0] sm:$0xff]  ;;  %v1030_v22 = vmul.f32 %v13716_v15, %v15182_v54  ;;  %v124_v9 = vld [vmem:[%s17816_s1 + $0x210] sm:$0xff]  ;;  %v3211_v54 = vld [vmem:[#allocation5 + $0x1928] sm:$0xff] }
 0x3d2   :  { %v694_v40 = vpop.permute.xlu1 %693  ;;  %12114 = vmatpush3.bf16.msra.mxu0 %v12113_v3  ;;  %v3208_v3 = vld [vmem:[#allocation5 + $0x1910] sm:$0xff]  ;;  %v15491_v47 = vld [vmem:[%s17816_s1 + $0x218] sm:$0xff] }
 0x3d3   :  { %v915_v12 = vsel %vm841_vm1, %v15391_v32, %v694_v40  ;;  %6167 = vmatprep.mubr.f32.mxu1 %v2323_v19  ;;  %v696_v5 = vpop.permute.xlu0 %695  ;;  %12116 = vmatprep.subr.bf16.mxu0 %v12115_v45  ;;  %v522_v32 = vsel %vm450_vm0, %v15416_v48, %v15445_v2  ;;  %v3227_v45 = vld [vmem:[#allocation5 + $0x19a8] sm:$0xff]  ;;  %v3186_v48 = vld [vmem:[#allocation5 + $0x1860] sm:$0xff]  ;;  %v12137_v50 = vpack.c.bf16 %v3209_v0, %v3208_v3  ;;  %v3229_v10 = vld [vmem:[#allocation5 + $0x19b8] sm:$0xff] }
 0x3d4   :  { %v1420_v56 = vmul.f32 %v13735_v34, %v915_v12  ;;  %v914_v35 = vsel %vm841_vm1, %v694_v40, %v696_v5  ;;  %12098 = vmatpush3.bf16.msra.mxu1 %v12097_v43  ;;  %v1161_v37 = vmul.f32 %v13718_v16, %v522_v32  ;;  %v3204_v43 = vld [vmem:[#allocation5 + $0x18f0] sm:$0xff]  ;;  %v12139_v19 = vpack.c.bf16 %v3227_v45, %v3226_v59  ;;  %v3231_v32 = vld [vmem:[#allocation5 + $0x19c8] sm:$0xff] }
 0x3d5   :  { %v1421_v21 = vmul.f32 %v13735_v34, %v914_v35  ;;  %12132 = vmatprep.subr.bf16.mxu1 %v12131_v55  ;;  %v3210_v55 = vld [vmem:[#allocation5 + $0x1920] sm:$0xff]  ;;  %v12125_v40 = vpack.c.bf16 %v3187_v46, %v3186_v48  ;;  %v3188_v12 = vld [vmem:[#allocation5 + $0x1870] sm:$0xff]  ;;  %v3255_v35 = vld [vmem:[#allocation5 + $0x1a88] sm:$0xff] }
 0x3d6   :  { %v15472_v25 = vadd.f32 %v1420_v56, %v1289_v13  ;;  %v15474_v62 = vpop.permute.xlu1 %1723  ;;  %12118 = vmatpush3.bf16.msra.mxu0 %v12117_v18  ;;  %v3228_v18 = vld [vmem:[#allocation5 + $0x19b0] sm:$0xff]  ;;  %v1291_v44 = vadd.f32 %v1161_v37, %v1030_v22  ;;  %v12141_v13 = vpack.c.bf16 %v3211_v54, %v3210_v55  ;;  %v3254_v56 = vld [vmem:[#allocation5 + $0x1a80] sm:$0xff]  ;;  %v3215_v59 = vld [vmem:[#allocation5 + $0x1948] sm:$0xff] }
 0x3d7   :  { %v15476_v61 = vadd.f32 %v1421_v21, %v1290_v7  ;;  %6168 = vmatmul.mubr.f32.vlgmr.msra.gmra.mrb[22].mxu1 %v2322_v39  ;;  %12120 = vmatprep.subr.bf16.mxu0 %v12119_v38  ;;  %v12127_v7 = vpack.c.bf16 %v3205_v60, %v3204_v43  ;;  %v3189_v38 = vld [vmem:[#allocation5 + $0x1878] sm:$0xff]  ;;  %v12143_v42 = vpack.c.bf16 %v3229_v10, %v3228_v18  ;;  %v3230_v39 = vld [vmem:[#allocation5 + $0x19c0] sm:$0xff]  ;;  %v3232_v45 = vld [vmem:[#allocation5 + $0x19d0] sm:$0xff] }
 0x3d8   :  { %1735 = vrot.lane.b32.xlu1 %v15472_v25, %s13540_s28  ;;  %12134 = vmatpush3.bf16.msra.mxu1 %v12133_v41  ;;  %v12129_v41 = vpack.c.bf16 %v3189_v38, %v3188_v12  ;;  %v12163_v21 = vpack.c.bf16 %v3255_v35, %v3254_v56  ;;  %v12147_v0 = vpack.c.bf16 %v3231_v32, %v3230_v39  ;;  %v3216_v22 = vld [vmem:[#allocation5 + $0x1950] sm:$0xff]  ;;  %v3217_v37 = vld [vmem:[#allocation5 + $0x1958] sm:$0xff]  ;;  %v3234_v43 = vld [vmem:[#allocation5 + $0x19e0] sm:$0xff] }
 0x3d9   :  { %1737 = vrot.lane.b32.xlu0 %v15476_v61, %s13540_s28  ;;  %12136 = vmatprep.subr.bf16.mxu1 %v12135_v52  ;;  %v3235_v60 = vld [vmem:[#allocation5 + $0x19e8] sm:$0xff]  ;;  %v3218_v54 = vld [vmem:[#allocation5 + $0x1960] sm:$0xff]  ;;  %v3236_v18 = vld [vmem:[#allocation5 + $0x19f0] sm:$0xff]  ;;  %v1965_v32 = vsel %vm450_vm0, %v15425_v53, %v15474_v62 }
 0x3da   :  { %v15493_v6 = vpop.permute.xlu1 %697  ;;  %12122 = vmatpush3.bf16.msra.mxu0 %v12121_v31  ;;  %v3214_v31 = vld [vmem:[#allocation5 + $0x1940] sm:$0xff]  ;;  %v12155_v55 = vpack.c.bf16 %v3235_v60, %v3234_v43  ;;  %v3237_v10 = vld [vmem:[#allocation5 + $0x19f8] sm:$0xff] }
 0x3db   :  { %v913_v29 = vsel %vm841_vm1, %v696_v5, %v15493_v6  ;;  %12124 = vmatprep.subr.bf16.mxu0 %v12123_v30  ;;  %v3213_v5 = vld [vmem:[#allocation5 + $0x1938] sm:$0xff]  ;;  %v12149_v48 = vpack.c.bf16 %v3215_v59, %v3214_v31  ;;  %v3286_v38 = vld [vmem:[#allocation5 + $0x1b80] sm:$0xff]  ;;  %v13441_v59 = vld [vmem:[%s17816_s1 + $0x1d0] sm:$0xff] }
 0x3dc   :  { %320 = vrot.lane.b32.xlu1 %v124_v9, %s13540_s28  ;;  %v1422_v51 = vmul.f32 %v13735_v34, %v913_v29  ;;  %12138 = vmatpush3.bf16.msra.mxu1 %v12137_v50  ;;  %v12145_v3 = vpack.c.bf16 %v3213_v5, %v3212_v14  ;;  %v3233_v30 = vld [vmem:[#allocation5 + $0x19d8] sm:$0xff]  ;;  %v12153_v50 = vpack.c.bf16 %v3217_v37, %v3216_v22  ;;  %v3256_v37 = vld [vmem:[#allocation5 + $0x1a90] sm:$0xff] }
 0x3dd   :  { %322 = vrot.lane.b32.xlu0 %v15491_v47, %s13540_s28  ;;  %12140 = vmatprep.subr.bf16.mxu1 %v12139_v19  ;;  %v12151_v46 = vpack.c.bf16 %v3233_v30, %v3232_v45  ;;  %v15514_v19 = vld [vmem:[%s17816_s1 + $0x220] sm:$0xff]  ;;  %v3221_v12 = vld [vmem:[#allocation5 + $0x1978] sm:$0xff]  ;;  %v1031_v53 = vmul.f32 %v13441_v59, %v13716_v15 }
 0x3de   :  { %12126 = vmatpush3.bf16.msra.mxu0 %v12125_v40  ;;  %v15502_v52 = vadd.f32 %v1422_v51, %v1291_v44  ;;  %v3219_v40 = vld [vmem:[#allocation5 + $0x1968] sm:$0xff] }
 0x3df   :  { %12128 = vmatprep.subr.bf16.mxu0 %v12127_v7  ;;  %v12157_v29 = vpack.c.bf16 %v3219_v40, %v3218_v54  ;;  %v3220_v7 = vld [vmem:[#allocation5 + $0x1970] sm:$0xff]  ;;  %v3287_v44 = vld [vmem:[#allocation5 + $0x1b88] sm:$0xff] }
 0x3e0   :  { %709 = vrot.lane.b32.xlu1 %v15410_v8, %s13541_s6  ;;  %12142 = vmatpush3.bf16.msra.mxu1 %v12141_v13  ;;  %v12161_v51 = vpack.c.bf16 %v3221_v12, %v3220_v7  ;;  %v12195_v13 = vpack.c.bf16 %v3287_v44, %v3286_v38  ;;  %v3241_v7 = vld [vmem:[#allocation5 + $0x1a18] sm:$0xff]  ;;  %v3258_v38 = vld [vmem:[#allocation5 + $0x1aa0] sm:$0xff]  ;;  %v3259_v44 = vld [vmem:[#allocation5 + $0x1aa8] sm:$0xff] }
 0x3e1   :  { %711 = vrot.lane.b32.xlu0 %v15443_v17, %s13541_s6  ;;  %12144 = vmatprep.subr.bf16.mxu1 %v12143_v42 }
 0x3e2   :  { %12130 = vmatpush3.bf16.msra.mxu0 %v12129_v41 }
 0x3e3   :  { %12164 = vmatprep.subr.bf16.mxu0 %v12163_v21 }
 0x3e4   :  { %1739 = vrot.lane.b32.xlu1 %v15502_v52, %s13540_s28  ;;  %12146 = vmatpush3.bf16.msra.mxu1 %v12145_v3  ;;  %v521_v3 = vsel %vm450_vm0, %v15445_v2, %v15450_v33 }
 0x3e5   :  { %12148 = vmatprep.subr.bf16.mxu1 %v12147_v0  ;;  %v2063_v0 = vmax.f32 %v15215_v36, %v1965_v32  ;;  %v1162_v45 = vmul.f32 %v13718_v16, %v521_v3  ;;  %v3238_v36 = vld [vmem:[#allocation5 + $0x1a00] sm:$0xff]  ;;  %v3244_v32 = vld [vmem:[#allocation5 + $0x1a30] sm:$0xff]  ;;  %v15560_v3 = vld [vmem:[%s17816_s1 + $0x228] sm:$0xff] }
 0x3e7   :  { %v2194_v2 = vadd.f32 %v13963_v28, %v2063_v0  ;;  %v3262_v0 = vld [vmem:[#allocation5 + $0x1ac0] sm:$0xff] }
 0x3e8   :  { %713 = vrot.lane.b32.xlu1 %v124_v9, %s13541_s6  ;;  %12150 = vmatpush3.bf16.msra.mxu1 %v12149_v48  ;;  %v12159_v9 = vpack.c.bf16 %v3237_v10, %v3236_v18  ;;  %v3239_v48 = vld [vmem:[#allocation5 + $0x1a08] sm:$0xff] }
 0x3e9   :  { %12152 = vmatprep.subr.bf16.mxu1 %v12151_v46  ;;  %v12165_v40 = vpack.c.bf16 %v3239_v48, %v3238_v36  ;;  %v2324_v18 = vmax.f32 %v2194_v2, 0.0  ;;  %v3264_v36 = vld [vmem:[#allocation5 + $0x1ad0] sm:$0xff]  ;;  %v3265_v48 = vld [vmem:[#allocation5 + $0x1ad8] sm:$0xff] }
 0x3ec   :  { %324 = vrot.lane.b32.xlu1 %v15514_v19, %s13540_s28  ;;  %12154 = vmatpush3.bf16.msra.mxu1 %v12153_v50  ;;  %v1292_v50 = vadd.f32 %v1162_v45, %v1031_v53  ;;  %v3246_v45 = vld [vmem:[#allocation5 + $0x1a40] sm:$0xff] }
 0x3ed   :  { %12156 = vmatprep.subr.bf16.mxu1 %v12155_v55 }
 0x3f0   :  { %12158 = vmatpush3.bf16.msra.mxu1 %v12157_v29 }
 0x3f1   :  { %12160 = vmatprep.subr.bf16.mxu1 %v12159_v9  ;;  %v3240_v9 = vld [vmem:[#allocation5 + $0x1a10] sm:$0xff] }
 0x3f4   :  { %12162 = vmatpush3.bf16.msra.mxu1 %v12161_v51 }
 0x3f5   :  { %v9648_v56 = vpop.f32.mrb[16].mxu0  ;;  %12196 = vmatprep.subr.bf16.mxu1 %v12195_v13  ;;  %v12171_v13 = vpack.c.bf16 %v3259_v44, %v3258_v38 }
 0x3f6   :  { %v9649_v35 = vpop.f32.mrb[17].mxu0 }
 0x3f7   :  { %v9650_v42 = vadd.f32 %v9649_v35, %v9648_v56  ;;  %v3242_v56 = vld [vmem:[#allocation5 + $0x1a20] sm:$0xff]  ;;  %v3243_v35 = vld [vmem:[#allocation5 + $0x1a28] sm:$0xff] }
 0x3f9   :  { %v5680_v14 = vadd.f32 %v9650_v42, %v15318_v27  ;;  %v3260_v42 = vld [vmem:[#allocation5 + $0x1ab0] sm:$0xff] }
 0x40a   :  { %v9683_v5 = vpop.f32.mrb[16].mxu1 }
 0x40b   :  { %v9684_v41 = vpop.f32.mrb[17].mxu1 }
 0x40c   :  { %v9685_v39 = vadd.f32 %v9684_v41, %v9683_v5  ;;  %v309_v5 = vpop.permute.xlu1 %308  ;;  %v12173_v41 = vpack.c.bf16 %v3243_v35, %v3242_v56  ;;  %v3250_v35 = vld [vmem:[#allocation5 + $0x1a60] sm:$0xff] }
 0x40d   :  { %v520_v2 = vsel %vm450_vm0, %v15450_v33, %v309_v5  ;;  %v3266_v33 = vld [vmem:[#allocation5 + $0x1ae0] sm:$0xff] }
 0x40e   :  { %v5750_v21 = vadd.f32 %v9685_v39, %v5680_v14  ;;  %v3261_v14 = vld [vmem:[#allocation5 + $0x1ab8] sm:$0xff] }
 0x40f   :  { %v12175_v39 = vpack.c.bf16 %v3261_v14, %v3260_v42  ;;  %v3251_v42 = vld [vmem:[#allocation5 + $0x1a68] sm:$0xff]  ;;  %v3268_v14 = vld [vmem:[#allocation5 + $0x1af0] sm:$0xff] }
 0x411   :  { %v15528_v31 = vpop.permute.xlu0 %1725 }
 0x412   :  { %v1964_v27 = vsel %vm450_vm0, %v15474_v62, %v15528_v31  ;;  %v3257_v62 = vld [vmem:[#allocation5 + $0x1a98] sm:$0xff] }
 0x413   :  { %v2064_v30 = vmax.f32 %v15241_v4, %v1964_v27  ;;  %v12167_v29 = vpack.c.bf16 %v3257_v62, %v3256_v37  ;;  %v3263_v27 = vld [vmem:[#allocation5 + $0x1ac8] sm:$0xff]  ;;  %v13442_v62 = vld [vmem:[%s17816_s1 + $0x1d8] sm:$0xff] }
 0x415   :  { %v15541_v46 = vpop.permute.xlu0 %699  ;;  %v2195_v22 = vadd.f32 %v13963_v28, %v2064_v30  ;;  %v3247_v30 = vld [vmem:[#allocation5 + $0x1a48] sm:$0xff] }
 0x416   :  { %v9718_v43 = vpop.f32.mrb[18].mxu0  ;;  %v912_v60 = vsel %vm841_vm1, %v15493_v6, %v15541_v46  ;;  %v12169_v6 = vpack.c.bf16 %v3241_v7, %v3240_v9  ;;  %v12181_v37 = vpack.c.bf16 %v3247_v30, %v3246_v45  ;;  %v3253_v45 = vld [vmem:[#allocation5 + $0x1a78] sm:$0xff] }
 0x417   :  { %v1423_v55 = vmul.f32 %v13735_v34, %v912_v60  ;;  %v9719_v4 = vpop.f32.mrb[19].mxu0  ;;  %v2325_v54 = vmax.f32 %v2195_v22, 0.0  ;;  %v1163_v60 = vmul.f32 %v13718_v16, %v520_v2  ;;  %v3270_v2 = vld [vmem:[#allocation5 + $0x1b00] sm:$0xff] }
 0x418   :  { %v9720_v10 = vadd.f32 %v9719_v4, %v9718_v43  ;;  %v1032_v43 = vmul.f32 %v13442_v62, %v13716_v15  ;;  %v3248_v4 = vld [vmem:[#allocation5 + $0x1a50] sm:$0xff]  ;;  %v3289_v62 = vld [vmem:[#allocation5 + $0x1b98] sm:$0xff] }
 0x419   :  { %v15549_v12 = vadd.f32 %v1423_v55, %v1292_v50  ;;  %6237 = vmatprep.mubr.f32.mxu0 %v2325_v54  ;;  %v311_v50 = vpop.permute.xlu0 %310  ;;  %v12183_v55 = vpack.c.bf16 %v3265_v48, %v3264_v36  ;;  %v3249_v54 = vld [vmem:[#allocation5 + $0x1a58] sm:$0xff]  ;;  %v3288_v36 = vld [vmem:[#allocation5 + $0x1b90] sm:$0xff] }
 0x41a   :  { %v15551_v51 = vadd.f32 %v9720_v10, %v5750_v21  ;;  %6238 = vmatmul.mubr.f32.vlgmr.msra.gmra.mrb[24].mxu0 %v2324_v18  ;;  %v3245_v21 = vld [vmem:[#allocation5 + $0x1a38] sm:$0xff]  ;;  %v12185_v38 = vpack.c.bf16 %v3249_v54, %v3248_v4  ;;  %v1293_v44 = vadd.f32 %v1163_v60, %v1032_v43  ;;  %v3318_v43 = vld [vmem:[#allocation5 + $0x1c80] sm:$0xff]  ;;  %v3319_v60 = vld [vmem:[#allocation5 + $0x1c88] sm:$0xff] }
 0x41b   :  { %1741 = vrot.lane.b32.xlu0 %v15549_v12, %s13540_s28  ;;  %12166 = vmatpush3.bf16.msra.mxu0 %v12165_v40  ;;  %v12177_v53 = vpack.c.bf16 %v3245_v21, %v3244_v32  ;;  %v3267_v40 = vld [vmem:[#allocation5 + $0x1ae8] sm:$0xff] }
 0x41c   :  { %12168 = vmatprep.subr.bf16.mxu0 %v12167_v29  ;;  %v12187_v56 = vpack.c.bf16 %v3267_v40, %v3266_v33  ;;  %v3272_v33 = vld [vmem:[#allocation5 + $0x1b10] sm:$0xff] }
 0x41f   :  { %715 = vrot.lane.b32.xlu0 %v15491_v47, %s13541_s6  ;;  %12170 = vmatpush3.bf16.msra.mxu0 %v12169_v6  ;;  %v12179_v47 = vpack.c.bf16 %v3263_v27, %v3262_v0  ;;  %v12189_v0 = vpack.c.bf16 %v3251_v42, %v3250_v35  ;;  %v519_v27 = vsel %vm450_vm0, %v309_v5, %v311_v50 }
 0x420   :  { %12172 = vmatprep.subr.bf16.mxu0 %v12171_v13  ;;  %v1164_v54 = vmul.f32 %v13718_v16, %v519_v27 }
 0x422   :  { %v1728_v59 = vpop.permute.xlu1 %1727 }
 0x423   :  { %12174 = vmatpush3.bf16.msra.mxu0 %v12173_v41  ;;  %326 = vrot.lane.b32.xlu0 %v15560_v3, %s13540_s28  ;;  %v1963_v18 = vsel %vm450_vm0, %v15528_v31, %v1728_v59  ;;  %v3269_v41 = vld [vmem:[#allocation5 + $0x1af8] sm:$0xff] }
 0x424   :  { %12176 = vmatprep.subr.bf16.mxu0 %v12175_v39  ;;  %v2065_v31 = vmax.f32 %v15285_v57, %v1963_v18  ;;  %v1034_v18 = vmul.f32 %v13716_v15, %v15294_v23  ;;  %v3290_v23 = vld [vmem:[#allocation5 + $0x1ba0] sm:$0xff] }
 0x426   :  { %v15567_v22 = vpop.permute.xlu1 %312  ;;  %v2196_v30 = vadd.f32 %v13963_v28, %v2065_v31  ;;  %v3291_v31 = vld [vmem:[#allocation5 + $0x1ba8] sm:$0xff] }
 0x427   :  { %12178 = vmatpush3.bf16.msra.mxu0 %v12177_v53  ;;  %v518_v5 = vsel %vm450_vm0, %v311_v50, %v15567_v22  ;;  %v3273_v50 = vld [vmem:[#allocation5 + $0x1b18] sm:$0xff] }
 0x428   :  { %12180 = vmatprep.subr.bf16.mxu0 %v12179_v47  ;;  %v12191_v47 = vpack.c.bf16 %v3269_v41, %v3268_v14  ;;  %v12201_v42 = vpack.c.bf16 %v3273_v50, %v3272_v33  ;;  %v3295_v33 = vld [vmem:[#allocation5 + $0x1bc8] sm:$0xff]  ;;  %v3302_v50 = vld [vmem:[#allocation5 + $0x1c00] sm:$0xff] }
 0x42a   :  { %v9753_v10 = vpop.f32.mrb[18].mxu1  ;;  %v15577_v29 = vpop.permute.xlu1 %701 }
 0x42b   :  { %v9754_v9 = vpop.f32.mrb[19].mxu1  ;;  %v911_v7 = vsel %vm841_vm1, %v15541_v46, %v15577_v29  ;;  %12182 = vmatpush3.bf16.msra.mxu0 %v12181_v37 }
 0x42c   :  { %v9755_v6 = vadd.f32 %v9754_v9, %v9753_v10  ;;  %v1424_v13 = vmul.f32 %v13735_v34, %v911_v7  ;;  %12184 = vmatprep.subr.bf16.mxu0 %v12183_v55  ;;  %v13443_v55 = vld [vmem:[%s17816_s1 + $0x1e0] sm:$0xff]  ;;  %v1165_v10 = vmul.f32 %v13718_v16, %v518_v5 }
 0x42d   :  { %v1033_v4 = vmul.f32 %v13443_v55, %v13716_v15 }
 0x42e   :  { %v15586_v39 = vadd.f32 %v9755_v6, %v15551_v51  ;;  %v15588_v32 = vadd.f32 %v1424_v13, %v1293_v44  ;;  %v1730_v46 = vpop.permute.xlu0 %1729  ;;  %v15602_v51 = vld [vmem:[%s17816_s1 + $0x230] sm:$0xff]  ;;  %v12199_v44 = vpack.c.bf16 %v3289_v62, %v3288_v36  ;;  %v12227_v6 = vpack.c.bf16 %v3319_v60, %v3318_v43  ;;  %v3277_v60 = vld [vmem:[#allocation5 + $0x1b38] sm:$0xff] }
 0x42f   :  { %v1962_v21 = vsel %vm450_vm0, %v1728_v59, %v1730_v46  ;;  %12186 = vmatpush3.bf16.msra.mxu0 %v12185_v38  ;;  %v15594_v53 = vpop.permute.xlu1 %1731  ;;  %v3252_v59 = vld [vmem:[#allocation5 + $0x1a70] sm:$0xff]  ;;  %v2326_v38 = vmax.f32 %v2196_v30, 0.0  ;;  %v1294_v14 = vadd.f32 %v1164_v54, %v1033_v4  ;;  %v3294_v54 = vld [vmem:[#allocation5 + $0x1bc0] sm:$0xff] }
 0x430   :  { %v2066_v57 = vmax.f32 %v15320_v11, %v1962_v21  ;;  %1743 = vrot.lane.b32.xlu1 %v15588_v32, %s13540_s28  ;;  %12188 = vmatprep.subr.bf16.mxu0 %v12187_v56  ;;  %v3271_v11 = vld [vmem:[#allocation5 + $0x1b08] sm:$0xff]  ;;  %v12193_v40 = vpack.c.bf16 %v3253_v45, %v3252_v59  ;;  %v1961_v13 = vsel %vm450_vm0, %v1730_v46, %v15594_v53  ;;  %v3274_v59 = vld [vmem:[#allocation5 + $0x1b20] sm:$0xff]  ;;  %v3276_v43 = vld [vmem:[#allocation5 + $0x1b30] sm:$0xff] }
 0x431   :  { %v12197_v7 = vpack.c.bf16 %v3271_v11, %v3270_v2  ;;  %v3275_v45 = vld [vmem:[#allocation5 + $0x1b28] sm:$0xff]  ;;  %v3292_v2 = vld [vmem:[#allocation5 + $0x1bb0] sm:$0xff]  ;;  %v3293_v11 = vld [vmem:[#allocation5 + $0x1bb8] sm:$0xff] }
 0x432   :  { %v15608_v48 = vpop.permute.xlu0 %314  ;;  %v2197_v37 = vadd.f32 %v13963_v28, %v2066_v57  ;;  %v2067_v57 = vmax.f32 %v15366_v24, %v1961_v13  ;;  %v12205_v36 = vpack.c.bf16 %v3275_v45, %v3274_v59  ;;  %v3322_v59 = vld [vmem:[#allocation5 + $0x1ca0] sm:$0xff]  ;;  %v3323_v45 = vld [vmem:[#allocation5 + $0x1ca8] sm:$0xff] }
 0x433   :  { %12190 = vmatpush3.bf16.msra.mxu0 %v12189_v0  ;;  %v706_v56 = vpop.permute.xlu1 %705  ;;  %v1295_v0 = vadd.f32 %v1165_v10, %v1034_v18  ;;  %v517_v62 = vsel %vm450_vm0, %v15567_v22, %v15608_v48  ;;  %v13444_v18 = vld [vmem:[%s17816_s1 + $0x1f0] sm:$0xff] }
 0x434   :  { %328 = vrot.lane.b32.xlu1 %v15602_v51, %s13540_s28  ;;  %v2327_v9 = vmax.f32 %v2197_v37, 0.0  ;;  %12192 = vmatprep.subr.bf16.mxu0 %v12191_v47  ;;  %v12203_v47 = vpack.c.bf16 %v3291_v31, %v3290_v23  ;;  %v2198_v37 = vadd.f32 %v13963_v28, %v2067_v57  ;;  %v1035_v10 = vmul.f32 %v13444_v18, %v13716_v15  ;;  %v15678_v31 = vld [vmem:[%s17816_s1 + $0x240] sm:$0xff] }
 0x435   :  { %v3282_v18 = vld [vmem:[#allocation5 + $0x1b60] sm:$0xff] }
 0x436   :  { %6307 = vmatprep.mubr.f32.mxu1 %v2327_v9  ;;  %v704_v35 = vpop.permute.xlu0 %703  ;;  %v1166_v9 = vmul.f32 %v13718_v16, %v517_v62  ;;  %v2328_v13 = vmax.f32 %v2198_v37, 0.0  ;;  %v3298_v62 = vld [vmem:[#allocation5 + $0x1be0] sm:$0xff] }
 0x437   :  { %v909_v41 = vsel %vm841_vm1, %v704_v35, %v706_v56  ;;  %v910_v21 = vsel %vm841_vm1, %v15577_v29, %v704_v35  ;;  %6308 = vmatmul.mubr.f32.vlgmr.msra.gmra.mrb[24].mxu1 %v2326_v38  ;;  %12194 = vmatpush3.bf16.msra.mxu0 %v12193_v40  ;;  %v3303_v40 = vld [vmem:[#allocation5 + $0x1c08] sm:$0xff]  ;;  %v12209_v38 = vpack.c.bf16 %v3277_v60, %v3276_v43  ;;  %v3278_v35 = vld [vmem:[#allocation5 + $0x1b40] sm:$0xff] }
 0x438   :  { %v1425_v27 = vmul.f32 %v13735_v34, %v910_v21  ;;  %v1426_v46 = vmul.f32 %v13735_v34, %v909_v41  ;;  %12198 = vmatpush3.bf16.msra.mxu1 %v12197_v7  ;;  %717 = vrot.lane.b32.xlu1 %v15514_v19, %s13541_s6  ;;  %v3297_v41 = vld [vmem:[#allocation5 + $0x1bd8] sm:$0xff]  ;;  %v12229_v21 = vpack.c.bf16 %v3303_v40, %v3302_v50 }
 0x439   :  { %12200 = vmatprep.subr.bf16.mxu1 %v12199_v44  ;;  %12228 = vmatprep.subr.bf16.mxu0 %v12227_v6  ;;  %v3320_v44 = vld [vmem:[#allocation5 + $0x1c90] sm:$0xff]  ;;  %v3321_v6 = vld [vmem:[#allocation5 + $0x1c98] sm:$0xff]  ;;  %v1296_v57 = vadd.f32 %v1166_v9, %v1035_v10  ;;  %v12235_v60 = vpack.c.bf16 %v3323_v45, %v3322_v59  ;;  %v3283_v10 = vld [vmem:[#allocation5 + $0x1b68] sm:$0xff] }
 0x43a   :  { %v15634_v30 = vadd.f32 %v1425_v27, %v1294_v14  ;;  %v15636_v29 = vadd.f32 %v1426_v46, %v1295_v0  ;;  %v15638_v5 = vpop.permute.xlu0 %1733  ;;  %v3296_v14 = vld [vmem:[#allocation5 + $0x1bd0] sm:$0xff]  ;;  %v12231_v0 = vpack.c.bf16 %v3321_v6, %v3320_v44  ;;  %v3305_v46 = vld [vmem:[#allocation5 + $0x1c18] sm:$0xff]  ;;  %v15711_v45 = vld [vmem:[%s17816_s1 + $0x248] sm:$0xff] }
 0x43b   :  { %v1960_v19 = vsel %vm450_vm0, %v15594_v53, %v15638_v5  ;;  %v12207_v53 = vpack.c.bf16 %v3293_v11, %v3292_v2  ;;  %v3304_v27 = vld [vmem:[#allocation5 + $0x1c10] sm:$0xff]  ;;  %v12215_v11 = vpack.c.bf16 %v3297_v41, %v3296_v14  ;;  %v3325_v50 = vld [vmem:[#allocation5 + $0x1cb8] sm:$0xff]  ;;  %v12221_v41 = vpack.c.bf16 %v3283_v10, %v3282_v18  ;;  %v3334_v10 = vld [vmem:[#allocation5 + $0x1d00] sm:$0xff] }
 0x43c   :  { %v2068_v24 = vmax.f32 %v15368_v63, %v1960_v19  ;;  %12202 = vmatpush3.bf16.msra.mxu1 %v12201_v42  ;;  %1745 = vrot.lane.b32.xlu0 %v15634_v30, %s13540_s28  ;;  %v15657_v63 = vld [vmem:[%s17816_s1 + $0x238] sm:$0xff]  ;;  %v3279_v42 = vld [vmem:[#allocation5 + $0x1b48] sm:$0xff]  ;;  %v3280_v19 = vld [vmem:[#allocation5 + $0x1b50] sm:$0xff]  ;;  %v12233_v43 = vpack.c.bf16 %v3305_v46, %v3304_v27 }
 0x43d   :  { %1747 = vrot.lane.b32.xlu1 %v15636_v29, %s13540_s28  ;;  %12204 = vmatprep.subr.bf16.mxu1 %v12203_v47  ;;  %v12213_v47 = vpack.c.bf16 %v3279_v42, %v3278_v35  ;;  %v3308_v35 = vld [vmem:[#allocation5 + $0x1c30] sm:$0xff]  ;;  %v3309_v42 = vld [vmem:[#allocation5 + $0x1c38] sm:$0xff] }
 0x43e   :  { %v15659_v55 = vpop.permute.xlu0 %707  ;;  %v2199_v4 = vadd.f32 %v13963_v28, %v2068_v24  ;;  %v3281_v24 = vld [vmem:[#allocation5 + $0x1b58] sm:$0xff] }
 0x43f   :  { %v908_v22 = vsel %vm841_vm1, %v706_v56, %v15659_v55  ;;  %v12211_v56 = vpack.c.bf16 %v3295_v33, %v3294_v54  ;;  %v3307_v54 = vld [vmem:[#allocation5 + $0x1c28] sm:$0xff]  ;;  %v12217_v33 = vpack.c.bf16 %v3281_v24, %v3280_v19  ;;  %v3285_v59 = vld [vmem:[#allocation5 + $0x1b78] sm:$0xff]  ;;  %v3350_v19 = vld [vmem:[#allocation5 + $0x1d80] sm:$0xff] }
 0x440   :  { %12206 = vmatpush3.bf16.msra.mxu1 %v12205_v36  ;;  %330 = vrot.lane.b32.xlu0 %v15657_v63, %s13540_s28  ;;  %v2329_v7 = vmax.f32 %v2199_v4, 0.0  ;;  %v1427_v23 = vmul.f32 %v13735_v34, %v908_v22  ;;  %v317_v36 = vpop.permute.xlu1 %316  ;;  %v3306_v4 = vld [vmem:[#allocation5 + $0x1c20] sm:$0xff]  ;;  %v3324_v22 = vld [vmem:[#allocation5 + $0x1cb0] sm:$0xff]  ;;  %v3351_v24 = vld [vmem:[#allocation5 + $0x1d88] sm:$0xff] }
 0x441   :  { %721 = vrot.lane.b32.xlu1 %v15602_v51, %s13541_s6  ;;  %12208 = vmatprep.subr.bf16.mxu1 %v12207_v53  ;;  %v3299_v53 = vld [vmem:[#allocation5 + $0x1be8] sm:$0xff]  ;;  %v12237_v44 = vpack.c.bf16 %v3307_v54, %v3306_v4  ;;  %v12259_v18 = vpack.c.bf16 %v3351_v24, %v3350_v19  ;;  %v3336_v19 = vld [vmem:[#allocation5 + $0x1d10] sm:$0xff]  ;;  %v3337_v24 = vld [vmem:[#allocation5 + $0x1d18] sm:$0xff] }
 0x442   :  { %6377 = vmatprep.mubr.f32.mxu0 %v2329_v7  ;;  %v15684_v2 = vpop.permute.xlu0 %318  ;;  %v15686_v37 = vadd.f32 %v1427_v23, %v1296_v57  ;;  %v12219_v40 = vpack.c.bf16 %v3299_v53, %v3298_v62  ;;  %v3300_v7 = vld [vmem:[#allocation5 + $0x1bf0] sm:$0xff]  ;;  %v3310_v53 = vld [vmem:[#allocation5 + $0x1c40] sm:$0xff] }
 0x443   :  { %6378 = vmatmul.mubr.f32.vlgmr.msra.gmra.mrb[26].mxu0 %v2328_v13  ;;  %v515_v23 = vsel %vm450_vm0, %v317_v36, %v15684_v2 }
 0x444   :  { %12210 = vmatpush3.bf16.msra.mxu1 %v12209_v38  ;;  %719 = vrot.lane.b32.xlu0 %v15560_v3, %s13541_s6  ;;  %v3301_v38 = vld [vmem:[#allocation5 + $0x1bf8] sm:$0xff] }
 0x445   :  { %332 = vrot.lane.b32.xlu1 %v15678_v31, %s13540_s28  ;;  %12212 = vmatprep.subr.bf16.mxu1 %v12211_v56  ;;  %v12239_v56 = vpack.c.bf16 %v3325_v50, %v3324_v22  ;;  %v12223_v57 = vpack.c.bf16 %v3301_v38, %v3300_v7  ;;  %v3329_v22 = vld [vmem:[#allocation5 + $0x1cd8] sm:$0xff] }
 0x446   :  { %12230 = vmatpush3.bf16.msra.mxu0 %v12229_v21  ;;  %v3327_v21 = vld [vmem:[#allocation5 + $0x1cc8] sm:$0xff] }
 0x447   :  { %12232 = vmatprep.subr.bf16.mxu0 %v12231_v0  ;;  %v516_v0 = vsel %vm450_vm0, %v15608_v48, %v317_v36 }
 0x448   :  { %12214 = vmatpush3.bf16.msra.mxu1 %v12213_v47  ;;  %1749 = vrot.lane.b32.xlu0 %v15686_v37, %s13540_s28  ;;  %v3284_v47 = vld [vmem:[#allocation5 + $0x1b70] sm:$0xff]  ;;  %v1167_v54 = vmul.f32 %v13718_v16, %v516_v0 }
 0x449   :  { %12216 = vmatprep.subr.bf16.mxu1 %v12215_v11  ;;  %v12241_v11 = vpack.c.bf16 %v3309_v42, %v3308_v35 }
 0x44a   :  { %v1736_v9 = vpop.permute.xlu1 %1735  ;;  %12234 = vmatpush3.bf16.msra.mxu0 %v12233_v43  ;;  %v3311_v43 = vld [vmem:[#allocation5 + $0x1c48] sm:$0xff] }
 0x44b   :  { %v1959_v6 = vsel %vm450_vm0, %v15638_v5, %v1736_v9  ;;  %v15693_v13 = vpop.permute.xlu0 %1737  ;;  %12236 = vmatprep.subr.bf16.mxu0 %v12235_v60  ;;  %v3326_v5 = vld [vmem:[#allocation5 + $0x1cc0] sm:$0xff]  ;;  %v13445_v60 = vld [vmem:[%s17816_s1 + $0x1f8] sm:$0xff]  ;;  %v12245_v38 = vpack.c.bf16 %v3311_v43, %v3310_v53  ;;  %v3355_v53 = vld [vmem:[#allocation5 + $0x1da8] sm:$0xff] }
 0x44c   :  { %v1958_v14 = vsel %vm450_vm0, %v1736_v9, %v15693_v13  ;;  %12218 = vmatpush3.bf16.msra.mxu1 %v12217_v33  ;;  %723 = vrot.lane.b32.xlu0 %v15657_v63, %s13541_s6  ;;  %v2069_v27 = vmax.f32 %v15418_v1, %v1959_v6  ;;  %v1037_v1 = vmul.f32 %v13716_v15, %v15410_v8  ;;  %v3328_v33 = vld [vmem:[#allocation5 + $0x1cd0] sm:$0xff]  ;;  %v3335_v9 = vld [vmem:[#allocation5 + $0x1d08] sm:$0xff]  ;;  %v3353_v6 = vld [vmem:[#allocation5 + $0x1d98] sm:$0xff] }
 0x44d   :  { %v2070_v46 = vmax.f32 %v15472_v25, %v1958_v14  ;;  %12220 = vmatprep.subr.bf16.mxu1 %v12219_v40  ;;  %v1168_v25 = vmul.f32 %v13718_v16, %v515_v23  ;;  %v12243_v62 = vpack.c.bf16 %v3327_v21, %v3326_v5  ;;  %v1036_v4 = vmul.f32 %v13445_v60, %v13716_v15  ;;  %v3312_v14 = vld [vmem:[#allocation5 + $0x1c50] sm:$0xff] }
 0x44e   :  { %v15713_v63 = vpop.permute.xlu1 %320  ;;  %12238 = vmatpush3.bf16.msra.mxu0 %v12237_v44  ;;  %v12225_v8 = vpack.c.bf16 %v3285_v59, %v3284_v47  ;;  %v2200_v50 = vadd.f32 %v13963_v28, %v2069_v27  ;;  %v3352_v44 = vld [vmem:[#allocation5 + $0x1d90] sm:$0xff]  ;;  %v12247_v23 = vpack.c.bf16 %v3329_v22, %v3328_v33  ;;  %v3330_v27 = vld [vmem:[#allocation5 + $0x1ce0] sm:$0xff]  ;;  %v3333_v22 = vld [vmem:[#allocation5 + $0x1cf8] sm:$0xff] }
 0x44f   :  { %v15718_v48 = vpop.permute.xlu0 %322  ;;  %v2201_v36 = vadd.f32 %v13963_v28, %v2070_v46  ;;  %12240 = vmatprep.subr.bf16.mxu0 %v12239_v56  ;;  %v1298_v56 = vadd.f32 %v1168_v25, %v1037_v1  ;;  %v1297_v5 = vadd.f32 %v1167_v54, %v1036_v4  ;;  %v3331_v46 = vld [vmem:[#allocation5 + $0x1ce8] sm:$0xff]  ;;  %v1038_v54 = vmul.f32 %v13716_v15, %v15443_v17  ;;  %v3332_v33 = vld [vmem:[#allocation5 + $0x1cf0] sm:$0xff] }
 0x450   :  { %12222 = vmatpush3.bf16.msra.mxu1 %v12221_v41  ;;  %334 = vrot.lane.b32.xlu0 %v15711_v45, %s13540_s28  ;;  %v3313_v41 = vld [vmem:[#allocation5 + $0x1c58] sm:$0xff]  ;;  %v2330_v47 = vmax.f32 %v2200_v50, 0.0  ;;  %v12251_v60 = vpack.c.bf16 %v3331_v46, %v3330_v27  ;;  %v3315_v4 = vld [vmem:[#allocation5 + $0x1c68] sm:$0xff]  ;;  %v12265_v50 = vpack.c.bf16 %v3337_v24, %v3336_v19 }
 0x451   :  { %12224 = vmatprep.subr.bf16.mxu1 %v12223_v57  ;;  %v2331_v40 = vmax.f32 %v2201_v36, 0.0  ;;  %v12261_v57 = vpack.c.bf16 %v3335_v9, %v3334_v10  ;;  %v12249_v36 = vpack.c.bf16 %v3313_v41, %v3312_v14  ;;  %v3338_v10 = vld [vmem:[#allocation5 + $0x1d20] sm:$0xff]  ;;  %v3339_v17 = vld [vmem:[#allocation5 + $0x1d28] sm:$0xff]  ;;  %v15759_v9 = vld [vmem:[%s17816_s1 + $0x258] sm:$0xff] }
 0x452   :  { %v710_v7 = vpop.permute.xlu1 %709  ;;  %12242 = vmatpush3.bf16.msra.mxu0 %v12241_v11  ;;  %v12263_v11 = vpack.c.bf16 %v3353_v6, %v3352_v44  ;;  %v3356_v44 = vld [vmem:[#allocation5 + $0x1db0] sm:$0xff]  ;;  %v3357_v6 = vld [vmem:[#allocation5 + $0x1db8] sm:$0xff]  ;;  %v3383_v27 = vld [vmem:[#allocation5 + $0x1e88] sm:$0xff] }
 0x453   :  { %v907_v35 = vsel %vm841_vm1, %v15659_v55, %v710_v7  ;;  %6447 = vmatprep.mubr.f32.mxu1 %v2331_v40  ;;  %v712_v42 = vpop.permute.xlu0 %711  ;;  %12244 = vmatprep.subr.bf16.mxu0 %v12243_v62  ;;  %v514_v55 = vsel %vm450_vm0, %v15684_v2, %v15713_v63  ;;  %v3354_v62 = vld [vmem:[#allocation5 + $0x1da0] sm:$0xff]  ;;  %v132_v40 = vld [vmem:[%s17816_s1 + $0x250] sm:$0xff]  ;;  %v3317_v14 = vld [vmem:[#allocation5 + $0x1c78] sm:$0xff]  ;;  %v12271_v46 = vpack.c.bf16 %v3357_v6, %v3356_v44 }
 0x454   :  { %v1428_v21 = vmul.f32 %v13735_v34, %v907_v35  ;;  %v906_v0 = vsel %vm841_vm1, %v710_v7, %v712_v42  ;;  %12226 = vmatpush3.bf16.msra.mxu1 %v12225_v8  ;;  %v3314_v2 = vld [vmem:[#allocation5 + $0x1c60] sm:$0xff]  ;;  %v1169_v8 = vmul.f32 %v13718_v16, %v514_v55  ;;  %v12255_v35 = vpack.c.bf16 %v3333_v22, %v3332_v33  ;;  %v3345_v33 = vld [vmem:[#allocation5 + $0x1d58] sm:$0xff]  ;;  %v3347_v44 = vld [vmem:[#allocation5 + $0x1d68] sm:$0xff] }
 0x455   :  { %v1429_v59 = vmul.f32 %v13735_v34, %v906_v0  ;;  %12260 = vmatprep.subr.bf16.mxu1 %v12259_v18  ;;  %v12267_v18 = vpack.c.bf16 %v3355_v53, %v3354_v62  ;;  %v3382_v0 = vld [vmem:[#allocation5 + $0x1e80] sm:$0xff]  ;;  %v3343_v53 = vld [vmem:[#allocation5 + $0x1d48] sm:$0xff]  ;;  %v3364_v6 = vld [vmem:[#allocation5 + $0x1df0] sm:$0xff] }
 0x456   :  { %v15740_v1 = vadd.f32 %v1428_v21, %v1297_v5  ;;  %v15742_v25 = vpop.permute.xlu1 %1739  ;;  %12246 = vmatpush3.bf16.msra.mxu0 %v12245_v38  ;;  %v12253_v38 = vpack.c.bf16 %v3315_v4, %v3314_v2  ;;  %v1299_v41 = vadd.f32 %v1169_v8, %v1038_v54  ;;  %v12269_v21 = vpack.c.bf16 %v3339_v17, %v3338_v10  ;;  %v3358_v55 = vld [vmem:[#allocation5 + $0x1dc0] sm:$0xff]  ;;  %v3361_v2 = vld [vmem:[#allocation5 + $0x1dd8] sm:$0xff]  ;;  %v3344_v8 = vld [vmem:[#allocation5 + $0x1d50] sm:$0xff] }
 0x457   :  { %v15744_v43 = vadd.f32 %v1429_v59, %v1298_v56  ;;  %6448 = vmatmul.mubr.f32.vlgmr.msra.gmra.mrb[26].mxu1 %v2330_v47  ;;  %12248 = vmatprep.subr.bf16.mxu0 %v12247_v23  ;;  %v3316_v23 = vld [vmem:[#allocation5 + $0x1c70] sm:$0xff]  ;;  %v3359_v59 = vld [vmem:[#allocation5 + $0x1dc8] sm:$0xff]  ;;  %v3342_v62 = vld [vmem:[#allocation5 + $0x1d40] sm:$0xff] }
 0x458   :  { %1751 = vrot.lane.b32.xlu1 %v15740_v1, %s13540_s28  ;;  %12262 = vmatpush3.bf16.msra.mxu1 %v12261_v57  ;;  %v3340_v57 = vld [vmem:[#allocation5 + $0x1d30] sm:$0xff]  ;;  %v12257_v47 = vpack.c.bf16 %v3317_v14, %v3316_v23  ;;  %v12277_v4 = vpack.c.bf16 %v3343_v53, %v3342_v62  ;;  %v3362_v22 = vld [vmem:[#allocation5 + $0x1de0] sm:$0xff]  ;;  %v3349_v14 = vld [vmem:[#allocation5 + $0x1d78] sm:$0xff] }
 0x459   :  { %1753 = vrot.lane.b32.xlu0 %v15744_v43, %s13540_s28  ;;  %12264 = vmatprep.subr.bf16.mxu1 %v12263_v11  ;;  %v12291_v11 = vpack.c.bf16 %v3383_v27, %v3382_v0  ;;  %v15782_v10 = vld [vmem:[%s17816_s1 + $0x260] sm:$0xff]  ;;  %v3348_v23 = vld [vmem:[#allocation5 + $0x1d70] sm:$0xff] }
 0x45a   :  { %v15761_v7 = vpop.permute.xlu1 %713  ;;  %12250 = vmatpush3.bf16.msra.mxu0 %v12249_v36  ;;  %v12275_v36 = vpack.c.bf16 %v3359_v59, %v3358_v55  ;;  %v513_v55 = vsel %vm450_vm0, %v15713_v63, %v15718_v48 }
 0x45b   :  { %v905_v56 = vsel %vm841_vm1, %v712_v42, %v15761_v7  ;;  %12252 = vmatprep.subr.bf16.mxu0 %v12251_v60  ;;  %v3341_v42 = vld [vmem:[#allocation5 + $0x1d38] sm:$0xff]  ;;  %v3360_v60 = vld [vmem:[#allocation5 + $0x1dd0] sm:$0xff]  ;;  %v1170_v53 = vmul.f32 %v13718_v16, %v513_v55 }
 0x45c   :  { %336 = vrot.lane.b32.xlu1 %v132_v40, %s13540_s28  ;;  %v1430_v5 = vmul.f32 %v13735_v34, %v905_v56  ;;  %12266 = vmatpush3.bf16.msra.mxu1 %v12265_v50  ;;  %v12273_v24 = vpack.c.bf16 %v3341_v42, %v3340_v57  ;;  %v12279_v54 = vpack.c.bf16 %v3361_v2, %v3360_v60  ;;  %v3363_v50 = vld [vmem:[#allocation5 + $0x1de8] sm:$0xff]  ;;  %v3365_v56 = vld [vmem:[#allocation5 + $0x1df8] sm:$0xff] }
 0x45d   :  { %338 = vrot.lane.b32.xlu0 %v15759_v9, %s13540_s28  ;;  %12268 = vmatprep.subr.bf16.mxu1 %v12267_v18  ;;  %v12281_v18 = vpack.c.bf16 %v3345_v33, %v3344_v8  ;;  %v12283_v17 = vpack.c.bf16 %v3363_v50, %v3362_v22  ;;  %v3384_v50 = vld [vmem:[#allocation5 + $0x1e90] sm:$0xff] }
 0x45e   :  { %12254 = vmatpush3.bf16.msra.mxu0 %v12253_v38  ;;  %v15770_v19 = vadd.f32 %v1430_v5, %v1299_v41  ;;  %v3346_v38 = vld [vmem:[#allocation5 + $0x1d60] sm:$0xff]  ;;  %v3415_v5 = vld [vmem:[#allocation5 + $0x1f88] sm:$0xff] }
 0x45f   :  { %12256 = vmatprep.subr.bf16.mxu0 %v12255_v35  ;;  %v12285_v35 = vpack.c.bf16 %v3347_v44, %v3346_v38  ;;  %v3414_v41 = vld [vmem:[#allocation5 + $0x1f80] sm:$0xff] }
 0x460   :  { %725 = vrot.lane.b32.xlu1 %v15678_v31, %s13541_s6  ;;  %12270 = vmatpush3.bf16.msra.mxu1 %v12269_v21  ;;  %v12289_v21 = vpack.c.bf16 %v3349_v14, %v3348_v23  ;;  %v12323_v27 = vpack.c.bf16 %v3415_v5, %v3414_v41  ;;  %v3386_v23 = vld [vmem:[#allocation5 + $0x1ea0] sm:$0xff]  ;;  %v3387_v14 = vld [vmem:[#allocation5 + $0x1ea8] sm:$0xff] }
 0x461   :  { %727 = vrot.lane.b32.xlu0 %v15711_v45, %s13541_s6  ;;  %12272 = vmatprep.subr.bf16.mxu1 %v12271_v46 }
 0x462   :  { %12258 = vmatpush3.bf16.msra.mxu0 %v12257_v47  ;;  %v1957_v47 = vsel %vm450_vm0, %v15693_v13, %v15742_v25 }
 0x463   :  { %12292 = vmatprep.subr.bf16.mxu0 %v12291_v11 }
 0x464   :  { %1755 = vrot.lane.b32.xlu1 %v15770_v19, %s13540_s28  ;;  %12274 = vmatpush3.bf16.msra.mxu1 %v12273_v24  ;;  %v2071_v24 = vmax.f32 %v15476_v61, %v1957_v47 }
 0x465   :  { %12276 = vmatprep.subr.bf16.mxu1 %v12275_v36 }
 0x466   :  { %v2202_v61 = vadd.f32 %v13963_v28, %v2071_v24  ;;  %v3373_v24 = vld [vmem:[#allocation5 + $0x1e38] sm:$0xff] }
 0x468   :  { %729 = vrot.lane.b32.xlu1 %v132_v40, %s13541_s6  ;;  %12278 = vmatpush3.bf16.msra.mxu1 %v12277_v4  ;;  %v12287_v40 = vpack.c.bf16 %v3365_v56, %v3364_v6  ;;  %v3366_v4 = vld [vmem:[#allocation5 + $0x1e00] sm:$0xff]  ;;  %v2332_v44 = vmax.f32 %v2202_v61, 0.0  ;;  %v3368_v56 = vld [vmem:[#allocation5 + $0x1e10] sm:$0xff] }
 0x469   :  { %12280 = vmatprep.subr.bf16.mxu1 %v12279_v54  ;;  %v3367_v54 = vld [vmem:[#allocation5 + $0x1e08] sm:$0xff]  ;;  %v3392_v61 = vld [vmem:[#allocation5 + $0x1ed0] sm:$0xff] }
 0x46c   :  { %340 = vrot.lane.b32.xlu1 %v15782_v10, %s13540_s28  ;;  %12282 = vmatpush3.bf16.msra.mxu1 %v12281_v18  ;;  %v3385_v18 = vld [vmem:[#allocation5 + $0x1e98] sm:$0xff] }
 0x46d   :  { %12284 = vmatprep.subr.bf16.mxu1 %v12283_v17  ;;  %v12295_v6 = vpack.c.bf16 %v3385_v18, %v3384_v50  ;;  %v3376_v50 = vld [vmem:[#allocation5 + $0x1e50] sm:$0xff]  ;;  %v3377_v18 = vld [vmem:[#allocation5 + $0x1e58] sm:$0xff] }
 0x470   :  { %12286 = vmatpush3.bf16.msra.mxu1 %v12285_v35  ;;  %v3369_v35 = vld [vmem:[#allocation5 + $0x1e18] sm:$0xff] }
 0x471   :  { %v9788_v0 = vpop.f32.mrb[20].mxu0  ;;  %12288 = vmatprep.subr.bf16.mxu1 %v12287_v40 }
 0x472   :  { %v9789_v46 = vpop.f32.mrb[21].mxu0 }
 0x473   :  { %v9790_v57 = vadd.f32 %v9789_v46, %v9788_v0  ;;  %v12299_v0 = vpack.c.bf16 %v3387_v14, %v3386_v23  ;;  %v3371_v46 = vld [vmem:[#allocation5 + $0x1e28] sm:$0xff] }
 0x474   :  { %12290 = vmatpush3.bf16.msra.mxu1 %v12289_v21 }
 0x475   :  { %v5960_v42 = vadd.f32 %v9790_v57, %v15586_v39  ;;  %12324 = vmatprep.subr.bf16.mxu1 %v12323_v27  ;;  %v13446_v39 = vld [vmem:[%s17816_s1 + $0x210] sm:$0xff]  ;;  %v3370_v27 = vld [vmem:[#allocation5 + $0x1e20] sm:$0xff] }
 0x476   :  { %v1039_v62 = vmul.f32 %v13446_v39, %v13716_v15  ;;  %v3388_v57 = vld [vmem:[#allocation5 + $0x1eb0] sm:$0xff]  ;;  %v12301_v55 = vpack.c.bf16 %v3371_v46, %v3370_v27  ;;  %v3390_v39 = vld [vmem:[#allocation5 + $0x1ec0] sm:$0xff] }
 0x478   :  { %v1300_v8 = vadd.f32 %v1170_v53, %v1039_v62  ;;  %v3391_v62 = vld [vmem:[#allocation5 + $0x1ec8] sm:$0xff]  ;;  %v325_v53 = vpop.permute.xlu1 %324 }
 0x48a   :  { %v9823_v59 = vpop.f32.mrb[20].mxu1 }
 0x48b   :  { %v9824_v11 = vpop.f32.mrb[21].mxu1 }
 0x48c   :  { %v9825_v36 = vadd.f32 %v9824_v11, %v9823_v59  ;;  %v3372_v11 = vld [vmem:[#allocation5 + $0x1e30] sm:$0xff] }
 0x48d   :  { %v15801_v60 = vpop.permute.xlu0 %1741 }
 0x48e   :  { %v6030_v13 = vadd.f32 %v9825_v36, %v5960_v42  ;;  %v1956_v63 = vsel %vm450_vm0, %v15742_v25, %v15801_v60  ;;  %v3389_v42 = vld [vmem:[#allocation5 + $0x1eb8] sm:$0xff]  ;;  %v15826_v36 = vld [vmem:[%s17816_s1 + $0x268] sm:$0xff] }
 0x48f   :  { %v2072_v2 = vmax.f32 %v15502_v52, %v1956_v63  ;;  %v12293_v52 = vpack.c.bf16 %v3367_v54, %v3366_v4  ;;  %v12303_v59 = vpack.c.bf16 %v3389_v42, %v3388_v57  ;;  %v12305_v63 = vpack.c.bf16 %v3373_v24, %v3372_v11  ;;  %v3393_v4 = vld [vmem:[#allocation5 + $0x1ed8] sm:$0xff] }
 0x491   :  { %v15809_v33 = vpop.permute.xlu0 %715  ;;  %v2203_v22 = vadd.f32 %v13963_v28, %v2072_v2  ;;  %v3375_v2 = vld [vmem:[#allocation5 + $0x1e48] sm:$0xff] }
 0x492   :  { %v904_v17 = vsel %vm841_vm1, %v15761_v7, %v15809_v33  ;;  %v12297_v7 = vpack.c.bf16 %v3369_v35, %v3368_v56 }
 0x493   :  { %v1431_v25 = vmul.f32 %v13735_v34, %v904_v17  ;;  %v2333_v38 = vmax.f32 %v2203_v22, 0.0  ;;  %v12311_v22 = vpack.c.bf16 %v3393_v4, %v3392_v61  ;;  %v512_v17 = vsel %vm450_vm0, %v15718_v48, %v325_v53  ;;  %v3396_v48 = vld [vmem:[#allocation5 + $0x1ef0] sm:$0xff] }
 0x494   :  { %v1171_v35 = vmul.f32 %v13718_v16, %v512_v17  ;;  %v3399_v17 = vld [vmem:[#allocation5 + $0x1f08] sm:$0xff] }
 0x495   :  { %v15817_v40 = vadd.f32 %v1431_v25, %v1300_v8  ;;  %6517 = vmatprep.mubr.f32.mxu0 %v2333_v38  ;;  %v3394_v25 = vld [vmem:[#allocation5 + $0x1ee0] sm:$0xff]  ;;  %v3395_v38 = vld [vmem:[#allocation5 + $0x1ee8] sm:$0xff]  ;;  %v327_v23 = vpop.permute.xlu0 %326 }
 0x496   :  { %v9858_v41 = vpop.f32.mrb[22].mxu0  ;;  %6518 = vmatmul.mubr.f32.vlgmr.msra.gmra.mrb[28].mxu0 %v2332_v44  ;;  %v12313_v44 = vpack.c.bf16 %v3377_v18, %v3376_v50  ;;  %v12315_v14 = vpack.c.bf16 %v3395_v38, %v3394_v25  ;;  %v3416_v38 = vld [vmem:[#allocation5 + $0x1f90] sm:$0xff] }
 0x497   :  { %v9859_v5 = vpop.f32.mrb[23].mxu0  ;;  %1757 = vrot.lane.b32.xlu0 %v15817_v40, %s13540_s28  ;;  %12294 = vmatpush3.bf16.msra.mxu0 %v12293_v52 }
 0x498   :  { %v9860_v21 = vadd.f32 %v9859_v5, %v9858_v41  ;;  %12296 = vmatprep.subr.bf16.mxu0 %v12295_v6  ;;  %v13447_v6 = vld [vmem:[%s17816_s1 + $0x218] sm:$0xff]  ;;  %v3378_v41 = vld [vmem:[#allocation5 + $0x1e60] sm:$0xff]  ;;  %v3379_v5 = vld [vmem:[#allocation5 + $0x1e68] sm:$0xff] }
 0x499   :  { %v1040_v56 = vmul.f32 %v13447_v6, %v13716_v15  ;;  %v12317_v42 = vpack.c.bf16 %v3379_v5, %v3378_v41  ;;  %v13448_v6 = vld [vmem:[%s17816_s1 + $0x220] sm:$0xff] }
 0x49a   :  { %v6100_v47 = vadd.f32 %v9860_v21, %v6030_v13  ;;  %v3374_v13 = vld [vmem:[#allocation5 + $0x1e40] sm:$0xff] }
 0x49b   :  { %731 = vrot.lane.b32.xlu0 %v15759_v9, %s13541_s6  ;;  %12298 = vmatpush3.bf16.msra.mxu0 %v12297_v7  ;;  %v12307_v9 = vpack.c.bf16 %v3391_v62, %v3390_v39  ;;  %v12309_v8 = vpack.c.bf16 %v3375_v2, %v3374_v13  ;;  %v3397_v7 = vld [vmem:[#allocation5 + $0x1ef8] sm:$0xff]  ;;  %v3380_v39 = vld [vmem:[#allocation5 + $0x1e70] sm:$0xff] }
 0x49c   :  { %12300 = vmatprep.subr.bf16.mxu0 %v12299_v0  ;;  %v12319_v24 = vpack.c.bf16 %v3397_v7, %v3396_v48  ;;  %v3381_v62 = vld [vmem:[#allocation5 + $0x1e78] sm:$0xff]  ;;  %v3400_v48 = vld [vmem:[#allocation5 + $0x1f10] sm:$0xff] }
 0x49d   :  { %v12321_v4 = vpack.c.bf16 %v3381_v62, %v3380_v39  ;;  %v3401_v7 = vld [vmem:[#allocation5 + $0x1f18] sm:$0xff] }
 0x49e   :  { %v12329_v39 = vpack.c.bf16 %v3401_v7, %v3400_v48 }
 0x49f   :  { %12302 = vmatpush3.bf16.msra.mxu0 %v12301_v55  ;;  %342 = vrot.lane.b32.xlu0 %v15826_v36, %s13540_s28  ;;  %v1301_v55 = vadd.f32 %v1171_v35, %v1040_v56  ;;  %v1041_v56 = vmul.f32 %v13448_v6, %v13716_v15 }
 0x4a0   :  { %12304 = vmatprep.subr.bf16.mxu0 %v12303_v59 }
 0x4a2   :  { %v1744_v54 = vpop.permute.xlu1 %1743 }
 0x4a3   :  { %12306 = vmatpush3.bf16.msra.mxu0 %v12305_v63  ;;  %v1955_v21 = vsel %vm450_vm0, %v15801_v60, %v1744_v54  ;;  %v3446_v60 = vld [vmem:[#allocation5 + $0x2080] sm:$0xff] }
 0x4a4   :  { %12308 = vmatprep.subr.bf16.mxu0 %v12307_v9  ;;  %v2073_v63 = vmax.f32 %v15549_v12, %v1955_v21  ;;  %v3447_v9 = vld [vmem:[#allocation5 + $0x2088] sm:$0xff] }
 0x4a5   :  { %v12355_v12 = vpack.c.bf16 %v3447_v9, %v3446_v60 }
 0x4a6   :  { %v15833_v52 = vpop.permute.xlu1 %328 }
 0x4a7   :  { %12310 = vmatpush3.bf16.msra.mxu0 %v12309_v8  ;;  %v511_v8 = vsel %vm450_vm0, %v325_v53, %v327_v23  ;;  %v510_v18 = vsel %vm450_vm0, %v327_v23, %v15833_v52  ;;  %v3398_v53 = vld [vmem:[#allocation5 + $0x1f00] sm:$0xff]  ;;  %v1042_v23 = vmul.f32 %v13716_v15, %v15560_v3  ;;  %v3419_v3 = vld [vmem:[#allocation5 + $0x1fa8] sm:$0xff] }
 0x4a8   :  { %12312 = vmatprep.subr.bf16.mxu0 %v12311_v22  ;;  %v1172_v35 = vmul.f32 %v13718_v16, %v511_v8  ;;  %v12325_v5 = vpack.c.bf16 %v3399_v17, %v3398_v53 }
 0x4aa   :  { %v9893_v0 = vpop.f32.mrb[22].mxu1  ;;  %v718_v27 = vpop.permute.xlu1 %717 }
 0x4ab   :  { %v9894_v46 = vpop.f32.mrb[23].mxu1  ;;  %v903_v57 = vsel %vm841_vm1, %v15809_v33, %v718_v27  ;;  %12314 = vmatpush3.bf16.msra.mxu0 %v12313_v44  ;;  %v3417_v44 = vld [vmem:[#allocation5 + $0x1f98] sm:$0xff] }
 0x4ac   :  { %v9895_v59 = vadd.f32 %v9894_v46, %v9893_v0  ;;  %v1432_v11 = vmul.f32 %v13735_v34, %v903_v57  ;;  %12316 = vmatprep.subr.bf16.mxu0 %v12315_v14  ;;  %v1173_v14 = vmul.f32 %v13718_v16, %v510_v18  ;;  %v12327_v0 = vpack.c.bf16 %v3417_v44, %v3416_v38  ;;  %v3405_v38 = vld [vmem:[#allocation5 + $0x1f38] sm:$0xff] }
 0x4ae   :  { %v15848_v13 = vadd.f32 %v9895_v59, %v6100_v47  ;;  %v15850_v2 = vadd.f32 %v1432_v11, %v1301_v55  ;;  %v1746_v61 = vpop.permute.xlu0 %1745  ;;  %v2204_v47 = vadd.f32 %v13963_v28, %v2073_v63  ;;  %v3418_v55 = vld [vmem:[#allocation5 + $0x1fa0] sm:$0xff]  ;;  %v1302_v59 = vadd.f32 %v1172_v35, %v1041_v56  ;;  %v3423_v35 = vld [vmem:[#allocation5 + $0x1fc8] sm:$0xff] }
 0x4af   :  { %v1954_v33 = vsel %vm450_vm0, %v1744_v54, %v1746_v61  ;;  %12318 = vmatpush3.bf16.msra.mxu0 %v12317_v42  ;;  %v1748_v22 = vpop.permute.xlu1 %1747  ;;  %v15866_v54 = vld [vmem:[%s17816_s1 + $0x270] sm:$0xff]  ;;  %v1303_v62 = vadd.f32 %v1173_v14, %v1042_v23  ;;  %v3422_v56 = vld [vmem:[#allocation5 + $0x1fc0] sm:$0xff]  ;;  %v3431_v14 = vld [vmem:[#allocation5 + $0x2008] sm:$0xff] }
 0x4b0   :  { %v2074_v50 = vmax.f32 %v15588_v32, %v1954_v33  ;;  %1759 = vrot.lane.b32.xlu1 %v15850_v2, %s13540_s28  ;;  %12320 = vmatprep.subr.bf16.mxu0 %v12319_v24  ;;  %v2334_v21 = vmax.f32 %v2204_v47, 0.0  ;;  %v1953_v46 = vsel %vm450_vm0, %v1746_v61, %v1748_v22  ;;  %v12331_v61 = vpack.c.bf16 %v3419_v3, %v3418_v55  ;;  %v3402_v33 = vld [vmem:[#allocation5 + $0x1f20] sm:$0xff]  ;;  %v3421_v47 = vld [vmem:[#allocation5 + $0x1fb8] sm:$0xff]  ;;  %v3407_v55 = vld [vmem:[#allocation5 + $0x1f48] sm:$0xff] }
 0x4b1   :  { %v2075_v9 = vmax.f32 %v15634_v30, %v1953_v46  ;;  %v3430_v23 = vld [vmem:[#allocation5 + $0x2000] sm:$0xff] }
 0x4b2   :  { %v15868_v25 = vpop.permute.xlu0 %330  ;;  %v2205_v32 = vadd.f32 %v13963_v28, %v2074_v50  ;;  %v15933_v3 = vld [vmem:[%s17816_s1 + $0x280] sm:$0xff] }
 0x4b3   :  { %12322 = vmatpush3.bf16.msra.mxu0 %v12321_v4  ;;  %v722_v57 = vpop.permute.xlu1 %721  ;;  %v3403_v4 = vld [vmem:[#allocation5 + $0x1f28] sm:$0xff]  ;;  %v2206_v53 = vadd.f32 %v13963_v28, %v2075_v9  ;;  %v509_v17 = vsel %vm450_vm0, %v15833_v52, %v15868_v25 }
 0x4b4   :  { %344 = vrot.lane.b32.xlu1 %v15866_v54, %s13540_s28  ;;  %v2335_v41 = vmax.f32 %v2205_v32, 0.0  ;;  %12356 = vmatprep.subr.bf16.mxu0 %v12355_v12  ;;  %v3420_v12 = vld [vmem:[#allocation5 + $0x1fb0] sm:$0xff]  ;;  %v12333_v30 = vpack.c.bf16 %v3403_v4, %v3402_v33  ;;  %v3451_v33 = vld [vmem:[#allocation5 + $0x20a8] sm:$0xff] }
 0x4b5   :  { %v3404_v32 = vld [vmem:[#allocation5 + $0x1f30] sm:$0xff]  ;;  %v2336_v46 = vmax.f32 %v2206_v53, 0.0  ;;  %v3426_v53 = vld [vmem:[#allocation5 + $0x1fe0] sm:$0xff] }
 0x4b6   :  { %6587 = vmatprep.mubr.f32.mxu1 %v2335_v41  ;;  %v720_v42 = vpop.permute.xlu0 %719  ;;  %v1043_v41 = vmul.f32 %v13716_v15, %v15602_v51  ;;  %v12337_v7 = vpack.c.bf16 %v3405_v38, %v3404_v32  ;;  %v3434_v38 = vld [vmem:[#allocation5 + $0x2020] sm:$0xff] }
 0x4b7   :  { %v901_v11 = vsel %vm841_vm1, %v720_v42, %v722_v57  ;;  %v902_v24 = vsel %vm841_vm1, %v718_v27, %v720_v42  ;;  %6588 = vmatmul.mubr.f32.vlgmr.msra.gmra.mrb[28].mxu1 %v2334_v21  ;;  %v3448_v21 = vld [vmem:[#allocation5 + $0x2090] sm:$0xff]  ;;  %v3406_v42 = vld [vmem:[#allocation5 + $0x1f40] sm:$0xff] }
 0x4b8   :  { %v1433_v63 = vmul.f32 %v13735_v34, %v902_v24  ;;  %v1434_v60 = vmul.f32 %v13735_v34, %v901_v11  ;;  %12326 = vmatpush3.bf16.msra.mxu1 %v12325_v5  ;;  %733 = vrot.lane.b32.xlu1 %v15782_v10, %s13541_s6  ;;  %v1174_v5 = vmul.f32 %v13718_v16, %v509_v17  ;;  %v3425_v11 = vld [vmem:[#allocation5 + $0x1fd8] sm:$0xff]  ;;  %v3427_v17 = vld [vmem:[#allocation5 + $0x1fe8] sm:$0xff] }
 0x4b9   :  { %12328 = vmatprep.subr.bf16.mxu1 %v12327_v0  ;;  %v3449_v0 = vld [vmem:[#allocation5 + $0x2098] sm:$0xff]  ;;  %v12357_v24 = vpack.c.bf16 %v3431_v14, %v3430_v23  ;;  %v12341_v9 = vpack.c.bf16 %v3407_v55, %v3406_v42  ;;  %v12347_v23 = vpack.c.bf16 %v3427_v17, %v3426_v53  ;;  %v3410_v14 = vld [vmem:[#allocation5 + $0x1f60] sm:$0xff]  ;;  %v3436_v42 = vld [vmem:[#allocation5 + $0x2030] sm:$0xff] }
 0x4ba   :  { %v15892_v8 = vadd.f32 %v1433_v63, %v1302_v59  ;;  %v15894_v27 = vadd.f32 %v1434_v60, %v1303_v62  ;;  %v15896_v50 = vpop.permute.xlu0 %1749  ;;  %v3424_v59 = vld [vmem:[#allocation5 + $0x1fd0] sm:$0xff]  ;;  %v3433_v63 = vld [vmem:[#allocation5 + $0x2018] sm:$0xff]  ;;  %v1304_v60 = vadd.f32 %v1174_v5, %v1043_v41  ;;  %v3411_v41 = vld [vmem:[#allocation5 + $0x1f68] sm:$0xff] }
 0x4bb   :  { %v1952_v18 = vsel %vm450_vm0, %v1748_v22, %v15896_v50  ;;  %v12335_v22 = vpack.c.bf16 %v3421_v47, %v3420_v12  ;;  %v3432_v62 = vld [vmem:[#allocation5 + $0x2010] sm:$0xff]  ;;  %v12343_v12 = vpack.c.bf16 %v3425_v11, %v3424_v59  ;;  %v3437_v55 = vld [vmem:[#allocation5 + $0x2038] sm:$0xff]  ;;  %v12349_v11 = vpack.c.bf16 %v3411_v41, %v3410_v14  ;;  %v3438_v17 = vld [vmem:[#allocation5 + $0x2040] sm:$0xff] }
 0x4bc   :  { %v2076_v10 = vmax.f32 %v15636_v29, %v1952_v18  ;;  %12330 = vmatpush3.bf16.msra.mxu1 %v12329_v39  ;;  %1761 = vrot.lane.b32.xlu0 %v15892_v8, %s13540_s28  ;;  %v15914_v29 = vld [vmem:[%s17816_s1 + $0x278] sm:$0xff]  ;;  %v12359_v39 = vpack.c.bf16 %v3449_v0, %v3448_v21  ;;  %v3408_v47 = vld [vmem:[#allocation5 + $0x1f50] sm:$0xff]  ;;  %v3462_v41 = vld [vmem:[#allocation5 + $0x2100] sm:$0xff] }
 0x4bd   :  { %1763 = vrot.lane.b32.xlu1 %v15894_v27, %s13540_s28  ;;  %12332 = vmatprep.subr.bf16.mxu1 %v12331_v61  ;;  %v3450_v61 = vld [vmem:[#allocation5 + $0x20a0] sm:$0xff]  ;;  %v3409_v18 = vld [vmem:[#allocation5 + $0x1f58] sm:$0xff] }
 0x4be   :  { %v15916_v44 = vpop.permute.xlu0 %723  ;;  %v2207_v6 = vadd.f32 %v13963_v28, %v2076_v10  ;;  %v333_v10 = vpop.permute.xlu1 %332  ;;  %v12363_v32 = vpack.c.bf16 %v3451_v33, %v3450_v61  ;;  %v3413_v61 = vld [vmem:[#allocation5 + $0x1f78] sm:$0xff]  ;;  %v15966_v33 = vld [vmem:[%s17816_s1 + $0x288] sm:$0xff] }
 0x4bf   :  { %v900_v52 = vsel %vm841_vm1, %v722_v57, %v15916_v44  ;;  %v12339_v57 = vpack.c.bf16 %v3423_v35, %v3422_v56  ;;  %v12345_v56 = vpack.c.bf16 %v3409_v18, %v3408_v47  ;;  %v3452_v35 = vld [vmem:[#allocation5 + $0x20b0] sm:$0xff]  ;;  %v3478_v47 = vld [vmem:[#allocation5 + $0x2180] sm:$0xff]  ;;  %v3479_v18 = vld [vmem:[#allocation5 + $0x2188] sm:$0xff] }
 0x4c0   :  { %12334 = vmatpush3.bf16.msra.mxu1 %v12333_v30  ;;  %346 = vrot.lane.b32.xlu0 %v15914_v29, %s13540_s28  ;;  %v2337_v48 = vmax.f32 %v2207_v6, 0.0  ;;  %v1435_v51 = vmul.f32 %v13735_v34, %v900_v52  ;;  %v3435_v6 = vld [vmem:[#allocation5 + $0x2028] sm:$0xff]  ;;  %v3453_v52 = vld [vmem:[#allocation5 + $0x20b8] sm:$0xff]  ;;  %v12387_v14 = vpack.c.bf16 %v3479_v18, %v3478_v47  ;;  %v3464_v47 = vld [vmem:[#allocation5 + $0x2110] sm:$0xff] }
 0x4c1   :  { %737 = vrot.lane.b32.xlu1 %v15866_v54, %s13541_s6  ;;  %12336 = vmatprep.subr.bf16.mxu1 %v12335_v22  ;;  %v12361_v22 = vpack.c.bf16 %v3433_v63, %v3432_v62  ;;  %v12365_v21 = vpack.c.bf16 %v3435_v6, %v3434_v38  ;;  %v3465_v18 = vld [vmem:[#allocation5 + $0x2118] sm:$0xff] }
 0x4c2   :  { %6657 = vmatprep.mubr.f32.mxu0 %v2337_v48  ;;  %v15939_v4 = vpop.permute.xlu0 %334  ;;  %v15941_v30 = vadd.f32 %v1435_v51, %v1304_v60  ;;  %v3428_v48 = vld [vmem:[#allocation5 + $0x1ff0] sm:$0xff] }
 0x4c3   :  { %6658 = vmatmul.mubr.f32.vlgmr.msra.gmra.mrb[30].mxu0 %v2336_v46  ;;  %v507_v51 = vsel %vm450_vm0, %v333_v10, %v15939_v4 }
 0x4c4   :  { %12338 = vmatpush3.bf16.msra.mxu1 %v12337_v7  ;;  %735 = vrot.lane.b32.xlu0 %v15826_v36, %s13541_s6  ;;  %v3429_v7 = vld [vmem:[#allocation5 + $0x1ff8] sm:$0xff] }
 0x4c5   :  { %348 = vrot.lane.b32.xlu1 %v15933_v3, %s13540_s28  ;;  %12340 = vmatprep.subr.bf16.mxu1 %v12339_v57  ;;  %v12367_v57 = vpack.c.bf16 %v3453_v52, %v3452_v35  ;;  %v12351_v60 = vpack.c.bf16 %v3429_v7, %v3428_v48  ;;  %v3457_v35 = vld [vmem:[#allocation5 + $0x20d8] sm:$0xff] }
 0x4c6   :  { %12358 = vmatpush3.bf16.msra.mxu0 %v12357_v24  ;;  %v3455_v24 = vld [vmem:[#allocation5 + $0x20c8] sm:$0xff] }
 0x4c7   :  { %12360 = vmatprep.subr.bf16.mxu0 %v12359_v39  ;;  %v508_v39 = vsel %vm450_vm0, %v15868_v25, %v333_v10 }
 0x4c8   :  { %12342 = vmatpush3.bf16.msra.mxu1 %v12341_v9  ;;  %1765 = vrot.lane.b32.xlu0 %v15941_v30, %s13540_s28  ;;  %v3412_v9 = vld [vmem:[#allocation5 + $0x1f70] sm:$0xff]  ;;  %v1175_v6 = vmul.f32 %v13718_v16, %v508_v39 }
 0x4c9   :  { %12344 = vmatprep.subr.bf16.mxu1 %v12343_v12  ;;  %v12369_v12 = vpack.c.bf16 %v3437_v55, %v3436_v42 }
 0x4ca   :  { %v1752_v5 = vpop.permute.xlu1 %1751  ;;  %12362 = vmatpush3.bf16.msra.mxu0 %v12361_v22  ;;  %v3439_v22 = vld [vmem:[#allocation5 + $0x2048] sm:$0xff] }
 0x4cb   :  { %v1951_v0 = vsel %vm450_vm0, %v15896_v50, %v1752_v5  ;;  %v15948_v46 = vpop.permute.xlu0 %1753  ;;  %12364 = vmatprep.subr.bf16.mxu0 %v12363_v32  ;;  %v3454_v50 = vld [vmem:[#allocation5 + $0x20c0] sm:$0xff]  ;;  %v13449_v32 = vld [vmem:[%s17816_s1 + $0x238] sm:$0xff]  ;;  %v12373_v7 = vpack.c.bf16 %v3439_v22, %v3438_v17  ;;  %v3483_v17 = vld [vmem:[#allocation5 + $0x21a8] sm:$0xff] }
 0x4cc   :  { %v1950_v59 = vsel %vm450_vm0, %v1752_v5, %v15948_v46  ;;  %12346 = vmatpush3.bf16.msra.mxu1 %v12345_v56  ;;  %739 = vrot.lane.b32.xlu0 %v15914_v29, %s13541_s6  ;;  %v2077_v62 = vmax.f32 %v15686_v37, %v1951_v0  ;;  %v1045_v37 = vmul.f32 %v13716_v15, %v15678_v31  ;;  %v3456_v56 = vld [vmem:[#allocation5 + $0x20d0] sm:$0xff]  ;;  %v3463_v5 = vld [vmem:[#allocation5 + $0x2108] sm:$0xff]  ;;  %v3481_v0 = vld [vmem:[#allocation5 + $0x2198] sm:$0xff] }
 0x4cd   :  { %v2078_v63 = vmax.f32 %v15740_v1, %v1950_v59  ;;  %12348 = vmatprep.subr.bf16.mxu1 %v12347_v23  ;;  %v1176_v1 = vmul.f32 %v13718_v16, %v507_v51  ;;  %v12371_v53 = vpack.c.bf16 %v3455_v24, %v3454_v50  ;;  %v1044_v38 = vmul.f32 %v13449_v32, %v13716_v15  ;;  %v3440_v59 = vld [vmem:[#allocation5 + $0x2050] sm:$0xff] }
 0x4ce   :  { %v15968_v29 = vpop.permute.xlu1 %336  ;;  %12366 = vmatpush3.bf16.msra.mxu0 %v12365_v21  ;;  %v12353_v31 = vpack.c.bf16 %v3413_v61, %v3412_v9  ;;  %v2208_v52 = vadd.f32 %v13963_v28, %v2077_v62  ;;  %v3480_v21 = vld [vmem:[#allocation5 + $0x2190] sm:$0xff]  ;;  %v12375_v51 = vpack.c.bf16 %v3457_v35, %v3456_v56  ;;  %v3458_v62 = vld [vmem:[#allocation5 + $0x20e0] sm:$0xff]  ;;  %v3461_v35 = vld [vmem:[#allocation5 + $0x20f8] sm:$0xff] }
 0x4cf   :  { %v15973_v25 = vpop.permute.xlu0 %338  ;;  %v2209_v10 = vadd.f32 %v13963_v28, %v2078_v63  ;;  %12368 = vmatprep.subr.bf16.mxu0 %v12367_v57  ;;  %v1306_v57 = vadd.f32 %v1176_v1, %v1045_v37  ;;  %v1305_v50 = vadd.f32 %v1175_v6, %v1044_v38  ;;  %v3459_v63 = vld [vmem:[#allocation5 + $0x20e8] sm:$0xff]  ;;  %v1046_v6 = vmul.f32 %v13716_v15, %v15711_v45  ;;  %v3460_v56 = vld [vmem:[#allocation5 + $0x20f0] sm:$0xff] }
 0x4d0   :  { %12350 = vmatpush3.bf16.msra.mxu1 %v12349_v11  ;;  %350 = vrot.lane.b32.xlu0 %v15966_v33, %s13540_s28  ;;  %v3441_v11 = vld [vmem:[#allocation5 + $0x2058] sm:$0xff]  ;;  %v2338_v9 = vmax.f32 %v2208_v52, 0.0  ;;  %v12379_v32 = vpack.c.bf16 %v3459_v63, %v3458_v62  ;;  %v3443_v38 = vld [vmem:[#allocation5 + $0x2068] sm:$0xff]  ;;  %v12393_v52 = vpack.c.bf16 %v3465_v18, %v3464_v47 }
 0x4d1   :  { %12352 = vmatprep.subr.bf16.mxu1 %v12351_v60  ;;  %v2339_v23 = vmax.f32 %v2209_v10, 0.0  ;;  %v12389_v60 = vpack.c.bf16 %v3463_v5, %v3462_v41  ;;  %v12377_v10 = vpack.c.bf16 %v3441_v11, %v3440_v59  ;;  %v3466_v41 = vld [vmem:[#allocation5 + $0x2120] sm:$0xff]  ;;  %v3467_v45 = vld [vmem:[#allocation5 + $0x2128] sm:$0xff]  ;;  %v16014_v5 = vld [vmem:[%s17816_s1 + $0x298] sm:$0xff] }
 0x4d2   :  { %v726_v48 = vpop.permute.xlu1 %725  ;;  %12370 = vmatpush3.bf16.msra.mxu0 %v12369_v12  ;;  %v12391_v12 = vpack.c.bf16 %v3481_v0, %v3480_v21  ;;  %v3484_v21 = vld [vmem:[#allocation5 + $0x21b0] sm:$0xff]  ;;  %v3485_v0 = vld [vmem:[#allocation5 + $0x21b8] sm:$0xff]  ;;  %v3511_v62 = vld [vmem:[#allocation5 + $0x2288] sm:$0xff] }
 0x4d3   :  { %v899_v42 = vsel %vm841_vm1, %v15916_v44, %v726_v48  ;;  %6727 = vmatprep.mubr.f32.mxu1 %v2339_v23  ;;  %v728_v55 = vpop.permute.xlu0 %727  ;;  %12372 = vmatprep.subr.bf16.mxu0 %v12371_v53  ;;  %v506_v44 = vsel %vm450_vm0, %v15939_v4, %v15968_v29  ;;  %v3482_v53 = vld [vmem:[#allocation5 + $0x21a0] sm:$0xff]  ;;  %v140_v23 = vld [vmem:[%s17816_s1 + $0x290] sm:$0xff]  ;;  %v3445_v59 = vld [vmem:[#allocation5 + $0x2078] sm:$0xff]  ;;  %v12399_v63 = vpack.c.bf16 %v3485_v0, %v3484_v21 }
 0x4d4   :  { %v1436_v24 = vmul.f32 %v13735_v34, %v899_v42  ;;  %v898_v39 = vsel %vm841_vm1, %v726_v48, %v728_v55  ;;  %12354 = vmatpush3.bf16.msra.mxu1 %v12353_v31  ;;  %v3442_v4 = vld [vmem:[#allocation5 + $0x2060] sm:$0xff]  ;;  %v1177_v31 = vmul.f32 %v13718_v16, %v506_v44  ;;  %v12383_v42 = vpack.c.bf16 %v3461_v35, %v3460_v56  ;;  %v3473_v56 = vld [vmem:[#allocation5 + $0x2158] sm:$0xff]  ;;  %v3475_v21 = vld [vmem:[#allocation5 + $0x2168] sm:$0xff] }
 0x4d5   :  { %v1437_v61 = vmul.f32 %v13735_v34, %v898_v39  ;;  %12388 = vmatprep.subr.bf16.mxu1 %v12387_v14  ;;  %v12395_v14 = vpack.c.bf16 %v3483_v17, %v3482_v53  ;;  %v3510_v39 = vld [vmem:[#allocation5 + $0x2280] sm:$0xff]  ;;  %v3471_v17 = vld [vmem:[#allocation5 + $0x2148] sm:$0xff]  ;;  %v3492_v0 = vld [vmem:[#allocation5 + $0x21f0] sm:$0xff] }
 0x4d6   :  { %v15995_v37 = vadd.f32 %v1436_v24, %v1305_v50  ;;  %v15997_v1 = vpop.permute.xlu1 %1755  ;;  %12374 = vmatpush3.bf16.msra.mxu0 %v12373_v7  ;;  %v12381_v7 = vpack.c.bf16 %v3443_v38, %v3442_v4  ;;  %v1307_v11 = vadd.f32 %v1177_v31, %v1046_v6  ;;  %v12397_v24 = vpack.c.bf16 %v3467_v45, %v3466_v41  ;;  %v3486_v44 = vld [vmem:[#allocation5 + $0x21c0] sm:$0xff]  ;;  %v3489_v4 = vld [vmem:[#allocation5 + $0x21d8] sm:$0xff]  ;;  %v3472_v31 = vld [vmem:[#allocation5 + $0x2150] sm:$0xff] }
 0x4d7   :  { %v15999_v22 = vadd.f32 %v1437_v61, %v1306_v57  ;;  %6728 = vmatmul.mubr.f32.vlgmr.msra.gmra.mrb[30].mxu1 %v2338_v9  ;;  %12376 = vmatprep.subr.bf16.mxu0 %v12375_v51  ;;  %v3444_v51 = vld [vmem:[#allocation5 + $0x2070] sm:$0xff]  ;;  %v3487_v61 = vld [vmem:[#allocation5 + $0x21c8] sm:$0xff]  ;;  %v3470_v53 = vld [vmem:[#allocation5 + $0x2140] sm:$0xff] }
 0x4d8   :  { %1767 = vrot.lane.b32.xlu1 %v15995_v37, %s13540_s28  ;;  %12390 = vmatpush3.bf16.msra.mxu1 %v12389_v60  ;;  %v3468_v60 = vld [vmem:[#allocation5 + $0x2130] sm:$0xff]  ;;  %v12385_v9 = vpack.c.bf16 %v3445_v59, %v3444_v51  ;;  %v12405_v38 = vpack.c.bf16 %v3471_v17, %v3470_v53  ;;  %v3490_v35 = vld [vmem:[#allocation5 + $0x21e0] sm:$0xff] }
 0x4d9   :  { %1769 = vrot.lane.b32.xlu0 %v15999_v22, %s13540_s28  ;;  %12392 = vmatprep.subr.bf16.mxu1 %v12391_v12  ;;  %v12419_v12 = vpack.c.bf16 %v3511_v62, %v3510_v39  ;;  %v16037_v41 = vld [vmem:[%s17816_s1 + $0x2a0] sm:$0xff]  ;;  %v3476_v59 = vld [vmem:[#allocation5 + $0x2170] sm:$0xff]  ;;  %v3543_v39 = vld [vmem:[#allocation5 + $0x2388] sm:$0xff] }
 0x4da   :  { %v16016_v48 = vpop.permute.xlu1 %729  ;;  %12378 = vmatpush3.bf16.msra.mxu0 %v12377_v10  ;;  %v12403_v10 = vpack.c.bf16 %v3487_v61, %v3486_v44  ;;  %v505_v44 = vsel %vm450_vm0, %v15968_v29, %v15973_v25 }
 0x4db   :  { %v897_v57 = vsel %vm841_vm1, %v728_v55, %v16016_v48  ;;  %12380 = vmatprep.subr.bf16.mxu0 %v12379_v32  ;;  %v3469_v55 = vld [vmem:[#allocation5 + $0x2138] sm:$0xff]  ;;  %v3488_v32 = vld [vmem:[#allocation5 + $0x21d0] sm:$0xff] }
 0x4dc   :  { %352 = vrot.lane.b32.xlu1 %v140_v23, %s13540_s28  ;;  %v1438_v50 = vmul.f32 %v13735_v34, %v897_v57  ;;  %12394 = vmatpush3.bf16.msra.mxu1 %v12393_v52  ;;  %v12401_v18 = vpack.c.bf16 %v3469_v55, %v3468_v60  ;;  %v12407_v6 = vpack.c.bf16 %v3489_v4, %v3488_v32  ;;  %v3491_v52 = vld [vmem:[#allocation5 + $0x21e8] sm:$0xff]  ;;  %v3493_v57 = vld [vmem:[#allocation5 + $0x21f8] sm:$0xff]  ;;  %v3494_v4 = vld [vmem:[#allocation5 + $0x2200] sm:$0xff] }
 0x4dd   :  { %354 = vrot.lane.b32.xlu0 %v16014_v5, %s13540_s28  ;;  %12396 = vmatprep.subr.bf16.mxu1 %v12395_v14  ;;  %v12409_v14 = vpack.c.bf16 %v3473_v56, %v3472_v31  ;;  %v12411_v45 = vpack.c.bf16 %v3491_v52, %v3490_v35  ;;  %v3512_v35 = vld [vmem:[#allocation5 + $0x2290] sm:$0xff]  ;;  %v3513_v52 = vld [vmem:[#allocation5 + $0x2298] sm:$0xff] }
 0x4de   :  { %12382 = vmatpush3.bf16.msra.mxu0 %v12381_v7  ;;  %v16025_v47 = vadd.f32 %v1438_v50, %v1307_v11  ;;  %v3474_v7 = vld [vmem:[#allocation5 + $0x2160] sm:$0xff]  ;;  %v3477_v11 = vld [vmem:[#allocation5 + $0x2178] sm:$0xff] }
 0x4df   :  { %12384 = vmatprep.subr.bf16.mxu0 %v12383_v42  ;;  %v12413_v42 = vpack.c.bf16 %v3475_v21, %v3474_v7 }
 0x4e0   :  { %741 = vrot.lane.b32.xlu1 %v15933_v3, %s13541_s6  ;;  %12398 = vmatpush3.bf16.msra.mxu1 %v12397_v24  ;;  %v3542_v24 = vld [vmem:[#allocation5 + $0x2380] sm:$0xff] }
 0x4e1   :  { %743 = vrot.lane.b32.xlu0 %v15966_v33, %s13541_s6  ;;  %12400 = vmatprep.subr.bf16.mxu1 %v12399_v63  ;;  %v12417_v63 = vpack.c.bf16 %v3477_v11, %v3476_v59  ;;  %v12451_v55 = vpack.c.bf16 %v3543_v39, %v3542_v24  ;;  %v3515_v59 = vld [vmem:[#allocation5 + $0x22a8] sm:$0xff]  ;;  %v3516_v39 = vld [vmem:[#allocation5 + $0x22b0] sm:$0xff] }
 0x4e2   :  { %12386 = vmatpush3.bf16.msra.mxu0 %v12385_v9  ;;  %v1949_v9 = vsel %vm450_vm0, %v15948_v46, %v15997_v1  ;;  %v3499_v24 = vld [vmem:[#allocation5 + $0x2228] sm:$0xff] }
 0x4e3   :  { %12420 = vmatprep.subr.bf16.mxu0 %v12419_v12  ;;  %v2079_v61 = vmax.f32 %v15744_v43, %v1949_v9 }
 0x4e4   :  { %1771 = vrot.lane.b32.xlu1 %v16025_v47, %s13540_s28  ;;  %12402 = vmatpush3.bf16.msra.mxu1 %v12401_v18  ;;  %v1178_v18 = vmul.f32 %v13718_v16, %v505_v44 }
 0x4e5   :  { %12404 = vmatprep.subr.bf16.mxu1 %v12403_v10  ;;  %v2210_v43 = vadd.f32 %v13963_v28, %v2079_v61  ;;  %v3500_v61 = vld [vmem:[#allocation5 + $0x2230] sm:$0xff] }
 0x4e7   :  { %v2340_v21 = vmax.f32 %v2210_v43, 0.0  ;;  %v3503_v43 = vld [vmem:[#allocation5 + $0x2248] sm:$0xff] }
 0x4e8   :  { %745 = vrot.lane.b32.xlu1 %v140_v23, %s13541_s6  ;;  %12406 = vmatpush3.bf16.msra.mxu1 %v12405_v38  ;;  %v12415_v23 = vpack.c.bf16 %v3493_v57, %v3492_v0  ;;  %v3495_v38 = vld [vmem:[#allocation5 + $0x2208] sm:$0xff]  ;;  %v12423_v0 = vpack.c.bf16 %v3513_v52, %v3512_v35  ;;  %v3496_v57 = vld [vmem:[#allocation5 + $0x2210] sm:$0xff]  ;;  %v3505_v52 = vld [vmem:[#allocation5 + $0x2258] sm:$0xff] }
 0x4e9   :  { %12408 = vmatprep.subr.bf16.mxu1 %v12407_v6  ;;  %v12421_v7 = vpack.c.bf16 %v3495_v38, %v3494_v4  ;;  %v3521_v4 = vld [vmem:[#allocation5 + $0x22d8] sm:$0xff]  ;;  %v341_v38 = vpop.permute.xlu1 %340  ;;  %v3504_v35 = vld [vmem:[#allocation5 + $0x2250] sm:$0xff] }
 0x4ec   :  { %356 = vrot.lane.b32.xlu1 %v16037_v41, %s13540_s28  ;;  %12410 = vmatpush3.bf16.msra.mxu1 %v12409_v14 }
 0x4ed   :  { %v9928_v51 = vpop.f32.mrb[24].mxu0  ;;  %12412 = vmatprep.subr.bf16.mxu1 %v12411_v45 }
 0x4ee   :  { %v9929_v50 = vpop.f32.mrb[25].mxu0 }
 0x4ef   :  { %v9930_v62 = vadd.f32 %v9929_v50, %v9928_v51  ;;  %v3498_v50 = vld [vmem:[#allocation5 + $0x2220] sm:$0xff] }
 0x4f0   :  { %12414 = vmatpush3.bf16.msra.mxu1 %v12413_v42  ;;  %v3497_v42 = vld [vmem:[#allocation5 + $0x2218] sm:$0xff] }
 0x4f1   :  { %v6240_v60 = vadd.f32 %v9930_v62, %v15848_v13  ;;  %12416 = vmatprep.subr.bf16.mxu1 %v12415_v23  ;;  %v13450_v13 = vld [vmem:[%s17816_s1 + $0x250] sm:$0xff]  ;;  %v3514_v23 = vld [vmem:[#allocation5 + $0x22a0] sm:$0xff]  ;;  %v12425_v11 = vpack.c.bf16 %v3497_v42, %v3496_v57  ;;  %v3517_v62 = vld [vmem:[#allocation5 + $0x22b8] sm:$0xff]  ;;  %v504_v57 = vsel %vm450_vm0, %v15973_v25, %v341_v38 }
 0x4f2   :  { %v1047_v12 = vmul.f32 %v13450_v13, %v13716_v15  ;;  %v12431_v44 = vpack.c.bf16 %v3517_v62, %v3516_v39  ;;  %v3501_v13 = vld [vmem:[#allocation5 + $0x2238] sm:$0xff]  ;;  %v3524_v42 = vld [vmem:[#allocation5 + $0x22f0] sm:$0xff]  ;;  %v3574_v25 = vld [vmem:[#allocation5 + $0x2480] sm:$0xff] }
 0x4f4   :  { %12418 = vmatpush3.bf16.msra.mxu1 %v12417_v63  ;;  %v1308_v6 = vadd.f32 %v1178_v18, %v1047_v12  ;;  %v16081_v12 = vld [vmem:[%s17816_s1 + $0x2a8] sm:$0xff]  ;;  %v3518_v18 = vld [vmem:[#allocation5 + $0x22c0] sm:$0xff] }
 0x4f5   :  { %12452 = vmatprep.subr.bf16.mxu1 %v12451_v55  ;;  %v12429_v55 = vpack.c.bf16 %v3499_v24, %v3498_v50  ;;  %v1179_v24 = vmul.f32 %v13718_v16, %v504_v57 }
 0x509   :  { %v16056_v10 = vpop.permute.xlu0 %1757 }
 0x50a   :  { %v9963_v53 = vpop.f32.mrb[24].mxu1  ;;  %v1948_v46 = vsel %vm450_vm0, %v15997_v1, %v16056_v10 }
 0x50b   :  { %v2080_v29 = vmax.f32 %v15770_v19, %v1948_v46  ;;  %v9964_v17 = vpop.f32.mrb[25].mxu1 }
 0x50c   :  { %v9965_v32 = vadd.f32 %v9964_v17, %v9963_v53  ;;  %v3519_v53 = vld [vmem:[#allocation5 + $0x22c8] sm:$0xff]  ;;  %v3502_v17 = vld [vmem:[#allocation5 + $0x2240] sm:$0xff] }
 0x50d   :  { %v16064_v31 = vpop.permute.xlu0 %731  ;;  %v2211_v56 = vadd.f32 %v13963_v28, %v2080_v29  ;;  %v12433_v29 = vpack.c.bf16 %v3501_v13, %v3500_v61 }
 0x50e   :  { %v6310_v14 = vadd.f32 %v9965_v32, %v6240_v60  ;;  %v896_v1 = vsel %vm841_vm1, %v16016_v48, %v16064_v31  ;;  %v12427_v48 = vpack.c.bf16 %v3515_v59, %v3514_v23  ;;  %v3520_v32 = vld [vmem:[#allocation5 + $0x22d0] sm:$0xff]  ;;  %v3525_v23 = vld [vmem:[#allocation5 + $0x22f8] sm:$0xff] }
 0x50f   :  { %v1439_v19 = vmul.f32 %v13735_v34, %v896_v1  ;;  %v2341_v45 = vmax.f32 %v2211_v56, 0.0  ;;  %v12439_v56 = vpack.c.bf16 %v3521_v4, %v3520_v32  ;;  %v3522_v1 = vld [vmem:[#allocation5 + $0x22e0] sm:$0xff]  ;;  %v12447_v62 = vpack.c.bf16 %v3525_v23, %v3524_v42 }
 0x510   :  { %v1050_v42 = vmul.f32 %v13716_v15, %v15826_v36 }
 0x511   :  { %v16072_v51 = vadd.f32 %v1439_v19, %v1308_v6  ;;  %6797 = vmatprep.mubr.f32.mxu0 %v2341_v45  ;;  %v12437_v6 = vpack.c.bf16 %v3503_v43, %v3502_v17  ;;  %v12441_v45 = vpack.c.bf16 %v3505_v52, %v3504_v35  ;;  %v343_v39 = vpop.permute.xlu0 %342 }
 0x512   :  { %6798 = vmatmul.mubr.f32.vlgmr.msra.gmra.mrb[32].mxu0 %v2340_v21  ;;  %v3506_v21 = vld [vmem:[#allocation5 + $0x2260] sm:$0xff] }
 0x513   :  { %1773 = vrot.lane.b32.xlu0 %v16072_v51, %s13540_s28  ;;  %12422 = vmatpush3.bf16.msra.mxu0 %v12421_v7 }
 0x514   :  { %12424 = vmatprep.subr.bf16.mxu0 %v12423_v0  ;;  %v3507_v0 = vld [vmem:[#allocation5 + $0x2268] sm:$0xff] }
 0x516   :  { %v9998_v63 = vpop.f32.mrb[26].mxu0 }
 0x517   :  { %v9999_v60 = vpop.f32.mrb[27].mxu0  ;;  %747 = vrot.lane.b32.xlu0 %v16014_v5, %s13541_s6  ;;  %12426 = vmatpush3.bf16.msra.mxu0 %v12425_v11  ;;  %v12435_v5 = vpack.c.bf16 %v3519_v53, %v3518_v18  ;;  %v12445_v11 = vpack.c.bf16 %v3507_v0, %v3506_v21  ;;  %v13452_v21 = vld [vmem:[%s17816_s1 + $0x260] sm:$0xff] }
 0x518   :  { %v10000_v9 = vadd.f32 %v9999_v60, %v9998_v63  ;;  %12428 = vmatprep.subr.bf16.mxu0 %v12427_v48  ;;  %v13451_v48 = vld [vmem:[%s17816_s1 + $0x258] sm:$0xff]  ;;  %v3508_v63 = vld [vmem:[#allocation5 + $0x2270] sm:$0xff]  ;;  %v1049_v0 = vmul.f32 %v13452_v21, %v13716_v15 }
 0x519   :  { %v1048_v50 = vmul.f32 %v13451_v48, %v13716_v15  ;;  %v3509_v60 = vld [vmem:[#allocation5 + $0x2278] sm:$0xff] }
 0x51a   :  { %v6380_v46 = vadd.f32 %v10000_v9, %v6310_v14  ;;  %v3523_v14 = vld [vmem:[#allocation5 + $0x22e8] sm:$0xff]  ;;  %v12449_v53 = vpack.c.bf16 %v3509_v60, %v3508_v63 }
 0x51b   :  { %12430 = vmatpush3.bf16.msra.mxu0 %v12429_v55  ;;  %358 = vrot.lane.b32.xlu0 %v16081_v12, %s13540_s28  ;;  %v12443_v7 = vpack.c.bf16 %v3523_v14, %v3522_v1  ;;  %v3575_v55 = vld [vmem:[#allocation5 + $0x2488] sm:$0xff]  ;;  %v16121_v1 = vld [vmem:[%s17816_s1 + $0x2b0] sm:$0xff]  ;;  %v3526_v14 = vld [vmem:[#allocation5 + $0x2300] sm:$0xff] }
 0x51c   :  { %12432 = vmatprep.subr.bf16.mxu0 %v12431_v44  ;;  %v12483_v43 = vpack.c.bf16 %v3575_v55, %v3574_v25  ;;  %v3546_v55 = vld [vmem:[#allocation5 + $0x23a0] sm:$0xff] }
 0x51f   :  { %12434 = vmatpush3.bf16.msra.mxu0 %v12433_v29  ;;  %v1309_v29 = vadd.f32 %v1179_v24, %v1048_v50  ;;  %v3528_v50 = vld [vmem:[#allocation5 + $0x2310] sm:$0xff]  ;;  %v3529_v24 = vld [vmem:[#allocation5 + $0x2318] sm:$0xff] }
 0x520   :  { %12436 = vmatprep.subr.bf16.mxu0 %v12435_v5 }
 0x522   :  { %v1760_v19 = vpop.permute.xlu1 %1759 }
 0x523   :  { %12438 = vmatpush3.bf16.msra.mxu0 %v12437_v6  ;;  %v1947_v9 = vsel %vm450_vm0, %v16056_v10, %v1760_v19 }
 0x524   :  { %12440 = vmatprep.subr.bf16.mxu0 %v12439_v56  ;;  %v2081_v32 = vmax.f32 %v15817_v40, %v1947_v9  ;;  %v3547_v9 = vld [vmem:[#allocation5 + $0x23a8] sm:$0xff] }
 0x526   :  { %v16088_v59 = vpop.permute.xlu1 %344  ;;  %v2212_v40 = vadd.f32 %v13963_v28, %v2081_v32  ;;  %v3530_v32 = vld [vmem:[#allocation5 + $0x2320] sm:$0xff] }
 0x527   :  { %12442 = vmatpush3.bf16.msra.mxu0 %v12441_v45  ;;  %v3544_v45 = vld [vmem:[#allocation5 + $0x2390] sm:$0xff] }
 0x528   :  { %12444 = vmatprep.subr.bf16.mxu0 %v12443_v7  ;;  %v3545_v7 = vld [vmem:[#allocation5 + $0x2398] sm:$0xff] }
 0x52a   :  { %v10033_v44 = vpop.f32.mrb[26].mxu1  ;;  %v734_v61 = vpop.permute.xlu1 %733 }
 0x52b   :  { %v10034_v13 = vpop.f32.mrb[27].mxu1  ;;  %v895_v18 = vsel %vm841_vm1, %v16064_v31, %v734_v61  ;;  %12446 = vmatpush3.bf16.msra.mxu0 %v12445_v11  ;;  %v503_v31 = vsel %vm450_vm0, %v341_v38, %v343_v39  ;;  %v3527_v38 = vld [vmem:[#allocation5 + $0x2308] sm:$0xff] }
 0x52c   :  { %v10035_v5 = vadd.f32 %v10034_v13, %v10033_v44  ;;  %v1440_v17 = vmul.f32 %v13735_v34, %v895_v18  ;;  %12448 = vmatprep.subr.bf16.mxu0 %v12447_v62  ;;  %v1180_v57 = vmul.f32 %v13718_v16, %v503_v31  ;;  %v12453_v48 = vpack.c.bf16 %v3527_v38, %v3526_v14 }
 0x52d   :  { %v12455_v62 = vpack.c.bf16 %v3545_v7, %v3544_v45  ;;  %v12457_v18 = vpack.c.bf16 %v3529_v24, %v3528_v50  ;;  %v3533_v45 = vld [vmem:[#allocation5 + $0x2338] sm:$0xff] }
 0x52e   :  { %v16103_v4 = vadd.f32 %v10035_v5, %v6380_v46  ;;  %v16105_v10 = vadd.f32 %v1440_v17, %v1309_v29  ;;  %v1762_v6 = vpop.permute.xlu0 %1761  ;;  %v502_v46 = vsel %vm450_vm0, %v343_v39, %v16088_v59  ;;  %v2342_v39 = vmax.f32 %v2212_v40, 0.0  ;;  %v3549_v40 = vld [vmem:[#allocation5 + $0x23b8] sm:$0xff] }
 0x52f   :  { %v1946_v56 = vsel %vm450_vm0, %v1760_v19, %v1762_v6  ;;  %12450 = vmatpush3.bf16.msra.mxu0 %v12449_v53  ;;  %v1764_v35 = vpop.permute.xlu1 %1763  ;;  %v1181_v23 = vmul.f32 %v13718_v16, %v502_v46  ;;  %v1310_v36 = vadd.f32 %v1180_v57, %v1049_v0  ;;  %v3550_v0 = vld [vmem:[#allocation5 + $0x23c0] sm:$0xff]  ;;  %v3551_v57 = vld [vmem:[#allocation5 + $0x23c8] sm:$0xff] }
 0x530   :  { %v2082_v52 = vmax.f32 %v15850_v2, %v1946_v56  ;;  %1775 = vrot.lane.b32.xlu1 %v16105_v10, %s13540_s28  ;;  %12484 = vmatprep.subr.bf16.mxu0 %v12483_v43  ;;  %v1945_v63 = vsel %vm450_vm0, %v1762_v6, %v1764_v35  ;;  %v12459_v43 = vpack.c.bf16 %v3547_v9, %v3546_v55  ;;  %v3531_v6 = vld [vmem:[#allocation5 + $0x2328] sm:$0xff]  ;;  %v16188_v9 = vld [vmem:[%s17816_s1 + $0x2c0] sm:$0xff] }
 0x531   :  { %v1311_v53 = vadd.f32 %v1181_v23, %v1050_v42  ;;  %v2083_v17 = vmax.f32 %v15892_v8, %v1945_v63  ;;  %v12461_v8 = vpack.c.bf16 %v3531_v6, %v3530_v32  ;;  %v3558_v42 = vld [vmem:[#allocation5 + $0x2400] sm:$0xff]  ;;  %v3559_v23 = vld [vmem:[#allocation5 + $0x2408] sm:$0xff] }
 0x532   :  { %v16123_v19 = vpop.permute.xlu0 %346  ;;  %v2213_v2 = vadd.f32 %v13963_v28, %v2082_v52  ;;  %v3548_v52 = vld [vmem:[#allocation5 + $0x23b0] sm:$0xff]  ;;  %v3535_v55 = vld [vmem:[#allocation5 + $0x2348] sm:$0xff] }
 0x533   :  { %v738_v60 = vpop.permute.xlu1 %737  ;;  %v2214_v14 = vadd.f32 %v13963_v28, %v2083_v17  ;;  %v501_v38 = vsel %vm450_vm0, %v16088_v59, %v16123_v19  ;;  %v3579_v32 = vld [vmem:[#allocation5 + $0x24a8] sm:$0xff] }
 0x534   :  { %360 = vrot.lane.b32.xlu1 %v16121_v1, %s13540_s28  ;;  %v2343_v11 = vmax.f32 %v2213_v2, 0.0  ;;  %v3532_v2 = vld [vmem:[#allocation5 + $0x2330] sm:$0xff] }
 0x535   :  { %v12465_v24 = vpack.c.bf16 %v3533_v45, %v3532_v2  ;;  %v2344_v63 = vmax.f32 %v2214_v14, 0.0  ;;  %v3554_v14 = vld [vmem:[#allocation5 + $0x23e0] sm:$0xff] }
 0x536   :  { %6867 = vmatprep.mubr.f32.mxu1 %v2343_v11  ;;  %v736_v25 = vpop.permute.xlu0 %735  ;;  %v1051_v11 = vmul.f32 %v13716_v15, %v15866_v54  ;;  %v3562_v45 = vld [vmem:[#allocation5 + $0x2420] sm:$0xff] }
 0x537   :  { %v893_v44 = vsel %vm841_vm1, %v736_v25, %v738_v60  ;;  %v894_v13 = vsel %vm841_vm1, %v734_v61, %v736_v25  ;;  %6868 = vmatmul.mubr.f32.vlgmr.msra.gmra.mrb[32].mxu1 %v2342_v39  ;;  %v3576_v39 = vld [vmem:[#allocation5 + $0x2490] sm:$0xff]  ;;  %v3534_v25 = vld [vmem:[#allocation5 + $0x2340] sm:$0xff] }
 0x538   :  { %v1441_v29 = vmul.f32 %v13735_v34, %v894_v13  ;;  %v1442_v5 = vmul.f32 %v13735_v34, %v893_v44  ;;  %12454 = vmatpush3.bf16.msra.mxu1 %v12453_v48  ;;  %749 = vrot.lane.b32.xlu1 %v16037_v41, %s13541_s6  ;;  %v1182_v48 = vmul.f32 %v13718_v16, %v501_v38  ;;  %v3553_v44 = vld [vmem:[#allocation5 + $0x23d8] sm:$0xff]  ;;  %v3555_v38 = vld [vmem:[#allocation5 + $0x23e8] sm:$0xff] }
 0x539   :  { %12456 = vmatprep.subr.bf16.mxu1 %v12455_v62  ;;  %v3577_v62 = vld [vmem:[#allocation5 + $0x2498] sm:$0xff]  ;;  %v12485_v13 = vpack.c.bf16 %v3559_v23, %v3558_v42  ;;  %v12469_v17 = vpack.c.bf16 %v3535_v55, %v3534_v25  ;;  %v12475_v42 = vpack.c.bf16 %v3555_v38, %v3554_v14  ;;  %v3538_v23 = vld [vmem:[#allocation5 + $0x2360] sm:$0xff]  ;;  %v3564_v25 = vld [vmem:[#allocation5 + $0x2430] sm:$0xff] }
 0x53a   :  { %v16147_v56 = vadd.f32 %v1441_v29, %v1310_v36  ;;  %v16149_v61 = vadd.f32 %v1442_v5, %v1311_v53  ;;  %v16151_v31 = vpop.permute.xlu0 %1765  ;;  %v3552_v36 = vld [vmem:[#allocation5 + $0x23d0] sm:$0xff]  ;;  %v3561_v29 = vld [vmem:[#allocation5 + $0x2418] sm:$0xff]  ;;  %v1312_v5 = vadd.f32 %v1182_v48, %v1051_v11  ;;  %v3539_v11 = vld [vmem:[#allocation5 + $0x2368] sm:$0xff] }
 0x53b   :  { %v1944_v46 = vsel %vm450_vm0, %v1764_v35, %v16151_v31  ;;  %v12463_v35 = vpack.c.bf16 %v3549_v40, %v3548_v52  ;;  %v3560_v53 = vld [vmem:[#allocation5 + $0x2410] sm:$0xff]  ;;  %v12471_v52 = vpack.c.bf16 %v3553_v44, %v3552_v36  ;;  %v3565_v55 = vld [vmem:[#allocation5 + $0x2438] sm:$0xff]  ;;  %v12477_v44 = vpack.c.bf16 %v3539_v11, %v3538_v23  ;;  %v3566_v38 = vld [vmem:[#allocation5 + $0x2440] sm:$0xff] }
 0x53c   :  { %v2084_v41 = vmax.f32 %v15894_v27, %v1944_v46  ;;  %12458 = vmatpush3.bf16.msra.mxu1 %v12457_v18  ;;  %1777 = vrot.lane.b32.xlu0 %v16147_v56, %s13540_s28  ;;  %v16169_v27 = vld [vmem:[%s17816_s1 + $0x2b8] sm:$0xff]  ;;  %v12487_v18 = vpack.c.bf16 %v3577_v62, %v3576_v39  ;;  %v3536_v40 = vld [vmem:[#allocation5 + $0x2350] sm:$0xff]  ;;  %v3590_v11 = vld [vmem:[#allocation5 + $0x2500] sm:$0xff] }
 0x53d   :  { %1779 = vrot.lane.b32.xlu1 %v16149_v61, %s13540_s28  ;;  %12460 = vmatprep.subr.bf16.mxu1 %v12459_v43  ;;  %v3578_v43 = vld [vmem:[#allocation5 + $0x24a0] sm:$0xff]  ;;  %v3537_v46 = vld [vmem:[#allocation5 + $0x2358] sm:$0xff] }
 0x53e   :  { %v16171_v7 = vpop.permute.xlu0 %739  ;;  %v2215_v21 = vadd.f32 %v13963_v28, %v2084_v41  ;;  %v349_v41 = vpop.permute.xlu1 %348  ;;  %v12491_v2 = vpack.c.bf16 %v3579_v32, %v3578_v43  ;;  %v3541_v43 = vld [vmem:[#allocation5 + $0x2378] sm:$0xff]  ;;  %v16221_v32 = vld [vmem:[%s17816_s1 + $0x2c8] sm:$0xff] }
 0x53f   :  { %v892_v59 = vsel %vm841_vm1, %v738_v60, %v16171_v7  ;;  %v12467_v60 = vpack.c.bf16 %v3551_v57, %v3550_v0  ;;  %v12473_v0 = vpack.c.bf16 %v3537_v46, %v3536_v40  ;;  %v3580_v57 = vld [vmem:[#allocation5 + $0x24b0] sm:$0xff]  ;;  %v3606_v40 = vld [vmem:[#allocation5 + $0x2580] sm:$0xff]  ;;  %v3607_v46 = vld [vmem:[#allocation5 + $0x2588] sm:$0xff] }
 0x540   :  { %12462 = vmatpush3.bf16.msra.mxu1 %v12461_v8  ;;  %362 = vrot.lane.b32.xlu0 %v16169_v27, %s13540_s28  ;;  %v2345_v50 = vmax.f32 %v2215_v21, 0.0  ;;  %v1443_v54 = vmul.f32 %v13735_v34, %v892_v59  ;;  %v3563_v21 = vld [vmem:[#allocation5 + $0x2428] sm:$0xff]  ;;  %v3581_v59 = vld [vmem:[#allocation5 + $0x24b8] sm:$0xff]  ;;  %v12515_v23 = vpack.c.bf16 %v3607_v46, %v3606_v40  ;;  %v3592_v40 = vld [vmem:[#allocation5 + $0x2510] sm:$0xff] }
 0x541   :  { %753 = vrot.lane.b32.xlu1 %v16121_v1, %s13541_s6  ;;  %12464 = vmatprep.subr.bf16.mxu1 %v12463_v35  ;;  %v12489_v35 = vpack.c.bf16 %v3561_v29, %v3560_v53  ;;  %v12493_v39 = vpack.c.bf16 %v3563_v21, %v3562_v45  ;;  %v3593_v46 = vld [vmem:[#allocation5 + $0x2518] sm:$0xff] }
 0x542   :  { %6937 = vmatprep.mubr.f32.mxu0 %v2345_v50  ;;  %v16194_v6 = vpop.permute.xlu0 %350  ;;  %v16196_v8 = vadd.f32 %v1443_v54, %v1312_v5  ;;  %v3556_v50 = vld [vmem:[#allocation5 + $0x23f0] sm:$0xff] }
 0x543   :  { %6938 = vmatmul.mubr.f32.vlgmr.msra.gmra.mrb[34].mxu0 %v2344_v63  ;;  %v499_v54 = vsel %vm450_vm0, %v349_v41, %v16194_v6 }
 0x544   :  { %12466 = vmatpush3.bf16.msra.mxu1 %v12465_v24  ;;  %751 = vrot.lane.b32.xlu0 %v16081_v12, %s13541_s6  ;;  %v3557_v24 = vld [vmem:[#allocation5 + $0x23f8] sm:$0xff] }
 0x545   :  { %364 = vrot.lane.b32.xlu1 %v16188_v9, %s13540_s28  ;;  %12468 = vmatprep.subr.bf16.mxu1 %v12467_v60  ;;  %v12495_v60 = vpack.c.bf16 %v3581_v59, %v3580_v57  ;;  %v12479_v5 = vpack.c.bf16 %v3557_v24, %v3556_v50  ;;  %v3585_v57 = vld [vmem:[#allocation5 + $0x24d8] sm:$0xff] }
 0x546   :  { %12486 = vmatpush3.bf16.msra.mxu0 %v12485_v13  ;;  %v3583_v13 = vld [vmem:[#allocation5 + $0x24c8] sm:$0xff] }
 0x547   :  { %12488 = vmatprep.subr.bf16.mxu0 %v12487_v18  ;;  %v500_v18 = vsel %vm450_vm0, %v16123_v19, %v349_v41 }
 0x548   :  { %12470 = vmatpush3.bf16.msra.mxu1 %v12469_v17  ;;  %1781 = vrot.lane.b32.xlu0 %v16196_v8, %s13540_s28  ;;  %v3540_v17 = vld [vmem:[#allocation5 + $0x2370] sm:$0xff]  ;;  %v1183_v21 = vmul.f32 %v13718_v16, %v500_v18 }
 0x549   :  { %12472 = vmatprep.subr.bf16.mxu1 %v12471_v52  ;;  %v12497_v52 = vpack.c.bf16 %v3565_v55, %v3564_v25 }
 0x54a   :  { %v1768_v48 = vpop.permute.xlu1 %1767  ;;  %12490 = vmatpush3.bf16.msra.mxu0 %v12489_v35  ;;  %v3567_v35 = vld [vmem:[#allocation5 + $0x2448] sm:$0xff] }
 0x54b   :  { %v1943_v62 = vsel %vm450_vm0, %v16151_v31, %v1768_v48  ;;  %v16203_v63 = vpop.permute.xlu0 %1769  ;;  %12492 = vmatprep.subr.bf16.mxu0 %v12491_v2  ;;  %v3582_v31 = vld [vmem:[#allocation5 + $0x24c0] sm:$0xff]  ;;  %v13453_v2 = vld [vmem:[%s17816_s1 + $0x278] sm:$0xff]  ;;  %v12501_v24 = vpack.c.bf16 %v3567_v35, %v3566_v38  ;;  %v3611_v38 = vld [vmem:[#allocation5 + $0x25a8] sm:$0xff] }
 0x54c   :  { %v1942_v36 = vsel %vm450_vm0, %v1768_v48, %v16203_v63  ;;  %12474 = vmatpush3.bf16.msra.mxu1 %v12473_v0  ;;  %755 = vrot.lane.b32.xlu0 %v16169_v27, %s13541_s6  ;;  %v2085_v53 = vmax.f32 %v15941_v30, %v1943_v62  ;;  %v1053_v30 = vmul.f32 %v13716_v15, %v15933_v3  ;;  %v3584_v0 = vld [vmem:[#allocation5 + $0x24d0] sm:$0xff]  ;;  %v3591_v48 = vld [vmem:[#allocation5 + $0x2508] sm:$0xff]  ;;  %v3609_v62 = vld [vmem:[#allocation5 + $0x2598] sm:$0xff] }
 0x54d   :  { %v2086_v29 = vmax.f32 %v15995_v37, %v1942_v36  ;;  %12476 = vmatprep.subr.bf16.mxu1 %v12475_v42  ;;  %v1184_v37 = vmul.f32 %v13718_v16, %v499_v54  ;;  %v12499_v14 = vpack.c.bf16 %v3583_v13, %v3582_v31  ;;  %v1052_v45 = vmul.f32 %v13453_v2, %v13716_v15  ;;  %v3568_v36 = vld [vmem:[#allocation5 + $0x2450] sm:$0xff] }
 0x54e   :  { %v16223_v27 = vpop.permute.xlu1 %352  ;;  %12494 = vmatpush3.bf16.msra.mxu0 %v12493_v39  ;;  %v12481_v3 = vpack.c.bf16 %v3541_v43, %v3540_v17  ;;  %v2216_v59 = vadd.f32 %v13963_v28, %v2085_v53  ;;  %v3608_v39 = vld [vmem:[#allocation5 + $0x2590] sm:$0xff]  ;;  %v12503_v54 = vpack.c.bf16 %v3585_v57, %v3584_v0  ;;  %v3586_v53 = vld [vmem:[#allocation5 + $0x24e0] sm:$0xff]  ;;  %v3589_v57 = vld [vmem:[#allocation5 + $0x24f8] sm:$0xff] }
 0x54f   :  { %v16228_v19 = vpop.permute.xlu0 %354  ;;  %v2217_v41 = vadd.f32 %v13963_v28, %v2086_v29  ;;  %12496 = vmatprep.subr.bf16.mxu0 %v12495_v60  ;;  %v1314_v60 = vadd.f32 %v1184_v37, %v1053_v30  ;;  %v1313_v31 = vadd.f32 %v1183_v21, %v1052_v45  ;;  %v3587_v29 = vld [vmem:[#allocation5 + $0x24e8] sm:$0xff]  ;;  %v1054_v21 = vmul.f32 %v13716_v15, %v15966_v33  ;;  %v3588_v0 = vld [vmem:[#allocation5 + $0x24f0] sm:$0xff] }
 0x550   :  { %12478 = vmatpush3.bf16.msra.mxu1 %v12477_v44  ;;  %366 = vrot.lane.b32.xlu0 %v16221_v32, %s13540_s28  ;;  %v3569_v44 = vld [vmem:[#allocation5 + $0x2458] sm:$0xff]  ;;  %v2346_v17 = vmax.f32 %v2216_v59, 0.0  ;;  %v12507_v2 = vpack.c.bf16 %v3587_v29, %v3586_v53  ;;  %v3571_v45 = vld [vmem:[#allocation5 + $0x2468] sm:$0xff]  ;;  %v12521_v59 = vpack.c.bf16 %v3593_v46, %v3592_v40 }
 0x551   :  { %12480 = vmatprep.subr.bf16.mxu1 %v12479_v5  ;;  %v2347_v42 = vmax.f32 %v2217_v41, 0.0  ;;  %v12517_v5 = vpack.c.bf16 %v3591_v48, %v3590_v11  ;;  %v12505_v41 = vpack.c.bf16 %v3569_v44, %v3568_v36  ;;  %v3594_v11 = vld [vmem:[#allocation5 + $0x2520] sm:$0xff]  ;;  %v3595_v33 = vld [vmem:[#allocation5 + $0x2528] sm:$0xff]  ;;  %v16269_v48 = vld [vmem:[%s17816_s1 + $0x2d8] sm:$0xff] }
 0x552   :  { %v742_v50 = vpop.permute.xlu1 %741  ;;  %12498 = vmatpush3.bf16.msra.mxu0 %v12497_v52  ;;  %v12519_v52 = vpack.c.bf16 %v3609_v62, %v3608_v39  ;;  %v3612_v39 = vld [vmem:[#allocation5 + $0x25b0] sm:$0xff]  ;;  %v3613_v62 = vld [vmem:[#allocation5 + $0x25b8] sm:$0xff]  ;;  %v3639_v53 = vld [vmem:[#allocation5 + $0x2688] sm:$0xff] }
 0x553   :  { %v891_v25 = vsel %vm841_vm1, %v16171_v7, %v742_v50  ;;  %7007 = vmatprep.mubr.f32.mxu1 %v2347_v42  ;;  %v744_v55 = vpop.permute.xlu0 %743  ;;  %12500 = vmatprep.subr.bf16.mxu0 %v12499_v14  ;;  %v498_v7 = vsel %vm450_vm0, %v16194_v6, %v16223_v27  ;;  %v3610_v14 = vld [vmem:[#allocation5 + $0x25a0] sm:$0xff]  ;;  %v148_v42 = vld [vmem:[%s17816_s1 + $0x2d0] sm:$0xff]  ;;  %v3573_v36 = vld [vmem:[#allocation5 + $0x2478] sm:$0xff]  ;;  %v12527_v29 = vpack.c.bf16 %v3613_v62, %v3612_v39 }
 0x554   :  { %v1444_v13 = vmul.f32 %v13735_v34, %v891_v25  ;;  %v890_v18 = vsel %vm841_vm1, %v742_v50, %v744_v55  ;;  %12482 = vmatpush3.bf16.msra.mxu1 %v12481_v3  ;;  %v3570_v6 = vld [vmem:[#allocation5 + $0x2460] sm:$0xff]  ;;  %v1185_v3 = vmul.f32 %v13718_v16, %v498_v7  ;;  %v12511_v25 = vpack.c.bf16 %v3589_v57, %v3588_v0  ;;  %v3601_v0 = vld [vmem:[#allocation5 + $0x2558] sm:$0xff]  ;;  %v3603_v62 = vld [vmem:[#allocation5 + $0x2568] sm:$0xff] }
 0x555   :  { %v1445_v43 = vmul.f32 %v13735_v34, %v890_v18  ;;  %12516 = vmatprep.subr.bf16.mxu1 %v12515_v23  ;;  %v12523_v23 = vpack.c.bf16 %v3611_v38, %v3610_v14  ;;  %v3638_v18 = vld [vmem:[#allocation5 + $0x2680] sm:$0xff]  ;;  %v3599_v38 = vld [vmem:[#allocation5 + $0x2548] sm:$0xff] }
 0x556   :  { %v16250_v30 = vadd.f32 %v1444_v13, %v1313_v31  ;;  %v16252_v37 = vpop.permute.xlu1 %1771  ;;  %12502 = vmatpush3.bf16.msra.mxu0 %v12501_v24  ;;  %v12509_v24 = vpack.c.bf16 %v3571_v45, %v3570_v6  ;;  %v1315_v44 = vadd.f32 %v1185_v3, %v1054_v21  ;;  %v12525_v13 = vpack.c.bf16 %v3595_v33, %v3594_v11  ;;  %v3614_v7 = vld [vmem:[#allocation5 + $0x25c0] sm:$0xff]  ;;  %v3617_v6 = vld [vmem:[#allocation5 + $0x25d8] sm:$0xff]  ;;  %v3600_v3 = vld [vmem:[#allocation5 + $0x2550] sm:$0xff] }
 0x557   :  { %v16254_v35 = vadd.f32 %v1445_v43, %v1314_v60  ;;  %7008 = vmatmul.mubr.f32.vlgmr.msra.gmra.mrb[34].mxu1 %v2346_v17  ;;  %12504 = vmatprep.subr.bf16.mxu0 %v12503_v54  ;;  %v3572_v54 = vld [vmem:[#allocation5 + $0x2470] sm:$0xff]  ;;  %v3615_v43 = vld [vmem:[#allocation5 + $0x25c8] sm:$0xff]  ;;  %v3598_v14 = vld [vmem:[#allocation5 + $0x2540] sm:$0xff] }
 0x558   :  { %1783 = vrot.lane.b32.xlu1 %v16250_v30, %s13540_s28  ;;  %12518 = vmatpush3.bf16.msra.mxu1 %v12517_v5  ;;  %v3596_v5 = vld [vmem:[#allocation5 + $0x2530] sm:$0xff]  ;;  %v12513_v17 = vpack.c.bf16 %v3573_v36, %v3572_v54  ;;  %v12533_v45 = vpack.c.bf16 %v3599_v38, %v3598_v14  ;;  %v3618_v57 = vld [vmem:[#allocation5 + $0x25e0] sm:$0xff]  ;;  %v3621_v54 = vld [vmem:[#allocation5 + $0x25f8] sm:$0xff] }
 0x559   :  { %1785 = vrot.lane.b32.xlu0 %v16254_v35, %s13540_s28  ;;  %12520 = vmatprep.subr.bf16.mxu1 %v12519_v52  ;;  %v12547_v52 = vpack.c.bf16 %v3639_v53, %v3638_v18  ;;  %v16292_v33 = vld [vmem:[%s17816_s1 + $0x2e0] sm:$0xff]  ;;  %v3605_v18 = vld [vmem:[#allocation5 + $0x2578] sm:$0xff]  ;;  %v3623_v38 = vld [vmem:[#allocation5 + $0x2608] sm:$0xff] }
 0x55a   :  { %v16271_v50 = vpop.permute.xlu1 %745  ;;  %12506 = vmatpush3.bf16.msra.mxu0 %v12505_v41  ;;  %v12531_v41 = vpack.c.bf16 %v3615_v43, %v3614_v7  ;;  %v3602_v39 = vld [vmem:[#allocation5 + $0x2560] sm:$0xff]  ;;  %v13454_v43 = vld [vmem:[%s17816_s1 + $0x290] sm:$0xff] }
 0x55b   :  { %v889_v60 = vsel %vm841_vm1, %v744_v55, %v16271_v50  ;;  %12508 = vmatprep.subr.bf16.mxu0 %v12507_v2  ;;  %v3597_v55 = vld [vmem:[#allocation5 + $0x2538] sm:$0xff]  ;;  %v3616_v2 = vld [vmem:[#allocation5 + $0x25d0] sm:$0xff]  ;;  %v3670_v53 = vld [vmem:[#allocation5 + $0x2780] sm:$0xff] }
 0x55c   :  { %368 = vrot.lane.b32.xlu1 %v148_v42, %s13540_s28  ;;  %v1446_v31 = vmul.f32 %v13735_v34, %v889_v60  ;;  %12522 = vmatpush3.bf16.msra.mxu1 %v12521_v59  ;;  %v12529_v46 = vpack.c.bf16 %v3597_v55, %v3596_v5  ;;  %v12535_v21 = vpack.c.bf16 %v3617_v6, %v3616_v2  ;;  %v3619_v59 = vld [vmem:[#allocation5 + $0x25e8] sm:$0xff] }
 0x55d   :  { %370 = vrot.lane.b32.xlu0 %v16269_v48, %s13540_s28  ;;  %12524 = vmatprep.subr.bf16.mxu1 %v12523_v23  ;;  %v12537_v23 = vpack.c.bf16 %v3601_v0, %v3600_v3  ;;  %v3641_v3 = vld [vmem:[#allocation5 + $0x2698] sm:$0xff] }
 0x55e   :  { %12510 = vmatpush3.bf16.msra.mxu0 %v12509_v24  ;;  %v16280_v40 = vadd.f32 %v1446_v31, %v1315_v44  ;;  %v12539_v24 = vpack.c.bf16 %v3619_v59, %v3618_v57 }
 0x55f   :  { %12512 = vmatprep.subr.bf16.mxu0 %v12511_v25  ;;  %v3620_v25 = vld [vmem:[#allocation5 + $0x25f0] sm:$0xff] }
 0x560   :  { %757 = vrot.lane.b32.xlu1 %v16188_v9, %s13541_s6  ;;  %12526 = vmatpush3.bf16.msra.mxu1 %v12525_v13  ;;  %v12543_v31 = vpack.c.bf16 %v3621_v54, %v3620_v25  ;;  %v3604_v13 = vld [vmem:[#allocation5 + $0x2570] sm:$0xff]  ;;  %v3642_v54 = vld [vmem:[#allocation5 + $0x26a0] sm:$0xff] }
 0x561   :  { %759 = vrot.lane.b32.xlu0 %v16221_v32, %s13541_s6  ;;  %12528 = vmatprep.subr.bf16.mxu1 %v12527_v29  ;;  %v3671_v29 = vld [vmem:[#allocation5 + $0x2788] sm:$0xff]  ;;  %v12545_v5 = vpack.c.bf16 %v3605_v18, %v3604_v13  ;;  %v3626_v13 = vld [vmem:[#allocation5 + $0x2620] sm:$0xff] }
 0x562   :  { %12514 = vmatpush3.bf16.msra.mxu0 %v12513_v17  ;;  %v12579_v55 = vpack.c.bf16 %v3671_v29, %v3670_v53  ;;  %v1941_v17 = vsel %vm450_vm0, %v16203_v63, %v16252_v37  ;;  %v3627_v18 = vld [vmem:[#allocation5 + $0x2628] sm:$0xff]  ;;  %v3644_v53 = vld [vmem:[#allocation5 + $0x26b0] sm:$0xff]  ;;  %v3645_v29 = vld [vmem:[#allocation5 + $0x26b8] sm:$0xff] }
 0x563   :  { %12548 = vmatprep.subr.bf16.mxu0 %v12547_v52  ;;  %v2087_v7 = vmax.f32 %v15999_v22, %v1941_v17  ;;  %v1055_v52 = vmul.f32 %v13454_v43, %v13716_v15  ;;  %v3622_v22 = vld [vmem:[#allocation5 + $0x2600] sm:$0xff]  ;;  %v3629_v17 = vld [vmem:[#allocation5 + $0x2638] sm:$0xff]  ;;  %v3647_v43 = vld [vmem:[#allocation5 + $0x26c8] sm:$0xff] }
 0x564   :  { %1787 = vrot.lane.b32.xlu1 %v16280_v40, %s13540_s28  ;;  %12530 = vmatpush3.bf16.msra.mxu1 %v12529_v46 }
 0x565   :  { %12532 = vmatprep.subr.bf16.mxu1 %v12531_v41 }
 0x568   :  { %761 = vrot.lane.b32.xlu1 %v148_v42, %s13541_s6  ;;  %12534 = vmatpush3.bf16.msra.mxu1 %v12533_v45  ;;  %v12541_v42 = vpack.c.bf16 %v3603_v62, %v3602_v39  ;;  %v3624_v62 = vld [vmem:[#allocation5 + $0x2610] sm:$0xff] }
 0x569   :  { %v10068_v11 = vpop.f32.mrb[28].mxu0  ;;  %12536 = vmatprep.subr.bf16.mxu1 %v12535_v21  ;;  %v3640_v21 = vld [vmem:[#allocation5 + $0x2690] sm:$0xff] }
 0x56a   :  { %v10069_v60 = vpop.f32.mrb[29].mxu0  ;;  %v12551_v39 = vpack.c.bf16 %v3641_v3, %v3640_v21 }
 0x56b   :  { %v10070_v36 = vadd.f32 %v10069_v60, %v10068_v11  ;;  %v3625_v60 = vld [vmem:[#allocation5 + $0x2618] sm:$0xff] }
 0x56c   :  { %372 = vrot.lane.b32.xlu1 %v16292_v33, %s13540_s28  ;;  %12538 = vmatpush3.bf16.msra.mxu1 %v12537_v23  ;;  %v12549_v23 = vpack.c.bf16 %v3623_v38, %v3622_v22  ;;  %v3631_v22 = vld [vmem:[#allocation5 + $0x2648] sm:$0xff]  ;;  %v3648_v38 = vld [vmem:[#allocation5 + $0x26d0] sm:$0xff] }
 0x56d   :  { %v6520_v44 = vadd.f32 %v10070_v36, %v16103_v4  ;;  %12540 = vmatprep.subr.bf16.mxu1 %v12539_v24  ;;  %v497_v4 = vsel %vm450_vm0, %v16223_v27, %v16228_v19  ;;  %v2218_v27 = vadd.f32 %v13963_v28, %v2087_v7  ;;  %v3643_v36 = vld [vmem:[#allocation5 + $0x26a8] sm:$0xff]  ;;  %v3646_v7 = vld [vmem:[#allocation5 + $0x26c0] sm:$0xff] }
 0x56e   :  { %v1186_v46 = vmul.f32 %v13718_v16, %v497_v4  ;;  %v16336_v4 = vld [vmem:[%s17816_s1 + $0x2e8] sm:$0xff] }
 0x56f   :  { %v2348_v11 = vmax.f32 %v2218_v27, 0.0  ;;  %v3630_v27 = vld [vmem:[#allocation5 + $0x2640] sm:$0xff] }
 0x570   :  { %12542 = vmatpush3.bf16.msra.mxu1 %v12541_v42  ;;  %v1316_v2 = vadd.f32 %v1186_v46, %v1055_v52  ;;  %v12565_v21 = vpack.c.bf16 %v3631_v22, %v3630_v27 }
 0x571   :  { %12544 = vmatprep.subr.bf16.mxu1 %v12543_v31  ;;  %v12555_v31 = vpack.c.bf16 %v3643_v36, %v3642_v54 }
 0x574   :  { %12546 = vmatpush3.bf16.msra.mxu1 %v12545_v5  ;;  %v12557_v5 = vpack.c.bf16 %v3627_v18, %v3626_v13  ;;  %v3702_v18 = vld [vmem:[#allocation5 + $0x2880] sm:$0xff] }
 0x575   :  { %12580 = vmatprep.subr.bf16.mxu1 %v12579_v55  ;;  %v12559_v55 = vpack.c.bf16 %v3645_v29, %v3644_v53  ;;  %v3703_v53 = vld [vmem:[#allocation5 + $0x2888] sm:$0xff] }
 0x585   :  { %v16311_v41 = vpop.permute.xlu0 %1773 }
 0x586   :  { %v1940_v63 = vsel %vm450_vm0, %v16252_v37, %v16311_v41 }
 0x587   :  { %v2088_v14 = vmax.f32 %v16025_v47, %v1940_v63 }
 0x589   :  { %v16319_v6 = vpop.permute.xlu0 %747  ;;  %v2219_v45 = vadd.f32 %v13963_v28, %v2088_v14  ;;  %v12563_v14 = vpack.c.bf16 %v3647_v43, %v3646_v7  ;;  %v12611_v43 = vpack.c.bf16 %v3703_v53, %v3702_v18 }
 0x58a   :  { %v10103_v0 = vpop.f32.mrb[28].mxu1  ;;  %v888_v57 = vsel %vm841_vm1, %v16271_v50, %v16319_v6  ;;  %v12553_v50 = vpack.c.bf16 %v3625_v60, %v3624_v62  ;;  %v3652_v62 = vld [vmem:[#allocation5 + $0x26f0] sm:$0xff]  ;;  %v3653_v60 = vld [vmem:[#allocation5 + $0x26f8] sm:$0xff] }
 0x58b   :  { %v1447_v37 = vmul.f32 %v13735_v34, %v888_v57  ;;  %v10104_v47 = vpop.f32.mrb[29].mxu1  ;;  %v2349_v59 = vmax.f32 %v2219_v45, 0.0  ;;  %v3633_v57 = vld [vmem:[#allocation5 + $0x2658] sm:$0xff] }
 0x58c   :  { %v10105_v24 = vadd.f32 %v10104_v47, %v10103_v0  ;;  %v3632_v0 = vld [vmem:[#allocation5 + $0x2650] sm:$0xff]  ;;  %v3651_v47 = vld [vmem:[#allocation5 + $0x26e8] sm:$0xff] }
 0x58d   :  { %v16327_v25 = vadd.f32 %v1447_v37, %v1316_v2  ;;  %7077 = vmatprep.mubr.f32.mxu0 %v2349_v59  ;;  %v3649_v2 = vld [vmem:[#allocation5 + $0x26d8] sm:$0xff]  ;;  %v3650_v37 = vld [vmem:[#allocation5 + $0x26e0] sm:$0xff]  ;;  %v357_v59 = vpop.permute.xlu1 %356  ;;  %v359_v7 = vpop.permute.xlu0 %358 }
 0x58e   :  { %v6590_v42 = vadd.f32 %v10105_v24, %v6520_v44  ;;  %7078 = vmatmul.mubr.f32.vlgmr.msra.gmra.mrb[36].mxu0 %v2348_v11  ;;  %v3628_v44 = vld [vmem:[#allocation5 + $0x2630] sm:$0xff]  ;;  %v12567_v3 = vpack.c.bf16 %v3649_v2, %v3648_v38  ;;  %v12571_v11 = vpack.c.bf16 %v3651_v47, %v3650_v37  ;;  %v3634_v24 = vld [vmem:[#allocation5 + $0x2660] sm:$0xff]  ;;  %v496_v13 = vsel %vm450_vm0, %v16228_v19, %v357_v59 }
 0x58f   :  { %1789 = vrot.lane.b32.xlu0 %v16327_v25, %s13540_s28  ;;  %12550 = vmatpush3.bf16.msra.mxu0 %v12549_v23  ;;  %v12561_v63 = vpack.c.bf16 %v3629_v17, %v3628_v44  ;;  %v12569_v23 = vpack.c.bf16 %v3633_v57, %v3632_v0  ;;  %v1187_v17 = vmul.f32 %v13718_v16, %v496_v13  ;;  %v3654_v47 = vld [vmem:[#allocation5 + $0x2700] sm:$0xff]  ;;  %v3657_v13 = vld [vmem:[#allocation5 + $0x2718] sm:$0xff] }
 0x590   :  { %12552 = vmatprep.subr.bf16.mxu0 %v12551_v39  ;;  %v3635_v39 = vld [vmem:[#allocation5 + $0x2668] sm:$0xff]  ;;  %v495_v0 = vsel %vm450_vm0, %v357_v59, %v359_v7 }
 0x591   :  { %v12573_v36 = vpack.c.bf16 %v3635_v39, %v3634_v24  ;;  %v3673_v24 = vld [vmem:[#allocation5 + $0x2798] sm:$0xff]  ;;  %v13456_v39 = vld [vmem:[%s17816_s1 + $0x2a0] sm:$0xff] }
 0x593   :  { %763 = vrot.lane.b32.xlu0 %v16269_v48, %s13541_s6  ;;  %12554 = vmatpush3.bf16.msra.mxu0 %v12553_v50  ;;  %v3636_v50 = vld [vmem:[#allocation5 + $0x2670] sm:$0xff] }
 0x594   :  { %12556 = vmatprep.subr.bf16.mxu0 %v12555_v31  ;;  %v3637_v31 = vld [vmem:[#allocation5 + $0x2678] sm:$0xff] }
 0x596   :  { %v10138_v52 = vpop.f32.mrb[30].mxu0 }
 0x597   :  { %v10139_v46 = vpop.f32.mrb[31].mxu0  ;;  %12558 = vmatpush3.bf16.msra.mxu0 %v12557_v5  ;;  %374 = vrot.lane.b32.xlu0 %v16336_v4, %s13540_s28  ;;  %v12577_v5 = vpack.c.bf16 %v3637_v31, %v3636_v50  ;;  %v3656_v31 = vld [vmem:[#allocation5 + $0x2710] sm:$0xff] }
 0x598   :  { %v10140_v48 = vadd.f32 %v10139_v46, %v10138_v52  ;;  %12560 = vmatprep.subr.bf16.mxu0 %v12559_v55  ;;  %v13455_v55 = vld [vmem:[%s17816_s1 + $0x298] sm:$0xff] }
 0x599   :  { %v1056_v44 = vmul.f32 %v13455_v55, %v13716_v15 }
 0x59a   :  { %v6660_v45 = vadd.f32 %v10140_v48, %v6590_v42  ;;  %v12575_v42 = vpack.c.bf16 %v3653_v60, %v3652_v62  ;;  %v1057_v62 = vmul.f32 %v13456_v39, %v13716_v15  ;;  %v1188_v60 = vmul.f32 %v13718_v16, %v495_v0 }
 0x59b   :  { %12562 = vmatpush3.bf16.msra.mxu0 %v12561_v63 }
 0x59c   :  { %12564 = vmatprep.subr.bf16.mxu0 %v12563_v14  ;;  %v1317_v14 = vadd.f32 %v1187_v17, %v1056_v44  ;;  %v3674_v17 = vld [vmem:[#allocation5 + $0x27a0] sm:$0xff] }
 0x59f   :  { %12566 = vmatpush3.bf16.msra.mxu0 %v12565_v21 }
 0x5a0   :  { %12568 = vmatprep.subr.bf16.mxu0 %v12567_v3 }
 0x5a2   :  { %v1776_v54 = vpop.permute.xlu1 %1775 }
 0x5a3   :  { %12570 = vmatpush3.bf16.msra.mxu0 %v12569_v23  ;;  %v1939_v19 = vsel %vm450_vm0, %v16311_v41, %v1776_v54  ;;  %v3655_v23 = vld [vmem:[#allocation5 + $0x2708] sm:$0xff] }
 0x5a4   :  { %12572 = vmatprep.subr.bf16.mxu0 %v12571_v11  ;;  %v2089_v38 = vmax.f32 %v16072_v51, %v1939_v19  ;;  %v3672_v11 = vld [vmem:[#allocation5 + $0x2790] sm:$0xff]  ;;  %v12581_v50 = vpack.c.bf16 %v3655_v23, %v3654_v47 }
 0x5a5   :  { %v12583_v53 = vpack.c.bf16 %v3673_v24, %v3672_v11  ;;  %v3661_v11 = vld [vmem:[#allocation5 + $0x2738] sm:$0xff] }
 0x5a6   :  { %v16343_v29 = vpop.permute.xlu1 %360  ;;  %v2220_v37 = vadd.f32 %v13963_v28, %v2089_v38  ;;  %v3658_v38 = vld [vmem:[#allocation5 + $0x2720] sm:$0xff] }
 0x5a7   :  { %12574 = vmatpush3.bf16.msra.mxu0 %v12573_v36  ;;  %v494_v51 = vsel %vm450_vm0, %v359_v7, %v16343_v29  ;;  %v3675_v7 = vld [vmem:[#allocation5 + $0x27a8] sm:$0xff] }
 0x5a8   :  { %12576 = vmatprep.subr.bf16.mxu0 %v12575_v42  ;;  %v1189_v36 = vmul.f32 %v13718_v16, %v494_v51  ;;  %v2350_v18 = vmax.f32 %v2220_v37, 0.0  ;;  %v3677_v37 = vld [vmem:[#allocation5 + $0x27b8] sm:$0xff] }
 0x5aa   :  { %v10173_v52 = vpop.f32.mrb[30].mxu1  ;;  %v750_v46 = vpop.permute.xlu1 %749 }
 0x5ab   :  { %v10174_v63 = vpop.f32.mrb[31].mxu1  ;;  %v887_v48 = vsel %vm841_vm1, %v16319_v6, %v750_v46  ;;  %12578 = vmatpush3.bf16.msra.mxu0 %v12577_v5 }
 0x5ac   :  { %v10175_v27 = vadd.f32 %v10174_v63, %v10173_v52  ;;  %v1448_v22 = vmul.f32 %v13735_v34, %v887_v48  ;;  %12612 = vmatprep.subr.bf16.mxu0 %v12611_v43  ;;  %v12585_v52 = vpack.c.bf16 %v3657_v13, %v3656_v31 }
 0x5ae   :  { %v16358_v2 = vadd.f32 %v10175_v27, %v6660_v45  ;;  %v16360_v21 = vadd.f32 %v1448_v22, %v1317_v14  ;;  %v1778_v41 = vpop.permute.xlu0 %1777  ;;  %v16376_v45 = vld [vmem:[%s17816_s1 + $0x2f0] sm:$0xff]  ;;  %v12587_v22 = vpack.c.bf16 %v3675_v7, %v3674_v17  ;;  %v3663_v17 = vld [vmem:[#allocation5 + $0x2748] sm:$0xff]  ;;  %v16443_v7 = vld [vmem:[%s17816_s1 + $0x300] sm:$0xff] }
 0x5af   :  { %v1938_v3 = vsel %vm450_vm0, %v1776_v54, %v1778_v41  ;;  %v1780_v6 = vpop.permute.xlu1 %1779  ;;  %v1058_v54 = vmul.f32 %v13716_v15, %v16081_v12  ;;  %v1318_v12 = vadd.f32 %v1188_v60, %v1057_v62  ;;  %v3678_v62 = vld [vmem:[#allocation5 + $0x27c0] sm:$0xff]  ;;  %v3679_v60 = vld [vmem:[#allocation5 + $0x27c8] sm:$0xff] }
 0x5b0   :  { %v2090_v57 = vmax.f32 %v16105_v10, %v1938_v3  ;;  %1791 = vrot.lane.b32.xlu1 %v16360_v21, %s13540_s28  ;;  %v1937_v5 = vsel %vm450_vm0, %v1778_v41, %v1780_v6  ;;  %v3659_v41 = vld [vmem:[#allocation5 + $0x2728] sm:$0xff] }
 0x5b1   :  { %v1319_v63 = vadd.f32 %v1189_v36, %v1058_v54  ;;  %v2091_v27 = vmax.f32 %v16147_v56, %v1937_v5  ;;  %v12589_v56 = vpack.c.bf16 %v3659_v41, %v3658_v38  ;;  %v3686_v54 = vld [vmem:[#allocation5 + $0x2800] sm:$0xff]  ;;  %v3687_v36 = vld [vmem:[#allocation5 + $0x2808] sm:$0xff] }
 0x5b2   :  { %v16378_v59 = vpop.permute.xlu0 %362  ;;  %v2221_v10 = vadd.f32 %v13963_v28, %v2090_v57  ;;  %v3676_v57 = vld [vmem:[#allocation5 + $0x27b0] sm:$0xff]  ;;  %v3707_v38 = vld [vmem:[#allocation5 + $0x28a8] sm:$0xff] }
 0x5b3   :  { %v754_v55 = vpop.permute.xlu1 %753  ;;  %v2222_v47 = vadd.f32 %v13963_v28, %v2091_v27  ;;  %v493_v23 = vsel %vm450_vm0, %v16343_v29, %v16378_v59 }
 0x5b4   :  { %376 = vrot.lane.b32.xlu1 %v16376_v45, %s13540_s28  ;;  %v2351_v42 = vmax.f32 %v2221_v10, 0.0  ;;  %v3660_v10 = vld [vmem:[#allocation5 + $0x2730] sm:$0xff] }
 0x5b5   :  { %v12593_v13 = vpack.c.bf16 %v3661_v11, %v3660_v10  ;;  %v2352_v5 = vmax.f32 %v2222_v47, 0.0  ;;  %v3682_v47 = vld [vmem:[#allocation5 + $0x27e0] sm:$0xff] }
 0x5b6   :  { %7147 = vmatprep.mubr.f32.mxu1 %v2351_v42  ;;  %v752_v44 = vpop.permute.xlu0 %751  ;;  %v1059_v42 = vmul.f32 %v13716_v15, %v16121_v1  ;;  %v3690_v11 = vld [vmem:[#allocation5 + $0x2820] sm:$0xff] }
 0x5b7   :  { %v885_v43 = vsel %vm841_vm1, %v752_v44, %v754_v55  ;;  %v886_v19 = vsel %vm841_vm1, %v750_v46, %v752_v44  ;;  %7148 = vmatmul.mubr.f32.vlgmr.msra.gmra.mrb[36].mxu1 %v2350_v18  ;;  %v3704_v18 = vld [vmem:[#allocation5 + $0x2890] sm:$0xff]  ;;  %v3662_v44 = vld [vmem:[#allocation5 + $0x2740] sm:$0xff] }
 0x5b8   :  { %v1449_v48 = vmul.f32 %v13735_v34, %v886_v19  ;;  %v1450_v14 = vmul.f32 %v13735_v34, %v885_v43  ;;  %12582 = vmatpush3.bf16.msra.mxu1 %v12581_v50  ;;  %765 = vrot.lane.b32.xlu1 %v16292_v33, %s13541_s6  ;;  %v1190_v50 = vmul.f32 %v13718_v16, %v493_v23  ;;  %v3681_v43 = vld [vmem:[#allocation5 + $0x27d8] sm:$0xff]  ;;  %v3683_v23 = vld [vmem:[#allocation5 + $0x27e8] sm:$0xff] }
 0x5b9   :  { %12584 = vmatprep.subr.bf16.mxu1 %v12583_v53  ;;  %v3705_v53 = vld [vmem:[#allocation5 + $0x2898] sm:$0xff]  ;;  %v12613_v19 = vpack.c.bf16 %v3687_v36, %v3686_v54  ;;  %v12597_v27 = vpack.c.bf16 %v3663_v17, %v3662_v44  ;;  %v12603_v54 = vpack.c.bf16 %v3683_v23, %v3682_v47  ;;  %v3666_v36 = vld [vmem:[#allocation5 + $0x2760] sm:$0xff]  ;;  %v3692_v44 = vld [vmem:[#allocation5 + $0x2830] sm:$0xff] }
 0x5ba   :  { %v16402_v3 = vadd.f32 %v1449_v48, %v1318_v12  ;;  %v16404_v46 = vadd.f32 %v1450_v14, %v1319_v63  ;;  %v16406_v0 = vpop.permute.xlu0 %1781  ;;  %v3680_v12 = vld [vmem:[#allocation5 + $0x27d0] sm:$0xff]  ;;  %v3689_v48 = vld [vmem:[#allocation5 + $0x2818] sm:$0xff]  ;;  %v1320_v14 = vadd.f32 %v1190_v50, %v1059_v42  ;;  %v3667_v42 = vld [vmem:[#allocation5 + $0x2768] sm:$0xff] }
 0x5bb   :  { %v1936_v51 = vsel %vm450_vm0, %v1780_v6, %v16406_v0  ;;  %v12591_v6 = vpack.c.bf16 %v3677_v37, %v3676_v57  ;;  %v3688_v63 = vld [vmem:[#allocation5 + $0x2810] sm:$0xff]  ;;  %v12599_v57 = vpack.c.bf16 %v3681_v43, %v3680_v12  ;;  %v3693_v17 = vld [vmem:[#allocation5 + $0x2838] sm:$0xff]  ;;  %v12605_v43 = vpack.c.bf16 %v3667_v42, %v3666_v36  ;;  %v3694_v23 = vld [vmem:[#allocation5 + $0x2840] sm:$0xff] }
 0x5bc   :  { %v2092_v33 = vmax.f32 %v16149_v61, %v1936_v51  ;;  %12586 = vmatpush3.bf16.msra.mxu1 %v12585_v52  ;;  %1793 = vrot.lane.b32.xlu0 %v16402_v3, %s13540_s28  ;;  %v16424_v61 = vld [vmem:[%s17816_s1 + $0x2f8] sm:$0xff]  ;;  %v12615_v52 = vpack.c.bf16 %v3705_v53, %v3704_v18  ;;  %v3664_v37 = vld [vmem:[#allocation5 + $0x2750] sm:$0xff]  ;;  %v3718_v42 = vld [vmem:[#allocation5 + $0x2900] sm:$0xff] }
 0x5bd   :  { %1795 = vrot.lane.b32.xlu1 %v16404_v46, %s13540_s28  ;;  %12588 = vmatprep.subr.bf16.mxu1 %v12587_v22  ;;  %v3706_v22 = vld [vmem:[#allocation5 + $0x28a0] sm:$0xff]  ;;  %v3665_v51 = vld [vmem:[#allocation5 + $0x2758] sm:$0xff] }
 0x5be   :  { %v16426_v24 = vpop.permute.xlu0 %755  ;;  %v2223_v39 = vadd.f32 %v13963_v28, %v2092_v33  ;;  %v365_v33 = vpop.permute.xlu1 %364  ;;  %v12619_v10 = vpack.c.bf16 %v3707_v38, %v3706_v22  ;;  %v3669_v22 = vld [vmem:[#allocation5 + $0x2778] sm:$0xff]  ;;  %v16476_v38 = vld [vmem:[%s17816_s1 + $0x308] sm:$0xff] }
 0x5bf   :  { %v884_v29 = vsel %vm841_vm1, %v754_v55, %v16426_v24  ;;  %v12595_v55 = vpack.c.bf16 %v3679_v60, %v3678_v62  ;;  %v12601_v62 = vpack.c.bf16 %v3665_v51, %v3664_v37  ;;  %v3708_v60 = vld [vmem:[#allocation5 + $0x28b0] sm:$0xff]  ;;  %v3734_v37 = vld [vmem:[#allocation5 + $0x2980] sm:$0xff]  ;;  %v3735_v51 = vld [vmem:[#allocation5 + $0x2988] sm:$0xff] }
 0x5c0   :  { %12590 = vmatpush3.bf16.msra.mxu1 %v12589_v56  ;;  %378 = vrot.lane.b32.xlu0 %v16424_v61, %s13540_s28  ;;  %v2353_v31 = vmax.f32 %v2223_v39, 0.0  ;;  %v1451_v1 = vmul.f32 %v13735_v34, %v884_v29  ;;  %v3691_v39 = vld [vmem:[#allocation5 + $0x2828] sm:$0xff]  ;;  %v3709_v29 = vld [vmem:[#allocation5 + $0x28b8] sm:$0xff]  ;;  %v12643_v36 = vpack.c.bf16 %v3735_v51, %v3734_v37  ;;  %v3720_v37 = vld [vmem:[#allocation5 + $0x2910] sm:$0xff] }
 0x5c1   :  { %769 = vrot.lane.b32.xlu1 %v16376_v45, %s13541_s6  ;;  %12592 = vmatprep.subr.bf16.mxu1 %v12591_v6  ;;  %v12617_v6 = vpack.c.bf16 %v3689_v48, %v3688_v63  ;;  %v12621_v18 = vpack.c.bf16 %v3691_v39, %v3690_v11  ;;  %v3721_v51 = vld [vmem:[#allocation5 + $0x2918] sm:$0xff] }
 0x5c2   :  { %7217 = vmatprep.mubr.f32.mxu0 %v2353_v31  ;;  %v16449_v41 = vpop.permute.xlu0 %366  ;;  %v16451_v56 = vadd.f32 %v1451_v1, %v1320_v14  ;;  %v3684_v31 = vld [vmem:[#allocation5 + $0x27f0] sm:$0xff] }
 0x5c3   :  { %7218 = vmatmul.mubr.f32.vlgmr.msra.gmra.mrb[38].mxu0 %v2352_v5  ;;  %v491_v1 = vsel %vm450_vm0, %v365_v33, %v16449_v41 }
 0x5c4   :  { %12594 = vmatpush3.bf16.msra.mxu1 %v12593_v13  ;;  %767 = vrot.lane.b32.xlu0 %v16336_v4, %s13541_s6  ;;  %v3685_v13 = vld [vmem:[#allocation5 + $0x27f8] sm:$0xff] }
 0x5c5   :  { %380 = vrot.lane.b32.xlu1 %v16443_v7, %s13540_s28  ;;  %12596 = vmatprep.subr.bf16.mxu1 %v12595_v55  ;;  %v12623_v55 = vpack.c.bf16 %v3709_v29, %v3708_v60  ;;  %v12607_v14 = vpack.c.bf16 %v3685_v13, %v3684_v31  ;;  %v3713_v60 = vld [vmem:[#allocation5 + $0x28d8] sm:$0xff] }
 0x5c6   :  { %12614 = vmatpush3.bf16.msra.mxu0 %v12613_v19  ;;  %v3711_v19 = vld [vmem:[#allocation5 + $0x28c8] sm:$0xff] }
 0x5c7   :  { %12616 = vmatprep.subr.bf16.mxu0 %v12615_v52  ;;  %v492_v52 = vsel %vm450_vm0, %v16378_v59, %v365_v33 }
 0x5c8   :  { %12598 = vmatpush3.bf16.msra.mxu1 %v12597_v27  ;;  %1797 = vrot.lane.b32.xlu0 %v16451_v56, %s13540_s28  ;;  %v3668_v27 = vld [vmem:[#allocation5 + $0x2770] sm:$0xff]  ;;  %v1191_v39 = vmul.f32 %v13718_v16, %v492_v52 }
 0x5c9   :  { %12600 = vmatprep.subr.bf16.mxu1 %v12599_v57  ;;  %v12625_v57 = vpack.c.bf16 %v3693_v17, %v3692_v44 }
 0x5ca   :  { %v1784_v50 = vpop.permute.xlu1 %1783  ;;  %12618 = vmatpush3.bf16.msra.mxu0 %v12617_v6  ;;  %v3695_v6 = vld [vmem:[#allocation5 + $0x2848] sm:$0xff] }
 0x5cb   :  { %v1935_v53 = vsel %vm450_vm0, %v16406_v0, %v1784_v50  ;;  %v16458_v5 = vpop.permute.xlu0 %1785  ;;  %12620 = vmatprep.subr.bf16.mxu0 %v12619_v10  ;;  %v3710_v0 = vld [vmem:[#allocation5 + $0x28c0] sm:$0xff]  ;;  %v13457_v10 = vld [vmem:[%s17816_s1 + $0x2b8] sm:$0xff]  ;;  %v12629_v13 = vpack.c.bf16 %v3695_v6, %v3694_v23  ;;  %v3739_v23 = vld [vmem:[#allocation5 + $0x29a8] sm:$0xff] }
 0x5cc   :  { %v1934_v12 = vsel %vm450_vm0, %v1784_v50, %v16458_v5  ;;  %12602 = vmatpush3.bf16.msra.mxu1 %v12601_v62  ;;  %771 = vrot.lane.b32.xlu0 %v16424_v61, %s13541_s6  ;;  %v2093_v63 = vmax.f32 %v16196_v8, %v1935_v53  ;;  %v1061_v8 = vmul.f32 %v13716_v15, %v16188_v9  ;;  %v3712_v62 = vld [vmem:[#allocation5 + $0x28d0] sm:$0xff]  ;;  %v3719_v50 = vld [vmem:[#allocation5 + $0x2908] sm:$0xff]  ;;  %v3737_v53 = vld [vmem:[#allocation5 + $0x2998] sm:$0xff] }
 0x5cd   :  { %v2094_v48 = vmax.f32 %v16250_v30, %v1934_v12  ;;  %12604 = vmatprep.subr.bf16.mxu1 %v12603_v54  ;;  %v1192_v30 = vmul.f32 %v13718_v16, %v491_v1  ;;  %v12627_v47 = vpack.c.bf16 %v3711_v19, %v3710_v0  ;;  %v1060_v11 = vmul.f32 %v13457_v10, %v13716_v15  ;;  %v3696_v12 = vld [vmem:[#allocation5 + $0x2850] sm:$0xff] }
 0x5ce   :  { %v16478_v61 = vpop.permute.xlu1 %368  ;;  %12622 = vmatpush3.bf16.msra.mxu0 %v12621_v18  ;;  %v12609_v9 = vpack.c.bf16 %v3669_v22, %v3668_v27  ;;  %v2224_v29 = vadd.f32 %v13963_v28, %v2093_v63  ;;  %v3736_v18 = vld [vmem:[#allocation5 + $0x2990] sm:$0xff]  ;;  %v12631_v1 = vpack.c.bf16 %v3713_v60, %v3712_v62  ;;  %v3714_v63 = vld [vmem:[#allocation5 + $0x28e0] sm:$0xff]  ;;  %v3717_v60 = vld [vmem:[#allocation5 + $0x28f8] sm:$0xff] }
 0x5cf   :  { %v16483_v59 = vpop.permute.xlu0 %370  ;;  %v2225_v33 = vadd.f32 %v13963_v28, %v2094_v48  ;;  %12624 = vmatprep.subr.bf16.mxu0 %v12623_v55  ;;  %v1322_v55 = vadd.f32 %v1192_v30, %v1061_v8  ;;  %v1321_v0 = vadd.f32 %v1191_v39, %v1060_v11  ;;  %v3715_v48 = vld [vmem:[#allocation5 + $0x28e8] sm:$0xff]  ;;  %v1062_v39 = vmul.f32 %v13716_v15, %v16221_v32  ;;  %v3716_v62 = vld [vmem:[#allocation5 + $0x28f0] sm:$0xff] }
 0x5d0   :  { %12606 = vmatpush3.bf16.msra.mxu1 %v12605_v43  ;;  %382 = vrot.lane.b32.xlu0 %v16476_v38, %s13540_s28  ;;  %v3697_v43 = vld [vmem:[#allocation5 + $0x2858] sm:$0xff]  ;;  %v2354_v27 = vmax.f32 %v2224_v29, 0.0  ;;  %v12635_v10 = vpack.c.bf16 %v3715_v48, %v3714_v63  ;;  %v3699_v11 = vld [vmem:[#allocation5 + $0x2868] sm:$0xff]  ;;  %v12649_v29 = vpack.c.bf16 %v3721_v51, %v3720_v37 }
 0x5d1   :  { %12608 = vmatprep.subr.bf16.mxu1 %v12607_v14  ;;  %v2355_v54 = vmax.f32 %v2225_v33, 0.0  ;;  %v12645_v14 = vpack.c.bf16 %v3719_v50, %v3718_v42  ;;  %v12633_v33 = vpack.c.bf16 %v3697_v43, %v3696_v12  ;;  %v3722_v42 = vld [vmem:[#allocation5 + $0x2920] sm:$0xff]  ;;  %v3723_v32 = vld [vmem:[#allocation5 + $0x2928] sm:$0xff]  ;;  %v16524_v50 = vld [vmem:[%s17816_s1 + $0x318] sm:$0xff] }
 0x5d2   :  { %v758_v31 = vpop.permute.xlu1 %757  ;;  %12626 = vmatpush3.bf16.msra.mxu0 %v12625_v57  ;;  %v12647_v57 = vpack.c.bf16 %v3737_v53, %v3736_v18  ;;  %v3740_v18 = vld [vmem:[#allocation5 + $0x29b0] sm:$0xff]  ;;  %v3741_v53 = vld [vmem:[#allocation5 + $0x29b8] sm:$0xff]  ;;  %v3767_v63 = vld [vmem:[#allocation5 + $0x2a88] sm:$0xff] }
 0x5d3   :  { %v883_v44 = vsel %vm841_vm1, %v16426_v24, %v758_v31  ;;  %7287 = vmatprep.mubr.f32.mxu1 %v2355_v54  ;;  %v760_v17 = vpop.permute.xlu0 %759  ;;  %12628 = vmatprep.subr.bf16.mxu0 %v12627_v47  ;;  %v490_v24 = vsel %vm450_vm0, %v16449_v41, %v16478_v61  ;;  %v3738_v47 = vld [vmem:[#allocation5 + $0x29a0] sm:$0xff]  ;;  %v156_v54 = vld [vmem:[%s17816_s1 + $0x310] sm:$0xff]  ;;  %v3701_v12 = vld [vmem:[#allocation5 + $0x2878] sm:$0xff]  ;;  %v12655_v48 = vpack.c.bf16 %v3741_v53, %v3740_v18 }
 0x5d4   :  { %v1452_v19 = vmul.f32 %v13735_v34, %v883_v44  ;;  %v882_v52 = vsel %vm841_vm1, %v758_v31, %v760_v17  ;;  %12610 = vmatpush3.bf16.msra.mxu1 %v12609_v9  ;;  %v3698_v41 = vld [vmem:[#allocation5 + $0x2860] sm:$0xff]  ;;  %v1193_v9 = vmul.f32 %v13718_v16, %v490_v24  ;;  %v12639_v44 = vpack.c.bf16 %v3717_v60, %v3716_v62  ;;  %v3728_v62 = vld [vmem:[#allocation5 + $0x2950] sm:$0xff]  ;;  %v3729_v60 = vld [vmem:[#allocation5 + $0x2958] sm:$0xff] }
 0x5d5   :  { %v1453_v22 = vmul.f32 %v13735_v34, %v882_v52  ;;  %12644 = vmatprep.subr.bf16.mxu1 %v12643_v36  ;;  %v12651_v36 = vpack.c.bf16 %v3739_v23, %v3738_v47  ;;  %v3766_v52 = vld [vmem:[#allocation5 + $0x2a80] sm:$0xff]  ;;  %v3727_v23 = vld [vmem:[#allocation5 + $0x2948] sm:$0xff] }
 0x5d6   :  { %v16505_v8 = vadd.f32 %v1452_v19, %v1321_v0  ;;  %v16507_v30 = vpop.permute.xlu1 %1787  ;;  %12630 = vmatpush3.bf16.msra.mxu0 %v12629_v13  ;;  %v12637_v13 = vpack.c.bf16 %v3699_v11, %v3698_v41  ;;  %v1323_v43 = vadd.f32 %v1193_v9, %v1062_v39  ;;  %v12653_v19 = vpack.c.bf16 %v3723_v32, %v3722_v42  ;;  %v3742_v24 = vld [vmem:[#allocation5 + $0x29c0] sm:$0xff]  ;;  %v3745_v41 = vld [vmem:[#allocation5 + $0x29d8] sm:$0xff]  ;;  %v3747_v42 = vld [vmem:[#allocation5 + $0x29e8] sm:$0xff] }
 0x5d7   :  { %v16509_v6 = vadd.f32 %v1453_v22, %v1322_v55  ;;  %7288 = vmatmul.mubr.f32.vlgmr.msra.gmra.mrb[38].mxu1 %v2354_v27  ;;  %12632 = vmatprep.subr.bf16.mxu0 %v12631_v1  ;;  %v3700_v1 = vld [vmem:[#allocation5 + $0x2870] sm:$0xff]  ;;  %v3743_v22 = vld [vmem:[#allocation5 + $0x29c8] sm:$0xff]  ;;  %v3726_v47 = vld [vmem:[#allocation5 + $0x2940] sm:$0xff] }
 0x5d8   :  { %1799 = vrot.lane.b32.xlu1 %v16505_v8, %s13540_s28  ;;  %12646 = vmatpush3.bf16.msra.mxu1 %v12645_v14  ;;  %v3724_v14 = vld [vmem:[#allocation5 + $0x2930] sm:$0xff]  ;;  %v12641_v27 = vpack.c.bf16 %v3701_v12, %v3700_v1  ;;  %v12661_v11 = vpack.c.bf16 %v3727_v23, %v3726_v47  ;;  %v16550_v53 = vld [vmem:[%s17816_s1 + $0x320] sm:$0xff]  ;;  %v3731_v1 = vld [vmem:[#allocation5 + $0x2968] sm:$0xff] }
 0x5d9   :  { %1801 = vrot.lane.b32.xlu0 %v16509_v6, %s13540_s28  ;;  %12648 = vmatprep.subr.bf16.mxu1 %v12647_v57  ;;  %v12675_v57 = vpack.c.bf16 %v3767_v63, %v3766_v52  ;;  %v3748_v12 = vld [vmem:[#allocation5 + $0x29f0] sm:$0xff]  ;;  %v3798_v52 = vld [vmem:[#allocation5 + $0x2b80] sm:$0xff]  ;;  %v3799_v63 = vld [vmem:[#allocation5 + $0x2b88] sm:$0xff] }
 0x5da   :  { %v16526_v31 = vpop.permute.xlu1 %761  ;;  %12634 = vmatpush3.bf16.msra.mxu0 %v12633_v33  ;;  %v12659_v33 = vpack.c.bf16 %v3743_v22, %v3742_v24  ;;  %v13458_v22 = vld [vmem:[%s17816_s1 + $0x2d0] sm:$0xff]  ;;  %v3751_v23 = vld [vmem:[#allocation5 + $0x2a08] sm:$0xff] }
 0x5db   :  { %v881_v55 = vsel %vm841_vm1, %v760_v17, %v16526_v31  ;;  %12636 = vmatprep.subr.bf16.mxu0 %v12635_v10  ;;  %v3725_v17 = vld [vmem:[#allocation5 + $0x2938] sm:$0xff]  ;;  %v3744_v10 = vld [vmem:[#allocation5 + $0x29d0] sm:$0xff] }
 0x5dc   :  { %384 = vrot.lane.b32.xlu1 %v156_v54, %s13540_s28  ;;  %v1454_v0 = vmul.f32 %v13735_v34, %v881_v55  ;;  %12650 = vmatpush3.bf16.msra.mxu1 %v12649_v29  ;;  %v12657_v51 = vpack.c.bf16 %v3725_v17, %v3724_v14  ;;  %v12663_v9 = vpack.c.bf16 %v3745_v41, %v3744_v10 }
 0x5dd   :  { %386 = vrot.lane.b32.xlu0 %v16524_v50, %s13540_s28  ;;  %12652 = vmatprep.subr.bf16.mxu1 %v12651_v36  ;;  %v3746_v36 = vld [vmem:[#allocation5 + $0x29e0] sm:$0xff]  ;;  %v12707_v14 = vpack.c.bf16 %v3799_v63, %v3798_v52  ;;  %v1933_v17 = vsel %vm450_vm0, %v16458_v5, %v16507_v30  ;;  %v3773_v52 = vld [vmem:[#allocation5 + $0x2ab8] sm:$0xff] }
 0x5de   :  { %12638 = vmatpush3.bf16.msra.mxu0 %v12637_v13  ;;  %v16535_v37 = vadd.f32 %v1454_v0, %v1323_v43  ;;  %v12665_v13 = vpack.c.bf16 %v3729_v60, %v3728_v62  ;;  %v12667_v55 = vpack.c.bf16 %v3747_v42, %v3746_v36  ;;  %v3749_v43 = vld [vmem:[#allocation5 + $0x29f8] sm:$0xff]  ;;  %v2095_v24 = vmax.f32 %v16254_v35, %v1933_v17  ;;  %v3750_v35 = vld [vmem:[#allocation5 + $0x2a00] sm:$0xff]  ;;  %v3752_v42 = vld [vmem:[#allocation5 + $0x2a10] sm:$0xff] }
 0x5df   :  { %12640 = vmatprep.subr.bf16.mxu0 %v12639_v44  ;;  %v3730_v44 = vld [vmem:[#allocation5 + $0x2960] sm:$0xff]  ;;  %v12671_v0 = vpack.c.bf16 %v3749_v43, %v3748_v12  ;;  %v3756_v17 = vld [vmem:[#allocation5 + $0x2a30] sm:$0xff] }
 0x5e0   :  { %773 = vrot.lane.b32.xlu1 %v16443_v7, %s13541_s6  ;;  %12654 = vmatpush3.bf16.msra.mxu1 %v12653_v19  ;;  %v3733_v19 = vld [vmem:[#allocation5 + $0x2978] sm:$0xff] }
 0x5e1   :  { %775 = vrot.lane.b32.xlu0 %v16476_v38, %s13541_s6  ;;  %12656 = vmatprep.subr.bf16.mxu1 %v12655_v48 }
 0x5e2   :  { %12642 = vmatpush3.bf16.msra.mxu0 %v12641_v27  ;;  %v489_v27 = vsel %vm450_vm0, %v16478_v61, %v16483_v59  ;;  %v2226_v61 = vadd.f32 %v13963_v28, %v2095_v24  ;;  %v16594_v24 = vld [vmem:[%s17816_s1 + $0x328] sm:$0xff] }
 0x5e3   :  { %12676 = vmatprep.subr.bf16.mxu0 %v12675_v57  ;;  %v1063_v57 = vmul.f32 %v13458_v22, %v13716_v15  ;;  %v3774_v22 = vld [vmem:[#allocation5 + $0x2ac0] sm:$0xff] }
 0x5e4   :  { %1803 = vrot.lane.b32.xlu1 %v16535_v37, %s13540_s28  ;;  %12658 = vmatpush3.bf16.msra.mxu1 %v12657_v51  ;;  %v1194_v51 = vmul.f32 %v13718_v16, %v489_v27  ;;  %v3757_v27 = vld [vmem:[#allocation5 + $0x2a38] sm:$0xff] }
 0x5e5   :  { %v10208_v39 = vpop.f32.mrb[32].mxu0  ;;  %12660 = vmatprep.subr.bf16.mxu1 %v12659_v33 }
 0x5e6   :  { %v10209_v29 = vpop.f32.mrb[33].mxu0  ;;  %v1324_v10 = vadd.f32 %v1194_v51, %v1063_v57  ;;  %v3775_v57 = vld [vmem:[#allocation5 + $0x2ac8] sm:$0xff]  ;;  %v12689_v51 = vpack.c.bf16 %v3757_v27, %v3756_v17  ;;  %v13459_v17 = vld [vmem:[%s17816_s1 + $0x2d8] sm:$0xff] }
 0x5e7   :  { %v10210_v32 = vadd.f32 %v10209_v29, %v10208_v39  ;;  %v3768_v39 = vld [vmem:[#allocation5 + $0x2a90] sm:$0xff]  ;;  %v2356_v29 = vmax.f32 %v2226_v61, 0.0  ;;  %v3777_v61 = vld [vmem:[#allocation5 + $0x2ad8] sm:$0xff]  ;;  %v1064_v27 = vmul.f32 %v13459_v17, %v13716_v15 }
 0x5e8   :  { %777 = vrot.lane.b32.xlu1 %v156_v54, %s13541_s6  ;;  %12662 = vmatpush3.bf16.msra.mxu1 %v12661_v11  ;;  %v12669_v54 = vpack.c.bf16 %v3731_v1, %v3730_v44  ;;  %v3771_v44 = vld [vmem:[#allocation5 + $0x2aa8] sm:$0xff] }
 0x5e9   :  { %v16545_v18 = vadd.f32 %v10210_v32, %v16358_v2  ;;  %12664 = vmatprep.subr.bf16.mxu1 %v12663_v9  ;;  %v3732_v2 = vld [vmem:[#allocation5 + $0x2970] sm:$0xff]  ;;  %v3769_v9 = vld [vmem:[#allocation5 + $0x2a98] sm:$0xff] }
 0x5ea   :  { %v12673_v48 = vpack.c.bf16 %v3733_v19, %v3732_v2  ;;  %v12679_v36 = vpack.c.bf16 %v3769_v9, %v3768_v39  ;;  %v3753_v32 = vld [vmem:[#allocation5 + $0x2a18] sm:$0xff]  ;;  %v3755_v2 = vld [vmem:[#allocation5 + $0x2a28] sm:$0xff]  ;;  %v3772_v19 = vld [vmem:[#allocation5 + $0x2ab0] sm:$0xff] }
 0x5eb   :  { %v3760_v9 = vld [vmem:[#allocation5 + $0x2a50] sm:$0xff] }
 0x5ec   :  { %388 = vrot.lane.b32.xlu1 %v16550_v53, %s13540_s28  ;;  %12666 = vmatpush3.bf16.msra.mxu1 %v12665_v13 }
 0x5ed   :  { %12668 = vmatprep.subr.bf16.mxu1 %v12667_v55  ;;  %v3770_v55 = vld [vmem:[#allocation5 + $0x2aa0] sm:$0xff] }
 0x5f0   :  { %12670 = vmatpush3.bf16.msra.mxu1 %v12669_v54  ;;  %v12683_v54 = vpack.c.bf16 %v3771_v44, %v3770_v55  ;;  %v3780_v55 = vld [vmem:[#allocation5 + $0x2af0] sm:$0xff]  ;;  %v3781_v44 = vld [vmem:[#allocation5 + $0x2af8] sm:$0xff] }
 0x5f1   :  { %12672 = vmatprep.subr.bf16.mxu1 %v12671_v0  ;;  %v3754_v0 = vld [vmem:[#allocation5 + $0x2a20] sm:$0xff] }
 0x5f4   :  { %12674 = vmatpush3.bf16.msra.mxu1 %v12673_v48  ;;  %v12685_v48 = vpack.c.bf16 %v3755_v2, %v3754_v0  ;;  %v3830_v0 = vld [vmem:[#allocation5 + $0x2c80] sm:$0xff]  ;;  %v3831_v2 = vld [vmem:[#allocation5 + $0x2c88] sm:$0xff] }
 0x5f5   :  { %12708 = vmatprep.subr.bf16.mxu1 %v12707_v14  ;;  %v12687_v14 = vpack.c.bf16 %v3773_v52, %v3772_v19 }
 0x601   :  { %v16568_v33 = vpop.permute.xlu0 %1789 }
 0x602   :  { %v1932_v5 = vsel %vm450_vm0, %v16507_v30, %v16568_v33 }
 0x603   :  { %v2096_v47 = vmax.f32 %v16280_v40, %v1932_v5  ;;  %v12677_v40 = vpack.c.bf16 %v3751_v23, %v3750_v35  ;;  %v3759_v5 = vld [vmem:[#allocation5 + $0x2a48] sm:$0xff] }
 0x605   :  { %v16576_v41 = vpop.permute.xlu0 %763  ;;  %v2227_v11 = vadd.f32 %v13963_v28, %v2096_v47  ;;  %v3776_v47 = vld [vmem:[#allocation5 + $0x2ad0] sm:$0xff] }
 0x606   :  { %v880_v62 = vsel %vm841_vm1, %v16526_v31, %v16576_v41  ;;  %v12681_v31 = vpack.c.bf16 %v3753_v32, %v3752_v42  ;;  %v12695_v39 = vpack.c.bf16 %v3777_v61, %v3776_v47  ;;  %v3762_v42 = vld [vmem:[#allocation5 + $0x2a60] sm:$0xff]  ;;  %v3763_v32 = vld [vmem:[#allocation5 + $0x2a68] sm:$0xff] }
 0x607   :  { %v1455_v30 = vmul.f32 %v13735_v34, %v880_v62  ;;  %v2357_v60 = vmax.f32 %v2227_v11, 0.0  ;;  %v3761_v62 = vld [vmem:[#allocation5 + $0x2a58] sm:$0xff] }
 0x609   :  { %v16584_v13 = vadd.f32 %v1455_v30, %v1324_v10  ;;  %7357 = vmatprep.mubr.f32.mxu0 %v2357_v60  ;;  %v3778_v30 = vld [vmem:[#allocation5 + $0x2ae0] sm:$0xff]  ;;  %v3779_v60 = vld [vmem:[#allocation5 + $0x2ae8] sm:$0xff] }
 0x60a   :  { %v10243_v1 = vpop.f32.mrb[32].mxu1  ;;  %7358 = vmatmul.mubr.f32.vlgmr.msra.gmra.mrb[40].mxu0 %v2356_v29  ;;  %v12697_v29 = vpack.c.bf16 %v3761_v62, %v3760_v9 }
 0x60b   :  { %v10244_v12 = vpop.f32.mrb[33].mxu1  ;;  %1805 = vrot.lane.b32.xlu0 %v16584_v13, %s13540_s28  ;;  %12678 = vmatpush3.bf16.msra.mxu0 %v12677_v40 }
 0x60c   :  { %v10245_v43 = vadd.f32 %v10244_v12, %v10243_v1  ;;  %12680 = vmatprep.subr.bf16.mxu0 %v12679_v36  ;;  %v12699_v36 = vpack.c.bf16 %v3779_v60, %v3778_v30  ;;  %v373_v1 = vpop.permute.xlu1 %372  ;;  %v12701_v12 = vpack.c.bf16 %v3763_v32, %v3762_v42  ;;  %v16634_v60 = vld [vmem:[%s17816_s1 + $0x330] sm:$0xff]  ;;  %v3801_v32 = vld [vmem:[#allocation5 + $0x2b98] sm:$0xff] }
 0x60d   :  { %v3800_v42 = vld [vmem:[#allocation5 + $0x2b90] sm:$0xff] }
 0x60e   :  { %v6870_v63 = vadd.f32 %v10245_v43, %v16545_v18  ;;  %v3758_v18 = vld [vmem:[#allocation5 + $0x2a40] sm:$0xff]  ;;  %v3764_v43 = vld [vmem:[#allocation5 + $0x2a70] sm:$0xff] }
 0x60f   :  { %779 = vrot.lane.b32.xlu0 %v16524_v50, %s13541_s6  ;;  %12682 = vmatpush3.bf16.msra.mxu0 %v12681_v31  ;;  %v12691_v50 = vpack.c.bf16 %v3775_v57, %v3774_v22  ;;  %v12693_v10 = vpack.c.bf16 %v3759_v5, %v3758_v18  ;;  %v12703_v31 = vpack.c.bf16 %v3781_v44, %v3780_v55  ;;  %v375_v57 = vpop.permute.xlu0 %374  ;;  %v13460_v55 = vld [vmem:[%s17816_s1 + $0x2e0] sm:$0xff] }
 0x610   :  { %12684 = vmatprep.subr.bf16.mxu0 %v12683_v54  ;;  %v3765_v54 = vld [vmem:[#allocation5 + $0x2a78] sm:$0xff]  ;;  %v487_v9 = vsel %vm450_vm0, %v373_v1, %v375_v57  ;;  %v1065_v44 = vmul.f32 %v13460_v55, %v13716_v15 }
 0x611   :  { %v12705_v52 = vpack.c.bf16 %v3765_v54, %v3764_v43 }
 0x613   :  { %12686 = vmatpush3.bf16.msra.mxu0 %v12685_v48  ;;  %390 = vrot.lane.b32.xlu0 %v16594_v24, %s13540_s28  ;;  %v488_v48 = vsel %vm450_vm0, %v16483_v59, %v373_v1  ;;  %v1196_v1 = vmul.f32 %v13718_v16, %v487_v9 }
 0x614   :  { %12688 = vmatprep.subr.bf16.mxu0 %v12687_v14  ;;  %v1195_v22 = vmul.f32 %v13718_v16, %v488_v48 }
 0x616   :  { %v10278_v35 = vpop.f32.mrb[34].mxu0  ;;  %v1325_v47 = vadd.f32 %v1195_v22, %v1064_v27  ;;  %v3802_v27 = vld [vmem:[#allocation5 + $0x2ba0] sm:$0xff]  ;;  %v3803_v22 = vld [vmem:[#allocation5 + $0x2ba8] sm:$0xff] }
 0x617   :  { %v10279_v23 = vpop.f32.mrb[35].mxu0  ;;  %12690 = vmatpush3.bf16.msra.mxu0 %v12689_v51 }
 0x618   :  { %v10280_v11 = vadd.f32 %v10279_v23, %v10278_v35  ;;  %12692 = vmatprep.subr.bf16.mxu0 %v12691_v50 }
 0x61a   :  { %v6940_v40 = vadd.f32 %v10280_v11, %v6870_v63  ;;  %v12739_v63 = vpack.c.bf16 %v3831_v2, %v3830_v0  ;;  %v3784_v0 = vld [vmem:[#allocation5 + $0x2b10] sm:$0xff]  ;;  %v3785_v2 = vld [vmem:[#allocation5 + $0x2b18] sm:$0xff] }
 0x61b   :  { %12694 = vmatpush3.bf16.msra.mxu0 %v12693_v10 }
 0x61c   :  { %12696 = vmatprep.subr.bf16.mxu0 %v12695_v39 }
 0x61f   :  { %12698 = vmatpush3.bf16.msra.mxu0 %v12697_v29  ;;  %v3783_v29 = vld [vmem:[#allocation5 + $0x2b08] sm:$0xff] }
 0x620   :  { %12700 = vmatprep.subr.bf16.mxu0 %v12699_v36 }
 0x622   :  { %v1792_v19 = vpop.permute.xlu1 %1791 }
 0x623   :  { %12702 = vmatpush3.bf16.msra.mxu0 %v12701_v12  ;;  %v1931_v51 = vsel %vm450_vm0, %v16568_v33, %v1792_v19  ;;  %v1066_v12 = vmul.f32 %v13716_v15, %v16336_v4  ;;  %v1326_v4 = vadd.f32 %v1196_v1, %v1065_v44  ;;  %v3806_v44 = vld [vmem:[#allocation5 + $0x2bc0] sm:$0xff]  ;;  %v3807_v1 = vld [vmem:[#allocation5 + $0x2bc8] sm:$0xff] }
 0x624   :  { %12704 = vmatprep.subr.bf16.mxu0 %v12703_v31  ;;  %v2097_v23 = vmax.f32 %v16327_v25, %v1931_v51 }
 0x626   :  { %v16601_v14 = vpop.permute.xlu1 %376  ;;  %v2228_v30 = vadd.f32 %v13963_v28, %v2097_v23  ;;  %v3786_v23 = vld [vmem:[#allocation5 + $0x2b20] sm:$0xff] }
 0x627   :  { %12706 = vmatpush3.bf16.msra.mxu0 %v12705_v52  ;;  %v486_v25 = vsel %vm450_vm0, %v375_v57, %v16601_v14  ;;  %v12711_v52 = vpack.c.bf16 %v3801_v32, %v3800_v42  ;;  %v3789_v42 = vld [vmem:[#allocation5 + $0x2b38] sm:$0xff] }
 0x628   :  { %12740 = vmatprep.subr.bf16.mxu0 %v12739_v63  ;;  %v1197_v31 = vmul.f32 %v13718_v16, %v486_v25 }
 0x62a   :  { %v10313_v50 = vpop.f32.mrb[34].mxu1  ;;  %v766_v18 = vpop.permute.xlu1 %765 }
 0x62b   :  { %v10314_v59 = vpop.f32.mrb[35].mxu1  ;;  %v879_v5 = vsel %vm841_vm1, %v16576_v41, %v766_v18 }
 0x62c   :  { %v10315_v61 = vadd.f32 %v10314_v59, %v10313_v50  ;;  %v1456_v35 = vmul.f32 %v13735_v34, %v879_v5  ;;  %v12713_v50 = vpack.c.bf16 %v3785_v2, %v3784_v0  ;;  %v1327_v59 = vadd.f32 %v1197_v31, %v1066_v12  ;;  %v3814_v12 = vld [vmem:[#allocation5 + $0x2c00] sm:$0xff]  ;;  %v3815_v31 = vld [vmem:[#allocation5 + $0x2c08] sm:$0xff] }
 0x62e   :  { %v16616_v10 = vadd.f32 %v10315_v61, %v6940_v40  ;;  %v16618_v11 = vadd.f32 %v1456_v35, %v1325_v47  ;;  %v1794_v39 = vpop.permute.xlu0 %1793  ;;  %v3782_v40 = vld [vmem:[#allocation5 + $0x2b00] sm:$0xff]  ;;  %v12715_v35 = vpack.c.bf16 %v3803_v22, %v3802_v27  ;;  %v3791_v27 = vld [vmem:[#allocation5 + $0x2b48] sm:$0xff] }
 0x62f   :  { %v1930_v33 = vsel %vm450_vm0, %v1792_v19, %v1794_v39  ;;  %v1796_v62 = vpop.permute.xlu1 %1795  ;;  %v12709_v54 = vpack.c.bf16 %v3783_v29, %v3782_v40  ;;  %v2358_v19 = vmax.f32 %v2228_v30, 0.0  ;;  %v3805_v30 = vld [vmem:[#allocation5 + $0x2bb8] sm:$0xff]  ;;  %v16701_v22 = vld [vmem:[%s17816_s1 + $0x340] sm:$0xff] }
 0x630   :  { %v2098_v41 = vmax.f32 %v16360_v21, %v1930_v33  ;;  %1807 = vrot.lane.b32.xlu1 %v16618_v11, %s13540_s28  ;;  %v1929_v63 = vsel %vm450_vm0, %v1794_v39, %v1796_v62  ;;  %v3787_v39 = vld [vmem:[#allocation5 + $0x2b28] sm:$0xff] }
 0x631   :  { %v2099_v61 = vmax.f32 %v16402_v3, %v1929_v63  ;;  %v12717_v3 = vpack.c.bf16 %v3787_v39, %v3786_v23  ;;  %v3835_v23 = vld [vmem:[#allocation5 + $0x2ca8] sm:$0xff] }
 0x632   :  { %v16636_v36 = vpop.permute.xlu0 %378  ;;  %v2229_v21 = vadd.f32 %v13963_v28, %v2098_v41  ;;  %v3804_v41 = vld [vmem:[#allocation5 + $0x2bb0] sm:$0xff] }
 0x633   :  { %v770_v48 = vpop.permute.xlu1 %769  ;;  %v2230_v40 = vadd.f32 %v13963_v28, %v2099_v61  ;;  %v485_v29 = vsel %vm450_vm0, %v16601_v14, %v16636_v36 }
 0x634   :  { %392 = vrot.lane.b32.xlu1 %v16634_v60, %s13540_s28  ;;  %v2359_v43 = vmax.f32 %v2229_v21, 0.0  ;;  %v3788_v21 = vld [vmem:[#allocation5 + $0x2b30] sm:$0xff] }
 0x635   :  { %v12721_v2 = vpack.c.bf16 %v3789_v42, %v3788_v21  ;;  %v2360_v63 = vmax.f32 %v2230_v40, 0.0  ;;  %v3810_v40 = vld [vmem:[#allocation5 + $0x2be0] sm:$0xff] }
 0x636   :  { %7427 = vmatprep.mubr.f32.mxu1 %v2359_v43  ;;  %v768_v17 = vpop.permute.xlu0 %767  ;;  %v1067_v43 = vmul.f32 %v13716_v15, %v16376_v45  ;;  %v3818_v42 = vld [vmem:[#allocation5 + $0x2c20] sm:$0xff] }
 0x637   :  { %v877_v57 = vsel %vm841_vm1, %v768_v17, %v770_v48  ;;  %v878_v51 = vsel %vm841_vm1, %v766_v18, %v768_v17  ;;  %7428 = vmatmul.mubr.f32.vlgmr.msra.gmra.mrb[40].mxu1 %v2358_v19  ;;  %v3832_v19 = vld [vmem:[#allocation5 + $0x2c90] sm:$0xff]  ;;  %v3790_v17 = vld [vmem:[#allocation5 + $0x2b40] sm:$0xff] }
 0x638   :  { %v1457_v5 = vmul.f32 %v13735_v34, %v878_v51  ;;  %v1458_v47 = vmul.f32 %v13735_v34, %v877_v57  ;;  %12710 = vmatpush3.bf16.msra.mxu1 %v12709_v54  ;;  %781 = vrot.lane.b32.xlu1 %v16550_v53, %s13541_s6  ;;  %v1198_v54 = vmul.f32 %v13718_v16, %v485_v29  ;;  %v3809_v57 = vld [vmem:[#allocation5 + $0x2bd8] sm:$0xff]  ;;  %v3811_v29 = vld [vmem:[#allocation5 + $0x2be8] sm:$0xff] }
 0x639   :  { %12712 = vmatprep.subr.bf16.mxu1 %v12711_v52  ;;  %v3833_v52 = vld [vmem:[#allocation5 + $0x2c98] sm:$0xff]  ;;  %v12741_v51 = vpack.c.bf16 %v3815_v31, %v3814_v12  ;;  %v12725_v61 = vpack.c.bf16 %v3791_v27, %v3790_v17  ;;  %v12731_v12 = vpack.c.bf16 %v3811_v29, %v3810_v40  ;;  %v3794_v31 = vld [vmem:[#allocation5 + $0x2b60] sm:$0xff]  ;;  %v3820_v17 = vld [vmem:[#allocation5 + $0x2c30] sm:$0xff] }
 0x63a   :  { %v16660_v33 = vadd.f32 %v1457_v5, %v1326_v4  ;;  %v16662_v18 = vadd.f32 %v1458_v47, %v1327_v59  ;;  %v16664_v9 = vpop.permute.xlu0 %1797  ;;  %v3808_v4 = vld [vmem:[#allocation5 + $0x2bd0] sm:$0xff]  ;;  %v3817_v5 = vld [vmem:[#allocation5 + $0x2c18] sm:$0xff]  ;;  %v1328_v47 = vadd.f32 %v1198_v54, %v1067_v43  ;;  %v3795_v43 = vld [vmem:[#allocation5 + $0x2b68] sm:$0xff] }
 0x63b   :  { %v1928_v25 = vsel %vm450_vm0, %v1796_v62, %v16664_v9  ;;  %v12719_v62 = vpack.c.bf16 %v3805_v30, %v3804_v41  ;;  %v3816_v59 = vld [vmem:[#allocation5 + $0x2c10] sm:$0xff]  ;;  %v12727_v41 = vpack.c.bf16 %v3809_v57, %v3808_v4  ;;  %v3821_v27 = vld [vmem:[#allocation5 + $0x2c38] sm:$0xff]  ;;  %v12733_v57 = vpack.c.bf16 %v3795_v43, %v3794_v31  ;;  %v3822_v29 = vld [vmem:[#allocation5 + $0x2c40] sm:$0xff] }
 0x63c   :  { %v2100_v53 = vmax.f32 %v16404_v46, %v1928_v25  ;;  %12714 = vmatpush3.bf16.msra.mxu1 %v12713_v50  ;;  %1809 = vrot.lane.b32.xlu0 %v16660_v33, %s13540_s28  ;;  %v16682_v46 = vld [vmem:[%s17816_s1 + $0x338] sm:$0xff]  ;;  %v12743_v50 = vpack.c.bf16 %v3833_v52, %v3832_v19  ;;  %v3792_v30 = vld [vmem:[#allocation5 + $0x2b50] sm:$0xff]  ;;  %v3846_v43 = vld [vmem:[#allocation5 + $0x2d00] sm:$0xff] }
 0x63d   :  { %1811 = vrot.lane.b32.xlu1 %v16662_v18, %s13540_s28  ;;  %12716 = vmatprep.subr.bf16.mxu1 %v12715_v35  ;;  %v3834_v35 = vld [vmem:[#allocation5 + $0x2ca0] sm:$0xff]  ;;  %v3793_v25 = vld [vmem:[#allocation5 + $0x2b58] sm:$0xff] }
 0x63e   :  { %v16684_v32 = vpop.permute.xlu0 %771  ;;  %v2231_v55 = vadd.f32 %v13963_v28, %v2100_v53  ;;  %v381_v53 = vpop.permute.xlu1 %380  ;;  %v12747_v21 = vpack.c.bf16 %v3835_v23, %v3834_v35  ;;  %v3797_v35 = vld [vmem:[#allocation5 + $0x2b78] sm:$0xff]  ;;  %v16734_v23 = vld [vmem:[%s17816_s1 + $0x348] sm:$0xff] }
 0x63f   :  { %v876_v14 = vsel %vm841_vm1, %v770_v48, %v16684_v32  ;;  %v12723_v48 = vpack.c.bf16 %v3807_v1, %v3806_v44  ;;  %v12729_v44 = vpack.c.bf16 %v3793_v25, %v3792_v30  ;;  %v3836_v1 = vld [vmem:[#allocation5 + $0x2cb0] sm:$0xff]  ;;  %v3862_v30 = vld [vmem:[#allocation5 + $0x2d80] sm:$0xff]  ;;  %v3863_v25 = vld [vmem:[#allocation5 + $0x2d88] sm:$0xff] }
 0x640   :  { %12718 = vmatpush3.bf16.msra.mxu1 %v12717_v3  ;;  %394 = vrot.lane.b32.xlu0 %v16682_v46, %s13540_s28  ;;  %v2361_v0 = vmax.f32 %v2231_v55, 0.0  ;;  %v1459_v45 = vmul.f32 %v13735_v34, %v876_v14  ;;  %v3819_v55 = vld [vmem:[#allocation5 + $0x2c28] sm:$0xff]  ;;  %v3837_v14 = vld [vmem:[#allocation5 + $0x2cb8] sm:$0xff]  ;;  %v12771_v31 = vpack.c.bf16 %v3863_v25, %v3862_v30  ;;  %v3848_v30 = vld [vmem:[#allocation5 + $0x2d10] sm:$0xff] }
 0x641   :  { %785 = vrot.lane.b32.xlu1 %v16634_v60, %s13541_s6  ;;  %12720 = vmatprep.subr.bf16.mxu1 %v12719_v62  ;;  %v12745_v62 = vpack.c.bf16 %v3817_v5, %v3816_v59  ;;  %v12749_v19 = vpack.c.bf16 %v3819_v55, %v3818_v42  ;;  %v3849_v25 = vld [vmem:[#allocation5 + $0x2d18] sm:$0xff] }
 0x642   :  { %7497 = vmatprep.mubr.f32.mxu0 %v2361_v0  ;;  %v16707_v39 = vpop.permute.xlu0 %382  ;;  %v16709_v3 = vadd.f32 %v1459_v45, %v1328_v47  ;;  %v3812_v0 = vld [vmem:[#allocation5 + $0x2bf0] sm:$0xff] }
 0x643   :  { %7498 = vmatmul.mubr.f32.vlgmr.msra.gmra.mrb[42].mxu0 %v2360_v63  ;;  %v483_v45 = vsel %vm450_vm0, %v381_v53, %v16707_v39 }
 0x644   :  { %12722 = vmatpush3.bf16.msra.mxu1 %v12721_v2  ;;  %783 = vrot.lane.b32.xlu0 %v16594_v24, %s13541_s6  ;;  %v3813_v2 = vld [vmem:[#allocation5 + $0x2bf8] sm:$0xff] }
 0x645   :  { %396 = vrot.lane.b32.xlu1 %v16701_v22, %s13540_s28  ;;  %12724 = vmatprep.subr.bf16.mxu1 %v12723_v48  ;;  %v12751_v48 = vpack.c.bf16 %v3837_v14, %v3836_v1  ;;  %v12735_v47 = vpack.c.bf16 %v3813_v2, %v3812_v0  ;;  %v3841_v1 = vld [vmem:[#allocation5 + $0x2cd8] sm:$0xff] }
 0x646   :  { %12742 = vmatpush3.bf16.msra.mxu0 %v12741_v51  ;;  %v3839_v51 = vld [vmem:[#allocation5 + $0x2cc8] sm:$0xff] }
 0x647   :  { %12744 = vmatprep.subr.bf16.mxu0 %v12743_v50  ;;  %v484_v50 = vsel %vm450_vm0, %v16636_v36, %v381_v53 }
 0x648   :  { %12726 = vmatpush3.bf16.msra.mxu1 %v12725_v61  ;;  %1813 = vrot.lane.b32.xlu0 %v16709_v3, %s13540_s28  ;;  %v3796_v61 = vld [vmem:[#allocation5 + $0x2b70] sm:$0xff]  ;;  %v1199_v55 = vmul.f32 %v13718_v16, %v484_v50 }
 0x649   :  { %12728 = vmatprep.subr.bf16.mxu1 %v12727_v41  ;;  %v12753_v41 = vpack.c.bf16 %v3821_v27, %v3820_v17 }
 0x64a   :  { %v1800_v54 = vpop.permute.xlu1 %1799  ;;  %12746 = vmatpush3.bf16.msra.mxu0 %v12745_v62  ;;  %v3823_v62 = vld [vmem:[#allocation5 + $0x2c48] sm:$0xff] }
 0x64b   :  { %v1927_v52 = vsel %vm450_vm0, %v16664_v9, %v1800_v54  ;;  %v16716_v63 = vpop.permute.xlu0 %1801  ;;  %12748 = vmatprep.subr.bf16.mxu0 %v12747_v21  ;;  %v3838_v9 = vld [vmem:[#allocation5 + $0x2cc0] sm:$0xff]  ;;  %v13461_v21 = vld [vmem:[%s17816_s1 + $0x2f8] sm:$0xff]  ;;  %v12757_v2 = vpack.c.bf16 %v3823_v62, %v3822_v29  ;;  %v3867_v29 = vld [vmem:[#allocation5 + $0x2da8] sm:$0xff] }
 0x64c   :  { %v1926_v4 = vsel %vm450_vm0, %v1800_v54, %v16716_v63  ;;  %12730 = vmatpush3.bf16.msra.mxu1 %v12729_v44  ;;  %787 = vrot.lane.b32.xlu0 %v16682_v46, %s13541_s6  ;;  %v2101_v59 = vmax.f32 %v16451_v56, %v1927_v52  ;;  %v1069_v56 = vmul.f32 %v13716_v15, %v16443_v7  ;;  %v3840_v44 = vld [vmem:[#allocation5 + $0x2cd0] sm:$0xff]  ;;  %v3847_v54 = vld [vmem:[#allocation5 + $0x2d08] sm:$0xff]  ;;  %v3865_v52 = vld [vmem:[#allocation5 + $0x2d98] sm:$0xff] }
 0x64d   :  { %v2102_v5 = vmax.f32 %v16505_v8, %v1926_v4  ;;  %12732 = vmatprep.subr.bf16.mxu1 %v12731_v12  ;;  %v1200_v8 = vmul.f32 %v13718_v16, %v483_v45  ;;  %v12755_v40 = vpack.c.bf16 %v3839_v51, %v3838_v9  ;;  %v1068_v42 = vmul.f32 %v13461_v21, %v13716_v15  ;;  %v3824_v4 = vld [vmem:[#allocation5 + $0x2c50] sm:$0xff] }
 0x64e   :  { %v16736_v46 = vpop.permute.xlu1 %384  ;;  %12750 = vmatpush3.bf16.msra.mxu0 %v12749_v19  ;;  %v12737_v7 = vpack.c.bf16 %v3797_v35, %v3796_v61  ;;  %v2232_v14 = vadd.f32 %v13963_v28, %v2101_v59  ;;  %v3864_v19 = vld [vmem:[#allocation5 + $0x2d90] sm:$0xff]  ;;  %v12759_v45 = vpack.c.bf16 %v3841_v1, %v3840_v44  ;;  %v3842_v59 = vld [vmem:[#allocation5 + $0x2ce0] sm:$0xff]  ;;  %v3845_v1 = vld [vmem:[#allocation5 + $0x2cf8] sm:$0xff] }
 0x64f   :  { %v16741_v36 = vpop.permute.xlu0 %386  ;;  %v2233_v53 = vadd.f32 %v13963_v28, %v2102_v5  ;;  %12752 = vmatprep.subr.bf16.mxu0 %v12751_v48  ;;  %v1330_v48 = vadd.f32 %v1200_v8, %v1069_v56  ;;  %v1329_v9 = vadd.f32 %v1199_v55, %v1068_v42  ;;  %v3843_v5 = vld [vmem:[#allocation5 + $0x2ce8] sm:$0xff]  ;;  %v1070_v55 = vmul.f32 %v13716_v15, %v16476_v38  ;;  %v3844_v44 = vld [vmem:[#allocation5 + $0x2cf0] sm:$0xff] }
 0x650   :  { %12734 = vmatpush3.bf16.msra.mxu1 %v12733_v57  ;;  %398 = vrot.lane.b32.xlu0 %v16734_v23, %s13540_s28  ;;  %v3825_v57 = vld [vmem:[#allocation5 + $0x2c58] sm:$0xff]  ;;  %v2362_v61 = vmax.f32 %v2232_v14, 0.0  ;;  %v12763_v21 = vpack.c.bf16 %v3843_v5, %v3842_v59  ;;  %v3827_v42 = vld [vmem:[#allocation5 + $0x2c68] sm:$0xff]  ;;  %v12777_v14 = vpack.c.bf16 %v3849_v25, %v3848_v30 }
 0x651   :  { %12736 = vmatprep.subr.bf16.mxu1 %v12735_v47  ;;  %v2363_v12 = vmax.f32 %v2233_v53, 0.0  ;;  %v12773_v47 = vpack.c.bf16 %v3847_v54, %v3846_v43  ;;  %v12761_v53 = vpack.c.bf16 %v3825_v57, %v3824_v4  ;;  %v3850_v43 = vld [vmem:[#allocation5 + $0x2d20] sm:$0xff]  ;;  %v3851_v38 = vld [vmem:[#allocation5 + $0x2d28] sm:$0xff]  ;;  %v16782_v54 = vld [vmem:[%s17816_s1 + $0x358] sm:$0xff] }
 0x652   :  { %v774_v0 = vpop.permute.xlu1 %773  ;;  %12754 = vmatpush3.bf16.msra.mxu0 %v12753_v41  ;;  %v12775_v41 = vpack.c.bf16 %v3865_v52, %v3864_v19  ;;  %v3868_v19 = vld [vmem:[#allocation5 + $0x2db0] sm:$0xff]  ;;  %v3869_v52 = vld [vmem:[#allocation5 + $0x2db8] sm:$0xff]  ;;  %v3895_v59 = vld [vmem:[#allocation5 + $0x2e88] sm:$0xff] }
 0x653   :  { %v875_v17 = vsel %vm841_vm1, %v16684_v32, %v774_v0  ;;  %7567 = vmatprep.mubr.f32.mxu1 %v2363_v12  ;;  %v776_v27 = vpop.permute.xlu0 %775  ;;  %12756 = vmatprep.subr.bf16.mxu0 %v12755_v40  ;;  %v482_v32 = vsel %vm450_vm0, %v16707_v39, %v16736_v46  ;;  %v3866_v40 = vld [vmem:[#allocation5 + $0x2da0] sm:$0xff]  ;;  %v164_v12 = vld [vmem:[%s17816_s1 + $0x350] sm:$0xff]  ;;  %v3829_v4 = vld [vmem:[#allocation5 + $0x2c78] sm:$0xff]  ;;  %v12783_v5 = vpack.c.bf16 %v3869_v52, %v3868_v19 }
 0x654   :  { %v1460_v51 = vmul.f32 %v13735_v34, %v875_v17  ;;  %v874_v50 = vsel %vm841_vm1, %v774_v0, %v776_v27  ;;  %12738 = vmatpush3.bf16.msra.mxu1 %v12737_v7  ;;  %v3826_v39 = vld [vmem:[#allocation5 + $0x2c60] sm:$0xff]  ;;  %v1201_v7 = vmul.f32 %v13718_v16, %v482_v32  ;;  %v12767_v17 = vpack.c.bf16 %v3845_v1, %v3844_v44 }
 0x655   :  { %v1461_v35 = vmul.f32 %v13735_v34, %v874_v50  ;;  %12772 = vmatprep.subr.bf16.mxu1 %v12771_v31  ;;  %v12779_v31 = vpack.c.bf16 %v3867_v29, %v3866_v40  ;;  %v3894_v50 = vld [vmem:[#allocation5 + $0x2e80] sm:$0xff] }
 0x656   :  { %v16763_v56 = vadd.f32 %v1460_v51, %v1329_v9  ;;  %v16765_v8 = vpop.permute.xlu1 %1803  ;;  %12758 = vmatpush3.bf16.msra.mxu0 %v12757_v2  ;;  %v12765_v2 = vpack.c.bf16 %v3827_v42, %v3826_v39  ;;  %v1331_v57 = vadd.f32 %v1201_v7, %v1070_v55  ;;  %v12781_v51 = vpack.c.bf16 %v3851_v38, %v3850_v43  ;;  %v3870_v32 = vld [vmem:[#allocation5 + $0x2dc0] sm:$0xff]  ;;  %v3872_v42 = vld [vmem:[#allocation5 + $0x2dd0] sm:$0xff]  ;;  %v3873_v55 = vld [vmem:[#allocation5 + $0x2dd8] sm:$0xff] }
 0x657   :  { %v16767_v62 = vadd.f32 %v1461_v35, %v1330_v48  ;;  %7568 = vmatmul.mubr.f32.vlgmr.msra.gmra.mrb[42].mxu1 %v2362_v61  ;;  %12760 = vmatprep.subr.bf16.mxu0 %v12759_v45  ;;  %v3828_v45 = vld [vmem:[#allocation5 + $0x2c70] sm:$0xff]  ;;  %v3871_v35 = vld [vmem:[#allocation5 + $0x2dc8] sm:$0xff]  ;;  %v3854_v29 = vld [vmem:[#allocation5 + $0x2d40] sm:$0xff] }
 0x658   :  { %1815 = vrot.lane.b32.xlu1 %v16763_v56, %s13540_s28  ;;  %12774 = vmatpush3.bf16.msra.mxu1 %v12773_v47  ;;  %v3852_v47 = vld [vmem:[#allocation5 + $0x2d30] sm:$0xff]  ;;  %v12769_v61 = vpack.c.bf16 %v3829_v4, %v3828_v45  ;;  %v12787_v40 = vpack.c.bf16 %v3871_v35, %v3870_v32  ;;  %v3857_v43 = vld [vmem:[#allocation5 + $0x2d58] sm:$0xff]  ;;  %v3874_v38 = vld [vmem:[#allocation5 + $0x2de0] sm:$0xff] }
 0x659   :  { %1817 = vrot.lane.b32.xlu0 %v16767_v62, %s13540_s28  ;;  %12776 = vmatprep.subr.bf16.mxu1 %v12775_v41  ;;  %v12803_v41 = vpack.c.bf16 %v3895_v59, %v3894_v50  ;;  %v16808_v52 = vld [vmem:[%s17816_s1 + $0x360] sm:$0xff]  ;;  %v3876_v45 = vld [vmem:[#allocation5 + $0x2df0] sm:$0xff]  ;;  %v3877_v4 = vld [vmem:[#allocation5 + $0x2df8] sm:$0xff] }
 0x65a   :  { %v16784_v0 = vpop.permute.xlu1 %777  ;;  %12762 = vmatpush3.bf16.msra.mxu0 %v12761_v53  ;;  %v3926_v50 = vld [vmem:[#allocation5 + $0x2f80] sm:$0xff]  ;;  %v3927_v59 = vld [vmem:[#allocation5 + $0x2f88] sm:$0xff]  ;;  %v13462_v35 = vld [vmem:[%s17816_s1 + $0x310] sm:$0xff] }
 0x65b   :  { %v873_v48 = vsel %vm841_vm1, %v776_v27, %v16784_v0  ;;  %12764 = vmatprep.subr.bf16.mxu0 %v12763_v21  ;;  %v3853_v27 = vld [vmem:[#allocation5 + $0x2d38] sm:$0xff]  ;;  %v3855_v21 = vld [vmem:[#allocation5 + $0x2d48] sm:$0xff] }
 0x65c   :  { %400 = vrot.lane.b32.xlu1 %v164_v12, %s13540_s28  ;;  %v1462_v9 = vmul.f32 %v13735_v34, %v873_v48  ;;  %12778 = vmatpush3.bf16.msra.mxu1 %v12777_v14  ;;  %v12785_v25 = vpack.c.bf16 %v3853_v27, %v3852_v47  ;;  %v12789_v44 = vpack.c.bf16 %v3855_v21, %v3854_v29  ;;  %v3879_v29 = vld [vmem:[#allocation5 + $0x2e08] sm:$0xff] }
 0x65d   :  { %402 = vrot.lane.b32.xlu0 %v16782_v54, %s13540_s28  ;;  %12780 = vmatprep.subr.bf16.mxu1 %v12779_v31  ;;  %v12791_v14 = vpack.c.bf16 %v3873_v55, %v3872_v42  ;;  %v3856_v31 = vld [vmem:[#allocation5 + $0x2d50] sm:$0xff]  ;;  %v12835_v47 = vpack.c.bf16 %v3927_v59, %v3926_v50  ;;  %v1925_v27 = vsel %vm450_vm0, %v16716_v63, %v16765_v8 }
 0x65e   :  { %12766 = vmatpush3.bf16.msra.mxu0 %v12765_v2  ;;  %v16793_v30 = vadd.f32 %v1462_v9, %v1331_v57  ;;  %v3875_v2 = vld [vmem:[#allocation5 + $0x2de8] sm:$0xff]  ;;  %v12793_v19 = vpack.c.bf16 %v3857_v43, %v3856_v31  ;;  %v3860_v9 = vld [vmem:[#allocation5 + $0x2d70] sm:$0xff]  ;;  %v2103_v32 = vmax.f32 %v16509_v6, %v1925_v27  ;;  %v3878_v6 = vld [vmem:[#allocation5 + $0x2e00] sm:$0xff] }
 0x65f   :  { %12768 = vmatprep.subr.bf16.mxu0 %v12767_v17  ;;  %v12795_v48 = vpack.c.bf16 %v3875_v2, %v3874_v38  ;;  %v3858_v17 = vld [vmem:[#allocation5 + $0x2d60] sm:$0xff]  ;;  %v3896_v55 = vld [vmem:[#allocation5 + $0x2e90] sm:$0xff]  ;;  %v3881_v2 = vld [vmem:[#allocation5 + $0x2e18] sm:$0xff] }
 0x660   :  { %789 = vrot.lane.b32.xlu1 %v16701_v22, %s13541_s6  ;;  %12782 = vmatpush3.bf16.msra.mxu1 %v12781_v51  ;;  %v3861_v51 = vld [vmem:[#allocation5 + $0x2d78] sm:$0xff]  ;;  %v3880_v38 = vld [vmem:[#allocation5 + $0x2e10] sm:$0xff] }
 0x661   :  { %791 = vrot.lane.b32.xlu0 %v16734_v23, %s13541_s6  ;;  %v10348_v53 = vpop.f32.mrb[36].mxu0  ;;  %12784 = vmatprep.subr.bf16.mxu1 %v12783_v5  ;;  %v12801_v5 = vpack.c.bf16 %v3861_v51, %v3860_v9  ;;  %v3885_v27 = vld [vmem:[#allocation5 + $0x2e38] sm:$0xff] }
 0x662   :  { %v10349_v39 = vpop.f32.mrb[37].mxu0  ;;  %12770 = vmatpush3.bf16.msra.mxu0 %v12769_v61  ;;  %v481_v61 = vsel %vm450_vm0, %v16736_v46, %v16741_v36  ;;  %v2234_v46 = vadd.f32 %v13963_v28, %v2103_v32  ;;  %v3902_v32 = vld [vmem:[#allocation5 + $0x2ec0] sm:$0xff] }
 0x663   :  { %v10350_v7 = vadd.f32 %v10349_v39, %v10348_v53  ;;  %12804 = vmatprep.subr.bf16.mxu0 %v12803_v41  ;;  %v1071_v41 = vmul.f32 %v13462_v35, %v13716_v15  ;;  %v3903_v35 = vld [vmem:[#allocation5 + $0x2ec8] sm:$0xff] }
 0x664   :  { %1819 = vrot.lane.b32.xlu1 %v16793_v30, %s13540_s28  ;;  %12786 = vmatpush3.bf16.msra.mxu1 %v12785_v25  ;;  %v1202_v25 = vmul.f32 %v13718_v16, %v481_v61  ;;  %v2364_v31 = vmax.f32 %v2234_v46, 0.0  ;;  %v16851_v61 = vld [vmem:[%s17816_s1 + $0x368] sm:$0xff]  ;;  %v3904_v46 = vld [vmem:[#allocation5 + $0x2ed0] sm:$0xff] }
 0x665   :  { %v16802_v1 = vadd.f32 %v10350_v7, %v16616_v10  ;;  %12788 = vmatprep.subr.bf16.mxu1 %v12787_v40  ;;  %v3859_v10 = vld [vmem:[#allocation5 + $0x2d68] sm:$0xff]  ;;  %v3897_v7 = vld [vmem:[#allocation5 + $0x2e98] sm:$0xff] }
 0x666   :  { %v12797_v57 = vpack.c.bf16 %v3859_v10, %v3858_v17  ;;  %v1332_v21 = vadd.f32 %v1202_v25, %v1071_v41  ;;  %v12807_v43 = vpack.c.bf16 %v3897_v7, %v3896_v55  ;;  %v3899_v17 = vld [vmem:[#allocation5 + $0x2ea8] sm:$0xff]  ;;  %v12809_v10 = vpack.c.bf16 %v3881_v2, %v3880_v38  ;;  %v3889_v55 = vld [vmem:[#allocation5 + $0x2e58] sm:$0xff]  ;;  %v3906_v7 = vld [vmem:[#allocation5 + $0x2ee0] sm:$0xff] }
 0x667   :  { %v3891_v38 = vld [vmem:[#allocation5 + $0x2e68] sm:$0xff]  ;;  %v3908_v2 = vld [vmem:[#allocation5 + $0x2ef0] sm:$0xff] }
 0x668   :  { %793 = vrot.lane.b32.xlu1 %v164_v12, %s13541_s6  ;;  %12790 = vmatpush3.bf16.msra.mxu1 %v12789_v44  ;;  %v12799_v12 = vpack.c.bf16 %v3877_v4, %v3876_v45  ;;  %v3882_v45 = vld [vmem:[#allocation5 + $0x2e20] sm:$0xff]  ;;  %v3883_v4 = vld [vmem:[#allocation5 + $0x2e28] sm:$0xff] }
 0x669   :  { %12792 = vmatprep.subr.bf16.mxu1 %v12791_v14  ;;  %v12813_v50 = vpack.c.bf16 %v3883_v4, %v3882_v45  ;;  %v3892_v45 = vld [vmem:[#allocation5 + $0x2e70] sm:$0xff]  ;;  %v3893_v4 = vld [vmem:[#allocation5 + $0x2e78] sm:$0xff] }
 0x66c   :  { %404 = vrot.lane.b32.xlu1 %v16808_v52, %s13540_s28  ;;  %12794 = vmatpush3.bf16.msra.mxu1 %v12793_v19 }
 0x66d   :  { %12796 = vmatprep.subr.bf16.mxu1 %v12795_v48  ;;  %v3898_v48 = vld [vmem:[#allocation5 + $0x2ea0] sm:$0xff] }
 0x670   :  { %12798 = vmatpush3.bf16.msra.mxu1 %v12797_v57  ;;  %v3900_v57 = vld [vmem:[#allocation5 + $0x2eb0] sm:$0xff] }
 0x671   :  { %12800 = vmatprep.subr.bf16.mxu1 %v12799_v12  ;;  %v3901_v12 = vld [vmem:[#allocation5 + $0x2eb8] sm:$0xff] }
 0x674   :  { %12802 = vmatpush3.bf16.msra.mxu1 %v12801_v5  ;;  %v12815_v5 = vpack.c.bf16 %v3901_v12, %v3900_v57  ;;  %v3958_v57 = vld [vmem:[#allocation5 + $0x3080] sm:$0xff]  ;;  %v3959_v12 = vld [vmem:[#allocation5 + $0x3088] sm:$0xff] }
 0x675   :  { %12836 = vmatprep.subr.bf16.mxu1 %v12835_v47  ;;  %v3884_v47 = vld [vmem:[#allocation5 + $0x2e30] sm:$0xff] }
 0x676   :  { %v12817_v25 = vpack.c.bf16 %v3885_v27, %v3884_v47  ;;  %v13463_v27 = vld [vmem:[%s17816_s1 + $0x318] sm:$0xff] }
 0x67d   :  { %v16826_v53 = vpop.permute.xlu0 %1805 }
 0x67e   :  { %v1924_v63 = vsel %vm450_vm0, %v16765_v8, %v16826_v53 }
 0x67f   :  { %v2104_v40 = vmax.f32 %v16535_v37, %v1924_v63  ;;  %v12805_v37 = vpack.c.bf16 %v3879_v29, %v3878_v6  ;;  %v3886_v63 = vld [vmem:[#allocation5 + $0x2e40] sm:$0xff]  ;;  %v3905_v6 = vld [vmem:[#allocation5 + $0x2ed8] sm:$0xff] }
 0x681   :  { %v16834_v39 = vpop.permute.xlu0 %779  ;;  %v2235_v42 = vadd.f32 %v13963_v28, %v2104_v40  ;;  %v3887_v40 = vld [vmem:[#allocation5 + $0x2e48] sm:$0xff] }
 0x682   :  { %v872_v44 = vsel %vm841_vm1, %v16784_v0, %v16834_v39  ;;  %v12811_v0 = vpack.c.bf16 %v3899_v17, %v3898_v48  ;;  %v12821_v29 = vpack.c.bf16 %v3887_v40, %v3886_v63  ;;  %v3909_v48 = vld [vmem:[#allocation5 + $0x2ef8] sm:$0xff] }
 0x683   :  { %v1463_v8 = vmul.f32 %v13735_v34, %v872_v44  ;;  %v2365_v14 = vmax.f32 %v2235_v42, 0.0  ;;  %v3888_v42 = vld [vmem:[#allocation5 + $0x2e50] sm:$0xff]  ;;  %v3907_v44 = vld [vmem:[#allocation5 + $0x2ee8] sm:$0xff] }
 0x685   :  { %v16842_v19 = vadd.f32 %v1463_v8, %v1332_v21  ;;  %7637 = vmatprep.mubr.f32.mxu0 %v2365_v14  ;;  %v12823_v21 = vpack.c.bf16 %v3905_v6, %v3904_v46  ;;  %v12825_v14 = vpack.c.bf16 %v3889_v55, %v3888_v42 }
 0x686   :  { %7638 = vmatmul.mubr.f32.vlgmr.msra.gmra.mrb[44].mxu0 %v2364_v31  ;;  %v12827_v31 = vpack.c.bf16 %v3907_v44, %v3906_v7 }
 0x687   :  { %1821 = vrot.lane.b32.xlu0 %v16842_v19, %s13540_s28  ;;  %12806 = vmatpush3.bf16.msra.mxu0 %v12805_v37 }
 0x688   :  { %12808 = vmatprep.subr.bf16.mxu0 %v12807_v43  ;;  %v3890_v43 = vld [vmem:[#allocation5 + $0x2e60] sm:$0xff] }
 0x68a   :  { %v10383_v9 = vpop.f32.mrb[36].mxu1 }
 0x68b   :  { %v10384_v51 = vpop.f32.mrb[37].mxu1  ;;  %795 = vrot.lane.b32.xlu0 %v16782_v54, %s13541_s6  ;;  %12810 = vmatpush3.bf16.msra.mxu0 %v12809_v10  ;;  %v12819_v54 = vpack.c.bf16 %v3903_v35, %v3902_v32  ;;  %v12829_v10 = vpack.c.bf16 %v3891_v38, %v3890_v43  ;;  %v1072_v32 = vmul.f32 %v13463_v27, %v13716_v15  ;;  %v3928_v38 = vld [vmem:[#allocation5 + $0x2f90] sm:$0xff] }
 0x68c   :  { %v10385_v59 = vadd.f32 %v10384_v51, %v10383_v9  ;;  %12812 = vmatprep.subr.bf16.mxu0 %v12811_v0  ;;  %v12831_v0 = vpack.c.bf16 %v3909_v48, %v3908_v2  ;;  %v389_v9 = vpop.permute.xlu1 %388  ;;  %v12833_v51 = vpack.c.bf16 %v3893_v4, %v3892_v45  ;;  %v3929_v2 = vld [vmem:[#allocation5 + $0x2f98] sm:$0xff]  ;;  %v13464_v48 = vld [vmem:[%s17816_s1 + $0x320] sm:$0xff] }
 0x68e   :  { %v7150_v41 = vadd.f32 %v10385_v59, %v16802_v1 }
 0x68f   :  { %12814 = vmatpush3.bf16.msra.mxu0 %v12813_v50  ;;  %406 = vrot.lane.b32.xlu0 %v16851_v61, %s13540_s28  ;;  %v12867_v50 = vpack.c.bf16 %v3959_v12, %v3958_v57  ;;  %v3912_v12 = vld [vmem:[#allocation5 + $0x2f10] sm:$0xff] }
 0x690   :  { %12816 = vmatprep.subr.bf16.mxu0 %v12815_v5  ;;  %v480_v5 = vsel %vm450_vm0, %v16741_v36, %v389_v9 }
 0x691   :  { %v1203_v35 = vmul.f32 %v13718_v16, %v480_v5 }
 0x693   :  { %12818 = vmatpush3.bf16.msra.mxu0 %v12817_v25  ;;  %v1333_v46 = vadd.f32 %v1203_v35, %v1072_v32  ;;  %v3930_v32 = vld [vmem:[#allocation5 + $0x2fa0] sm:$0xff]  ;;  %v3931_v35 = vld [vmem:[#allocation5 + $0x2fa8] sm:$0xff] }
 0x694   :  { %12820 = vmatprep.subr.bf16.mxu0 %v12819_v54 }
 0x696   :  { %v10418_v1 = vpop.f32.mrb[38].mxu0 }
 0x697   :  { %v10419_v8 = vpop.f32.mrb[39].mxu0  ;;  %12822 = vmatpush3.bf16.msra.mxu0 %v12821_v29 }
 0x698   :  { %v10420_v37 = vadd.f32 %v10419_v8, %v10418_v1  ;;  %12824 = vmatprep.subr.bf16.mxu0 %v12823_v21 }
 0x69a   :  { %v7220_v17 = vadd.f32 %v10420_v37, %v7150_v41  ;;  %v391_v41 = vpop.permute.xlu0 %390  ;;  %v3910_v37 = vld [vmem:[#allocation5 + $0x2f00] sm:$0xff] }
 0x69b   :  { %12826 = vmatpush3.bf16.msra.mxu0 %v12825_v14  ;;  %v479_v44 = vsel %vm450_vm0, %v389_v9, %v391_v41  ;;  %v16892_v14 = vld [vmem:[%s17816_s1 + $0x370] sm:$0xff]  ;;  %v3913_v9 = vld [vmem:[#allocation5 + $0x2f18] sm:$0xff] }
 0x69c   :  { %12828 = vmatprep.subr.bf16.mxu0 %v12827_v31  ;;  %v3911_v31 = vld [vmem:[#allocation5 + $0x2f08] sm:$0xff] }
 0x69d   :  { %v12837_v57 = vpack.c.bf16 %v3911_v31, %v3910_v37 }
 0x69f   :  { %12830 = vmatpush3.bf16.msra.mxu0 %v12829_v10  ;;  %v1204_v10 = vmul.f32 %v13718_v16, %v479_v44 }
 0x6a0   :  { %12832 = vmatprep.subr.bf16.mxu0 %v12831_v0  ;;  %v1074_v0 = vmul.f32 %v13716_v15, %v16594_v24 }
 0x6a2   :  { %v1808_v59 = vpop.permute.xlu1 %1807 }
 0x6a3   :  { %12834 = vmatpush3.bf16.msra.mxu0 %v12833_v51  ;;  %v1923_v25 = vsel %vm450_vm0, %v16826_v53, %v1808_v59 }
 0x6a4   :  { %12868 = vmatprep.subr.bf16.mxu0 %v12867_v50  ;;  %v2105_v21 = vmax.f32 %v16584_v13, %v1923_v25  ;;  %v12839_v50 = vpack.c.bf16 %v3929_v2, %v3928_v38  ;;  %v3917_v38 = vld [vmem:[#allocation5 + $0x2f38] sm:$0xff] }
 0x6a6   :  { %v16859_v47 = vpop.permute.xlu1 %392  ;;  %v2236_v8 = vadd.f32 %v13963_v28, %v2105_v21  ;;  %v3914_v21 = vld [vmem:[#allocation5 + $0x2f20] sm:$0xff] }
 0x6a7   :  { %v478_v13 = vsel %vm450_vm0, %v391_v41, %v16859_v47 }
 0x6a8   :  { %v1205_v45 = vmul.f32 %v13718_v16, %v478_v13  ;;  %v2366_v51 = vmax.f32 %v2236_v8, 0.0  ;;  %v3933_v8 = vld [vmem:[#allocation5 + $0x2fb8] sm:$0xff] }
 0x6aa   :  { %v10453_v54 = vpop.f32.mrb[38].mxu1  ;;  %v782_v63 = vpop.permute.xlu1 %781 }
 0x6ab   :  { %v10454_v40 = vpop.f32.mrb[39].mxu1  ;;  %v871_v36 = vsel %vm841_vm1, %v16834_v39, %v782_v63 }
 0x6ac   :  { %v10455_v6 = vadd.f32 %v10454_v40, %v10453_v54  ;;  %v1464_v29 = vmul.f32 %v13735_v34, %v871_v36  ;;  %v12841_v54 = vpack.c.bf16 %v3913_v9, %v3912_v12  ;;  %v1335_v40 = vadd.f32 %v1205_v45, %v1074_v0  ;;  %v3942_v0 = vld [vmem:[#allocation5 + $0x3000] sm:$0xff]  ;;  %v3943_v45 = vld [vmem:[#allocation5 + $0x3008] sm:$0xff] }
 0x6ae   :  { %v16874_v42 = vadd.f32 %v10455_v6, %v7220_v17  ;;  %v16876_v55 = vadd.f32 %v1464_v29, %v1333_v46  ;;  %v1810_v7 = vpop.permute.xlu0 %1809  ;;  %v1073_v17 = vmul.f32 %v13464_v48, %v13716_v15  ;;  %v12843_v29 = vpack.c.bf16 %v3931_v35, %v3930_v32  ;;  %v3919_v32 = vld [vmem:[#allocation5 + $0x2f48] sm:$0xff]  ;;  %v16959_v35 = vld [vmem:[%s17816_s1 + $0x380] sm:$0xff] }
 0x6af   :  { %v1922_v53 = vsel %vm450_vm0, %v1808_v59, %v1810_v7  ;;  %v1812_v1 = vpop.permute.xlu1 %1811 }
 0x6b0   :  { %v2106_v39 = vmax.f32 %v16618_v11, %v1922_v53  ;;  %1823 = vrot.lane.b32.xlu1 %v16876_v55, %s13540_s28  ;;  %v1921_v59 = vsel %vm450_vm0, %v1810_v7, %v1812_v1  ;;  %v1334_v24 = vadd.f32 %v1204_v10, %v1073_v17  ;;  %v3915_v7 = vld [vmem:[#allocation5 + $0x2f28] sm:$0xff]  ;;  %v3934_v17 = vld [vmem:[#allocation5 + $0x2fc0] sm:$0xff] }
 0x6b1   :  { %v2107_v6 = vmax.f32 %v16660_v33, %v1921_v59  ;;  %v12845_v33 = vpack.c.bf16 %v3915_v7, %v3914_v21  ;;  %v3935_v10 = vld [vmem:[#allocation5 + $0x2fc8] sm:$0xff] }
 0x6b2   :  { %v16894_v43 = vpop.permute.xlu0 %394  ;;  %v2237_v11 = vadd.f32 %v13963_v28, %v2106_v39  ;;  %v3932_v39 = vld [vmem:[#allocation5 + $0x2fb0] sm:$0xff]  ;;  %v3963_v21 = vld [vmem:[#allocation5 + $0x30a8] sm:$0xff] }
 0x6b3   :  { %v786_v5 = vpop.permute.xlu1 %785  ;;  %v2238_v37 = vadd.f32 %v13963_v28, %v2107_v6  ;;  %v477_v31 = vsel %vm450_vm0, %v16859_v47, %v16894_v43 }
 0x6b4   :  { %408 = vrot.lane.b32.xlu1 %v16892_v14, %s13540_s28  ;;  %v2367_v4 = vmax.f32 %v2237_v11, 0.0  ;;  %v3916_v11 = vld [vmem:[#allocation5 + $0x2f30] sm:$0xff] }
 0x6b5   :  { %v12849_v9 = vpack.c.bf16 %v3917_v38, %v3916_v11  ;;  %v2368_v59 = vmax.f32 %v2238_v37, 0.0  ;;  %v3938_v37 = vld [vmem:[#allocation5 + $0x2fe0] sm:$0xff] }
 0x6b6   :  { %7707 = vmatprep.mubr.f32.mxu1 %v2367_v4  ;;  %v784_v27 = vpop.permute.xlu0 %783  ;;  %v1075_v4 = vmul.f32 %v13716_v15, %v16634_v60  ;;  %v3946_v38 = vld [vmem:[#allocation5 + $0x3020] sm:$0xff] }
 0x6b7   :  { %v869_v41 = vsel %vm841_vm1, %v784_v27, %v786_v5  ;;  %v870_v25 = vsel %vm841_vm1, %v782_v63, %v784_v27  ;;  %7708 = vmatmul.mubr.f32.vlgmr.msra.gmra.mrb[44].mxu1 %v2366_v51  ;;  %v3960_v51 = vld [vmem:[#allocation5 + $0x3090] sm:$0xff]  ;;  %v3918_v27 = vld [vmem:[#allocation5 + $0x2f40] sm:$0xff] }
 0x6b8   :  { %v1465_v36 = vmul.f32 %v13735_v34, %v870_v25  ;;  %v1466_v46 = vmul.f32 %v13735_v34, %v869_v41  ;;  %12838 = vmatpush3.bf16.msra.mxu1 %v12837_v57  ;;  %797 = vrot.lane.b32.xlu1 %v16808_v52, %s13541_s6  ;;  %v1206_v57 = vmul.f32 %v13718_v16, %v477_v31  ;;  %v3937_v41 = vld [vmem:[#allocation5 + $0x2fd8] sm:$0xff]  ;;  %v3939_v31 = vld [vmem:[#allocation5 + $0x2fe8] sm:$0xff] }
 0x6b9   :  { %12840 = vmatprep.subr.bf16.mxu1 %v12839_v50  ;;  %v3961_v50 = vld [vmem:[#allocation5 + $0x3098] sm:$0xff]  ;;  %v12869_v25 = vpack.c.bf16 %v3943_v45, %v3942_v0  ;;  %v12853_v6 = vpack.c.bf16 %v3919_v32, %v3918_v27  ;;  %v12859_v0 = vpack.c.bf16 %v3939_v31, %v3938_v37  ;;  %v3922_v45 = vld [vmem:[#allocation5 + $0x2f60] sm:$0xff]  ;;  %v3948_v27 = vld [vmem:[#allocation5 + $0x3030] sm:$0xff] }
 0x6ba   :  { %v16918_v53 = vadd.f32 %v1465_v36, %v1334_v24  ;;  %v16920_v63 = vadd.f32 %v1466_v46, %v1335_v40  ;;  %v16922_v44 = vpop.permute.xlu0 %1813  ;;  %v3936_v24 = vld [vmem:[#allocation5 + $0x2fd0] sm:$0xff]  ;;  %v3945_v36 = vld [vmem:[#allocation5 + $0x3018] sm:$0xff]  ;;  %v1336_v46 = vadd.f32 %v1206_v57, %v1075_v4  ;;  %v3923_v4 = vld [vmem:[#allocation5 + $0x2f68] sm:$0xff] }
 0x6bb   :  { %v1920_v13 = vsel %vm450_vm0, %v1812_v1, %v16922_v44  ;;  %v12847_v1 = vpack.c.bf16 %v3933_v8, %v3932_v39  ;;  %v3944_v40 = vld [vmem:[#allocation5 + $0x3010] sm:$0xff]  ;;  %v12855_v39 = vpack.c.bf16 %v3937_v41, %v3936_v24  ;;  %v3949_v32 = vld [vmem:[#allocation5 + $0x3038] sm:$0xff]  ;;  %v12861_v41 = vpack.c.bf16 %v3923_v4, %v3922_v45  ;;  %v3950_v31 = vld [vmem:[#allocation5 + $0x3040] sm:$0xff] }
 0x6bc   :  { %v2108_v52 = vmax.f32 %v16662_v18, %v1920_v13  ;;  %12842 = vmatpush3.bf16.msra.mxu1 %v12841_v54  ;;  %1825 = vrot.lane.b32.xlu0 %v16918_v53, %s13540_s28  ;;  %v16940_v18 = vld [vmem:[%s17816_s1 + $0x378] sm:$0xff]  ;;  %v12871_v54 = vpack.c.bf16 %v3961_v50, %v3960_v51  ;;  %v3920_v8 = vld [vmem:[#allocation5 + $0x2f50] sm:$0xff]  ;;  %v3974_v4 = vld [vmem:[#allocation5 + $0x3100] sm:$0xff] }
 0x6bd   :  { %1827 = vrot.lane.b32.xlu1 %v16920_v63, %s13540_s28  ;;  %12844 = vmatprep.subr.bf16.mxu1 %v12843_v29  ;;  %v3962_v29 = vld [vmem:[#allocation5 + $0x30a0] sm:$0xff]  ;;  %v3921_v13 = vld [vmem:[#allocation5 + $0x2f58] sm:$0xff] }
 0x6be   :  { %v16942_v2 = vpop.permute.xlu0 %787  ;;  %v2239_v48 = vadd.f32 %v13963_v28, %v2108_v52  ;;  %v397_v52 = vpop.permute.xlu1 %396  ;;  %v12875_v11 = vpack.c.bf16 %v3963_v21, %v3962_v29  ;;  %v3925_v29 = vld [vmem:[#allocation5 + $0x2f78] sm:$0xff]  ;;  %v16992_v21 = vld [vmem:[%s17816_s1 + $0x388] sm:$0xff] }
 0x6bf   :  { %v868_v47 = vsel %vm841_vm1, %v786_v5, %v16942_v2  ;;  %v12851_v5 = vpack.c.bf16 %v3935_v10, %v3934_v17  ;;  %v12857_v17 = vpack.c.bf16 %v3921_v13, %v3920_v8  ;;  %v3964_v10 = vld [vmem:[#allocation5 + $0x30b0] sm:$0xff]  ;;  %v3990_v8 = vld [vmem:[#allocation5 + $0x3180] sm:$0xff]  ;;  %v3991_v13 = vld [vmem:[#allocation5 + $0x3188] sm:$0xff] }
 0x6c0   :  { %12846 = vmatpush3.bf16.msra.mxu1 %v12845_v33  ;;  %410 = vrot.lane.b32.xlu0 %v16940_v18, %s13540_s28  ;;  %v2369_v12 = vmax.f32 %v2239_v48, 0.0  ;;  %v1467_v60 = vmul.f32 %v13735_v34, %v868_v47  ;;  %v3947_v48 = vld [vmem:[#allocation5 + $0x3028] sm:$0xff]  ;;  %v3965_v47 = vld [vmem:[#allocation5 + $0x30b8] sm:$0xff]  ;;  %v12899_v45 = vpack.c.bf16 %v3991_v13, %v3990_v8  ;;  %v3976_v8 = vld [vmem:[#allocation5 + $0x3110] sm:$0xff] }
 0x6c1   :  { %801 = vrot.lane.b32.xlu1 %v16892_v14, %s13541_s6  ;;  %12848 = vmatprep.subr.bf16.mxu1 %v12847_v1  ;;  %v12873_v1 = vpack.c.bf16 %v3945_v36, %v3944_v40  ;;  %v12877_v51 = vpack.c.bf16 %v3947_v48, %v3946_v38  ;;  %v3977_v13 = vld [vmem:[#allocation5 + $0x3118] sm:$0xff] }
 0x6c2   :  { %7777 = vmatprep.mubr.f32.mxu0 %v2369_v12  ;;  %v16965_v7 = vpop.permute.xlu0 %398  ;;  %v16967_v33 = vadd.f32 %v1467_v60, %v1336_v46  ;;  %v3940_v12 = vld [vmem:[#allocation5 + $0x2ff0] sm:$0xff] }
 0x6c3   :  { %7778 = vmatmul.mubr.f32.vlgmr.msra.gmra.mrb[46].mxu0 %v2368_v59  ;;  %v475_v60 = vsel %vm450_vm0, %v397_v52, %v16965_v7 }
 0x6c4   :  { %12850 = vmatpush3.bf16.msra.mxu1 %v12849_v9  ;;  %799 = vrot.lane.b32.xlu0 %v16851_v61, %s13541_s6  ;;  %v3941_v9 = vld [vmem:[#allocation5 + $0x2ff8] sm:$0xff] }
 0x6c5   :  { %412 = vrot.lane.b32.xlu1 %v16959_v35, %s13540_s28  ;;  %12852 = vmatprep.subr.bf16.mxu1 %v12851_v5  ;;  %v12879_v5 = vpack.c.bf16 %v3965_v47, %v3964_v10  ;;  %v12863_v46 = vpack.c.bf16 %v3941_v9, %v3940_v12  ;;  %v3969_v10 = vld [vmem:[#allocation5 + $0x30d8] sm:$0xff] }
 0x6c6   :  { %12870 = vmatpush3.bf16.msra.mxu0 %v12869_v25  ;;  %v3967_v25 = vld [vmem:[#allocation5 + $0x30c8] sm:$0xff] }
 0x6c7   :  { %12872 = vmatprep.subr.bf16.mxu0 %v12871_v54  ;;  %v476_v54 = vsel %vm450_vm0, %v16894_v43, %v397_v52 }
 0x6c8   :  { %12854 = vmatpush3.bf16.msra.mxu1 %v12853_v6  ;;  %1829 = vrot.lane.b32.xlu0 %v16967_v33, %s13540_s28  ;;  %v3924_v6 = vld [vmem:[#allocation5 + $0x2f70] sm:$0xff]  ;;  %v1207_v48 = vmul.f32 %v13718_v16, %v476_v54 }
 0x6c9   :  { %12856 = vmatprep.subr.bf16.mxu1 %v12855_v39  ;;  %v12881_v39 = vpack.c.bf16 %v3949_v32, %v3948_v27 }
 0x6ca   :  { %v1816_v57 = vpop.permute.xlu1 %1815  ;;  %12874 = vmatpush3.bf16.msra.mxu0 %v12873_v1  ;;  %v3951_v1 = vld [vmem:[#allocation5 + $0x3048] sm:$0xff] }
 0x6cb   :  { %v1919_v50 = vsel %vm450_vm0, %v16922_v44, %v1816_v57  ;;  %v16974_v59 = vpop.permute.xlu0 %1817  ;;  %12876 = vmatprep.subr.bf16.mxu0 %v12875_v11  ;;  %v3966_v44 = vld [vmem:[#allocation5 + $0x30c0] sm:$0xff]  ;;  %v13465_v11 = vld [vmem:[%s17816_s1 + $0x338] sm:$0xff]  ;;  %v12885_v9 = vpack.c.bf16 %v3951_v1, %v3950_v31  ;;  %v3995_v31 = vld [vmem:[#allocation5 + $0x31a8] sm:$0xff] }
 0x6cc   :  { %v1918_v24 = vsel %vm450_vm0, %v1816_v57, %v16974_v59  ;;  %12858 = vmatpush3.bf16.msra.mxu1 %v12857_v17  ;;  %803 = vrot.lane.b32.xlu0 %v16940_v18, %s13541_s6  ;;  %v2109_v40 = vmax.f32 %v16709_v3, %v1919_v50  ;;  %v1077_v3 = vmul.f32 %v13716_v15, %v16701_v22  ;;  %v3968_v17 = vld [vmem:[#allocation5 + $0x30d0] sm:$0xff]  ;;  %v3975_v57 = vld [vmem:[#allocation5 + $0x3108] sm:$0xff]  ;;  %v3993_v50 = vld [vmem:[#allocation5 + $0x3198] sm:$0xff] }
 0x6cd   :  { %v2110_v36 = vmax.f32 %v16763_v56, %v1918_v24  ;;  %12860 = vmatprep.subr.bf16.mxu1 %v12859_v0  ;;  %v1208_v56 = vmul.f32 %v13718_v16, %v475_v60  ;;  %v12883_v37 = vpack.c.bf16 %v3967_v25, %v3966_v44  ;;  %v1076_v38 = vmul.f32 %v13465_v11, %v13716_v15  ;;  %v3952_v24 = vld [vmem:[#allocation5 + $0x3050] sm:$0xff] }
 0x6ce   :  { %v16994_v18 = vpop.permute.xlu1 %400  ;;  %12878 = vmatpush3.bf16.msra.mxu0 %v12877_v51  ;;  %v12865_v22 = vpack.c.bf16 %v3925_v29, %v3924_v6  ;;  %v2240_v47 = vadd.f32 %v13963_v28, %v2109_v40  ;;  %v3992_v51 = vld [vmem:[#allocation5 + $0x3190] sm:$0xff]  ;;  %v12887_v60 = vpack.c.bf16 %v3969_v10, %v3968_v17  ;;  %v3970_v40 = vld [vmem:[#allocation5 + $0x30e0] sm:$0xff]  ;;  %v3973_v10 = vld [vmem:[#allocation5 + $0x30f8] sm:$0xff] }
 0x6cf   :  { %v16999_v43 = vpop.permute.xlu0 %402  ;;  %v2241_v52 = vadd.f32 %v13963_v28, %v2110_v36  ;;  %12880 = vmatprep.subr.bf16.mxu0 %v12879_v5  ;;  %v1338_v5 = vadd.f32 %v1208_v56, %v1077_v3  ;;  %v1337_v44 = vadd.f32 %v1207_v48, %v1076_v38  ;;  %v3971_v36 = vld [vmem:[#allocation5 + $0x30e8] sm:$0xff]  ;;  %v1078_v48 = vmul.f32 %v13716_v15, %v16734_v23  ;;  %v3972_v17 = vld [vmem:[#allocation5 + $0x30f0] sm:$0xff]  ;;  %v3978_v23 = vld [vmem:[#allocation5 + $0x3120] sm:$0xff] }
 0x6d0   :  { %12862 = vmatpush3.bf16.msra.mxu1 %v12861_v41  ;;  %414 = vrot.lane.b32.xlu0 %v16992_v21, %s13540_s28  ;;  %v3953_v41 = vld [vmem:[#allocation5 + $0x3058] sm:$0xff]  ;;  %v2370_v6 = vmax.f32 %v2240_v47, 0.0  ;;  %v12891_v11 = vpack.c.bf16 %v3971_v36, %v3970_v40  ;;  %v3955_v38 = vld [vmem:[#allocation5 + $0x3068] sm:$0xff]  ;;  %v12905_v47 = vpack.c.bf16 %v3977_v13, %v3976_v8 }
 0x6d1   :  { %12864 = vmatprep.subr.bf16.mxu1 %v12863_v46  ;;  %v2371_v0 = vmax.f32 %v2241_v52, 0.0  ;;  %v12901_v46 = vpack.c.bf16 %v3975_v57, %v3974_v4  ;;  %v12889_v52 = vpack.c.bf16 %v3953_v41, %v3952_v24  ;;  %v3979_v4 = vld [vmem:[#allocation5 + $0x3128] sm:$0xff]  ;;  %v17042_v57 = vld [vmem:[%s17816_s1 + $0x398] sm:$0xff] }
 0x6d2   :  { %v790_v12 = vpop.permute.xlu1 %789  ;;  %12882 = vmatpush3.bf16.msra.mxu0 %v12881_v39  ;;  %v12903_v39 = vpack.c.bf16 %v3993_v50, %v3992_v51  ;;  %v3996_v51 = vld [vmem:[#allocation5 + $0x31b0] sm:$0xff]  ;;  %v3997_v50 = vld [vmem:[#allocation5 + $0x31b8] sm:$0xff]  ;;  %v4023_v40 = vld [vmem:[#allocation5 + $0x3288] sm:$0xff] }
 0x6d3   :  { %v867_v27 = vsel %vm841_vm1, %v16942_v2, %v790_v12  ;;  %7847 = vmatprep.mubr.f32.mxu1 %v2371_v0  ;;  %v792_v32 = vpop.permute.xlu0 %791  ;;  %12884 = vmatprep.subr.bf16.mxu0 %v12883_v37  ;;  %v474_v2 = vsel %vm450_vm0, %v16965_v7, %v16994_v18  ;;  %v3994_v37 = vld [vmem:[#allocation5 + $0x31a0] sm:$0xff]  ;;  %v17037_v0 = vld [vmem:[%s17816_s1 + $0x390] sm:$0xff]  ;;  %v3957_v24 = vld [vmem:[#allocation5 + $0x3078] sm:$0xff] }
 0x6d4   :  { %v1468_v25 = vmul.f32 %v13735_v34, %v867_v27  ;;  %v866_v54 = vsel %vm841_vm1, %v790_v12, %v792_v32  ;;  %12866 = vmatpush3.bf16.msra.mxu1 %v12865_v22  ;;  %v3954_v7 = vld [vmem:[#allocation5 + $0x3060] sm:$0xff]  ;;  %v1209_v22 = vmul.f32 %v13718_v16, %v474_v2  ;;  %v12895_v27 = vpack.c.bf16 %v3973_v10, %v3972_v17  ;;  %v3999_v8 = vld [vmem:[#allocation5 + $0x31c8] sm:$0xff]  ;;  %v4001_v17 = vld [vmem:[#allocation5 + $0x31d8] sm:$0xff] }
 0x6d5   :  { %v1469_v29 = vmul.f32 %v13735_v34, %v866_v54  ;;  %12900 = vmatprep.subr.bf16.mxu1 %v12899_v45  ;;  %v12907_v45 = vpack.c.bf16 %v3995_v31, %v3994_v37  ;;  %v4022_v54 = vld [vmem:[#allocation5 + $0x3280] sm:$0xff] }
 0x6d6   :  { %v17021_v3 = vadd.f32 %v1468_v25, %v1337_v44  ;;  %v17023_v56 = vpop.permute.xlu1 %1819  ;;  %12886 = vmatpush3.bf16.msra.mxu0 %v12885_v9  ;;  %v12893_v9 = vpack.c.bf16 %v3955_v38, %v3954_v7  ;;  %v1339_v41 = vadd.f32 %v1209_v22, %v1078_v48  ;;  %v12909_v25 = vpack.c.bf16 %v3979_v4, %v3978_v23  ;;  %v3982_v38 = vld [vmem:[#allocation5 + $0x3140] sm:$0xff]  ;;  %v3983_v48 = vld [vmem:[#allocation5 + $0x3148] sm:$0xff]  ;;  %v4000_v22 = vld [vmem:[#allocation5 + $0x31d0] sm:$0xff] }
 0x6d7   :  { %v17025_v1 = vadd.f32 %v1469_v29, %v1338_v5  ;;  %7848 = vmatmul.mubr.f32.vlgmr.msra.gmra.mrb[46].mxu1 %v2370_v6  ;;  %12888 = vmatprep.subr.bf16.mxu0 %v12887_v60  ;;  %v3956_v60 = vld [vmem:[#allocation5 + $0x3070] sm:$0xff]  ;;  %v3981_v6 = vld [vmem:[#allocation5 + $0x3138] sm:$0xff]  ;;  %v12917_v10 = vpack.c.bf16 %v3983_v48, %v3982_v38  ;;  %v4002_v23 = vld [vmem:[#allocation5 + $0x31e0] sm:$0xff] }
 0x6d8   :  { %1831 = vrot.lane.b32.xlu1 %v17021_v3, %s13540_s28  ;;  %12902 = vmatpush3.bf16.msra.mxu1 %v12901_v46  ;;  %v3980_v46 = vld [vmem:[#allocation5 + $0x3130] sm:$0xff]  ;;  %v12897_v29 = vpack.c.bf16 %v3957_v24, %v3956_v60  ;;  %v4003_v4 = vld [vmem:[#allocation5 + $0x31e8] sm:$0xff]  ;;  %v4005_v24 = vld [vmem:[#allocation5 + $0x31f8] sm:$0xff] }
 0x6d9   :  { %1833 = vrot.lane.b32.xlu0 %v17025_v1, %s13540_s28  ;;  %12904 = vmatprep.subr.bf16.mxu1 %v12903_v39  ;;  %v3998_v39 = vld [vmem:[#allocation5 + $0x31c0] sm:$0xff]  ;;  %v12913_v31 = vpack.c.bf16 %v3981_v6, %v3980_v46  ;;  %v4004_v60 = vld [vmem:[#allocation5 + $0x31f0] sm:$0xff]  ;;  %v1917_v6 = vsel %vm450_vm0, %v16974_v59, %v17023_v56 }
 0x6da   :  { %v17044_v12 = vpop.permute.xlu1 %793  ;;  %12890 = vmatpush3.bf16.msra.mxu0 %v12889_v52  ;;  %v12931_v52 = vpack.c.bf16 %v4023_v40, %v4022_v54  ;;  %v12915_v7 = vpack.c.bf16 %v3999_v8, %v3998_v39  ;;  %v3989_v54 = vld [vmem:[#allocation5 + $0x3178] sm:$0xff]  ;;  %v4054_v40 = vld [vmem:[#allocation5 + $0x3380] sm:$0xff]  ;;  %v13466_v39 = vld [vmem:[%s17816_s1 + $0x350] sm:$0xff] }
 0x6db   :  { %v865_v5 = vsel %vm841_vm1, %v792_v32, %v17044_v12  ;;  %12892 = vmatprep.subr.bf16.mxu0 %v12891_v11  ;;  %v12911_v32 = vpack.c.bf16 %v3997_v50, %v3996_v51  ;;  %v17070_v51 = vld [vmem:[%s17816_s1 + $0x3a0] sm:$0xff]  ;;  %v12923_v50 = vpack.c.bf16 %v4003_v4, %v4002_v23  ;;  %v1079_v8 = vmul.f32 %v13466_v39, %v13716_v15  ;;  %v4008_v4 = vld [vmem:[#allocation5 + $0x3210] sm:$0xff] }
 0x6dc   :  { %416 = vrot.lane.b32.xlu1 %v17037_v0, %s13540_s28  ;;  %v1470_v44 = vmul.f32 %v13735_v34, %v865_v5  ;;  %12906 = vmatpush3.bf16.msra.mxu1 %v12905_v47  ;;  %v12919_v47 = vpack.c.bf16 %v4001_v17, %v4000_v22  ;;  %v3986_v5 = vld [vmem:[#allocation5 + $0x3160] sm:$0xff]  ;;  %v4024_v17 = vld [vmem:[#allocation5 + $0x3290] sm:$0xff] }
 0x6dd   :  { %418 = vrot.lane.b32.xlu0 %v17042_v57, %s13540_s28  ;;  %v10488_v36 = vpop.f32.mrb[40].mxu0  ;;  %12908 = vmatprep.subr.bf16.mxu1 %v12907_v45  ;;  %v3985_v45 = vld [vmem:[#allocation5 + $0x3158] sm:$0xff] }
 0x6de   :  { %v10489_v2 = vpop.f32.mrb[41].mxu0  ;;  %12894 = vmatpush3.bf16.msra.mxu0 %v12893_v9  ;;  %v17054_v37 = vadd.f32 %v1470_v44, %v1339_v41  ;;  %v12927_v44 = vpack.c.bf16 %v4005_v24, %v4004_v60  ;;  %v4010_v24 = vld [vmem:[#allocation5 + $0x3220] sm:$0xff] }
 0x6df   :  { %v10490_v13 = vadd.f32 %v10489_v2, %v10488_v36  ;;  %12896 = vmatprep.subr.bf16.mxu0 %v12895_v27  ;;  %v3987_v27 = vld [vmem:[#allocation5 + $0x3168] sm:$0xff]  ;;  %v473_v2 = vsel %vm450_vm0, %v16994_v18, %v16999_v43 }
 0x6e0   :  { %805 = vrot.lane.b32.xlu1 %v16959_v35, %s13541_s6  ;;  %12910 = vmatpush3.bf16.msra.mxu1 %v12909_v25  ;;  %v12925_v41 = vpack.c.bf16 %v3987_v27, %v3986_v5  ;;  %v3988_v25 = vld [vmem:[#allocation5 + $0x3170] sm:$0xff]  ;;  %v4055_v36 = vld [vmem:[#allocation5 + $0x3388] sm:$0xff]  ;;  %v4026_v5 = vld [vmem:[#allocation5 + $0x32a0] sm:$0xff] }
 0x6e1   :  { %v17059_v11 = vadd.f32 %v10490_v13, %v16874_v42  ;;  %807 = vrot.lane.b32.xlu0 %v16992_v21, %s13541_s6  ;;  %12912 = vmatprep.subr.bf16.mxu1 %v12911_v32  ;;  %v3984_v42 = vld [vmem:[#allocation5 + $0x3150] sm:$0xff]  ;;  %v12929_v32 = vpack.c.bf16 %v3989_v54, %v3988_v25  ;;  %v12963_v46 = vpack.c.bf16 %v4055_v36, %v4054_v40  ;;  %v4027_v27 = vld [vmem:[#allocation5 + $0x32a8] sm:$0xff]  ;;  %v4029_v25 = vld [vmem:[#allocation5 + $0x32b8] sm:$0xff] }
 0x6e2   :  { %12898 = vmatpush3.bf16.msra.mxu0 %v12897_v29  ;;  %v12921_v9 = vpack.c.bf16 %v3985_v45, %v3984_v42  ;;  %v2111_v29 = vmax.f32 %v16767_v62, %v1917_v6  ;;  %v1210_v13 = vmul.f32 %v13718_v16, %v473_v2  ;;  %v4006_v62 = vld [vmem:[#allocation5 + $0x3200] sm:$0xff]  ;;  %v4012_v36 = vld [vmem:[#allocation5 + $0x3230] sm:$0xff]  ;;  %v4031_v2 = vld [vmem:[#allocation5 + $0x32c8] sm:$0xff] }
 0x6e3   :  { %12932 = vmatprep.subr.bf16.mxu0 %v12931_v52  ;;  %v4030_v6 = vld [vmem:[#allocation5 + $0x32c0] sm:$0xff] }
 0x6e4   :  { %1835 = vrot.lane.b32.xlu1 %v17054_v37, %s13540_s28  ;;  %12914 = vmatpush3.bf16.msra.mxu1 %v12913_v31  ;;  %v2242_v18 = vadd.f32 %v13963_v28, %v2111_v29  ;;  %v1340_v38 = vadd.f32 %v1210_v13, %v1079_v8  ;;  %v12947_v13 = vpack.c.bf16 %v4031_v2, %v4030_v6 }
 0x6e5   :  { %12916 = vmatprep.subr.bf16.mxu1 %v12915_v7  ;;  %v4007_v7 = vld [vmem:[#allocation5 + $0x3208] sm:$0xff] }
 0x6e6   :  { %v2372_v45 = vmax.f32 %v2242_v18, 0.0  ;;  %v4032_v18 = vld [vmem:[#allocation5 + $0x32d0] sm:$0xff] }
 0x6e8   :  { %809 = vrot.lane.b32.xlu1 %v17037_v0, %s13541_s6  ;;  %12918 = vmatpush3.bf16.msra.mxu1 %v12917_v10  ;;  %v4025_v10 = vld [vmem:[#allocation5 + $0x3298] sm:$0xff] }
 0x6e9   :  { %12920 = vmatprep.subr.bf16.mxu1 %v12919_v47  ;;  %v12935_v23 = vpack.c.bf16 %v4025_v10, %v4024_v17  ;;  %v4016_v17 = vld [vmem:[#allocation5 + $0x3250] sm:$0xff]  ;;  %v4017_v10 = vld [vmem:[#allocation5 + $0x3258] sm:$0xff] }
 0x6ec   :  { %420 = vrot.lane.b32.xlu1 %v17070_v51, %s13540_s28  ;;  %12922 = vmatpush3.bf16.msra.mxu1 %v12921_v9  ;;  %v4009_v9 = vld [vmem:[#allocation5 + $0x3218] sm:$0xff] }
 0x6ed   :  { %12924 = vmatprep.subr.bf16.mxu1 %v12923_v50  ;;  %v12937_v60 = vpack.c.bf16 %v4009_v9, %v4008_v4  ;;  %v4036_v4 = vld [vmem:[#allocation5 + $0x32f0] sm:$0xff]  ;;  %v4037_v9 = vld [vmem:[#allocation5 + $0x32f8] sm:$0xff] }
 0x6f0   :  { %12926 = vmatpush3.bf16.msra.mxu1 %v12925_v41  ;;  %v4011_v41 = vld [vmem:[#allocation5 + $0x3228] sm:$0xff] }
 0x6f1   :  { %12928 = vmatprep.subr.bf16.mxu1 %v12927_v44  ;;  %v4028_v44 = vld [vmem:[#allocation5 + $0x32b0] sm:$0xff]  ;;  %v12941_v54 = vpack.c.bf16 %v4011_v41, %v4010_v24  ;;  %v4021_v41 = vld [vmem:[#allocation5 + $0x3278] sm:$0xff] }
 0x6f2   :  { %v12943_v40 = vpack.c.bf16 %v4029_v25, %v4028_v44  ;;  %v4020_v24 = vld [vmem:[#allocation5 + $0x3270] sm:$0xff]  ;;  %v4086_v44 = vld [vmem:[#allocation5 + $0x3480] sm:$0xff]  ;;  %v4087_v25 = vld [vmem:[#allocation5 + $0x3488] sm:$0xff] }
 0x6f4   :  { %12930 = vmatpush3.bf16.msra.mxu1 %v12929_v32  ;;  %v4013_v32 = vld [vmem:[#allocation5 + $0x3238] sm:$0xff] }
 0x6f5   :  { %12964 = vmatprep.subr.bf16.mxu1 %v12963_v46  ;;  %v17113_v46 = vld [vmem:[%s17816_s1 + $0x3a8] sm:$0xff]  ;;  %v12945_v8 = vpack.c.bf16 %v4013_v32, %v4012_v36  ;;  %v12995_v36 = vpack.c.bf16 %v4087_v25, %v4086_v44  ;;  %v405_v32 = vpop.permute.xlu1 %404 }
 0x6f6   :  { %v472_v2 = vsel %vm450_vm0, %v16999_v43, %v405_v32 }
 0x6f9   :  { %v17088_v52 = vpop.permute.xlu0 %1821 }
 0x6fa   :  { %v1916_v59 = vsel %vm450_vm0, %v17023_v56, %v17088_v52 }
 0x6fb   :  { %v2112_v31 = vmax.f32 %v16793_v30, %v1916_v59  ;;  %v12933_v30 = vpack.c.bf16 %v4007_v7, %v4006_v62  ;;  %v4014_v59 = vld [vmem:[#allocation5 + $0x3240] sm:$0xff]  ;;  %v4033_v62 = vld [vmem:[#allocation5 + $0x32d8] sm:$0xff] }
 0x6fd   :  { %v17096_v48 = vpop.permute.xlu0 %795  ;;  %v2243_v22 = vadd.f32 %v13963_v28, %v2112_v31  ;;  %v4015_v31 = vld [vmem:[#allocation5 + $0x3248] sm:$0xff] }
 0x6fe   :  { %v864_v47 = vsel %vm841_vm1, %v17044_v12, %v17096_v48  ;;  %v12939_v12 = vpack.c.bf16 %v4027_v27, %v4026_v5 }
 0x6ff   :  { %v1471_v56 = vmul.f32 %v13735_v34, %v864_v47  ;;  %v2373_v42 = vmax.f32 %v2243_v22, 0.0  ;;  %v12951_v22 = vpack.c.bf16 %v4033_v62, %v4032_v18  ;;  %v4034_v47 = vld [vmem:[#allocation5 + $0x32e0] sm:$0xff] }
 0x701   :  { %v17104_v50 = vadd.f32 %v1471_v56, %v1340_v38  ;;  %7917 = vmatprep.mubr.f32.mxu0 %v2373_v42  ;;  %v12949_v38 = vpack.c.bf16 %v4015_v31, %v4014_v59  ;;  %v4035_v56 = vld [vmem:[#allocation5 + $0x32e8] sm:$0xff]  ;;  %v12953_v42 = vpack.c.bf16 %v4017_v10, %v4016_v17 }
 0x702   :  { %7918 = vmatmul.mubr.f32.vlgmr.msra.gmra.mrb[48].mxu0 %v2372_v45  ;;  %v4018_v45 = vld [vmem:[#allocation5 + $0x3260] sm:$0xff] }
 0x703   :  { %1837 = vrot.lane.b32.xlu0 %v17104_v50, %s13540_s28  ;;  %12934 = vmatpush3.bf16.msra.mxu0 %v12933_v30  ;;  %v12955_v30 = vpack.c.bf16 %v4035_v56, %v4034_v47 }
 0x704   :  { %12936 = vmatprep.subr.bf16.mxu0 %v12935_v23  ;;  %v4019_v23 = vld [vmem:[#allocation5 + $0x3268] sm:$0xff] }
 0x707   :  { %811 = vrot.lane.b32.xlu0 %v17042_v57, %s13541_s6  ;;  %12938 = vmatpush3.bf16.msra.mxu0 %v12937_v60 }
 0x708   :  { %12940 = vmatprep.subr.bf16.mxu0 %v12939_v12  ;;  %v12959_v12 = vpack.c.bf16 %v4037_v9, %v4036_v4  ;;  %v4038_v4 = vld [vmem:[#allocation5 + $0x3300] sm:$0xff]  ;;  %v4039_v9 = vld [vmem:[#allocation5 + $0x3308] sm:$0xff] }
 0x70a   :  { %v10523_v29 = vpop.f32.mrb[40].mxu1 }
 0x70b   :  { %v10524_v39 = vpop.f32.mrb[41].mxu1  ;;  %12942 = vmatpush3.bf16.msra.mxu0 %v12941_v54  ;;  %422 = vrot.lane.b32.xlu0 %v17113_v46, %s13540_s28 }
 0x70c   :  { %v10525_v57 = vadd.f32 %v10524_v39, %v10523_v29  ;;  %12944 = vmatprep.subr.bf16.mxu0 %v12943_v40  ;;  %v12961_v40 = vpack.c.bf16 %v4021_v41, %v4020_v24  ;;  %v13467_v39 = vld [vmem:[%s17816_s1 + $0x358] sm:$0xff]  ;;  %v1082_v41 = vmul.f32 %v13716_v15, %v16851_v61 }
 0x70e   :  { %v7430_v7 = vadd.f32 %v10525_v57, %v17059_v11  ;;  %v12957_v11 = vpack.c.bf16 %v4019_v23, %v4018_v45  ;;  %v1211_v57 = vmul.f32 %v13718_v16, %v472_v2  ;;  %v17154_v23 = vld [vmem:[%s17816_s1 + $0x3b0] sm:$0xff] }
 0x70f   :  { %12946 = vmatpush3.bf16.msra.mxu0 %v12945_v8  ;;  %v1080_v8 = vmul.f32 %v13467_v39, %v13716_v15 }
 0x710   :  { %12948 = vmatprep.subr.bf16.mxu0 %v12947_v13  ;;  %v407_v13 = vpop.permute.xlu0 %406 }
 0x713   :  { %12950 = vmatpush3.bf16.msra.mxu0 %v12949_v38 }
 0x714   :  { %12952 = vmatprep.subr.bf16.mxu0 %v12951_v22 }
 0x716   :  { %v10558_v5 = vpop.f32.mrb[42].mxu0 }
 0x717   :  { %v10559_v27 = vpop.f32.mrb[43].mxu0  ;;  %12954 = vmatpush3.bf16.msra.mxu0 %v12953_v42  ;;  %v471_v42 = vsel %vm450_vm0, %v405_v32, %v407_v13 }
 0x718   :  { %v10560_v60 = vadd.f32 %v10559_v27, %v10558_v5  ;;  %12956 = vmatprep.subr.bf16.mxu0 %v12955_v30  ;;  %v4056_v27 = vld [vmem:[#allocation5 + $0x3390] sm:$0xff]  ;;  %v1212_v24 = vmul.f32 %v13718_v16, %v471_v42 }
 0x71a   :  { %v7500_v54 = vadd.f32 %v10560_v60, %v7430_v7  ;;  %v1341_v7 = vadd.f32 %v1211_v57, %v1080_v8  ;;  %v13468_v60 = vld [vmem:[%s17816_s1 + $0x360] sm:$0xff] }
 0x71b   :  { %12958 = vmatpush3.bf16.msra.mxu0 %v12957_v11  ;;  %v4057_v11 = vld [vmem:[#allocation5 + $0x3398] sm:$0xff]  ;;  %v4058_v57 = vld [vmem:[#allocation5 + $0x33a0] sm:$0xff] }
 0x71c   :  { %12960 = vmatprep.subr.bf16.mxu0 %v12959_v12  ;;  %v1081_v12 = vmul.f32 %v13468_v60, %v13716_v15 }
 0x71e   :  { %v1342_v61 = vadd.f32 %v1212_v24, %v1081_v12  ;;  %v4062_v24 = vld [vmem:[#allocation5 + $0x33c0] sm:$0xff] }
 0x71f   :  { %12962 = vmatpush3.bf16.msra.mxu0 %v12961_v40  ;;  %v4040_v40 = vld [vmem:[#allocation5 + $0x3310] sm:$0xff] }
 0x720   :  { %12996 = vmatprep.subr.bf16.mxu0 %v12995_v36  ;;  %v4041_v36 = vld [vmem:[#allocation5 + $0x3318] sm:$0xff] }
 0x722   :  { %v1824_v6 = vpop.permute.xlu1 %1823 }
 0x723   :  { %v1915_v59 = vsel %vm450_vm0, %v17088_v52, %v1824_v6 }
 0x724   :  { %v2113_v17 = vmax.f32 %v16842_v19, %v1915_v59 }
 0x726   :  { %v17121_v29 = vpop.permute.xlu1 %408  ;;  %v2244_v45 = vadd.f32 %v13963_v28, %v2113_v17 }
 0x727   :  { %v470_v19 = vsel %vm450_vm0, %v407_v13, %v17121_v29  ;;  %v4059_v13 = vld [vmem:[#allocation5 + $0x33a8] sm:$0xff] }
 0x728   :  { %v1213_v44 = vmul.f32 %v13718_v16, %v470_v19  ;;  %v2374_v32 = vmax.f32 %v2244_v45, 0.0  ;;  %v12971_v17 = vpack.c.bf16 %v4059_v13, %v4058_v57  ;;  %v4060_v45 = vld [vmem:[#allocation5 + $0x33b0] sm:$0xff]  ;;  %v4061_v19 = vld [vmem:[#allocation5 + $0x33b8] sm:$0xff]  ;;  %v4046_v57 = vld [vmem:[#allocation5 + $0x3340] sm:$0xff] }
 0x729   :  { %v4047_v13 = vld [vmem:[#allocation5 + $0x3348] sm:$0xff] }
 0x72a   :  { %v10593_v31 = vpop.f32.mrb[42].mxu1  ;;  %v798_v18 = vpop.permute.xlu1 %797 }
 0x72b   :  { %v10594_v62 = vpop.f32.mrb[43].mxu1  ;;  %v863_v43 = vsel %vm841_vm1, %v17096_v48, %v798_v18 }
 0x72c   :  { %v10595_v38 = vadd.f32 %v10594_v62, %v10593_v31  ;;  %v1472_v22 = vmul.f32 %v13735_v34, %v863_v43  ;;  %v12969_v62 = vpack.c.bf16 %v4041_v36, %v4040_v40  ;;  %v1343_v43 = vadd.f32 %v1213_v44, %v1082_v41  ;;  %v4063_v41 = vld [vmem:[#allocation5 + $0x33c8] sm:$0xff]  ;;  %v4070_v44 = vld [vmem:[#allocation5 + $0x3400] sm:$0xff] }
 0x72e   :  { %v17136_v10 = vadd.f32 %v10595_v38, %v7500_v54  ;;  %v17138_v47 = vadd.f32 %v1472_v22, %v1341_v7  ;;  %v1826_v56 = vpop.permute.xlu0 %1825  ;;  %v12965_v54 = vpack.c.bf16 %v4039_v9, %v4038_v4 }
 0x72f   :  { %v1914_v52 = vsel %vm450_vm0, %v1824_v6, %v1826_v56  ;;  %v1828_v30 = vpop.permute.xlu1 %1827  ;;  %v12967_v6 = vpack.c.bf16 %v4057_v11, %v4056_v27  ;;  %v4044_v27 = vld [vmem:[#allocation5 + $0x3330] sm:$0xff]  ;;  %v4045_v11 = vld [vmem:[#allocation5 + $0x3338] sm:$0xff] }
 0x730   :  { %v2114_v48 = vmax.f32 %v16876_v55, %v1914_v52  ;;  %1839 = vrot.lane.b32.xlu1 %v17138_v47, %s13540_s28  ;;  %v1913_v2 = vsel %vm450_vm0, %v1826_v56, %v1828_v30  ;;  %v4042_v56 = vld [vmem:[#allocation5 + $0x3320] sm:$0xff]  ;;  %v4043_v52 = vld [vmem:[#allocation5 + $0x3328] sm:$0xff] }
 0x731   :  { %v2115_v22 = vmax.f32 %v16918_v53, %v1913_v2  ;;  %v12973_v53 = vpack.c.bf16 %v4043_v52, %v4042_v56  ;;  %v4089_v2 = vld [vmem:[#allocation5 + $0x3498] sm:$0xff]  ;;  %v4090_v56 = vld [vmem:[#allocation5 + $0x34a0] sm:$0xff]  ;;  %v4091_v52 = vld [vmem:[#allocation5 + $0x34a8] sm:$0xff] }
 0x732   :  { %v17156_v5 = vpop.permute.xlu0 %410  ;;  %v2245_v55 = vadd.f32 %v13963_v28, %v2114_v48 }
 0x733   :  { %v802_v39 = vpop.permute.xlu1 %801  ;;  %v2246_v9 = vadd.f32 %v13963_v28, %v2115_v22 }
 0x734   :  { %424 = vrot.lane.b32.xlu1 %v17154_v23, %s13540_s28  ;;  %v2375_v25 = vmax.f32 %v2245_v55, 0.0  ;;  %v469_v55 = vsel %vm450_vm0, %v17121_v29, %v17156_v5 }
 0x735   :  { %v1214_v40 = vmul.f32 %v13718_v16, %v469_v55  ;;  %v4066_v55 = vld [vmem:[#allocation5 + $0x33e0] sm:$0xff] }
 0x736   :  { %7987 = vmatprep.mubr.f32.mxu1 %v2375_v25  ;;  %v800_v8 = vpop.permute.xlu0 %799  ;;  %v4071_v25 = vld [vmem:[#allocation5 + $0x3408] sm:$0xff] }
 0x737   :  { %v861_v59 = vsel %vm841_vm1, %v800_v8, %v802_v39  ;;  %v862_v31 = vsel %vm841_vm1, %v798_v18, %v800_v8  ;;  %7988 = vmatmul.mubr.f32.vlgmr.msra.gmra.mrb[48].mxu1 %v2374_v32  ;;  %v12977_v32 = vpack.c.bf16 %v4045_v11, %v4044_v27  ;;  %v2376_v8 = vmax.f32 %v2246_v9, 0.0 }
 0x738   :  { %v1473_v7 = vmul.f32 %v13735_v34, %v862_v31  ;;  %v1474_v38 = vmul.f32 %v13735_v34, %v861_v59  ;;  %12966 = vmatpush3.bf16.msra.mxu1 %v12965_v54  ;;  %813 = vrot.lane.b32.xlu1 %v17070_v51, %s13541_s6  ;;  %v1083_v54 = vmul.f32 %v13716_v15, %v16892_v14  ;;  %v4064_v59 = vld [vmem:[#allocation5 + $0x33d0] sm:$0xff]  ;;  %v4065_v31 = vld [vmem:[#allocation5 + $0x33d8] sm:$0xff] }
 0x739   :  { %12968 = vmatprep.subr.bf16.mxu1 %v12967_v6  ;;  %v4088_v6 = vld [vmem:[#allocation5 + $0x3490] sm:$0xff]  ;;  %v13003_v11 = vpack.c.bf16 %v4091_v52, %v4090_v56  ;;  %v4053_v52 = vld [vmem:[#allocation5 + $0x3378] sm:$0xff] }
 0x73a   :  { %v17180_v42 = vadd.f32 %v1473_v7, %v1342_v61  ;;  %v17182_v18 = vadd.f32 %v1474_v38, %v1343_v43  ;;  %v17184_v48 = vpop.permute.xlu0 %1829  ;;  %v17221_v61 = vld [vmem:[%s17816_s1 + $0x3c0] sm:$0xff]  ;;  %v12999_v43 = vpack.c.bf16 %v4089_v2, %v4088_v6  ;;  %v4072_v7 = vld [vmem:[#allocation5 + $0x3410] sm:$0xff]  ;;  %v4073_v38 = vld [vmem:[#allocation5 + $0x3418] sm:$0xff]  ;;  %v1344_v22 = vadd.f32 %v1214_v40, %v1083_v54 }
 0x73b   :  { %v1912_v4 = vsel %vm450_vm0, %v1828_v30, %v17184_v48  ;;  %v12975_v30 = vpack.c.bf16 %v4061_v19, %v4060_v45  ;;  %v12983_v19 = vpack.c.bf16 %v4065_v31, %v4064_v59  ;;  %v13001_v27 = vpack.c.bf16 %v4073_v38, %v4072_v7  ;;  %v4050_v54 = vld [vmem:[#allocation5 + $0x3360] sm:$0xff]  ;;  %v4051_v40 = vld [vmem:[#allocation5 + $0x3368] sm:$0xff]  ;;  %v4069_v6 = vld [vmem:[#allocation5 + $0x33f8] sm:$0xff] }
 0x73c   :  { %v2116_v51 = vmax.f32 %v16920_v63, %v1912_v4  ;;  %12970 = vmatpush3.bf16.msra.mxu1 %v12969_v62  ;;  %1841 = vrot.lane.b32.xlu0 %v17180_v42, %s13540_s28  ;;  %v17202_v63 = vld [vmem:[%s17816_s1 + $0x3b8] sm:$0xff]  ;;  %v12997_v62 = vpack.c.bf16 %v4071_v25, %v4070_v44  ;;  %v4048_v4 = vld [vmem:[#allocation5 + $0x3350] sm:$0xff] }
 0x73d   :  { %1843 = vrot.lane.b32.xlu1 %v17182_v18, %s13540_s28  ;;  %12972 = vmatprep.subr.bf16.mxu1 %v12971_v17  ;;  %v12981_v17 = vpack.c.bf16 %v4047_v13, %v4046_v57  ;;  %v4093_v44 = vld [vmem:[#allocation5 + $0x34b8] sm:$0xff]  ;;  %v4076_v13 = vld [vmem:[#allocation5 + $0x3430] sm:$0xff] }
 0x73e   :  { %v17204_v60 = vpop.permute.xlu0 %803  ;;  %v2247_v12 = vadd.f32 %v13963_v28, %v2116_v51  ;;  %v4049_v51 = vld [vmem:[#allocation5 + $0x3358] sm:$0xff]  ;;  %v4052_v56 = vld [vmem:[#allocation5 + $0x3370] sm:$0xff] }
 0x73f   :  { %v860_v29 = vsel %vm841_vm1, %v802_v39, %v17204_v60  ;;  %v12979_v39 = vpack.c.bf16 %v4063_v41, %v4062_v24  ;;  %v4075_v24 = vld [vmem:[#allocation5 + $0x3428] sm:$0xff]  ;;  %v12985_v41 = vpack.c.bf16 %v4049_v51, %v4048_v4  ;;  %v4118_v51 = vld [vmem:[#allocation5 + $0x3580] sm:$0xff] }
 0x740   :  { %12974 = vmatpush3.bf16.msra.mxu1 %v12973_v53  ;;  %426 = vrot.lane.b32.xlu0 %v17202_v63, %s13540_s28  ;;  %v2377_v36 = vmax.f32 %v2247_v12, 0.0  ;;  %v1475_v14 = vmul.f32 %v13735_v34, %v860_v29  ;;  %v413_v53 = vpop.permute.xlu1 %412  ;;  %v4074_v12 = vld [vmem:[#allocation5 + $0x3420] sm:$0xff]  ;;  %v4092_v29 = vld [vmem:[#allocation5 + $0x34b0] sm:$0xff] }
 0x741   :  { %817 = vrot.lane.b32.xlu1 %v17154_v23, %s13541_s6  ;;  %12976 = vmatprep.subr.bf16.mxu1 %v12975_v30  ;;  %v4067_v30 = vld [vmem:[#allocation5 + $0x33e8] sm:$0xff]  ;;  %v13005_v2 = vpack.c.bf16 %v4075_v24, %v4074_v12  ;;  %v13007_v57 = vpack.c.bf16 %v4093_v44, %v4092_v29  ;;  %v468_v7 = vsel %vm450_vm0, %v17156_v5, %v413_v53  ;;  %v13469_v12 = vld [vmem:[%s17816_s1 + $0x378] sm:$0xff]  ;;  %v4096_v29 = vld [vmem:[#allocation5 + $0x34d0] sm:$0xff] }
 0x742   :  { %8057 = vmatprep.mubr.f32.mxu0 %v2377_v36  ;;  %v17227_v45 = vpop.permute.xlu0 %414  ;;  %v17229_v9 = vadd.f32 %v1475_v14, %v1344_v22  ;;  %v12987_v25 = vpack.c.bf16 %v4067_v30, %v4066_v55  ;;  %v4077_v14 = vld [vmem:[#allocation5 + $0x3438] sm:$0xff]  ;;  %v4119_v55 = vld [vmem:[#allocation5 + $0x3588] sm:$0xff]  ;;  %v1084_v24 = vmul.f32 %v13469_v12, %v13716_v15 }
 0x743   :  { %8058 = vmatmul.mubr.f32.vlgmr.msra.gmra.mrb[50].mxu0 %v2376_v8  ;;  %v467_v59 = vsel %vm450_vm0, %v413_v53, %v17227_v45  ;;  %v13009_v4 = vpack.c.bf16 %v4077_v14, %v4076_v13  ;;  %v4097_v44 = vld [vmem:[#allocation5 + $0x34d8] sm:$0xff] }
 0x744   :  { %12978 = vmatpush3.bf16.msra.mxu1 %v12977_v32  ;;  %815 = vrot.lane.b32.xlu0 %v17113_v46, %s13541_s6  ;;  %v4068_v32 = vld [vmem:[#allocation5 + $0x33f0] sm:$0xff] }
 0x745   :  { %428 = vrot.lane.b32.xlu1 %v17221_v61, %s13540_s28  ;;  %12980 = vmatprep.subr.bf16.mxu1 %v12979_v39 }
 0x746   :  { %12998 = vmatpush3.bf16.msra.mxu0 %v12997_v62  ;;  %v12989_v62 = vpack.c.bf16 %v4051_v40, %v4050_v54  ;;  %v13027_v40 = vpack.c.bf16 %v4119_v55, %v4118_v51  ;;  %v4104_v55 = vld [vmem:[#allocation5 + $0x3510] sm:$0xff] }
 0x747   :  { %13000 = vmatprep.subr.bf16.mxu0 %v12999_v43  ;;  %v4095_v43 = vld [vmem:[#allocation5 + $0x34c8] sm:$0xff] }
 0x748   :  { %12982 = vmatpush3.bf16.msra.mxu1 %v12981_v17  ;;  %1845 = vrot.lane.b32.xlu0 %v17229_v9, %s13540_s28  ;;  %v12991_v17 = vpack.c.bf16 %v4069_v6, %v4068_v32  ;;  %v4103_v32 = vld [vmem:[#allocation5 + $0x3508] sm:$0xff] }
 0x749   :  { %12984 = vmatprep.subr.bf16.mxu1 %v12983_v19  ;;  %v17254_v19 = vld [vmem:[%s17816_s1 + $0x3c8] sm:$0xff] }
 0x74a   :  { %v1832_v36 = vpop.permute.xlu1 %1831  ;;  %13002 = vmatpush3.bf16.msra.mxu0 %v13001_v27  ;;  %v4078_v27 = vld [vmem:[#allocation5 + $0x3440] sm:$0xff] }
 0x74b   :  { %v1911_v8 = vsel %vm450_vm0, %v17184_v48, %v1832_v36  ;;  %v17236_v39 = vpop.permute.xlu0 %1833  ;;  %13004 = vmatprep.subr.bf16.mxu0 %v13003_v11  ;;  %v4094_v48 = vld [vmem:[#allocation5 + $0x34c0] sm:$0xff]  ;;  %v4079_v11 = vld [vmem:[#allocation5 + $0x3448] sm:$0xff] }
 0x74c   :  { %v1910_v31 = vsel %vm450_vm0, %v1832_v36, %v17236_v39  ;;  %12986 = vmatpush3.bf16.msra.mxu1 %v12985_v41  ;;  %819 = vrot.lane.b32.xlu0 %v17202_v63, %s13541_s6  ;;  %v2117_v38 = vmax.f32 %v16967_v33, %v1911_v8  ;;  %v1085_v33 = vmul.f32 %v13716_v15, %v16959_v35  ;;  %v4102_v36 = vld [vmem:[#allocation5 + $0x3500] sm:$0xff]  ;;  %v4120_v8 = vld [vmem:[#allocation5 + $0x3590] sm:$0xff] }
 0x74d   :  { %v2118_v22 = vmax.f32 %v17021_v3, %v1910_v31  ;;  %12988 = vmatprep.subr.bf16.mxu1 %v12987_v25  ;;  %v1216_v3 = vmul.f32 %v13718_v16, %v467_v59  ;;  %v13011_v30 = vpack.c.bf16 %v4095_v43, %v4094_v48  ;;  %v1215_v41 = vmul.f32 %v13718_v16, %v468_v7  ;;  %v4081_v48 = vld [vmem:[#allocation5 + $0x3458] sm:$0xff] }
 0x74e   :  { %v17256_v63 = vpop.permute.xlu1 %416  ;;  %13006 = vmatpush3.bf16.msra.mxu0 %v13005_v2  ;;  %v12993_v35 = vpack.c.bf16 %v4053_v52, %v4052_v56  ;;  %v2248_v25 = vadd.f32 %v13963_v28, %v2117_v38  ;;  %v13013_v2 = vpack.c.bf16 %v4079_v11, %v4078_v27  ;;  %v13015_v31 = vpack.c.bf16 %v4097_v44, %v4096_v29  ;;  %v4122_v27 = vld [vmem:[#allocation5 + $0x35a0] sm:$0xff]  ;;  %v4123_v11 = vld [vmem:[#allocation5 + $0x35a8] sm:$0xff]  ;;  %v4100_v44 = vld [vmem:[#allocation5 + $0x34f0] sm:$0xff] }
 0x74f   :  { %v17261_v5 = vpop.permute.xlu0 %418  ;;  %v2249_v53 = vadd.f32 %v13963_v28, %v2118_v22  ;;  %13008 = vmatprep.subr.bf16.mxu0 %v13007_v57  ;;  %v4121_v57 = vld [vmem:[#allocation5 + $0x3598] sm:$0xff]  ;;  %v1346_v13 = vadd.f32 %v1216_v3, %v1085_v33  ;;  %v1345_v43 = vadd.f32 %v1215_v41, %v1084_v24  ;;  %v4098_v22 = vld [vmem:[#allocation5 + $0x34e0] sm:$0xff]  ;;  %v13029_v56 = vpack.c.bf16 %v4103_v32, %v4102_v36  ;;  %v4083_v41 = vld [vmem:[#allocation5 + $0x3468] sm:$0xff] }
 0x750   :  { %12990 = vmatpush3.bf16.msra.mxu1 %v12989_v62  ;;  %430 = vrot.lane.b32.xlu0 %v17254_v19, %s13540_s28  ;;  %v4080_v62 = vld [vmem:[#allocation5 + $0x3450] sm:$0xff]  ;;  %v2378_v52 = vmax.f32 %v2248_v25, 0.0  ;;  %v13031_v51 = vpack.c.bf16 %v4121_v57, %v4120_v8  ;;  %v4105_v33 = vld [vmem:[#allocation5 + $0x3518] sm:$0xff]  ;;  %v4106_v32 = vld [vmem:[#allocation5 + $0x3520] sm:$0xff] }
 0x751   :  { %12992 = vmatprep.subr.bf16.mxu1 %v12991_v17  ;;  %v2379_v54 = vmax.f32 %v2249_v53, 0.0  ;;  %v4099_v17 = vld [vmem:[#allocation5 + $0x34e8] sm:$0xff]  ;;  %v4101_v25 = vld [vmem:[#allocation5 + $0x34f8] sm:$0xff]  ;;  %v17299_v36 = vld [vmem:[%s17816_s1 + $0x3d0] sm:$0xff] }
 0x752   :  { %v806_v6 = vpop.permute.xlu1 %805  ;;  %13010 = vmatpush3.bf16.msra.mxu0 %v13009_v4  ;;  %v13019_v24 = vpack.c.bf16 %v4099_v17, %v4098_v22  ;;  %v17304_v8 = vld [vmem:[%s17816_s1 + $0x3d8] sm:$0xff] }
 0x753   :  { %v859_v14 = vsel %vm841_vm1, %v17204_v60, %v806_v6  ;;  %8127 = vmatprep.mubr.f32.mxu1 %v2379_v54  ;;  %v808_v59 = vpop.permute.xlu0 %807  ;;  %13012 = vmatprep.subr.bf16.mxu0 %v13011_v30  ;;  %v466_v60 = vsel %vm450_vm0, %v17227_v45, %v17256_v63  ;;  %v13017_v30 = vpack.c.bf16 %v4081_v48, %v4080_v62  ;;  %v4082_v45 = vld [vmem:[#allocation5 + $0x3460] sm:$0xff] }
 0x754   :  { %v1476_v7 = vmul.f32 %v13735_v34, %v859_v14  ;;  %v858_v38 = vsel %vm841_vm1, %v806_v6, %v808_v59  ;;  %12994 = vmatpush3.bf16.msra.mxu1 %v12993_v35  ;;  %v1086_v35 = vmul.f32 %v13716_v15, %v16992_v21  ;;  %v1217_v29 = vmul.f32 %v13718_v16, %v466_v60  ;;  %v4107_v6 = vld [vmem:[#allocation5 + $0x3528] sm:$0xff]  ;;  %v4124_v14 = vld [vmem:[#allocation5 + $0x35b0] sm:$0xff] }
 0x755   :  { %v1477_v4 = vmul.f32 %v13735_v34, %v858_v38  ;;  %13028 = vmatprep.subr.bf16.mxu1 %v13027_v40  ;;  %v13033_v54 = vpack.c.bf16 %v4105_v33, %v4104_v55  ;;  %v13035_v21 = vpack.c.bf16 %v4123_v11, %v4122_v27  ;;  %v4085_v38 = vld [vmem:[#allocation5 + $0x3478] sm:$0xff]  ;;  %v4151_v60 = vld [vmem:[#allocation5 + $0x3688] sm:$0xff] }
 0x756   :  { %v17283_v3 = vadd.f32 %v1476_v7, %v1345_v43  ;;  %v17285_v53 = vpop.permute.xlu1 %1835  ;;  %13014 = vmatpush3.bf16.msra.mxu0 %v13013_v2  ;;  %v13023_v43 = vpack.c.bf16 %v4101_v25, %v4100_v44  ;;  %v4084_v7 = vld [vmem:[#allocation5 + $0x3470] sm:$0xff]  ;;  %v1347_v22 = vadd.f32 %v1217_v29, %v1086_v35  ;;  %v4109_v55 = vld [vmem:[#allocation5 + $0x3538] sm:$0xff]  ;;  %v4127_v27 = vld [vmem:[#allocation5 + $0x35c8] sm:$0xff] }
 0x757   :  { %v17287_v12 = vadd.f32 %v1477_v4, %v1346_v13  ;;  %8128 = vmatmul.mubr.f32.vlgmr.msra.gmra.mrb[50].mxu1 %v2378_v52  ;;  %13016 = vmatprep.subr.bf16.mxu0 %v13015_v31  ;;  %v13021_v13 = vpack.c.bf16 %v4083_v41, %v4082_v45  ;;  %v4125_v31 = vld [vmem:[#allocation5 + $0x35b8] sm:$0xff]  ;;  %v4150_v52 = vld [vmem:[#allocation5 + $0x3680] sm:$0xff]  ;;  %v13025_v33 = vpack.c.bf16 %v4085_v38, %v4084_v7  ;;  %v4111_v35 = vld [vmem:[#allocation5 + $0x3548] sm:$0xff] }
 0x758   :  { %1847 = vrot.lane.b32.xlu1 %v17283_v3, %s13540_s28  ;;  %13030 = vmatpush3.bf16.msra.mxu1 %v13029_v56  ;;  %v13037_v56 = vpack.c.bf16 %v4107_v6, %v4106_v32  ;;  %v13059_v11 = vpack.c.bf16 %v4151_v60, %v4150_v52  ;;  %v4110_v41 = vld [vmem:[#allocation5 + $0x3540] sm:$0xff]  ;;  %v4128_v29 = vld [vmem:[#allocation5 + $0x35d0] sm:$0xff]  ;;  %v4129_v44 = vld [vmem:[#allocation5 + $0x35d8] sm:$0xff] }
 0x759   :  { %1849 = vrot.lane.b32.xlu0 %v17287_v12, %s13540_s28  ;;  %v10628_v40 = vpop.f32.mrb[44].mxu0  ;;  %13032 = vmatprep.subr.bf16.mxu1 %v13031_v51  ;;  %v4108_v51 = vld [vmem:[#allocation5 + $0x3530] sm:$0xff]  ;;  %v13045_v25 = vpack.c.bf16 %v4111_v35, %v4110_v41  ;;  %v4130_v32 = vld [vmem:[#allocation5 + $0x35e0] sm:$0xff]  ;;  %v4131_v6 = vld [vmem:[#allocation5 + $0x35e8] sm:$0xff] }
 0x75a   :  { %v10629_v2 = vpop.f32.mrb[45].mxu0  ;;  %v17306_v57 = vpop.permute.xlu1 %809  ;;  %13018 = vmatpush3.bf16.msra.mxu0 %v13017_v30  ;;  %v4126_v30 = vld [vmem:[#allocation5 + $0x35c0] sm:$0xff]  ;;  %v4183_v52 = vld [vmem:[#allocation5 + $0x3788] sm:$0xff] }
 0x75b   :  { %v10630_v62 = vadd.f32 %v10629_v2, %v10628_v40  ;;  %v857_v48 = vsel %vm841_vm1, %v808_v59, %v17306_v57  ;;  %13020 = vmatprep.subr.bf16.mxu0 %v13019_v24  ;;  %v13039_v59 = vpack.c.bf16 %v4125_v31, %v4124_v14  ;;  %v13043_v45 = vpack.c.bf16 %v4127_v27, %v4126_v30  ;;  %v4112_v40 = vld [vmem:[#allocation5 + $0x3550] sm:$0xff]  ;;  %v4114_v31 = vld [vmem:[#allocation5 + $0x3560] sm:$0xff] }
 0x75c   :  { %432 = vrot.lane.b32.xlu1 %v17299_v36, %s13540_s28  ;;  %v1478_v17 = vmul.f32 %v13735_v34, %v857_v48  ;;  %13034 = vmatpush3.bf16.msra.mxu1 %v13033_v54  ;;  %v13047_v54 = vpack.c.bf16 %v4129_v44, %v4128_v29  ;;  %v13051_v14 = vpack.c.bf16 %v4131_v6, %v4130_v32  ;;  %v4132_v48 = vld [vmem:[#allocation5 + $0x35f0] sm:$0xff]  ;;  %v4153_v44 = vld [vmem:[#allocation5 + $0x3698] sm:$0xff] }
 0x75d   :  { %v17315_v4 = vadd.f32 %v10630_v62, %v17136_v10  ;;  %434 = vrot.lane.b32.xlu0 %v17304_v8, %s13540_s28  ;;  %13036 = vmatprep.subr.bf16.mxu1 %v13035_v21  ;;  %v13041_v10 = vpack.c.bf16 %v4109_v55, %v4108_v51  ;;  %v4113_v21 = vld [vmem:[#allocation5 + $0x3558] sm:$0xff]  ;;  %v4115_v62 = vld [vmem:[#allocation5 + $0x3568] sm:$0xff]  ;;  %v465_v55 = vsel %vm450_vm0, %v17256_v63, %v17261_v5  ;;  %v4152_v29 = vld [vmem:[#allocation5 + $0x3690] sm:$0xff] }
 0x75e   :  { %13022 = vmatpush3.bf16.msra.mxu0 %v13021_v13  ;;  %v17319_v24 = vadd.f32 %v1478_v17, %v1347_v22  ;;  %v13049_v2 = vpack.c.bf16 %v4113_v21, %v4112_v40  ;;  %v17332_v13 = vld [vmem:[%s17816_s1 + $0x3e0] sm:$0xff]  ;;  %v13053_v7 = vpack.c.bf16 %v4115_v62, %v4114_v31  ;;  %v4116_v22 = vld [vmem:[#allocation5 + $0x3570] sm:$0xff]  ;;  %v4117_v17 = vld [vmem:[#allocation5 + $0x3578] sm:$0xff]  ;;  %v1087_v30 = vmul.f32 %v13716_v15, %v17037_v0 }
 0x75f   :  { %13024 = vmatprep.subr.bf16.mxu0 %v13023_v43  ;;  %v4133_v43 = vld [vmem:[#allocation5 + $0x35f8] sm:$0xff]  ;;  %v13057_v60 = vpack.c.bf16 %v4117_v17, %v4116_v22  ;;  %v1218_v27 = vmul.f32 %v13718_v16, %v465_v55  ;;  %v13063_v21 = vpack.c.bf16 %v4153_v44, %v4152_v29  ;;  %v4136_v32 = vld [vmem:[#allocation5 + $0x3610] sm:$0xff]  ;;  %v4155_v31 = vld [vmem:[#allocation5 + $0x36a8] sm:$0xff] }
 0x760   :  { %821 = vrot.lane.b32.xlu1 %v17221_v61, %s13541_s6  ;;  %13038 = vmatpush3.bf16.msra.mxu1 %v13037_v56  ;;  %v13055_v38 = vpack.c.bf16 %v4133_v43, %v4132_v48  ;;  %v4182_v56 = vld [vmem:[#allocation5 + $0x3780] sm:$0xff]  ;;  %v4137_v6 = vld [vmem:[#allocation5 + $0x3618] sm:$0xff]  ;;  %v4139_v43 = vld [vmem:[#allocation5 + $0x3628] sm:$0xff] }
 0x761   :  { %823 = vrot.lane.b32.xlu0 %v17254_v19, %s13541_s6  ;;  %13040 = vmatprep.subr.bf16.mxu1 %v13039_v59  ;;  %v1909_v59 = vsel %vm450_vm0, %v17236_v39, %v17285_v53  ;;  %v13091_v51 = vpack.c.bf16 %v4183_v52, %v4182_v56  ;;  %v1348_v41 = vadd.f32 %v1218_v27, %v1087_v30  ;;  %v4138_v48 = vld [vmem:[#allocation5 + $0x3620] sm:$0xff]  ;;  %v4140_v56 = vld [vmem:[#allocation5 + $0x3630] sm:$0xff]  ;;  %v4141_v52 = vld [vmem:[#allocation5 + $0x3638] sm:$0xff] }
 0x762   :  { %13026 = vmatpush3.bf16.msra.mxu0 %v13025_v33  ;;  %v2119_v33 = vmax.f32 %v17025_v1, %v1909_v59  ;;  %v4135_v1 = vld [vmem:[#allocation5 + $0x3608] sm:$0xff]  ;;  %v13065_v62 = vpack.c.bf16 %v4137_v6, %v4136_v32  ;;  %v13069_v22 = vpack.c.bf16 %v4139_v43, %v4138_v48  ;;  %v4158_v59 = vld [vmem:[#allocation5 + $0x36c0] sm:$0xff]  ;;  %v13073_v55 = vpack.c.bf16 %v4141_v52, %v4140_v56  ;;  %v4160_v27 = vld [vmem:[#allocation5 + $0x36d0] sm:$0xff]  ;;  %v421_v52 = vpop.permute.xlu1 %420 }
 0x763   :  { %13060 = vmatprep.subr.bf16.mxu0 %v13059_v11  ;;  %v4143_v30 = vld [vmem:[#allocation5 + $0x3648] sm:$0xff]  ;;  %v4145_v29 = vld [vmem:[#allocation5 + $0x3658] sm:$0xff]  ;;  %v4162_v44 = vld [vmem:[#allocation5 + $0x36e0] sm:$0xff] }
 0x764   :  { %1851 = vrot.lane.b32.xlu1 %v17319_v24, %s13540_s28  ;;  %13042 = vmatpush3.bf16.msra.mxu1 %v13041_v10  ;;  %v2250_v63 = vadd.f32 %v13963_v28, %v2119_v33  ;;  %v4142_v33 = vld [vmem:[#allocation5 + $0x3640] sm:$0xff]  ;;  %v4164_v32 = vld [vmem:[#allocation5 + $0x36f0] sm:$0xff]  ;;  %v4165_v6 = vld [vmem:[#allocation5 + $0x36f8] sm:$0xff] }
 0x765   :  { %13044 = vmatprep.subr.bf16.mxu1 %v13043_v45  ;;  %v4134_v45 = vld [vmem:[#allocation5 + $0x3600] sm:$0xff]  ;;  %v4215_v43 = vld [vmem:[#allocation5 + $0x3888] sm:$0xff] }
 0x766   :  { %v2380_v40 = vmax.f32 %v2250_v63, 0.0  ;;  %v4214_v48 = vld [vmem:[#allocation5 + $0x3880] sm:$0xff] }
 0x768   :  { %825 = vrot.lane.b32.xlu1 %v17299_v36, %s13541_s6  ;;  %13046 = vmatpush3.bf16.msra.mxu1 %v13045_v25 }
 0x769   :  { %13048 = vmatprep.subr.bf16.mxu1 %v13047_v54 }
 0x76c   :  { %436 = vrot.lane.b32.xlu1 %v17332_v13, %s13540_s28  ;;  %13050 = vmatpush3.bf16.msra.mxu1 %v13049_v2 }
 0x76d   :  { %13052 = vmatprep.subr.bf16.mxu1 %v13051_v14  ;;  %v4154_v14 = vld [vmem:[#allocation5 + $0x36a0] sm:$0xff] }
 0x770   :  { %13054 = vmatpush3.bf16.msra.mxu1 %v13053_v7  ;;  %v4156_v7 = vld [vmem:[#allocation5 + $0x36b0] sm:$0xff] }
 0x771   :  { %13056 = vmatprep.subr.bf16.mxu1 %v13055_v38  ;;  %v4157_v38 = vld [vmem:[#allocation5 + $0x36b8] sm:$0xff] }
 0x772   :  { %v13071_v17 = vpack.c.bf16 %v4157_v38, %v4156_v7 }
 0x774   :  { %13058 = vmatpush3.bf16.msra.mxu1 %v13057_v60  ;;  %v17373_v60 = vld [vmem:[%s17816_s1 + $0x3e8] sm:$0xff] }
 0x775   :  { %v17348_v11 = vpop.permute.xlu0 %1837  ;;  %13092 = vmatprep.subr.bf16.mxu1 %v13091_v51  ;;  %v4159_v51 = vld [vmem:[#allocation5 + $0x36c8] sm:$0xff] }
 0x776   :  { %v1908_v39 = vsel %vm450_vm0, %v17285_v53, %v17348_v11 }
 0x777   :  { %v2120_v10 = vmax.f32 %v17054_v37, %v1908_v39  ;;  %v13061_v37 = vpack.c.bf16 %v4135_v1, %v4134_v45  ;;  %v4161_v39 = vld [vmem:[#allocation5 + $0x36d8] sm:$0xff]  ;;  %v13077_v45 = vpack.c.bf16 %v4143_v30, %v4142_v33 }
 0x779   :  { %v17356_v35 = vpop.permute.xlu0 %811  ;;  %v2251_v0 = vadd.f32 %v13963_v28, %v2120_v10 }
 0x77a   :  { %v856_v25 = vsel %vm841_vm1, %v17306_v57, %v17356_v35  ;;  %v13067_v57 = vpack.c.bf16 %v4155_v31, %v4154_v14  ;;  %v13087_v31 = vpack.c.bf16 %v4165_v6, %v4164_v32  ;;  %v4166_v32 = vld [vmem:[#allocation5 + $0x3700] sm:$0xff]  ;;  %v4167_v6 = vld [vmem:[#allocation5 + $0x3708] sm:$0xff] }
 0x77b   :  { %v1479_v53 = vmul.f32 %v13735_v34, %v856_v25  ;;  %v2381_v54 = vmax.f32 %v2251_v0, 0.0  ;;  %v4144_v0 = vld [vmem:[#allocation5 + $0x3650] sm:$0xff]  ;;  %v4163_v25 = vld [vmem:[#allocation5 + $0x36e8] sm:$0xff] }
 0x77d   :  { %v17364_v2 = vadd.f32 %v1479_v53, %v1348_v41  ;;  %8197 = vmatprep.mubr.f32.mxu0 %v2381_v54  ;;  %v13079_v41 = vpack.c.bf16 %v4161_v39, %v4160_v27  ;;  %v13081_v54 = vpack.c.bf16 %v4145_v29, %v4144_v0  ;;  %v423_v27 = vpop.permute.xlu0 %422 }
 0x77e   :  { %8198 = vmatmul.mubr.f32.vlgmr.msra.gmra.mrb[52].mxu0 %v2380_v40  ;;  %v4146_v40 = vld [vmem:[#allocation5 + $0x3660] sm:$0xff] }
 0x77f   :  { %1853 = vrot.lane.b32.xlu0 %v17364_v2, %s13540_s28  ;;  %13062 = vmatpush3.bf16.msra.mxu0 %v13061_v37  ;;  %v13083_v37 = vpack.c.bf16 %v4163_v25, %v4162_v44 }
 0x780   :  { %13064 = vmatprep.subr.bf16.mxu0 %v13063_v21  ;;  %v4147_v21 = vld [vmem:[#allocation5 + $0x3668] sm:$0xff] }
 0x781   :  { %v13085_v14 = vpack.c.bf16 %v4147_v21, %v4146_v40  ;;  %v17414_v21 = vld [vmem:[%s17816_s1 + $0x3f0] sm:$0xff] }
 0x783   :  { %827 = vrot.lane.b32.xlu0 %v17304_v8, %s13541_s6  ;;  %13066 = vmatpush3.bf16.msra.mxu0 %v13065_v62  ;;  %v13075_v8 = vpack.c.bf16 %v4159_v51, %v4158_v59  ;;  %v4148_v62 = vld [vmem:[#allocation5 + $0x3670] sm:$0xff]  ;;  %v464_v51 = vsel %vm450_vm0, %v17261_v5, %v421_v52 }
 0x784   :  { %13068 = vmatprep.subr.bf16.mxu0 %v13067_v57  ;;  %v4149_v57 = vld [vmem:[#allocation5 + $0x3678] sm:$0xff]  ;;  %v1219_v30 = vmul.f32 %v13718_v16, %v464_v51 }
 0x787   :  { %13070 = vmatpush3.bf16.msra.mxu0 %v13069_v22  ;;  %438 = vrot.lane.b32.xlu0 %v17373_v60, %s13540_s28 }
 0x788   :  { %13072 = vmatprep.subr.bf16.mxu0 %v13071_v17  ;;  %v13123_v17 = vpack.c.bf16 %v4215_v43, %v4214_v48 }
 0x78a   :  { %v10663_v10 = vpop.f32.mrb[44].mxu1 }
 0x78b   :  { %v10664_v63 = vpop.f32.mrb[45].mxu1  ;;  %13074 = vmatpush3.bf16.msra.mxu0 %v13073_v55 }
 0x78c   :  { %v10665_v1 = vadd.f32 %v10664_v63, %v10663_v10  ;;  %13076 = vmatprep.subr.bf16.mxu0 %v13075_v8  ;;  %v13470_v8 = vld [vmem:[%s17816_s1 + $0x398] sm:$0xff] }
 0x78d   :  { %v1088_v33 = vmul.f32 %v13470_v8, %v13716_v15 }
 0x78e   :  { %v7710_v53 = vadd.f32 %v10665_v1, %v17315_v4  ;;  %v13089_v4 = vpack.c.bf16 %v4149_v57, %v4148_v62  ;;  %v4185_v62 = vld [vmem:[#allocation5 + $0x3798] sm:$0xff]  ;;  %v13471_v57 = vld [vmem:[%s17816_s1 + $0x3a0] sm:$0xff] }
 0x78f   :  { %13078 = vmatpush3.bf16.msra.mxu0 %v13077_v45  ;;  %v1349_v1 = vadd.f32 %v1219_v30, %v1088_v33  ;;  %v1089_v48 = vmul.f32 %v13471_v57, %v13716_v15  ;;  %v4186_v30 = vld [vmem:[#allocation5 + $0x37a0] sm:$0xff] }
 0x790   :  { %13080 = vmatprep.subr.bf16.mxu0 %v13079_v41 }
 0x793   :  { %13082 = vmatpush3.bf16.msra.mxu0 %v13081_v54  ;;  %v463_v54 = vsel %vm450_vm0, %v421_v52, %v423_v27 }
 0x794   :  { %13084 = vmatprep.subr.bf16.mxu0 %v13083_v37  ;;  %v1220_v43 = vmul.f32 %v13718_v16, %v463_v54 }
 0x796   :  { %v10698_v7 = vpop.f32.mrb[46].mxu0 }
 0x797   :  { %v10699_v38 = vpop.f32.mrb[47].mxu0  ;;  %13086 = vmatpush3.bf16.msra.mxu0 %v13085_v14 }
 0x798   :  { %v10700_v22 = vadd.f32 %v10699_v38, %v10698_v7  ;;  %13088 = vmatprep.subr.bf16.mxu0 %v13087_v31  ;;  %v4184_v31 = vld [vmem:[#allocation5 + $0x3790] sm:$0xff]  ;;  %v1090_v7 = vmul.f32 %v13716_v15, %v17113_v46  ;;  %v1350_v46 = vadd.f32 %v1220_v43, %v1089_v48  ;;  %v4190_v43 = vld [vmem:[#allocation5 + $0x37c0] sm:$0xff] }
 0x79a   :  { %v7780_v56 = vadd.f32 %v10700_v22, %v7710_v53  ;;  %v13093_v22 = vpack.c.bf16 %v4167_v6, %v4166_v32 }
 0x79b   :  { %13090 = vmatpush3.bf16.msra.mxu0 %v13089_v4 }
 0x79c   :  { %13124 = vmatprep.subr.bf16.mxu0 %v13123_v17  ;;  %v4168_v17 = vld [vmem:[#allocation5 + $0x3710] sm:$0xff] }
 0x7a2   :  { %v1840_v59 = vpop.permute.xlu1 %1839 }
 0x7a3   :  { %v1907_v39 = vsel %vm450_vm0, %v17348_v11, %v1840_v59 }
 0x7a4   :  { %v2121_v29 = vmax.f32 %v17104_v50, %v1907_v39 }
 0x7a6   :  { %v17381_v55 = vpop.permute.xlu1 %424  ;;  %v2252_v40 = vadd.f32 %v13963_v28, %v2121_v29 }
 0x7a7   :  { %v462_v50 = vsel %vm450_vm0, %v423_v27, %v17381_v55  ;;  %v4187_v27 = vld [vmem:[#allocation5 + $0x37a8] sm:$0xff] }
 0x7a8   :  { %v1221_v38 = vmul.f32 %v13718_v16, %v462_v50  ;;  %v2382_v52 = vmax.f32 %v2252_v40, 0.0  ;;  %v13099_v29 = vpack.c.bf16 %v4187_v27, %v4186_v30  ;;  %v4188_v40 = vld [vmem:[#allocation5 + $0x37b0] sm:$0xff]  ;;  %v4189_v50 = vld [vmem:[#allocation5 + $0x37b8] sm:$0xff]  ;;  %v4174_v30 = vld [vmem:[#allocation5 + $0x3740] sm:$0xff] }
 0x7a9   :  { %v4175_v27 = vld [vmem:[#allocation5 + $0x3748] sm:$0xff] }
 0x7aa   :  { %v10733_v10 = vpop.f32.mrb[46].mxu1  ;;  %v814_v63 = vpop.permute.xlu1 %813 }
 0x7ab   :  { %v10734_v45 = vpop.f32.mrb[47].mxu1  ;;  %v855_v5 = vsel %vm841_vm1, %v17356_v35, %v814_v63 }
 0x7ac   :  { %v10735_v41 = vadd.f32 %v10734_v45, %v10733_v10  ;;  %v1480_v0 = vmul.f32 %v13735_v34, %v855_v5  ;;  %v1351_v5 = vadd.f32 %v1221_v38, %v1090_v7  ;;  %v4191_v7 = vld [vmem:[#allocation5 + $0x37c8] sm:$0xff]  ;;  %v4198_v38 = vld [vmem:[#allocation5 + $0x3800] sm:$0xff] }
 0x7ae   :  { %v17396_v44 = vadd.f32 %v10735_v41, %v7780_v56  ;;  %v17398_v25 = vadd.f32 %v1480_v0, %v1349_v1  ;;  %v1842_v53 = vpop.permute.xlu0 %1841  ;;  %v4169_v56 = vld [vmem:[#allocation5 + $0x3718] sm:$0xff] }
 0x7af   :  { %v1906_v11 = vsel %vm450_vm0, %v1840_v59, %v1842_v53  ;;  %v1844_v37 = vpop.permute.xlu1 %1843  ;;  %v13095_v59 = vpack.c.bf16 %v4185_v62, %v4184_v31  ;;  %v13097_v45 = vpack.c.bf16 %v4169_v56, %v4168_v17  ;;  %v4172_v31 = vld [vmem:[#allocation5 + $0x3730] sm:$0xff]  ;;  %v4173_v62 = vld [vmem:[#allocation5 + $0x3738] sm:$0xff] }
 0x7b0   :  { %v2122_v35 = vmax.f32 %v17138_v47, %v1906_v11  ;;  %1855 = vrot.lane.b32.xlu1 %v17398_v25, %s13540_s28  ;;  %v1905_v51 = vsel %vm450_vm0, %v1842_v53, %v1844_v37  ;;  %v4170_v53 = vld [vmem:[#allocation5 + $0x3720] sm:$0xff]  ;;  %v4171_v11 = vld [vmem:[#allocation5 + $0x3728] sm:$0xff] }
 0x7b1   :  { %v2123_v0 = vmax.f32 %v17180_v42, %v1905_v51  ;;  %v13101_v42 = vpack.c.bf16 %v4171_v11, %v4170_v53  ;;  %v4217_v51 = vld [vmem:[#allocation5 + $0x3898] sm:$0xff]  ;;  %v4218_v53 = vld [vmem:[#allocation5 + $0x38a0] sm:$0xff]  ;;  %v4219_v11 = vld [vmem:[#allocation5 + $0x38a8] sm:$0xff] }
 0x7b2   :  { %v17416_v14 = vpop.permute.xlu0 %426  ;;  %v2253_v47 = vadd.f32 %v13963_v28, %v2122_v35 }
 0x7b3   :  { %v818_v8 = vpop.permute.xlu1 %817  ;;  %v2254_v6 = vadd.f32 %v13963_v28, %v2123_v0 }
 0x7b4   :  { %440 = vrot.lane.b32.xlu1 %v17414_v21, %s13540_s28  ;;  %v2383_v4 = vmax.f32 %v2253_v47, 0.0  ;;  %v461_v47 = vsel %vm450_vm0, %v17381_v55, %v17416_v14 }
 0x7b5   :  { %v1222_v17 = vmul.f32 %v13718_v16, %v461_v47  ;;  %v4194_v47 = vld [vmem:[#allocation5 + $0x37e0] sm:$0xff] }
 0x7b6   :  { %8267 = vmatprep.mubr.f32.mxu1 %v2383_v4  ;;  %v816_v33 = vpop.permute.xlu0 %815  ;;  %v4199_v4 = vld [vmem:[#allocation5 + $0x3808] sm:$0xff] }
 0x7b7   :  { %v853_v39 = vsel %vm841_vm1, %v816_v33, %v818_v8  ;;  %v854_v10 = vsel %vm841_vm1, %v814_v63, %v816_v33  ;;  %8268 = vmatmul.mubr.f32.vlgmr.msra.gmra.mrb[52].mxu1 %v2382_v52  ;;  %v13105_v52 = vpack.c.bf16 %v4173_v62, %v4172_v31  ;;  %v2384_v33 = vmax.f32 %v2254_v6, 0.0 }
 0x7b8   :  { %v1481_v1 = vmul.f32 %v13735_v34, %v854_v10  ;;  %v1482_v41 = vmul.f32 %v13735_v34, %v853_v39  ;;  %13094 = vmatpush3.bf16.msra.mxu1 %v13093_v22  ;;  %829 = vrot.lane.b32.xlu1 %v17332_v13, %s13541_s6  ;;  %v1091_v22 = vmul.f32 %v13716_v15, %v17154_v23  ;;  %v4192_v39 = vld [vmem:[#allocation5 + $0x37d0] sm:$0xff]  ;;  %v4193_v10 = vld [vmem:[#allocation5 + $0x37d8] sm:$0xff] }
 0x7b9   :  { %13096 = vmatprep.subr.bf16.mxu1 %v13095_v59  ;;  %v4216_v59 = vld [vmem:[#allocation5 + $0x3890] sm:$0xff]  ;;  %v13131_v62 = vpack.c.bf16 %v4219_v11, %v4218_v53 }
 0x7ba   :  { %v17440_v54 = vadd.f32 %v1481_v1, %v1350_v46  ;;  %v17442_v63 = vadd.f32 %v1482_v41, %v1351_v5  ;;  %v17444_v35 = vpop.permute.xlu0 %1845  ;;  %v17481_v46 = vld [vmem:[%s17816_s1 + $0x400] sm:$0xff]  ;;  %v13127_v5 = vpack.c.bf16 %v4217_v51, %v4216_v59  ;;  %v4200_v1 = vld [vmem:[#allocation5 + $0x3810] sm:$0xff]  ;;  %v4201_v41 = vld [vmem:[#allocation5 + $0x3818] sm:$0xff]  ;;  %v1352_v0 = vadd.f32 %v1222_v17, %v1091_v22 }
 0x7bb   :  { %v1904_v32 = vsel %vm450_vm0, %v1844_v37, %v17444_v35  ;;  %v13103_v37 = vpack.c.bf16 %v4189_v50, %v4188_v40  ;;  %v13111_v50 = vpack.c.bf16 %v4193_v10, %v4192_v39  ;;  %v13129_v31 = vpack.c.bf16 %v4201_v41, %v4200_v1  ;;  %v4178_v22 = vld [vmem:[#allocation5 + $0x3760] sm:$0xff]  ;;  %v4179_v17 = vld [vmem:[#allocation5 + $0x3768] sm:$0xff]  ;;  %v4197_v59 = vld [vmem:[#allocation5 + $0x37f8] sm:$0xff] }
 0x7bc   :  { %v2124_v13 = vmax.f32 %v17182_v18, %v1904_v32  ;;  %13098 = vmatpush3.bf16.msra.mxu1 %v13097_v45  ;;  %1857 = vrot.lane.b32.xlu0 %v17440_v54, %s13540_s28  ;;  %v17462_v18 = vld [vmem:[%s17816_s1 + $0x3f8] sm:$0xff]  ;;  %v13125_v45 = vpack.c.bf16 %v4199_v4, %v4198_v38  ;;  %v4176_v32 = vld [vmem:[#allocation5 + $0x3750] sm:$0xff]  ;;  %v4222_v1 = vld [vmem:[#allocation5 + $0x38c0] sm:$0xff] }
 0x7bd   :  { %1859 = vrot.lane.b32.xlu1 %v17442_v63, %s13540_s28  ;;  %13100 = vmatprep.subr.bf16.mxu1 %v13099_v29  ;;  %v13109_v29 = vpack.c.bf16 %v4175_v27, %v4174_v30  ;;  %v4221_v38 = vld [vmem:[#allocation5 + $0x38b8] sm:$0xff]  ;;  %v17503_v30 = vld [vmem:[%s17816_s1 + $0x408] sm:$0xff] }
 0x7be   :  { %v17464_v57 = vpop.permute.xlu0 %819  ;;  %v2255_v48 = vadd.f32 %v13963_v28, %v2124_v13  ;;  %v4177_v13 = vld [vmem:[#allocation5 + $0x3758] sm:$0xff]  ;;  %v4223_v41 = vld [vmem:[#allocation5 + $0x38c8] sm:$0xff] }
 0x7bf   :  { %v852_v55 = vsel %vm841_vm1, %v818_v8, %v17464_v57  ;;  %v13107_v8 = vpack.c.bf16 %v4191_v7, %v4190_v43  ;;  %v4203_v43 = vld [vmem:[#allocation5 + $0x3828] sm:$0xff]  ;;  %v13113_v7 = vpack.c.bf16 %v4177_v13, %v4176_v32  ;;  %v4205_v39 = vld [vmem:[#allocation5 + $0x3838] sm:$0xff]  ;;  %v4206_v32 = vld [vmem:[#allocation5 + $0x3840] sm:$0xff] }
 0x7c0   :  { %13102 = vmatpush3.bf16.msra.mxu1 %v13101_v42  ;;  %442 = vrot.lane.b32.xlu0 %v17462_v18, %s13540_s28  ;;  %v2385_v56 = vmax.f32 %v2255_v48, 0.0  ;;  %v1483_v23 = vmul.f32 %v13735_v34, %v852_v55  ;;  %v429_v42 = vpop.permute.xlu1 %428  ;;  %v4202_v48 = vld [vmem:[#allocation5 + $0x3820] sm:$0xff]  ;;  %v4220_v55 = vld [vmem:[#allocation5 + $0x38b0] sm:$0xff]  ;;  %v4207_v13 = vld [vmem:[#allocation5 + $0x3848] sm:$0xff] }
 0x7c1   :  { %833 = vrot.lane.b32.xlu1 %v17414_v21, %s13541_s6  ;;  %13104 = vmatprep.subr.bf16.mxu1 %v13103_v37  ;;  %v4195_v37 = vld [vmem:[#allocation5 + $0x37e8] sm:$0xff]  ;;  %v13133_v51 = vpack.c.bf16 %v4203_v43, %v4202_v48  ;;  %v13135_v27 = vpack.c.bf16 %v4221_v38, %v4220_v55  ;;  %v13139_v43 = vpack.c.bf16 %v4223_v41, %v4222_v1  ;;  %v4230_v55 = vld [vmem:[#allocation5 + $0x3900] sm:$0xff]  ;;  %v4208_v41 = vld [vmem:[#allocation5 + $0x3850] sm:$0xff] }
 0x7c2   :  { %8337 = vmatprep.mubr.f32.mxu0 %v2385_v56  ;;  %v17487_v40 = vpop.permute.xlu0 %430  ;;  %v17489_v6 = vadd.f32 %v1483_v23, %v1352_v0  ;;  %v13115_v4 = vpack.c.bf16 %v4195_v37, %v4194_v47  ;;  %v4204_v23 = vld [vmem:[#allocation5 + $0x3830] sm:$0xff]  ;;  %v460_v0 = vsel %vm450_vm0, %v17416_v14, %v429_v42  ;;  %v4247_v48 = vld [vmem:[#allocation5 + $0x3988] sm:$0xff]  ;;  %v1093_v14 = vmul.f32 %v13716_v15, %v17221_v61 }
 0x7c3   :  { %8338 = vmatmul.mubr.f32.vlgmr.msra.gmra.mrb[54].mxu0 %v2384_v33  ;;  %v459_v10 = vsel %vm450_vm0, %v429_v42, %v17487_v40  ;;  %v13137_v37 = vpack.c.bf16 %v4205_v39, %v4204_v23  ;;  %v4231_v38 = vld [vmem:[#allocation5 + $0x3908] sm:$0xff]  ;;  %v4248_v39 = vld [vmem:[#allocation5 + $0x3990] sm:$0xff] }
 0x7c4   :  { %13106 = vmatpush3.bf16.msra.mxu1 %v13105_v52  ;;  %831 = vrot.lane.b32.xlu0 %v17373_v60, %s13541_s6  ;;  %v4196_v52 = vld [vmem:[#allocation5 + $0x37f0] sm:$0xff]  ;;  %v13157_v23 = vpack.c.bf16 %v4231_v38, %v4230_v55  ;;  %v4250_v55 = vld [vmem:[#allocation5 + $0x39a0] sm:$0xff]  ;;  %v4251_v38 = vld [vmem:[#allocation5 + $0x39a8] sm:$0xff] }
 0x7c5   :  { %444 = vrot.lane.b32.xlu1 %v17481_v46, %s13540_s28  ;;  %13108 = vmatprep.subr.bf16.mxu1 %v13107_v8  ;;  %v13119_v11 = vpack.c.bf16 %v4197_v59, %v4196_v52 }
 0x7c6   :  { %13126 = vmatpush3.bf16.msra.mxu0 %v13125_v45 }
 0x7c7   :  { %13128 = vmatprep.subr.bf16.mxu0 %v13127_v5  ;;  %v4180_v5 = vld [vmem:[#allocation5 + $0x3770] sm:$0xff] }
 0x7c8   :  { %13110 = vmatpush3.bf16.msra.mxu1 %v13109_v29  ;;  %1861 = vrot.lane.b32.xlu0 %v17489_v6, %s13540_s28 }
 0x7c9   :  { %13112 = vmatprep.subr.bf16.mxu1 %v13111_v50  ;;  %837 = vrot.lane.b32.xlu1 %v17481_v46, %s13541_s6  ;;  %v4181_v50 = vld [vmem:[#allocation5 + $0x3778] sm:$0xff] }
 0x7ca   :  { %v1848_v56 = vpop.permute.xlu1 %1847  ;;  %13130 = vmatpush3.bf16.msra.mxu0 %v13129_v31  ;;  %v17520_v31 = vld [vmem:[#allocation5 + $0x38d0] sm:$0xff]  ;;  %v13121_v61 = vpack.c.bf16 %v4181_v50, %v4180_v5  ;;  %v4227_v50 = vld [vmem:[#allocation5 + $0x38e8] sm:$0xff] }
 0x7cb   :  { %v1903_v33 = vsel %vm450_vm0, %v17444_v35, %v1848_v56  ;;  %v17498_v8 = vpop.permute.xlu0 %1849  ;;  %13132 = vmatprep.subr.bf16.mxu0 %v13131_v62  ;;  %v13117_v35 = vpack.c.bf16 %v4179_v17, %v4178_v22  ;;  %v4246_v62 = vld [vmem:[#allocation5 + $0x3980] sm:$0xff]  ;;  %v1223_v17 = vmul.f32 %v13718_v16, %v460_v0  ;;  %v4209_v0 = vld [vmem:[#allocation5 + $0x3858] sm:$0xff] }
 0x7cc   :  { %v1902_v45 = vsel %vm450_vm0, %v1848_v56, %v17498_v8  ;;  %13114 = vmatpush3.bf16.msra.mxu1 %v13113_v7  ;;  %835 = vrot.lane.b32.xlu0 %v17462_v18, %s13541_s6  ;;  %v2125_v29 = vmax.f32 %v17229_v9, %v1903_v33  ;;  %v1224_v9 = vmul.f32 %v13718_v16, %v459_v10  ;;  %v4225_v7 = vld [vmem:[#allocation5 + $0x38d8] sm:$0xff] }
 0x7cd   :  { %v2126_v53 = vmax.f32 %v17283_v3, %v1902_v45  ;;  %13116 = vmatprep.subr.bf16.mxu1 %v13115_v4  ;;  %v13472_v4 = vld [vmem:[%s17816_s1 + $0x3b8] sm:$0xff]  ;;  %v13155_v59 = vpack.c.bf16 %v4247_v48, %v4246_v62  ;;  %v13141_v33 = vpack.c.bf16 %v4207_v13, %v4206_v32  ;;  %v1094_v48 = vmul.f32 %v13716_v15, %v17254_v19  ;;  %v4228_v19 = vld [vmem:[#allocation5 + $0x38f0] sm:$0xff] }
 0x7ce   :  { %v17518_v47 = vpop.permute.xlu1 %432  ;;  %13134 = vmatpush3.bf16.msra.mxu0 %v13133_v51  ;;  %v1092_v22 = vmul.f32 %v13472_v4, %v13716_v15  ;;  %v2256_v56 = vadd.f32 %v13963_v28, %v2125_v29  ;;  %v4249_v10 = vld [vmem:[#allocation5 + $0x3998] sm:$0xff]  ;;  %v1354_v45 = vadd.f32 %v1224_v9, %v1093_v14 }
 0x7cf   :  { %v17525_v42 = vpop.permute.xlu0 %434  ;;  %v2257_v3 = vadd.f32 %v13963_v28, %v2126_v53  ;;  %13136 = vmatprep.subr.bf16.mxu0 %v13135_v27  ;;  %v13143_v27 = vpack.c.bf16 %v4225_v7, %v17520_v31  ;;  %v4232_v31 = vld [vmem:[#allocation5 + $0x3910] sm:$0xff]  ;;  %v4233_v62 = vld [vmem:[#allocation5 + $0x3918] sm:$0xff]  ;;  %v13145_v7 = vpack.c.bf16 %v4209_v0, %v4208_v41 }
 0x7d0   :  { %13118 = vmatpush3.bf16.msra.mxu1 %v13117_v35  ;;  %446 = vrot.lane.b32.xlu0 %v17503_v30, %s13540_s28  ;;  %v458_v35 = vsel %vm450_vm0, %v17487_v40, %v17518_v47  ;;  %v1353_v29 = vadd.f32 %v1223_v17, %v1092_v22  ;;  %v4226_v40 = vld [vmem:[#allocation5 + $0x38e0] sm:$0xff]  ;;  %v2386_v32 = vmax.f32 %v2256_v56, 0.0  ;;  %v4211_v56 = vld [vmem:[#allocation5 + $0x3868] sm:$0xff]  ;;  %v4253_v41 = vld [vmem:[#allocation5 + $0x39b8] sm:$0xff] }
 0x7d1   :  { %13120 = vmatprep.subr.bf16.mxu1 %v13119_v11  ;;  %v2387_v52 = vmax.f32 %v2257_v3, 0.0  ;;  %v1225_v14 = vmul.f32 %v13718_v16, %v458_v35  ;;  %v13147_v17 = vpack.c.bf16 %v4227_v50, %v4226_v40  ;;  %v4212_v0 = vld [vmem:[#allocation5 + $0x3870] sm:$0xff]  ;;  %v4278_v40 = vld [vmem:[#allocation5 + $0x3a80] sm:$0xff]  ;;  %v4279_v50 = vld [vmem:[#allocation5 + $0x3a88] sm:$0xff] }
 0x7d2   :  { %v822_v51 = vpop.permute.xlu1 %821  ;;  %13138 = vmatpush3.bf16.msra.mxu0 %v13137_v37  ;;  %v13159_v37 = vpack.c.bf16 %v4249_v10, %v4248_v39  ;;  %v4234_v39 = vld [vmem:[#allocation5 + $0x3920] sm:$0xff] }
 0x7d3   :  { %v851_v5 = vsel %vm841_vm1, %v17464_v57, %v822_v51  ;;  %8407 = vmatprep.mubr.f32.mxu1 %v2387_v52  ;;  %v824_v1 = vpop.permute.xlu0 %823  ;;  %13140 = vmatprep.subr.bf16.mxu0 %v13139_v43  ;;  %v4229_v52 = vld [vmem:[#allocation5 + $0x38f8] sm:$0xff]  ;;  %v1355_v10 = vadd.f32 %v1225_v14, %v1094_v48  ;;  %v13187_v48 = vpack.c.bf16 %v4279_v50, %v4278_v40  ;;  %v4311_v40 = vld [vmem:[#allocation5 + $0x3b88] sm:$0xff] }
 0x7d4   :  { %v1484_v53 = vmul.f32 %v13735_v34, %v851_v5  ;;  %v850_v11 = vsel %vm841_vm1, %v822_v51, %v824_v1  ;;  %13122 = vmatpush3.bf16.msra.mxu1 %v13121_v61  ;;  %839 = vrot.lane.b32.xlu0 %v17503_v30, %s13541_s6  ;;  %v4210_v61 = vld [vmem:[#allocation5 + $0x3860] sm:$0xff]  ;;  %v4252_v5 = vld [vmem:[#allocation5 + $0x39b0] sm:$0xff] }
 0x7d5   :  { %v1485_v57 = vmul.f32 %v13735_v34, %v850_v11  ;;  %v10768_v13 = vpop.f32.mrb[48].mxu0  ;;  %13156 = vmatprep.subr.bf16.mxu1 %v13155_v59  ;;  %v13161_v59 = vpack.c.bf16 %v4233_v62, %v4232_v31  ;;  %v13149_v35 = vpack.c.bf16 %v4211_v56, %v4210_v61  ;;  %v4254_v62 = vld [vmem:[#allocation5 + $0x39c0] sm:$0xff]  ;;  %v4240_v56 = vld [vmem:[#allocation5 + $0x3950] sm:$0xff] }
 0x7d6   :  { %v17553_v9 = vadd.f32 %v1484_v53, %v1353_v29  ;;  %v17555_v3 = vpop.permute.xlu1 %1851  ;;  %v10769_v43 = vpop.f32.mrb[49].mxu0  ;;  %13142 = vmatpush3.bf16.msra.mxu0 %v13141_v33  ;;  %v13163_v33 = vpack.c.bf16 %v4251_v38, %v4250_v55  ;;  %v4213_v29 = vld [vmem:[#allocation5 + $0x3878] sm:$0xff]  ;;  %v4239_v55 = vld [vmem:[#allocation5 + $0x3948] sm:$0xff]  ;;  %v4256_v38 = vld [vmem:[#allocation5 + $0x39d0] sm:$0xff] }
 0x7d7   :  { %v17557_v4 = vadd.f32 %v1485_v57, %v1354_v45  ;;  %8408 = vmatmul.mubr.f32.vlgmr.msra.gmra.mrb[54].mxu1 %v2386_v32  ;;  %v10770_v22 = vadd.f32 %v10769_v43, %v10768_v13  ;;  %13144 = vmatprep.subr.bf16.mxu0 %v13143_v27  ;;  %v4235_v27 = vld [vmem:[#allocation5 + $0x3928] sm:$0xff]  ;;  %v13167_v32 = vpack.c.bf16 %v4253_v41, %v4252_v5  ;;  %v4236_v57 = vld [vmem:[#allocation5 + $0x3930] sm:$0xff]  ;;  %v4237_v13 = vld [vmem:[#allocation5 + $0x3938] sm:$0xff] }
 0x7d8   :  { %1863 = vrot.lane.b32.xlu1 %v17553_v9, %s13540_s28  ;;  %13158 = vmatpush3.bf16.msra.mxu1 %v13157_v23  ;;  %v13165_v11 = vpack.c.bf16 %v4235_v27, %v4234_v39  ;;  %v13153_v31 = vpack.c.bf16 %v4213_v29, %v4212_v0  ;;  %v13169_v14 = vpack.c.bf16 %v4237_v13, %v4236_v57  ;;  %v4242_v27 = vld [vmem:[#allocation5 + $0x3960] sm:$0xff]  ;;  %v4261_v5 = vld [vmem:[#allocation5 + $0x39f8] sm:$0xff]  ;;  %v4244_v0 = vld [vmem:[#allocation5 + $0x3970] sm:$0xff] }
 0x7d9   :  { %v17562_v51 = vadd.f32 %v10770_v22, %v17396_v44  ;;  %1865 = vrot.lane.b32.xlu0 %v17557_v4, %s13540_s28  ;;  %13160 = vmatprep.subr.bf16.mxu1 %v13159_v37  ;;  %v13151_v44 = vpack.c.bf16 %v4229_v52, %v4228_v19  ;;  %v4257_v22 = vld [vmem:[#allocation5 + $0x39d8] sm:$0xff]  ;;  %v4258_v52 = vld [vmem:[#allocation5 + $0x39e0] sm:$0xff]  ;;  %v1095_v57 = vmul.f32 %v13716_v15, %v17299_v36 }
 0x7da   :  { %v17566_v45 = vpop.permute.xlu1 %825  ;;  %13146 = vmatpush3.bf16.msra.mxu0 %v13145_v7  ;;  %v4238_v7 = vld [vmem:[#allocation5 + $0x3940] sm:$0xff]  ;;  %v13175_v61 = vpack.c.bf16 %v4257_v22, %v4256_v38  ;;  %v4241_v19 = vld [vmem:[#allocation5 + $0x3958] sm:$0xff] }
 0x7db   :  { %v849_v23 = vsel %vm841_vm1, %v824_v1, %v17566_v45  ;;  %13148 = vmatprep.subr.bf16.mxu0 %v13147_v17  ;;  %v4255_v1 = vld [vmem:[#allocation5 + $0x39c8] sm:$0xff]  ;;  %v13173_v17 = vpack.c.bf16 %v4239_v55, %v4238_v7  ;;  %v4245_v29 = vld [vmem:[#allocation5 + $0x3978] sm:$0xff]  ;;  %v4280_v7 = vld [vmem:[#allocation5 + $0x3a90] sm:$0xff] }
 0x7dc   :  { %v1486_v53 = vmul.f32 %v13735_v34, %v849_v23  ;;  %13162 = vmatpush3.bf16.msra.mxu1 %v13161_v59  ;;  %v13171_v43 = vpack.c.bf16 %v4255_v1, %v4254_v62  ;;  %v4259_v59 = vld [vmem:[#allocation5 + $0x39e8] sm:$0xff]  ;;  %v1901_v23 = vsel %vm450_vm0, %v17498_v8, %v17555_v3  ;;  %v4262_v1 = vld [vmem:[#allocation5 + $0x3a00] sm:$0xff]  ;;  %v4281_v55 = vld [vmem:[#allocation5 + $0x3a98] sm:$0xff] }
 0x7dd   :  { %13164 = vmatprep.subr.bf16.mxu1 %v13163_v33  ;;  %v13177_v33 = vpack.c.bf16 %v4241_v19, %v4240_v56  ;;  %v13179_v39 = vpack.c.bf16 %v4259_v59, %v4258_v52  ;;  %v2127_v50 = vmax.f32 %v17287_v12, %v1901_v23  ;;  %v4264_v56 = vld [vmem:[#allocation5 + $0x3a10] sm:$0xff]  ;;  %v4265_v19 = vld [vmem:[#allocation5 + $0x3a18] sm:$0xff]  ;;  %v4282_v59 = vld [vmem:[#allocation5 + $0x3aa0] sm:$0xff] }
 0x7de   :  { %v17572_v37 = vadd.f32 %v1486_v53, %v1355_v10  ;;  %13150 = vmatpush3.bf16.msra.mxu0 %v13149_v35  ;;  %v4243_v10 = vld [vmem:[#allocation5 + $0x3968] sm:$0xff]  ;;  %v4260_v35 = vld [vmem:[#allocation5 + $0x39f0] sm:$0xff]  ;;  %v457_v53 = vsel %vm450_vm0, %v17518_v47, %v17525_v42 }
 0x7df   :  { %13152 = vmatprep.subr.bf16.mxu0 %v13151_v44  ;;  %v13181_v41 = vpack.c.bf16 %v4243_v10, %v4242_v27  ;;  %v13183_v44 = vpack.c.bf16 %v4261_v5, %v4260_v35  ;;  %v1226_v8 = vmul.f32 %v13718_v16, %v457_v53  ;;  %v2258_v12 = vadd.f32 %v13963_v28, %v2127_v50  ;;  %v4266_v27 = vld [vmem:[#allocation5 + $0x3a20] sm:$0xff]  ;;  %v4267_v10 = vld [vmem:[#allocation5 + $0x3a28] sm:$0xff]  ;;  %v4284_v35 = vld [vmem:[#allocation5 + $0x3ab0] sm:$0xff] }
 0x7e0   :  { %1867 = vrot.lane.b32.xlu1 %v17572_v37, %s13540_s28  ;;  %13166 = vmatpush3.bf16.msra.mxu1 %v13165_v11  ;;  %v4310_v11 = vld [vmem:[#allocation5 + $0x3b80] sm:$0xff]  ;;  %v4285_v5 = vld [vmem:[#allocation5 + $0x3ab8] sm:$0xff]  ;;  %v4287_v53 = vld [vmem:[#allocation5 + $0x3ac8] sm:$0xff] }
 0x7e1   :  { %13168 = vmatprep.subr.bf16.mxu1 %v13167_v32  ;;  %v13185_v32 = vpack.c.bf16 %v4245_v29, %v4244_v0  ;;  %v13199_v23 = vpack.c.bf16 %v4285_v5, %v4284_v35  ;;  %v4269_v0 = vld [vmem:[#allocation5 + $0x3a38] sm:$0xff]  ;;  %v4286_v29 = vld [vmem:[#allocation5 + $0x3ac0] sm:$0xff] }
 0x7e2   :  { %13154 = vmatpush3.bf16.msra.mxu0 %v13153_v31  ;;  %v13219_v31 = vpack.c.bf16 %v4311_v40, %v4310_v11  ;;  %v13203_v40 = vpack.c.bf16 %v4287_v53, %v4286_v29  ;;  %v4270_v50 = vld [vmem:[#allocation5 + $0x3a40] sm:$0xff]  ;;  %v13473_v53 = vld [vmem:[%s17816_s1 + $0x3d8] sm:$0xff] }
 0x7e3   :  { %13188 = vmatprep.subr.bf16.mxu0 %v13187_v48  ;;  %v4263_v48 = vld [vmem:[#allocation5 + $0x3a08] sm:$0xff] }
 0x7e4   :  { %13170 = vmatpush3.bf16.msra.mxu1 %v13169_v14  ;;  %v1356_v14 = vadd.f32 %v1226_v8, %v1095_v57  ;;  %v13189_v22 = vpack.c.bf16 %v4263_v48, %v4262_v1  ;;  %v4288_v57 = vld [vmem:[#allocation5 + $0x3ad0] sm:$0xff]  ;;  %v4289_v8 = vld [vmem:[#allocation5 + $0x3ad8] sm:$0xff]  ;;  %v4290_v1 = vld [vmem:[#allocation5 + $0x3ae0] sm:$0xff] }
 0x7e5   :  { %13172 = vmatprep.subr.bf16.mxu1 %v13171_v43  ;;  %v4291_v48 = vld [vmem:[#allocation5 + $0x3ae8] sm:$0xff] }
 0x7e8   :  { %13174 = vmatpush3.bf16.msra.mxu1 %v13173_v17  ;;  %v2388_v17 = vmax.f32 %v2258_v12, 0.0  ;;  %v4273_v12 = vld [vmem:[#allocation5 + $0x3a58] sm:$0xff] }
 0x7e9   :  { %13176 = vmatprep.subr.bf16.mxu1 %v13175_v61  ;;  %v13191_v61 = vpack.c.bf16 %v4281_v55, %v4280_v7 }
 0x7ec   :  { %13178 = vmatpush3.bf16.msra.mxu1 %v13177_v33  ;;  %v4283_v33 = vld [vmem:[#allocation5 + $0x3aa8] sm:$0xff] }
 0x7ed   :  { %13180 = vmatprep.subr.bf16.mxu1 %v13179_v39  ;;  %v13193_v39 = vpack.c.bf16 %v4265_v19, %v4264_v56 }
 0x7f0   :  { %13182 = vmatpush3.bf16.msra.mxu1 %v13181_v41  ;;  %v13197_v41 = vpack.c.bf16 %v4267_v10, %v4266_v27 }
 0x7f1   :  { %v17588_v13 = vpop.permute.xlu0 %1853  ;;  %13184 = vmatprep.subr.bf16.mxu1 %v13183_v44  ;;  %v4268_v44 = vld [vmem:[#allocation5 + $0x3a30] sm:$0xff] }
 0x7f2   :  { %v1900_v47 = vsel %vm450_vm0, %v17555_v3, %v17588_v13  ;;  %v13201_v11 = vpack.c.bf16 %v4269_v0, %v4268_v44  ;;  %v437_v44 = vpop.permute.xlu1 %436 }
 0x7f3   :  { %v2128_v62 = vmax.f32 %v17319_v24, %v1900_v47  ;;  %v13207_v47 = vpack.c.bf16 %v4289_v8, %v4288_v57  ;;  %v456_v0 = vsel %vm450_vm0, %v17525_v42, %v437_v44 }
 0x7f4   :  { %13186 = vmatpush3.bf16.msra.mxu1 %v13185_v32  ;;  %v4271_v32 = vld [vmem:[#allocation5 + $0x3a48] sm:$0xff] }
 0x7f5   :  { %v17596_v36 = vpop.permute.xlu0 %827  ;;  %v2259_v43 = vadd.f32 %v13963_v28, %v2128_v62  ;;  %13220 = vmatprep.subr.bf16.mxu1 %v13219_v31  ;;  %v13205_v31 = vpack.c.bf16 %v4271_v32, %v4270_v50  ;;  %v4272_v62 = vld [vmem:[#allocation5 + $0x3a50] sm:$0xff] }
 0x7f6   :  { %v848_v3 = vsel %vm841_vm1, %v17566_v45, %v17596_v36  ;;  %v13195_v45 = vpack.c.bf16 %v4283_v33, %v4282_v59  ;;  %v13209_v7 = vpack.c.bf16 %v4273_v12, %v4272_v62  ;;  %v4276_v59 = vld [vmem:[#allocation5 + $0x3a70] sm:$0xff]  ;;  %v4277_v33 = vld [vmem:[#allocation5 + $0x3a78] sm:$0xff] }
 0x7f7   :  { %v1487_v24 = vmul.f32 %v13735_v34, %v848_v3  ;;  %v2389_v38 = vmax.f32 %v2259_v43, 0.0  ;;  %v13211_v3 = vpack.c.bf16 %v4291_v48, %v4290_v1  ;;  %v13217_v27 = vpack.c.bf16 %v4277_v33, %v4276_v59 }
 0x7f9   :  { %v17604_v52 = vadd.f32 %v1487_v24, %v1356_v14  ;;  %8477 = vmatprep.mubr.f32.mxu0 %v2389_v38  ;;  %v4274_v24 = vld [vmem:[#allocation5 + $0x3a60] sm:$0xff]  ;;  %v4275_v38 = vld [vmem:[#allocation5 + $0x3a68] sm:$0xff]  ;;  %v439_v50 = vpop.permute.xlu0 %438 }
 0x7fa   :  { %8478 = vmatmul.mubr.f32.vlgmr.msra.gmra.mrb[56].mxu0 %v2388_v17  ;;  %v4293_v17 = vld [vmem:[#allocation5 + $0x3af8] sm:$0xff]  ;;  %v13213_v56 = vpack.c.bf16 %v4275_v38, %v4274_v24  ;;  %v4294_v24 = vld [vmem:[#allocation5 + $0x3b00] sm:$0xff]  ;;  %v4295_v38 = vld [vmem:[#allocation5 + $0x3b08] sm:$0xff] }
 0x7fb   :  { %1869 = vrot.lane.b32.xlu0 %v17604_v52, %s13540_s28  ;;  %13190 = vmatpush3.bf16.msra.mxu0 %v13189_v22  ;;  %v4292_v22 = vld [vmem:[#allocation5 + $0x3af0] sm:$0xff] }
 0x7fc   :  { %13192 = vmatprep.subr.bf16.mxu0 %v13191_v61  ;;  %v13215_v19 = vpack.c.bf16 %v4293_v17, %v4292_v22 }
 0x7ff   :  { %13194 = vmatpush3.bf16.msra.mxu0 %v13193_v39  ;;  %v4342_v39 = vld [vmem:[#allocation5 + $0x3c80] sm:$0xff] }
 0x800   :  { %13196 = vmatprep.subr.bf16.mxu0 %v13195_v45  ;;  %v4343_v45 = vld [vmem:[#allocation5 + $0x3c88] sm:$0xff] }
 0x801   :  { %v13251_v10 = vpack.c.bf16 %v4343_v45, %v4342_v39  ;;  %v1098_v39 = vmul.f32 %v13716_v15, %v17373_v60 }
 0x803   :  { %13198 = vmatpush3.bf16.msra.mxu0 %v13197_v41 }
 0x804   :  { %13200 = vmatprep.subr.bf16.mxu0 %v13199_v23 }
 0x807   :  { %13202 = vmatpush3.bf16.msra.mxu0 %v13201_v11  ;;  %v1096_v11 = vmul.f32 %v13473_v53, %v13716_v15  ;;  %v4315_v53 = vld [vmem:[#allocation5 + $0x3ba8] sm:$0xff] }
 0x808   :  { %13204 = vmatprep.subr.bf16.mxu0 %v13203_v40  ;;  %v1227_v40 = vmul.f32 %v13718_v16, %v456_v0  ;;  %v4314_v0 = vld [vmem:[#allocation5 + $0x3ba0] sm:$0xff] }
 0x80a   :  { %v10803_v14 = vpop.f32.mrb[48].mxu1 }
 0x80b   :  { %v10804_v43 = vpop.f32.mrb[49].mxu1  ;;  %13206 = vmatpush3.bf16.msra.mxu0 %v13205_v31 }
 0x80c   :  { %v10805_v55 = vadd.f32 %v10804_v43, %v10803_v14  ;;  %13208 = vmatprep.subr.bf16.mxu0 %v13207_v47  ;;  %v1357_v47 = vadd.f32 %v1227_v40, %v1096_v11 }
 0x80e   :  { %v7990_v61 = vadd.f32 %v10805_v55, %v17562_v51  ;;  %v455_v55 = vsel %vm450_vm0, %v437_v44, %v439_v50 }
 0x80f   :  { %13210 = vmatpush3.bf16.msra.mxu0 %v13209_v7  ;;  %v1228_v59 = vmul.f32 %v13718_v16, %v455_v55 }
 0x810   :  { %13212 = vmatprep.subr.bf16.mxu0 %v13211_v3 }
 0x813   :  { %13214 = vmatpush3.bf16.msra.mxu0 %v13213_v56  ;;  %v4313_v56 = vld [vmem:[#allocation5 + $0x3b98] sm:$0xff] }
 0x814   :  { %13216 = vmatprep.subr.bf16.mxu0 %v13215_v19  ;;  %v13474_v19 = vld [vmem:[%s17816_s1 + $0x3e0] sm:$0xff] }
 0x816   :  { %v10838_v35 = vpop.f32.mrb[50].mxu0 }
 0x817   :  { %v10839_v5 = vpop.f32.mrb[51].mxu0  ;;  %13218 = vmatpush3.bf16.msra.mxu0 %v13217_v27 }
 0x818   :  { %v10840_v41 = vadd.f32 %v10839_v5, %v10838_v35  ;;  %13252 = vmatprep.subr.bf16.mxu0 %v13251_v10  ;;  %v13221_v10 = vpack.c.bf16 %v4295_v38, %v4294_v24  ;;  %v4296_v35 = vld [vmem:[#allocation5 + $0x3b10] sm:$0xff]  ;;  %v4297_v5 = vld [vmem:[#allocation5 + $0x3b18] sm:$0xff] }
 0x81a   :  { %v8060_v23 = vadd.f32 %v10840_v41, %v7990_v61  ;;  %v4312_v61 = vld [vmem:[#allocation5 + $0x3b90] sm:$0xff] }
 0x822   :  { %v1856_v51 = vpop.permute.xlu1 %1855 }
 0x823   :  { %v1899_v32 = vsel %vm450_vm0, %v17588_v13, %v1856_v51 }
 0x824   :  { %v2129_v1 = vmax.f32 %v17364_v2, %v1899_v32  ;;  %v13225_v32 = vpack.c.bf16 %v4297_v5, %v4296_v35  ;;  %v4326_v5 = vld [vmem:[#allocation5 + $0x3c00] sm:$0xff] }
 0x826   :  { %v441_v29 = vpop.permute.xlu1 %440  ;;  %v2260_v3 = vadd.f32 %v13963_v28, %v2129_v1  ;;  %v13227_v1 = vpack.c.bf16 %v4315_v53, %v4314_v0  ;;  %v4344_v53 = vld [vmem:[#allocation5 + $0x3c90] sm:$0xff] }
 0x827   :  { %v454_v2 = vsel %vm450_vm0, %v439_v50, %v441_v29 }
 0x828   :  { %v1229_v45 = vmul.f32 %v13718_v16, %v454_v2  ;;  %v2390_v41 = vmax.f32 %v2260_v3, 0.0  ;;  %v4317_v3 = vld [vmem:[#allocation5 + $0x3bb8] sm:$0xff]  ;;  %v1099_v2 = vmul.f32 %v13716_v15, %v17414_v21 }
 0x82a   :  { %v10873_v57 = vpop.f32.mrb[50].mxu1  ;;  %v830_v8 = vpop.permute.xlu1 %829 }
 0x82b   :  { %v10874_v31 = vpop.f32.mrb[51].mxu1  ;;  %v847_v42 = vsel %vm841_vm1, %v17596_v36, %v830_v8 }
 0x82c   :  { %v10875_v62 = vadd.f32 %v10874_v31, %v10873_v57  ;;  %v1488_v12 = vmul.f32 %v13735_v34, %v847_v42  ;;  %v1359_v57 = vadd.f32 %v1229_v45, %v1098_v39  ;;  %v4319_v39 = vld [vmem:[#allocation5 + $0x3bc8] sm:$0xff] }
 0x82e   :  { %v17625_v48 = vadd.f32 %v10875_v62, %v8060_v23  ;;  %v17627_v14 = vadd.f32 %v1488_v12, %v1357_v47  ;;  %v1858_v43 = vpop.permute.xlu0 %1857  ;;  %v13223_v23 = vpack.c.bf16 %v4313_v56, %v4312_v61  ;;  %v4300_v56 = vld [vmem:[#allocation5 + $0x3b30] sm:$0xff] }
 0x82f   :  { %v1860_v7 = vpop.permute.xlu1 %1859  ;;  %v1898_v13 = vsel %vm450_vm0, %v1856_v51, %v1858_v43 }
 0x830   :  { %v2130_v36 = vmax.f32 %v17398_v25, %v1898_v13  ;;  %1871 = vrot.lane.b32.xlu1 %v17627_v14, %s13540_s28  ;;  %v1097_v25 = vmul.f32 %v13474_v19, %v13716_v15  ;;  %v1897_v44 = vsel %vm450_vm0, %v1858_v43, %v1860_v7  ;;  %v4299_v43 = vld [vmem:[#allocation5 + $0x3b28] sm:$0xff]  ;;  %v4301_v19 = vld [vmem:[#allocation5 + $0x3b38] sm:$0xff] }
 0x831   :  { %v2131_v62 = vmax.f32 %v17440_v54, %v1897_v44  ;;  %v1100_v54 = vmul.f32 %v13716_v15, %v17462_v18  ;;  %v13233_v35 = vpack.c.bf16 %v4301_v19, %v4300_v56  ;;  %v4322_v56 = vld [vmem:[#allocation5 + $0x3be0] sm:$0xff]  ;;  %v4323_v19 = vld [vmem:[#allocation5 + $0x3be8] sm:$0xff] }
 0x832   :  { %v443_v22 = vpop.permute.xlu0 %442  ;;  %v2261_v17 = vadd.f32 %v13963_v28, %v2130_v36  ;;  %v1358_v11 = vadd.f32 %v1228_v59, %v1097_v25  ;;  %v4316_v36 = vld [vmem:[#allocation5 + $0x3bb0] sm:$0xff] }
 0x833   :  { %v834_v33 = vpop.permute.xlu1 %833  ;;  %v453_v31 = vsel %vm450_vm0, %v441_v29, %v443_v22  ;;  %v2262_v18 = vadd.f32 %v13963_v28, %v2131_v62  ;;  %v4320_v62 = vld [vmem:[#allocation5 + $0x3bd0] sm:$0xff] }
 0x834   :  { %v2391_v27 = vmax.f32 %v2261_v17, 0.0  ;;  %v1230_v24 = vmul.f32 %v13718_v16, %v453_v31 }
 0x836   :  { %8547 = vmatprep.mubr.f32.mxu1 %v2391_v27  ;;  %v832_v51 = vpop.permute.xlu0 %831  ;;  %v1360_v45 = vadd.f32 %v1230_v24, %v1099_v2  ;;  %v4329_v2 = vld [vmem:[#allocation5 + $0x3c18] sm:$0xff] }
 0x837   :  { %v17650_v40 = vpop.permute.xlu1 %444  ;;  %v845_v60 = vsel %vm841_vm1, %v832_v51, %v834_v33  ;;  %v846_v50 = vsel %vm841_vm1, %v830_v8, %v832_v51  ;;  %8548 = vmatmul.mubr.f32.vlgmr.msra.gmra.mrb[56].mxu1 %v2390_v41  ;;  %v4298_v8 = vld [vmem:[#allocation5 + $0x3b20] sm:$0xff]  ;;  %v4327_v41 = vld [vmem:[#allocation5 + $0x3c08] sm:$0xff] }
 0x838   :  { %v1489_v42 = vmul.f32 %v13735_v34, %v846_v50  ;;  %v1490_v47 = vmul.f32 %v13735_v34, %v845_v60  ;;  %13222 = vmatpush3.bf16.msra.mxu1 %v13221_v10  ;;  %v452_v12 = vsel %vm450_vm0, %v443_v22, %v17650_v40  ;;  %v13229_v21 = vpack.c.bf16 %v4299_v43, %v4298_v8 }
 0x839   :  { %13224 = vmatprep.subr.bf16.mxu1 %v13223_v23  ;;  %v1231_v22 = vmul.f32 %v13718_v16, %v452_v12  ;;  %v2392_v60 = vmax.f32 %v2262_v18, 0.0  ;;  %v4321_v12 = vld [vmem:[#allocation5 + $0x3bd8] sm:$0xff]  ;;  %v1102_v8 = vmul.f32 %v13716_v15, %v17503_v30  ;;  %v4346_v30 = vld [vmem:[#allocation5 + $0x3ca0] sm:$0xff] }
 0x83a   :  { %v17664_v13 = vadd.f32 %v1489_v42, %v1358_v11  ;;  %v17666_v55 = vadd.f32 %v1490_v47, %v1359_v57  ;;  %v17668_v29 = vpop.permute.xlu0 %1861  ;;  %v4345_v11 = vld [vmem:[#allocation5 + $0x3c98] sm:$0xff]  ;;  %v4303_v57 = vld [vmem:[#allocation5 + $0x3b48] sm:$0xff] }
 0x83b   :  { %v1896_v38 = vsel %vm450_vm0, %v1860_v7, %v17668_v29  ;;  %v17682_v61 = vpop.permute.xlu1 %837  ;;  %v13231_v7 = vpack.c.bf16 %v4317_v3, %v4316_v36  ;;  %v1361_v23 = vadd.f32 %v1231_v22, %v1100_v54  ;;  %v13255_v36 = vpack.c.bf16 %v4345_v11, %v4344_v53  ;;  %v4328_v3 = vld [vmem:[#allocation5 + $0x3c10] sm:$0xff]  ;;  %v4305_v22 = vld [vmem:[#allocation5 + $0x3b58] sm:$0xff] }
 0x83c   :  { %v2132_v17 = vmax.f32 %v17442_v63, %v1896_v38  ;;  %13226 = vmatpush3.bf16.msra.mxu1 %v13225_v32  ;;  %1873 = vrot.lane.b32.xlu0 %v17664_v13, %s13540_s28  ;;  %v4318_v63 = vld [vmem:[#allocation5 + $0x3bc0] sm:$0xff]  ;;  %v4347_v38 = vld [vmem:[#allocation5 + $0x3ca8] sm:$0xff]  ;;  %v4325_v53 = vld [vmem:[#allocation5 + $0x3bf8] sm:$0xff] }
 0x83d   :  { %1875 = vrot.lane.b32.xlu1 %v17666_v55, %s13540_s28  ;;  %13228 = vmatprep.subr.bf16.mxu1 %v13227_v1  ;;  %v13235_v50 = vpack.c.bf16 %v4319_v39, %v4318_v63  ;;  %v4302_v32 = vld [vmem:[#allocation5 + $0x3b40] sm:$0xff]  ;;  %v13253_v1 = vpack.c.bf16 %v4327_v41, %v4326_v5  ;;  %v4331_v63 = vld [vmem:[#allocation5 + $0x3c28] sm:$0xff]  ;;  %v4349_v5 = vld [vmem:[#allocation5 + $0x3cb8] sm:$0xff]  ;;  %v13243_v41 = vpack.c.bf16 %v4323_v19, %v4322_v56 }
 0x83e   :  { %v836_v25 = vpop.permute.xlu0 %835  ;;  %v2263_v59 = vadd.f32 %v13963_v28, %v2132_v17  ;;  %v4359_v56 = vld [vmem:[#allocation5 + $0x3d08] sm:$0xff] }
 0x83f   :  { %v843_v27 = vsel %vm841_vm1, %v836_v25, %v17682_v61  ;;  %v844_v10 = vsel %vm841_vm1, %v834_v33, %v836_v25  ;;  %v1101_v33 = vmul.f32 %v13716_v15, %v17481_v46  ;;  %v13237_v15 = vpack.c.bf16 %v4303_v57, %v4302_v32  ;;  %v4332_v32 = vld [vmem:[#allocation5 + $0x3c30] sm:$0xff]  ;;  %v4333_v57 = vld [vmem:[#allocation5 + $0x3c38] sm:$0xff] }
 0x840   :  { %v1491_v44 = vmul.f32 %v13735_v34, %v844_v10  ;;  %v1492_v51 = vmul.f32 %v13735_v34, %v843_v27  ;;  %13230 = vmatpush3.bf16.msra.mxu1 %v13229_v21  ;;  %v2393_v0 = vmax.f32 %v2263_v59, 0.0  ;;  %v13259_v25 = vpack.c.bf16 %v4347_v38, %v4346_v30  ;;  %v4330_v59 = vld [vmem:[#allocation5 + $0x3c20] sm:$0xff]  ;;  %v4335_v30 = vld [vmem:[#allocation5 + $0x3c48] sm:$0xff]  ;;  %v4353_v38 = vld [vmem:[#allocation5 + $0x3cd8] sm:$0xff] }
 0x841   :  { %13232 = vmatprep.subr.bf16.mxu1 %v13231_v7  ;;  %v13261_v11 = vpack.c.bf16 %v4331_v63, %v4330_v59  ;;  %v4336_v63 = vld [vmem:[#allocation5 + $0x3c50] sm:$0xff] }
 0x842   :  { %v17697_v31 = vadd.f32 %v1491_v44, %v1360_v45  ;;  %v17699_v42 = vadd.f32 %v1492_v51, %v1361_v23  ;;  %8617 = vmatprep.mubr.f32.mxu0 %v2393_v0  ;;  %v447_v47 = vpop.permute.xlu0 %446  ;;  %v4307_v23 = vld [vmem:[#allocation5 + $0x3b68] sm:$0xff]  ;;  %v4324_v0 = vld [vmem:[#allocation5 + $0x3bf0] sm:$0xff] }
 0x843   :  { %v451_v43 = vsel %vm450_vm0, %v17650_v40, %v447_v47  ;;  %v580_v46 = vsel %vm450_vm0, %v447_v47, %v13720_v20  ;;  %8618 = vmatmul.mubr.f32.vlgmr.msra.gmra.mrb[58].mxu0 %v2392_v60  ;;  %v13239_v20 = vpack.c.bf16 %v4321_v12, %v4320_v62  ;;  %v4304_v40 = vld [vmem:[#allocation5 + $0x3b50] sm:$0xff]  ;;  %v4350_v62 = vld [vmem:[#allocation5 + $0x3cc0] sm:$0xff]  ;;  %v4351_v12 = vld [vmem:[#allocation5 + $0x3cc8] sm:$0xff] }
 0x844   :  { %v1232_v54 = vmul.f32 %v13718_v16, %v451_v43  ;;  %v1233_v24 = vmul.f32 %v13718_v16, %v580_v46  ;;  %13234 = vmatpush3.bf16.msra.mxu1 %v13233_v35  ;;  %1877 = vrot.lane.b32.xlu0 %v17697_v31, %s13540_s28  ;;  %v13257_v16 = vpack.c.bf16 %v4329_v2, %v4328_v3  ;;  %v4348_v35 = vld [vmem:[#allocation5 + $0x3cb0] sm:$0xff]  ;;  %v4309_v46 = vld [vmem:[#allocation5 + $0x3b78] sm:$0xff]  ;;  %v4374_v3 = vld [vmem:[#allocation5 + $0x3d80] sm:$0xff] }
 0x845   :  { %1879 = vrot.lane.b32.xlu1 %v17699_v42, %s13540_s28  ;;  %13236 = vmatprep.subr.bf16.mxu1 %v13235_v50  ;;  %v13241_v10 = vpack.c.bf16 %v4305_v22, %v4304_v40  ;;  %v13263_v50 = vpack.c.bf16 %v4349_v5, %v4348_v35  ;;  %v4308_v43 = vld [vmem:[#allocation5 + $0x3b70] sm:$0xff]  ;;  %v4375_v2 = vld [vmem:[#allocation5 + $0x3d88] sm:$0xff] }
 0x846   :  { %v1362_v17 = vadd.f32 %v1232_v54, %v1101_v33  ;;  %v840_v21 = vpop.permute.xlu0 %839  ;;  %13254 = vmatpush3.bf16.msra.mxu0 %v13253_v1  ;;  %v1363_v39 = vadd.f32 %v1233_v24, %v1102_v8  ;;  %v13247_v8 = vpack.c.bf16 %v4325_v53, %v4324_v0  ;;  %v13267_v24 = vpack.c.bf16 %v4351_v12, %v4350_v62  ;;  %v4378_v0 = vld [vmem:[#allocation5 + $0x3da0] sm:$0xff]  ;;  %v4379_v53 = vld [vmem:[#allocation5 + $0x3da8] sm:$0xff] }
 0x847   :  { %v842_v18 = vsel %vm841_vm1, %v17682_v61, %v840_v21  ;;  %v971_v7 = vsel %vm841_vm1, %v840_v21, %v13748_v58  ;;  %13256 = vmatprep.subr.bf16.mxu0 %v13255_v36  ;;  %v4306_v61 = vld [vmem:[#allocation5 + $0x3b60] sm:$0xff]  ;;  %v13265_v36 = vpack.c.bf16 %v4333_v57, %v4332_v32  ;;  %v4356_v32 = vld [vmem:[#allocation5 + $0x3cf0] sm:$0xff]  ;;  %v4357_v57 = vld [vmem:[#allocation5 + $0x3cf8] sm:$0xff] }
 0x848   :  { %v1493_v45 = vmul.f32 %v13735_v34, %v842_v18  ;;  %v1494_v27 = vmul.f32 %v13735_v34, %v971_v7  ;;  %13238 = vmatpush3.bf16.msra.mxu1 %v13237_v15  ;;  %v13245_v47 = vpack.c.bf16 %v4307_v23, %v4306_v61  ;;  %v4334_v15 = vld [vmem:[#allocation5 + $0x3c40] sm:$0xff]  ;;  %v4376_v18 = vld [vmem:[#allocation5 + $0x3d90] sm:$0xff]  ;;  %v4377_v7 = vld [vmem:[#allocation5 + $0x3d98] sm:$0xff] }
 0x849   :  { %13240 = vmatprep.subr.bf16.mxu1 %v13239_v20  ;;  %v4358_v21 = vld [vmem:[#allocation5 + $0x3d00] sm:$0xff]  ;;  %v4360_v61 = vld [vmem:[#allocation5 + $0x3d10] sm:$0xff]  ;;  %v4361_v23 = vld [vmem:[#allocation5 + $0x3d18] sm:$0xff] }
 0x84a   :  { %v17723_v44 = vadd.f32 %v1493_v45, %v1362_v17  ;;  %v17725_v58 = vadd.f32 %v1494_v27, %v1363_v39  ;;  %v1864_v51 = vpop.permute.xlu1 %1863  ;;  %13258 = vmatpush3.bf16.msra.mxu0 %v13257_v16  ;;  %v13283_v17 = vpack.c.bf16 %v4375_v2, %v4374_v3  ;;  %v13269_v16 = vpack.c.bf16 %v4335_v30, %v4334_v15  ;;  %v4337_v39 = vld [vmem:[#allocation5 + $0x3c58] sm:$0xff]  ;;  %v4354_v45 = vld [vmem:[#allocation5 + $0x3ce0] sm:$0xff]  ;;  %v4355_v27 = vld [vmem:[#allocation5 + $0x3ce8] sm:$0xff] }
 0x84b   :  { %v1895_v34 = vsel %vm450_vm0, %v17668_v29, %v1864_v51  ;;  %v17730_v60 = vpop.permute.xlu0 %1865  ;;  %13260 = vmatprep.subr.bf16.mxu0 %v13259_v25  ;;  %v4363_v62 = vld [vmem:[#allocation5 + $0x3d28] sm:$0xff]  ;;  %v4365_v15 = vld [vmem:[#allocation5 + $0x3d38] sm:$0xff] }
 0x84c   :  { %v1894_v33 = vsel %vm450_vm0, %v1864_v51, %v17730_v60  ;;  %13242 = vmatpush3.bf16.msra.mxu1 %v13241_v10  ;;  %1883 = vrot.lane.b32.xlu1 %v17725_v58, %s13540_s28  ;;  %v2133_v1 = vmax.f32 %v17489_v6, %v1895_v34  ;;  %v13249_v6 = vpack.c.bf16 %v4309_v46, %v4308_v43  ;;  %v4338_v34 = vld [vmem:[#allocation5 + $0x3c60] sm:$0xff]  ;;  %v4340_v43 = vld [vmem:[#allocation5 + $0x3c70] sm:$0xff]  ;;  %v4341_v46 = vld [vmem:[#allocation5 + $0x3c78] sm:$0xff] }
 0x84d   :  { %v2134_v29 = vmax.f32 %v17553_v9, %v1894_v33  ;;  %1881 = vrot.lane.b32.xlu0 %v17723_v44, %s13540_s28  ;;  %13244 = vmatprep.subr.bf16.mxu1 %v13243_v41  ;;  %v4352_v9 = vld [vmem:[#allocation5 + $0x3cd0] sm:$0xff]  ;;  %v13285_v10 = vpack.c.bf16 %v4359_v56, %v4358_v21  ;;  %v13287_v41 = vpack.c.bf16 %v4377_v7, %v4376_v18  ;;  %v4407_v3 = vld [vmem:[#allocation5 + $0x3e88] sm:$0xff]  ;;  %v4385_v56 = vld [vmem:[#allocation5 + $0x3dd8] sm:$0xff] }
 0x84e   :  { %13262 = vmatpush3.bf16.msra.mxu0 %v13261_v11  ;;  %v2264_v20 = vadd.f32 %v13963_v28, %v2133_v1  ;;  %v13271_v59 = vpack.c.bf16 %v4353_v38, %v4352_v9  ;;  %v13273_v51 = vpack.c.bf16 %v4337_v39, %v4336_v63  ;;  %v13275_v11 = vpack.c.bf16 %v4355_v27, %v4354_v45  ;;  %v4380_v1 = vld [vmem:[#allocation5 + $0x3db0] sm:$0xff]  ;;  %v4383_v9 = vld [vmem:[#allocation5 + $0x3dc8] sm:$0xff]  ;;  %v4369_v7 = vld [vmem:[#allocation5 + $0x3d58] sm:$0xff] }
 0x84f   :  { %v2265_v54 = vadd.f32 %v13963_v28, %v2134_v29  ;;  %13264 = vmatprep.subr.bf16.mxu0 %v13263_v50  ;;  %v4339_v50 = vld [vmem:[#allocation5 + $0x3c68] sm:$0xff]  ;;  %v13289_v33 = vpack.c.bf16 %v4361_v23, %v4360_v61  ;;  %v4381_v29 = vld [vmem:[#allocation5 + $0x3db8] sm:$0xff]  ;;  %v13281_v30 = vpack.c.bf16 %v4341_v46, %v4340_v43  ;;  %v4384_v21 = vld [vmem:[#allocation5 + $0x3dd0] sm:$0xff] }
 0x850   :  { %13246 = vmatpush3.bf16.msra.mxu1 %v13245_v47  ;;  %v2394_v35 = vmax.f32 %v2264_v20, 0.0  ;;  %v4362_v47 = vld [vmem:[#allocation5 + $0x3d20] sm:$0xff]  ;;  %v13277_v12 = vpack.c.bf16 %v4339_v50, %v4338_v34  ;;  %v4368_v18 = vld [vmem:[#allocation5 + $0x3d50] sm:$0xff]  ;;  %v4387_v63 = vld [vmem:[#allocation5 + $0x3de8] sm:$0xff] }
 0x851   :  { %v10908_v40 = vpop.f32.mrb[52].mxu0  ;;  %13248 = vmatprep.subr.bf16.mxu1 %v13247_v8  ;;  %v2395_v22 = vmax.f32 %v2265_v54, 0.0  ;;  %v13279_v8 = vpack.c.bf16 %v4357_v57, %v4356_v32  ;;  %v13293_v2 = vpack.c.bf16 %v4363_v62, %v4362_v47  ;;  %v13295_v54 = vpack.c.bf16 %v4381_v29, %v4380_v1  ;;  %v4389_v61 = vld [vmem:[#allocation5 + $0x3df8] sm:$0xff]  ;;  %v4438_v50 = vld [vmem:[#allocation5 + $0x3f80] sm:$0xff]  ;;  %v4439_v32 = vld [vmem:[#allocation5 + $0x3f88] sm:$0xff] }
 0x852   :  { %v10909_v19 = vpop.f32.mrb[53].mxu0  ;;  %13266 = vmatpush3.bf16.msra.mxu0 %v13265_v36  ;;  %v4406_v36 = vld [vmem:[#allocation5 + $0x3e80] sm:$0xff]  ;;  %v13305_v39 = vpack.c.bf16 %v4369_v7, %v4368_v18  ;;  %v4373_v34 = vld [vmem:[#allocation5 + $0x3d78] sm:$0xff]  ;;  %v13347_v29 = vpack.c.bf16 %v4439_v32, %v4438_v50  ;;  %v4399_v7 = vld [vmem:[#allocation5 + $0x3e48] sm:$0xff] }
 0x853   :  { %8687 = vmatprep.mubr.f32.mxu1 %v2395_v22  ;;  %v10910_v25 = vadd.f32 %v10909_v19, %v10908_v40  ;;  %13268 = vmatprep.subr.bf16.mxu0 %v13267_v24  ;;  %v4364_v24 = vld [vmem:[#allocation5 + $0x3d30] sm:$0xff]  ;;  %v13315_v38 = vpack.c.bf16 %v4407_v3, %v4406_v36  ;;  %v4366_v22 = vld [vmem:[#allocation5 + $0x3d40] sm:$0xff]  ;;  %v4409_v1 = vld [vmem:[#allocation5 + $0x3e98] sm:$0xff] }
 0x854   :  { %13250 = vmatpush3.bf16.msra.mxu1 %v13249_v6  ;;  %v4382_v6 = vld [vmem:[#allocation5 + $0x3dc0] sm:$0xff]  ;;  %v13297_v20 = vpack.c.bf16 %v4365_v15, %v4364_v24  ;;  %v4392_v3 = vld [vmem:[#allocation5 + $0x3e10] sm:$0xff] }
 0x855   :  { %v17744_v5 = vadd.f32 %v10910_v25, %v17625_v48  ;;  %13284 = vmatprep.subr.bf16.mxu1 %v13283_v17  ;;  %v13291_v48 = vpack.c.bf16 %v4379_v53, %v4378_v0  ;;  %v13299_v40 = vpack.c.bf16 %v4383_v9, %v4382_v6  ;;  %v4367_v17 = vld [vmem:[#allocation5 + $0x3d48] sm:$0xff]  ;;  %v1868_v25 = vpop.permute.xlu1 %1867  ;;  %v4412_v9 = vld [vmem:[#allocation5 + $0x3eb0] sm:$0xff]  ;;  %v4398_v18 = vld [vmem:[#allocation5 + $0x3e40] sm:$0xff] }
 0x856   :  { %13270 = vmatpush3.bf16.msra.mxu0 %v13269_v16  ;;  %v13301_v19 = vpack.c.bf16 %v4367_v17, %v4366_v22  ;;  %v13303_v16 = vpack.c.bf16 %v4385_v56, %v4384_v21  ;;  %v1893_v45 = vsel %vm450_vm0, %v17730_v60, %v1868_v25  ;;  %v4395_v6 = vld [vmem:[#allocation5 + $0x3e28] sm:$0xff]  ;;  %v4396_v22 = vld [vmem:[#allocation5 + $0x3e30] sm:$0xff]  ;;  %v4397_v17 = vld [vmem:[#allocation5 + $0x3e38] sm:$0xff] }
 0x857   :  { %8688 = vmatmul.mubr.f32.vlgmr.msra.gmra.mrb[58].mxu1 %v2394_v35  ;;  %13272 = vmatprep.subr.bf16.mxu0 %v13271_v59  ;;  %v4386_v59 = vld [vmem:[#allocation5 + $0x3de0] sm:$0xff]  ;;  %v4371_v35 = vld [vmem:[#allocation5 + $0x3d68] sm:$0xff]  ;;  %v2135_v23 = vmax.f32 %v17557_v4, %v1893_v45  ;;  %v4400_v45 = vld [vmem:[#allocation5 + $0x3e50] sm:$0xff] }
 0x858   :  { %13286 = vmatpush3.bf16.msra.mxu1 %v13285_v10  ;;  %v13307_v27 = vpack.c.bf16 %v4387_v63, %v4386_v59  ;;  %v4370_v10 = vld [vmem:[#allocation5 + $0x3d60] sm:$0xff]  ;;  %v4391_v4 = vld [vmem:[#allocation5 + $0x3e08] sm:$0xff]  ;;  %v4417_v59 = vld [vmem:[#allocation5 + $0x3ed8] sm:$0xff]  ;;  %v13333_v63 = vpack.c.bf16 %v4399_v7, %v4398_v18 }
 0x859   :  { %13288 = vmatprep.subr.bf16.mxu1 %v13287_v41  ;;  %v4388_v41 = vld [vmem:[#allocation5 + $0x3df0] sm:$0xff]  ;;  %v4414_v21 = vld [vmem:[#allocation5 + $0x3ec0] sm:$0xff]  ;;  %v4415_v56 = vld [vmem:[#allocation5 + $0x3ec8] sm:$0xff] }
 0x85a   :  { %13274 = vmatpush3.bf16.msra.mxu0 %v13273_v51  ;;  %v13309_v51 = vpack.c.bf16 %v4371_v35, %v4370_v10  ;;  %v13311_v53 = vpack.c.bf16 %v4389_v61, %v4388_v41  ;;  %v4418_v10 = vld [vmem:[#allocation5 + $0x3ee0] sm:$0xff]  ;;  %v4419_v35 = vld [vmem:[#allocation5 + $0x3ee8] sm:$0xff]  ;;  %v4424_v7 = vld [vmem:[#allocation5 + $0x3f10] sm:$0xff] }
 0x85b   :  { %13276 = vmatprep.subr.bf16.mxu0 %v13275_v11  ;;  %v4372_v11 = vld [vmem:[#allocation5 + $0x3d70] sm:$0xff]  ;;  %v13339_v61 = vpack.c.bf16 %v4419_v35, %v4418_v10  ;;  %v4426_v10 = vld [vmem:[#allocation5 + $0x3f20] sm:$0xff]  ;;  %v4427_v35 = vld [vmem:[#allocation5 + $0x3f28] sm:$0xff] }
 0x85c   :  { %13290 = vmatpush3.bf16.msra.mxu1 %v13289_v33  ;;  %v2266_v33 = vadd.f32 %v13963_v28, %v2135_v23  ;;  %v13313_v47 = vpack.c.bf16 %v4373_v34, %v4372_v11  ;;  %v4402_v23 = vld [vmem:[#allocation5 + $0x3e60] sm:$0xff]  ;;  %v4421_v11 = vld [vmem:[#allocation5 + $0x3ef8] sm:$0xff] }
 0x85d   :  { %13292 = vmatprep.subr.bf16.mxu1 %v13291_v48  ;;  %v4390_v48 = vld [vmem:[#allocation5 + $0x3e00] sm:$0xff] }
 0x85e   :  { %13278 = vmatpush3.bf16.msra.mxu0 %v13277_v12  ;;  %v4408_v12 = vld [vmem:[#allocation5 + $0x3e90] sm:$0xff]  ;;  %v13317_v43 = vpack.c.bf16 %v4391_v4, %v4390_v48  ;;  %v2396_v46 = vmax.f32 %v2266_v33, 0.0  ;;  %v4405_v48 = vld [vmem:[#allocation5 + $0x3e78] sm:$0xff]  ;;  %v4470_v4 = vld [vmem:[#allocation5 + $0x4080] sm:$0xff] }
 0x85f   :  { %13280 = vmatprep.subr.bf16.mxu0 %v13279_v8  ;;  %v13319_v36 = vpack.c.bf16 %v4409_v1, %v4408_v12  ;;  %v4404_v33 = vld [vmem:[#allocation5 + $0x3e70] sm:$0xff] }
 0x860   :  { %13294 = vmatpush3.bf16.msra.mxu1 %v13293_v2  ;;  %v4393_v2 = vld [vmem:[#allocation5 + $0x3e18] sm:$0xff]  ;;  %v13345_v12 = vpack.c.bf16 %v4405_v48, %v4404_v33  ;;  %v4428_v33 = vld [vmem:[#allocation5 + $0x3f30] sm:$0xff] }
 0x861   :  { %13296 = vmatprep.subr.bf16.mxu1 %v13295_v54  ;;  %v4411_v54 = vld [vmem:[#allocation5 + $0x3ea8] sm:$0xff]  ;;  %v13321_v24 = vpack.c.bf16 %v4393_v2, %v4392_v3  ;;  %v4429_v48 = vld [vmem:[#allocation5 + $0x3f38] sm:$0xff] }
 0x862   :  { %13282 = vmatpush3.bf16.msra.mxu0 %v13281_v30  ;;  %v4394_v30 = vld [vmem:[#allocation5 + $0x3e20] sm:$0xff] }
 0x863   :  { %13316 = vmatprep.subr.bf16.mxu0 %v13315_v38  ;;  %v4413_v38 = vld [vmem:[#allocation5 + $0x3eb8] sm:$0xff] }
 0x864   :  { %13298 = vmatpush3.bf16.msra.mxu1 %v13297_v20  ;;  %v13325_v20 = vpack.c.bf16 %v4395_v6, %v4394_v30 }
 0x865   :  { %13300 = vmatprep.subr.bf16.mxu1 %v13299_v40  ;;  %v13327_v40 = vpack.c.bf16 %v4413_v38, %v4412_v9 }
 0x868   :  { %13302 = vmatpush3.bf16.msra.mxu1 %v13301_v19  ;;  %v13329_v19 = vpack.c.bf16 %v4397_v17, %v4396_v22  ;;  %v4440_v17 = vld [vmem:[#allocation5 + $0x3f90] sm:$0xff] }
 0x869   :  { %13304 = vmatprep.subr.bf16.mxu1 %v13303_v16  ;;  %v13331_v16 = vpack.c.bf16 %v4415_v56, %v4414_v21 }
 0x86c   :  { %13306 = vmatpush3.bf16.msra.mxu1 %v13305_v39 }
 0x86d   :  { %v17750_v0 = vpop.permute.xlu0 %1869  ;;  %13308 = vmatprep.subr.bf16.mxu1 %v13307_v27  ;;  %v4401_v27 = vld [vmem:[#allocation5 + $0x3e58] sm:$0xff] }
 0x86e   :  { %v1892_v60 = vsel %vm450_vm0, %v1868_v25, %v17750_v0  ;;  %v4416_v25 = vld [vmem:[#allocation5 + $0x3ed0] sm:$0xff]  ;;  %v13337_v41 = vpack.c.bf16 %v4401_v27, %v4400_v45 }
 0x86f   :  { %v2136_v57 = vmax.f32 %v17572_v37, %v1892_v60  ;;  %v4410_v37 = vld [vmem:[#allocation5 + $0x3ea0] sm:$0xff]  ;;  %v13335_v39 = vpack.c.bf16 %v4417_v59, %v4416_v25  ;;  %v4425_v25 = vld [vmem:[#allocation5 + $0x3f18] sm:$0xff] }
 0x870   :  { %13310 = vmatpush3.bf16.msra.mxu1 %v13309_v51  ;;  %v13323_v15 = vpack.c.bf16 %v4411_v54, %v4410_v37  ;;  %v4403_v51 = vld [vmem:[#allocation5 + $0x3e68] sm:$0xff]  ;;  %v4442_v59 = vld [vmem:[#allocation5 + $0x3fa0] sm:$0xff]  ;;  %v13353_v27 = vpack.c.bf16 %v4425_v25, %v4424_v7 }
 0x871   :  { %v2267_v62 = vadd.f32 %v13963_v28, %v2136_v57  ;;  %13312 = vmatprep.subr.bf16.mxu1 %v13311_v53  ;;  %v4420_v53 = vld [vmem:[#allocation5 + $0x3ef0] sm:$0xff]  ;;  %v13341_v50 = vpack.c.bf16 %v4403_v51, %v4402_v23  ;;  %v4455_v23 = vld [vmem:[#allocation5 + $0x4008] sm:$0xff] }
 0x872   :  { %v13343_v57 = vpack.c.bf16 %v4421_v11, %v4420_v53  ;;  %v4444_v51 = vld [vmem:[#allocation5 + $0x3fb0] sm:$0xff] }
 0x873   :  { %v2397_v8 = vmax.f32 %v2267_v62, 0.0 }
 0x874   :  { %13314 = vmatpush3.bf16.msra.mxu1 %v13313_v47  ;;  %v4471_v47 = vld [vmem:[#allocation5 + $0x4088] sm:$0xff] }
 0x875   :  { %8757 = vmatprep.mubr.f32.mxu0 %v2397_v8  ;;  %13348 = vmatprep.subr.bf16.mxu1 %v13347_v29  ;;  %v13379_v1 = vpack.c.bf16 %v4471_v47, %v4470_v4 }
 0x876   :  { %8758 = vmatmul.mubr.f32.vlgmr.msra.gmra.mrb[60].mxu0 %v2396_v46 }
 0x877   :  { %13318 = vmatpush3.bf16.msra.mxu0 %v13317_v43 }
 0x878   :  { %13320 = vmatprep.subr.bf16.mxu0 %v13319_v36 }
 0x87b   :  { %13322 = vmatpush3.bf16.msra.mxu0 %v13321_v24 }
 0x87c   :  { %13324 = vmatprep.subr.bf16.mxu0 %v13323_v15 }
 0x87f   :  { %13326 = vmatpush3.bf16.msra.mxu0 %v13325_v20  ;;  %v4422_v20 = vld [vmem:[#allocation5 + $0x3f00] sm:$0xff] }
 0x880   :  { %13328 = vmatprep.subr.bf16.mxu0 %v13327_v40  ;;  %v4423_v40 = vld [vmem:[#allocation5 + $0x3f08] sm:$0xff] }
 0x881   :  { %v13349_v56 = vpack.c.bf16 %v4423_v40, %v4422_v20  ;;  %v4458_v20 = vld [vmem:[#allocation5 + $0x4020] sm:$0xff]  ;;  %v4459_v40 = vld [vmem:[#allocation5 + $0x4028] sm:$0xff] }
 0x883   :  { %13330 = vmatpush3.bf16.msra.mxu0 %v13329_v19 }
 0x884   :  { %13332 = vmatprep.subr.bf16.mxu0 %v13331_v16 }
 0x887   :  { %13334 = vmatpush3.bf16.msra.mxu0 %v13333_v63  ;;  %v4443_v63 = vld [vmem:[#allocation5 + $0x3fa8] sm:$0xff] }
 0x888   :  { %13336 = vmatprep.subr.bf16.mxu0 %v13335_v39 }
 0x88a   :  { %v10943_v34 = vpop.f32.mrb[52].mxu1 }
 0x88b   :  { %v10944_v60 = vpop.f32.mrb[53].mxu1  ;;  %13338 = vmatpush3.bf16.msra.mxu0 %v13337_v41  ;;  %v13355_v41 = vpack.c.bf16 %v4443_v63, %v4442_v59  ;;  %v4460_v63 = vld [vmem:[#allocation5 + $0x4030] sm:$0xff] }
 0x88c   :  { %v10945_v32 = vadd.f32 %v10944_v60, %v10943_v34  ;;  %13340 = vmatprep.subr.bf16.mxu0 %v13339_v61  ;;  %v4454_v61 = vld [vmem:[#allocation5 + $0x4000] sm:$0xff]  ;;  %v4445_v34 = vld [vmem:[#allocation5 + $0x3fb8] sm:$0xff]  ;;  %v4472_v60 = vld [vmem:[#allocation5 + $0x4090] sm:$0xff] }
 0x88d   :  { %v13359_v47 = vpack.c.bf16 %v4445_v34, %v4444_v51  ;;  %v4462_v34 = vld [vmem:[#allocation5 + $0x4040] sm:$0xff] }
 0x88e   :  { %v8270_v62 = vadd.f32 %v10945_v32, %v17744_v5  ;;  %v13357_v32 = vpack.c.bf16 %v4427_v35, %v4426_v10  ;;  %v4478_v10 = vld [vmem:[#allocation5 + $0x40c0] sm:$0xff]  ;;  %v4479_v35 = vld [vmem:[#allocation5 + $0x40c8] sm:$0xff] }
 0x88f   :  { %13342 = vmatpush3.bf16.msra.mxu0 %v13341_v50  ;;  %v4473_v50 = vld [vmem:[#allocation5 + $0x4098] sm:$0xff] }
 0x890   :  { %13344 = vmatprep.subr.bf16.mxu0 %v13343_v57  ;;  %v13381_v57 = vpack.c.bf16 %v4455_v23, %v4454_v61  ;;  %v4434_v61 = vld [vmem:[#allocation5 + $0x3f60] sm:$0xff]  ;;  %v4435_v23 = vld [vmem:[#allocation5 + $0x3f68] sm:$0xff] }
 0x893   :  { %13346 = vmatpush3.bf16.msra.mxu0 %v13345_v12  ;;  %v4456_v12 = vld [vmem:[#allocation5 + $0x4010] sm:$0xff] }
 0x894   :  { %13380 = vmatprep.subr.bf16.mxu0 %v13379_v1  ;;  %v4457_v1 = vld [vmem:[#allocation5 + $0x4018] sm:$0xff] }
 0x896   :  { %v10978_v29 = vpop.f32.mrb[54].mxu0 }
 0x897   :  { %v10979_v8 = vpop.f32.mrb[55].mxu0 }
 0x898   :  { %v10980_v43 = vadd.f32 %v10979_v8, %v10978_v29  ;;  %v4446_v29 = vld [vmem:[#allocation5 + $0x3fc0] sm:$0xff] }
 0x89a   :  { %v8340_v46 = vadd.f32 %v10980_v43, %v8270_v62  ;;  %v13383_v62 = vpack.c.bf16 %v4473_v50, %v4472_v60  ;;  %v4447_v43 = vld [vmem:[#allocation5 + $0x3fc8] sm:$0xff]  ;;  %v4452_v50 = vld [vmem:[#allocation5 + $0x3ff0] sm:$0xff] }
 0x89b   :  { %v4463_v60 = vld [vmem:[#allocation5 + $0x4048] sm:$0xff] }
 0x8a2   :  { %v1872_v36 = vpop.permute.xlu1 %1871 }
 0x8a3   :  { %v1891_v3 = vsel %vm450_vm0, %v17750_v0, %v1872_v36 }
 0x8a4   :  { %v2137_v5 = vmax.f32 %v17604_v52, %v1891_v3  ;;  %v4441_v52 = vld [vmem:[#allocation5 + $0x3f98] sm:$0xff] }
 0x8a5   :  { %v13351_v18 = vpack.c.bf16 %v4441_v52, %v4440_v17  ;;  %v4476_v17 = vld [vmem:[#allocation5 + $0x40b0] sm:$0xff]  ;;  %v4477_v52 = vld [vmem:[#allocation5 + $0x40b8] sm:$0xff] }
 0x8a6   :  { %v2268_v38 = vadd.f32 %v13963_v28, %v2137_v5  ;;  %v13391_v59 = vpack.c.bf16 %v4477_v52, %v4476_v17  ;;  %v4469_v17 = vld [vmem:[#allocation5 + $0x4078] sm:$0xff] }
 0x8a8   :  { %v2398_v19 = vmax.f32 %v2268_v38, 0.0 }
 0x8aa   :  { %v11013_v2 = vpop.f32.mrb[54].mxu1 }
 0x8ab   :  { %v11014_v37 = vpop.f32.mrb[55].mxu1 }
 0x8ac   :  { %v11015_v54 = vadd.f32 %v11014_v37, %v11013_v2  ;;  %v13361_v37 = vpack.c.bf16 %v4429_v48, %v4428_v33  ;;  %v4481_v33 = vld [vmem:[#allocation5 + $0x40d8] sm:$0xff]  ;;  %v13373_v48 = vpack.c.bf16 %v4435_v23, %v4434_v61 }
 0x8ae   :  { %v17763_v24 = vadd.f32 %v11015_v54, %v8340_v46  ;;  %v1874_v15 = vpop.permute.xlu0 %1873  ;;  %v4474_v46 = vld [vmem:[#allocation5 + $0x40a0] sm:$0xff] }
 0x8af   :  { %v1876_v30 = vpop.permute.xlu1 %1875  ;;  %v1890_v6 = vsel %vm450_vm0, %v1872_v36, %v1874_v15  ;;  %v4475_v36 = vld [vmem:[#allocation5 + $0x40a8] sm:$0xff] }
 0x8b0   :  { %v2138_v9 = vmax.f32 %v17627_v14, %v1890_v6  ;;  %v1889_v0 = vsel %vm450_vm0, %v1874_v15, %v1876_v30  ;;  %v13385_v15 = vpack.c.bf16 %v4457_v1, %v4456_v12  ;;  %v4431_v6 = vld [vmem:[#allocation5 + $0x3f48] sm:$0xff]  ;;  %v13387_v38 = vpack.c.bf16 %v4475_v36, %v4474_v46  ;;  %v4464_v46 = vld [vmem:[#allocation5 + $0x4050] sm:$0xff]  ;;  %v4465_v36 = vld [vmem:[#allocation5 + $0x4058] sm:$0xff] }
 0x8b1   :  { %v2139_v16 = vmax.f32 %v17664_v13, %v1889_v0  ;;  %v4448_v0 = vld [vmem:[#allocation5 + $0x3fd0] sm:$0xff] }
 0x8b2   :  { %v2269_v22 = vadd.f32 %v13963_v28, %v2138_v9 }
 0x8b3   :  { %v2270_v13 = vadd.f32 %v13963_v28, %v2139_v16  ;;  %v13389_v16 = vpack.c.bf16 %v4459_v40, %v4458_v20  ;;  %v4485_v20 = vld [vmem:[#allocation5 + $0x40f8] sm:$0xff] }
 0x8b4   :  { %v2399_v21 = vmax.f32 %v2269_v22, 0.0  ;;  %v4449_v22 = vld [vmem:[#allocation5 + $0x3fd8] sm:$0xff] }
 0x8b5   :  { %v2400_v4 = vmax.f32 %v2270_v13, 0.0  ;;  %v13367_v25 = vpack.c.bf16 %v4449_v22, %v4448_v0  ;;  %v4468_v22 = vld [vmem:[#allocation5 + $0x4070] sm:$0xff] }
 0x8b6   :  { %8827 = vmatprep.mubr.f32.mxu1 %v2399_v21  ;;  %v17773_v14 = vpop.permute.xlu0 %1877  ;;  %v13409_v52 = vpack.c.bf16 %v4469_v17, %v4468_v22 }
 0x8b7   :  { %v1888_v39 = vsel %vm450_vm0, %v1876_v30, %v17773_v14  ;;  %8828 = vmatmul.mubr.f32.vlgmr.msra.gmra.mrb[60].mxu1 %v2398_v19  ;;  %v17780_v53 = vpop.permute.xlu1 %1879  ;;  %v4430_v30 = vld [vmem:[#allocation5 + $0x3f40] sm:$0xff] }
 0x8b8   :  { %v2140_v45 = vmax.f32 %v17666_v55, %v1888_v39  ;;  %13350 = vmatpush3.bf16.msra.mxu1 %v13349_v56  ;;  %v13365_v19 = vpack.c.bf16 %v4431_v6, %v4430_v30  ;;  %v4461_v39 = vld [vmem:[#allocation5 + $0x4038] sm:$0xff]  ;;  %v4466_v6 = vld [vmem:[#allocation5 + $0x4060] sm:$0xff] }
 0x8b9   :  { %13352 = vmatprep.subr.bf16.mxu1 %v13351_v18  ;;  %v4433_v18 = vld [vmem:[#allocation5 + $0x3f58] sm:$0xff] }
 0x8ba   :  { %v2271_v11 = vadd.f32 %v13963_v28, %v2140_v45  ;;  %v4450_v45 = vld [vmem:[#allocation5 + $0x3fe0] sm:$0xff] }
 0x8bc   :  { %13354 = vmatpush3.bf16.msra.mxu1 %v13353_v27  ;;  %v2401_v55 = vmax.f32 %v2271_v11, 0.0  ;;  %v4451_v27 = vld [vmem:[#allocation5 + $0x3fe8] sm:$0xff]  ;;  %v13395_v11 = vpack.c.bf16 %v4479_v35, %v4478_v10 }
 0x8bd   :  { %13356 = vmatprep.subr.bf16.mxu1 %v13355_v41  ;;  %v13393_v41 = vpack.c.bf16 %v4461_v39, %v4460_v63  ;;  %v13371_v51 = vpack.c.bf16 %v4451_v27, %v4450_v45 }
 0x8be   :  { %v17783_v8 = vpop.permute.xlu1 %1883  ;;  %8897 = vmatprep.mubr.f32.mxu0 %v2401_v55  ;;  %v1887_v55 = vsel %vm450_vm0, %v17773_v14, %v17780_v53  ;;  %v4482_v14 = vld [vmem:[#allocation5 + $0x40e0] sm:$0xff] }
 0x8bf   :  { %v2014_v3 = vsel %vm450_vm0, %v17783_v8, %v13955_v26  ;;  %v17789_v2 = vpop.permute.xlu0 %1881  ;;  %8898 = vmatmul.mubr.f32.vlgmr.msra.gmra.mrb[62].mxu0 %v2400_v4  ;;  %v13363_v26 = vpack.c.bf16 %v4447_v43, %v4446_v29  ;;  %v13397_v4 = vpack.c.bf16 %v4463_v60, %v4462_v34  ;;  %v4437_v43 = vld [vmem:[#allocation5 + $0x3f78] sm:$0xff] }
 0x8c0   :  { %v2144_v54 = vmax.f32 %v17725_v58, %v2014_v3  ;;  %v1886_v5 = vsel %vm450_vm0, %v17780_v53, %v17789_v2  ;;  %13358 = vmatpush3.bf16.msra.mxu1 %v13357_v32  ;;  %13382 = vmatpush3.bf16.msra.mxu0 %v13381_v57  ;;  %v4453_v32 = vld [vmem:[#allocation5 + $0x3ff8] sm:$0xff]  ;;  %v4480_v57 = vld [vmem:[#allocation5 + $0x40d0] sm:$0xff]  ;;  %v4483_v53 = vld [vmem:[#allocation5 + $0x40e8] sm:$0xff] }
 0x8c1   :  { %v2142_v9 = vmax.f32 %v17699_v42, %v1886_v5  ;;  %13360 = vmatprep.subr.bf16.mxu1 %v13359_v47  ;;  %13384 = vmatprep.subr.bf16.mxu0 %v13383_v62  ;;  %v4432_v42 = vld [vmem:[#allocation5 + $0x3f50] sm:$0xff]  ;;  %v2141_v62 = vmax.f32 %v17697_v31, %v1887_v55  ;;  %v13375_v1 = vpack.c.bf16 %v4453_v32, %v4452_v50 }
 0x8c2   :  { %v2275_v58 = vadd.f32 %v13963_v28, %v2144_v54  ;;  %v13369_v13 = vpack.c.bf16 %v4433_v18, %v4432_v42  ;;  %v4436_v47 = vld [vmem:[#allocation5 + $0x3f70] sm:$0xff]  ;;  %v13399_v29 = vpack.c.bf16 %v4481_v33, %v4480_v57  ;;  %v13401_v5 = vpack.c.bf16 %v4465_v36, %v4464_v46 }
 0x8c3   :  { %v2273_v21 = vadd.f32 %v13963_v28, %v2142_v9  ;;  %v13377_v54 = vpack.c.bf16 %v4437_v43, %v4436_v47  ;;  %v13403_v30 = vpack.c.bf16 %v4483_v53, %v4482_v14  ;;  %v4467_v9 = vld [vmem:[#allocation5 + $0x4068] sm:$0xff] }
 0x8c4   :  { %13362 = vmatpush3.bf16.msra.mxu1 %v13361_v37  ;;  %13386 = vmatpush3.bf16.msra.mxu0 %v13385_v15  ;;  %v2405_v56 = vmax.f32 %v2275_v58, 0.0  ;;  %v2272_v15 = vadd.f32 %v13963_v28, %v2141_v62  ;;  %v13405_v40 = vpack.c.bf16 %v4467_v9, %v4466_v6 }
 0x8c5   :  { %13364 = vmatprep.subr.bf16.mxu1 %v13363_v26  ;;  %v2403_v7 = vmax.f32 %v2273_v21, 0.0  ;;  %13388 = vmatprep.subr.bf16.mxu0 %v13387_v38  ;;  %v1885_v26 = vsel %vm450_vm0, %v17789_v2, %v17783_v8  ;;  %v4484_v38 = vld [vmem:[#allocation5 + $0x40f0] sm:$0xff] }
 0x8c6   :  { %9037 = vmatprep.mubr.f32.mxu0 %v2405_v56  ;;  %v2402_v0 = vmax.f32 %v2272_v15, 0.0  ;;  %v2143_v58 = vmax.f32 %v17723_v44, %v1885_v26 }
 0x8c7   :  { %8967 = vmatprep.mubr.f32.mxu1 %v2403_v7 }
 0x8c8   :  { %13366 = vmatpush3.bf16.msra.mxu1 %v13365_v19  ;;  %13390 = vmatpush3.bf16.msra.mxu0 %v13389_v16  ;;  %v2274_v21 = vadd.f32 %v13963_v28, %v2143_v58 }
 0x8c9   :  { %13368 = vmatprep.subr.bf16.mxu1 %v13367_v25  ;;  %13392 = vmatprep.subr.bf16.mxu0 %v13391_v59 }
 0x8ca   :  { %v2404_v49 = vmax.f32 %v2274_v21, 0.0 }
 0x8cc   :  { %13370 = vmatpush3.bf16.msra.mxu1 %v13369_v13  ;;  %13394 = vmatpush3.bf16.msra.mxu0 %v13393_v41 }
 0x8cd   :  { %v11048_v12 = vpop.f32.mrb[56].mxu0  ;;  %13372 = vmatprep.subr.bf16.mxu1 %v13371_v51  ;;  %13396 = vmatprep.subr.bf16.mxu0 %v13395_v11 }
 0x8ce   :  { %v11049_v3 = vpop.f32.mrb[57].mxu0 }
 0x8cf   :  { %v11050_v37 = vadd.f32 %v11049_v3, %v11048_v12 }
 0x8d0   :  { %13374 = vmatpush3.bf16.msra.mxu1 %v13373_v48  ;;  %13398 = vmatpush3.bf16.msra.mxu0 %v13397_v4 }
 0x8d1   :  { %v8480_v31 = vadd.f32 %v11050_v37, %v17763_v24  ;;  %13376 = vmatprep.subr.bf16.mxu1 %v13375_v1  ;;  %13400 = vmatprep.subr.bf16.mxu0 %v13399_v29  ;;  %v13407_v24 = vpack.c.bf16 %v4485_v20, %v4484_v38 }
 0x8d4   :  { %13378 = vmatpush3.bf16.msra.mxu1 %v13377_v54  ;;  %13402 = vmatpush3.bf16.msra.mxu0 %v13401_v5 }
 0x8d5   :  { %13404 = vmatprep.subr.bf16.mxu0 %v13403_v30 }
 0x8d7   :  { %8968 = vmatmul.mubr.f32.vlgmr.msra.gmra.mrb[62].mxu1 %v2402_v0 }
 0x8d8   :  { %13406 = vmatpush3.bf16.msra.mxu0 %v13405_v40 }
 0x8d9   :  { %13408 = vmatprep.subr.bf16.mxu0 %v13407_v24 }
 0x8dc   :  { %13410 = vmatpush3.bf16.msra.mxu0 %v13409_v52 }
 0x8df   :  { %9038 = vmatmul.mubr.f32.vlgmr.msra.gmra.mrb[64].mxu0 %v2404_v49 }
 0x90a   :  { %v11083_v8 = vpop.f32.mrb[56].mxu1 }
 0x90b   :  { %v11084_v2 = vpop.f32.mrb[57].mxu1 }
 0x90c   :  { %v11085_v56 = vadd.f32 %v11084_v2, %v11083_v8 }
 0x90e   :  { %v8550_v19 = vadd.f32 %v11085_v56, %v8480_v31 }
 0x916   :  { %v11118_v16 = vpop.f32.mrb[58].mxu0 }
 0x917   :  { %v11119_v42 = vpop.f32.mrb[59].mxu0 }
 0x918   :  { %v11120_v44 = vadd.f32 %v11119_v42, %v11118_v16 }
 0x91a   :  { %v8620_v18 = vadd.f32 %v11120_v44, %v8550_v19 }
 0x92a   :  { %v11153_v7 = vpop.f32.mrb[58].mxu1 }
 0x92b   :  { %v11154_v25 = vpop.f32.mrb[59].mxu1 }
 0x92c   :  { %v11155_v59 = vadd.f32 %v11154_v25, %v11153_v7 }
 0x92e   :  { %v8690_v63 = vadd.f32 %v11155_v59, %v8620_v18 }
 0x949   :  { %v11188_v39 = vpop.f32.mrb[60].mxu0 }
 0x94a   :  { %v11189_v45 = vpop.f32.mrb[61].mxu0 }
 0x94b   :  { %v11190_v27 = vadd.f32 %v11189_v45, %v11188_v39 }
 0x94d   :  { %v8760_v28 = vadd.f32 %v11190_v27, %v8690_v63 }
 0x98a   :  { %v11223_v10 = vpop.f32.mrb[60].mxu1 }
 0x98b   :  { %v11224_v35 = vpop.f32.mrb[61].mxu1 }
 0x98c   :  { %v11225_v13 = vadd.f32 %v11224_v35, %v11223_v10 }
 0x98e   :  { %v8830_v41 = vadd.f32 %v11225_v13, %v8760_v28 }
 0x992   :  { %v11258_v61 = vpop.f32.mrb[62].mxu0 }
 0x993   :  { %v11259_v23 = vpop.f32.mrb[63].mxu0 }
 0x994   :  { %v11260_v51 = vadd.f32 %v11259_v23, %v11258_v61 }
 0x996   :  { %v8900_v11 = vadd.f32 %v11260_v51, %v8830_v41 }
 0x9aa   :  { %v11293_v34 = vpop.f32.mrb[62].mxu1 }
 0x9ab   :  { %v11294_v60 = vpop.f32.mrb[63].mxu1 }
 0x9ac   :  { %v11295_v50 = vadd.f32 %v11294_v60, %v11293_v34 }
 0x9ae   :  { %v8970_v55 = vadd.f32 %v11295_v50, %v8900_v11 }
 0x9b2   :  { %v11328_v32 = vpop.f32.mrb[64].mxu0 }
 0x9b3   :  { %v11329_v57 = vpop.f32.mrb[65].mxu0 }
 0x9b4   :  { %v11330_v33 = vadd.f32 %v11329_v57, %v11328_v32 }
 0x9b6   :  { %v9040_v48 = vadd.f32 %v11330_v33, %v8970_v55 }
 0x9b8   :  { %9044 = vst.msk [vmem:[%s17819_s4] sm:$0xff] %vm9043_vm2, %v9040_v48 }
 0x9b9   :  { %9049 = vsyncpa [#allocation3], 1 }
 0x9ba   :  { %9050 = vsyncpa [#allocation7], 1 }
 0x9bb   :  { %9051 = vsyncpa [#allocation4], 1 }

</bundles_post_ra>
